<compile_context>
chip_gen: v7x
topology: tpu7x:2x2x1
jax: 0.10.0
libtpu: 0.0.40
codegen_flags: <defaults>
</compile_context>

<pallas_src>
import math
from functools import partial

import jax
import jax.numpy as jnp
from jax.experimental import pallas as pl
from jax.experimental.pallas import tpu as pltpu


# ----------------------------------------------------------------------------
# The single fused Pallas kernel
# ----------------------------------------------------------------------------

def _fused_transformer_kernel(
    # activations / mask
    src_ref, tgt_ref, mask_ref,
    # encoder layer weights (stacked over layers)
    e_wqkv, e_bqkv, e_wo, e_bo, e_n1g, e_n1b,
    e_w1, e_b1, e_w2, e_b2, e_n2g, e_n2b,
    # decoder layer weights (stacked over layers)
    d_wqkv, d_bqkv, d_wo1, d_bo1, d_n1g, d_n1b,
    d_wq, d_bq, d_wkv, d_bkv, d_wo2, d_bo2, d_n2g, d_n2b,
    d_w1, d_b1, d_w2, d_b2, d_n3g, d_n3b,
    # final norms + (lane-padded) output projection
    enc_ng, enc_nb, dec_ng, dec_nb, fc_w, fc_b,
    # output
    out_ref,
    # scratch
    attn_ref,
    *, B, Ss, St, D, H, n_enc, n_dec,
):
    Dh = D // H
    scale = 1.0 / math.sqrt(Dh)

    def layer_norm(x, g, b):
        mu = jnp.mean(x, axis=-1, keepdims=True)
        var = jnp.mean((x - mu) ** 2, axis=-1, keepdims=True)
        return (x - mu) * jax.lax.rsqrt(var + 1e-5) * g + b

    def matmul_bias(x, w, b):
        return jnp.dot(x, w, preferred_element_type=jnp.float32) + b

    def attention(q2d, k2d, v2d, Sq, Sk, mask):
        # q2d: (B*Sq, D); k2d, v2d: (B*Sk, D).  All (batch, head) pairs are
        # unrolled statically; everything stays in VMEM; output is assembled
        # in the attn_ref scratch and read back as one (B*Sq, D) value.
        for b in range(B):
            for h in range(H):
                qs = q2d[b * Sq:(b + 1) * Sq, h * Dh:(h + 1) * Dh]
                ks = k2d[b * Sk:(b + 1) * Sk, h * Dh:(h + 1) * Dh]
                vs = v2d[b * Sk:(b + 1) * Sk, h * Dh:(h + 1) * Dh]
                s = jnp.dot(qs, ks.T, preferred_element_type=jnp.float32) * scale
                if mask is not None:
                    s = s + mask
                m = jnp.max(s, axis=-1, keepdims=True)
                p = jnp.exp(s - m)
                denom = jnp.sum(p, axis=-1, keepdims=True)
                p = p * pl.reciprocal(denom, approx=True)
                o = jnp.dot(p, vs, preferred_element_type=jnp.float32)
                attn_ref[b * Sq:(b + 1) * Sq, h * Dh:(h + 1) * Dh] = o
        return attn_ref[0:B * Sq, :]

    # -------------------------- encoder --------------------------
    x = src_ref[...]                                       # (B*Ss, D)
    for l in range(n_enc):
        qkv = matmul_bias(x, e_wqkv[l], e_bqkv[l])         # fused QKV, (B*Ss, 3D)
        q, k, v = qkv[:, 0:D], qkv[:, D:2 * D], qkv[:, 2 * D:3 * D]
        a = attention(q, k, v, Ss, Ss, None)
        a = matmul_bias(a, e_wo[l], e_bo[l])
        x = layer_norm(x + a, e_n1g[l], e_n1b[l])
        hdn = jnp.maximum(matmul_bias(x, e_w1[l], e_b1[l]), 0.0)
        f = matmul_bias(hdn, e_w2[l], e_b2[l])
        x = layer_norm(x + f, e_n2g[l], e_n2b[l])
    memory = layer_norm(x, enc_ng[...], enc_nb[...])       # (B*Ss, D)

    # -------------------------- decoder --------------------------
    mask = mask_ref[...]                                   # (St, St) causal (-inf above diag)
    y = tgt_ref[...]                                       # (B*St, D)
    for l in range(n_dec):
        # masked self-attention (fused QKV)
        qkv = matmul_bias(y, d_wqkv[l], d_bqkv[l])
        q, k, v = qkv[:, 0:D], qkv[:, D:2 * D], qkv[:, 2 * D:3 * D]
        a = attention(q, k, v, St, St, mask)
        a = matmul_bias(a, d_wo1[l], d_bo1[l])
        y = layer_norm(y + a, d_n1g[l], d_n1b[l])
        # cross-attention (fused KV from encoder memory)
        q = matmul_bias(y, d_wq[l], d_bq[l])
        kv = matmul_bias(memory, d_wkv[l], d_bkv[l])       # (B*Ss, 2D)
        k, v = kv[:, 0:D], kv[:, D:2 * D]
        c = attention(q, k, v, St, Ss, None)
        c = matmul_bias(c, d_wo2[l], d_bo2[l])
        y = layer_norm(y + c, d_n2g[l], d_n2b[l])
        # feed-forward
        hdn = jnp.maximum(matmul_bias(y, d_w1[l], d_b1[l]), 0.0)
        f = matmul_bias(hdn, d_w2[l], d_b2[l])
        y = layer_norm(y + f, d_n3g[l], d_n3b[l])
    y = layer_norm(y, dec_ng[...], dec_nb[...])

    # output projection — last dim padded to a multiple of 128 (lane-dense store)
    out_ref[...] = matmul_bias(y, fc_w[...], fc_b[...]).astype(out_ref.dtype)


# ----------------------------------------------------------------------------
# Host-side glue (embeddings, PE, mask, weight staging) + pallas_call wrapper
# ----------------------------------------------------------------------------

def positional_encoding(max_len, d_model):
    position = jnp.arange(max_len, dtype=jnp.float32)[:, None]
    div_term = jnp.exp(jnp.arange(0, d_model, 2, dtype=jnp.float32)
                       * (-math.log(10000.0) / d_model))
    pe = jnp.zeros((max_len, d_model), jnp.float32)
    pe = pe.at[:, 0::2].set(jnp.sin(position * div_term))
    pe = pe.at[:, 1::2].set(jnp.cos(position * div_term))
    return pe


def causal_mask(sz):
    return jnp.where(jnp.tril(jnp.ones((sz, sz), bool)),
                     0.0, -jnp.inf).astype(jnp.float32)


_WEIGHT_ORDER = [
    "e_wqkv", "e_bqkv", "e_wo", "e_bo", "e_n1g", "e_n1b",
    "e_w1", "e_b1", "e_w2", "e_b2", "e_n2g", "e_n2b",
    "d_wqkv", "d_bqkv", "d_wo1", "d_bo1", "d_n1g", "d_n1b",
    "d_wq", "d_bq", "d_wkv", "d_bkv", "d_wo2", "d_bo2", "d_n2g", "d_n2b",
    "d_w1", "d_b1", "d_w2", "d_b2", "d_n3g", "d_n3b",
    "enc_ng", "enc_nb", "dec_ng", "dec_nb",
]


def transformer_pseudo2code_forward(params, src, tgt, cfg):
    d_model, nhead = cfg["d_model"], cfg["nhead"]
    B, Ss = src.shape
    St = tgt.shape[1]
    tgt_vocab = cfg["tgt_vocab"]

    pe = positional_encoding(cfg["max_len"], d_model)
    # embedding gather + scale + positional encoding (plain JAX glue)
    src_emb = jnp.take(params["src_emb"], src, axis=0) * math.sqrt(d_model) + pe[None, :Ss]
    tgt_emb = jnp.take(params["tgt_emb"], tgt, axis=0) * math.sqrt(d_model) + pe[None, :St]
    # TODO(synk): dropout (p=0.1) is identity here — eval-mode forward.
    src2d = src_emb.reshape(B * Ss, d_model).astype(jnp.float32)
    tgt2d = tgt_emb.reshape(B * St, d_model).astype(jnp.float32)
    mask = causal_mask(St)

    # lane-pad the final projection so the kernel output last dim is >= 128
    n_pad = max(128, ((tgt_vocab + 127) // 128) * 128)
    fc_w = jnp.zeros((d_model, n_pad), jnp.float32).at[:, :tgt_vocab].set(params["fc_w"])
    fc_b = jnp.zeros((1, n_pad), jnp.float32).at[:, :tgt_vocab].set(params["fc_b"])

    weights = [params[k] for k in _WEIGHT_ORDER] + [fc_w, fc_b]

    kernel = partial(
        _fused_transformer_kernel,
        B=B, Ss=Ss, St=St, D=d_model, H=nhead,
        n_enc=cfg["num_encoder_layers"], n_dec=cfg["num_decoder_layers"],
    )
    out_pad = pl.pallas_call(
        kernel,
        out_shape=jax.ShapeDtypeStruct((B * St, n_pad), jnp.float32),
        scratch_shapes=[pltpu.VMEM((B * max(Ss, St), d_model), jnp.float32)],
    )(src2d, tgt2d, mask, *weights)

    return out_pad[:, :tgt_vocab].reshape(B, St, tgt_vocab)


# ----------------------------------------------------------------------------
# Pure-JAX reference (for a correctness sanity check)
# ----------------------------------------------------------------------------

def _reference_forward(params, src, tgt, cfg):
    d, H = cfg["d_model"], cfg["nhead"]
    B, Ss = src.shape
    St = tgt.shape[1]
    Dh = d // H
    pe = positional_encoding(cfg["max_len"], d)
    x = jnp.take(params["src_emb"], src, axis=0) * math.sqrt(d) + pe[None, :Ss]
    y = jnp.take(params["tgt_emb"], tgt, axis=0) * math.sqrt(d) + pe[None, :St]

    def ln(v, g, b):
        mu = v.mean(-1, keepdims=True)
        var = ((v - mu) ** 2).mean(-1, keepdims=True)
        return (v - mu) / jnp.sqrt(var + 1e-5) * g + b

    def attn(q, k, v, mask):
        Sq, Sk = q.shape[1], k.shape[1]
        qh = q.reshape(B, Sq, H, Dh).transpose(0, 2, 1, 3)
        kh = k.reshape(B, Sk, H, Dh).transpose(0, 2, 1, 3)
        vh = v.reshape(B, Sk, H, Dh).transpose(0, 2, 1, 3)
        s = jnp.einsum("bhqd,bhkd->bhqk", qh, kh) / math.sqrt(Dh)
        if mask is not None:
            s = s + mask
        p = jax.nn.softmax(s, axis=-1)
        o = jnp.einsum("bhqk,bhkd->bhqd", p, vh)
        return o.transpose(0, 2, 1, 3).reshape(B, Sq, d)

    def lin(v, w, b):
        return v @ w + b

    mask = causal_mask(St)
    for l in range(cfg["num_encoder_layers"]):
        qkv = lin(x, params["e_wqkv"][l], params["e_bqkv"][l])
        a = attn(qkv[..., :d], qkv[..., d:2 * d], qkv[..., 2 * d:], None)
        a = lin(a, params["e_wo"][l], params["e_bo"][l])
        x = ln(x + a, params["e_n1g"][l], params["e_n1b"][l])
        f = lin(jax.nn.relu(lin(x, params["e_w1"][l], params["e_b1"][l])),
                params["e_w2"][l], params["e_b2"][l])
        x = ln(x + f, params["e_n2g"][l], params["e_n2b"][l])
    memory = ln(x, params["enc_ng"], params["enc_nb"])
    for l in range(cfg["num_decoder_layers"]):
        qkv = lin(y, params["d_wqkv"][l], params["d_bqkv"][l])
        a = attn(qkv[..., :d], qkv[..., d:2 * d], qkv[..., 2 * d:], mask)
        a = lin(a, params["d_wo1"][l], params["d_bo1"][l])
        y = ln(y + a, params["d_n1g"][l], params["d_n1b"][l])
        q = lin(y, params["d_wq"][l], params["d_bq"][l])
        kv = lin(memory, params["d_wkv"][l], params["d_bkv"][l])
        c = attn(q, kv[..., :d], kv[..., d:], None)
        c = lin(c, params["d_wo2"][l], params["d_bo2"][l])
        y = ln(y + c, params["d_n2g"][l], params["d_n2b"][l])
        f = lin(jax.nn.relu(lin(y, params["d_w1"][l], params["d_b1"][l])),
                params["d_w2"][l], params["d_b2"][l])
        y = ln(y + f, params["d_n3g"][l], params["d_n3b"][l])
    y = ln(y, params["dec_ng"], params["dec_nb"])
    return lin(y, params["fc_w"], params["fc_b"])


# ----------------------------------------------------------------------------
# Deterministic parameter init (synthetic; shapes follow the module __init__,
# stacked over layers and QKV-fused for the kernel)
# ----------------------------------------------------------------------------

class KeyGen:
    def __init__(self, key):
        self.key, self.i = key, 0

    def __call__(self):
        self.i += 1
        return jax.random.fold_in(self.key, self.i)


def init_params(key, cfg):
    kg = KeyGen(key)
    d, ff = cfg["d_model"], cfg["dim_feedforward"]
    ne, nd = cfg["num_encoder_layers"], cfg["num_decoder_layers"]

    def rnd(shape):
        return 0.02 * jax.random.normal(kg(), shape, jnp.float32)

    def ones(shape):
        return jnp.ones(shape, jnp.float32)

    def zeros(shape):
        return jnp.zeros(shape, jnp.float32)

    return {
        "src_emb": rnd((cfg["src_vocab"], d)),
        "tgt_emb": rnd((cfg["tgt_vocab"], d)),
        # encoder (stacked over layers)
        "e_wqkv": rnd((ne, d, 3 * d)), "e_bqkv": rnd((ne, 1, 3 * d)),
        "e_wo": rnd((ne, d, d)), "e_bo": rnd((ne, 1, d)),
        "e_n1g": ones((ne, 1, d)), "e_n1b": zeros((ne, 1, d)),
        "e_w1": rnd((ne, d, ff)), "e_b1": rnd((ne, 1, ff)),
        "e_w2": rnd((ne, ff, d)), "e_b2": rnd((ne, 1, d)),
        "e_n2g": ones((ne, 1, d)), "e_n2b": zeros((ne, 1, d)),
        # decoder (stacked over layers)
        "d_wqkv": rnd((nd, d, 3 * d)), "d_bqkv": rnd((nd, 1, 3 * d)),
        "d_wo1": rnd((nd, d, d)), "d_bo1": rnd((nd, 1, d)),
        "d_n1g": ones((nd, 1, d)), "d_n1b": zeros((nd, 1, d)),
        "d_wq": rnd((nd, d, d)), "d_bq": rnd((nd, 1, d)),
        "d_wkv": rnd((nd, d, 2 * d)), "d_bkv": rnd((nd, 1, 2 * d)),
        "d_wo2": rnd((nd, d, d)), "d_bo2": rnd((nd, 1, d)),
        "d_n2g": ones((nd, 1, d)), "d_n2b": zeros((nd, 1, d)),
        "d_w1": rnd((nd, d, ff)), "d_b1": rnd((nd, 1, ff)),
        "d_w2": rnd((nd, ff, d)), "d_b2": rnd((nd, 1, d)),
        "d_n3g": ones((nd, 1, d)), "d_n3b": zeros((nd, 1, d)),
        # final norms
        "enc_ng": ones((1, d)), "enc_nb": zeros((1, d)),
        "dec_ng": ones((1, d)), "dec_nb": zeros((1, d)),
        # output projection (un-padded; padded to 128 lanes at call time)
        "fc_w": rnd((d, cfg["tgt_vocab"])), "fc_b": rnd((1, cfg["tgt_vocab"])),
    }


# ----------------------------------------------------------------------------
# main
# ----------------------------------------------------------------------------

if __name__ == "__main__":
    cfg = dict(
        src_vocab=32, tgt_vocab=32,
        d_model=64, nhead=4,
        num_encoder_layers=2, num_decoder_layers=2,
        dim_feedforward=128, max_len=64,
    )

    key = jax.random.PRNGKey(0)
    params = init_params(key, cfg)

    B, Ss, St = 2, 8, 8
    src = jax.random.randint(jax.random.fold_in(key, 1001), (B, Ss),
                             0, cfg["src_vocab"], jnp.int32)
    tgt = jax.random.randint(jax.random.fold_in(key, 1002), (B, St),
                             0, cfg["tgt_vocab"], jnp.int32)

    fwd = jax.jit(partial(transformer_pseudo2code_forward, cfg=cfg))
    out = fwd(params, src, tgt)
    out = jax.block_until_ready(out)

    assert out.shape == (B, St, cfg["tgt_vocab"])
    assert bool(jnp.all(jnp.isfinite(out)))

    # correctness sanity check vs a pure-JAX reference (approx softmax recip -> loose tol)
    ref = _reference_forward(params, src, tgt, cfg)
    max_diff = float(jnp.max(jnp.abs(out - ref)))
    assert max_diff < 5e-2, f"mismatch vs reference: {max_diff}"

    print("KERNEL_OK")
</pallas_src>

<mosaic_0001>
module attributes {stable_mosaic.version = 11 : i64} {
  func.func @_fused_transformer_kernel(%arg0: memref<16x64xf32, #tpu.memory_space<vmem>>, %arg1: memref<16x64xf32, #tpu.memory_space<vmem>>, %arg2: memref<8x8xf32, #tpu.memory_space<vmem>>, %arg3: memref<2x64x192xf32, #tpu.memory_space<vmem>>, %arg4: memref<2x1x192xf32, #tpu.memory_space<vmem>>, %arg5: memref<2x64x64xf32, #tpu.memory_space<vmem>>, %arg6: memref<2x1x64xf32, #tpu.memory_space<vmem>>, %arg7: memref<2x1x64xf32, #tpu.memory_space<vmem>>, %arg8: memref<2x1x64xf32, #tpu.memory_space<vmem>>, %arg9: memref<2x64x128xf32, #tpu.memory_space<vmem>>, %arg10: memref<2x1x128xf32, #tpu.memory_space<vmem>>, %arg11: memref<2x128x64xf32, #tpu.memory_space<vmem>>, %arg12: memref<2x1x64xf32, #tpu.memory_space<vmem>>, %arg13: memref<2x1x64xf32, #tpu.memory_space<vmem>>, %arg14: memref<2x1x64xf32, #tpu.memory_space<vmem>>, %arg15: memref<2x64x192xf32, #tpu.memory_space<vmem>>, %arg16: memref<2x1x192xf32, #tpu.memory_space<vmem>>, %arg17: memref<2x64x64xf32, #tpu.memory_space<vmem>>, %arg18: memref<2x1x64xf32, #tpu.memory_space<vmem>>, %arg19: memref<2x1x64xf32, #tpu.memory_space<vmem>>, %arg20: memref<2x1x64xf32, #tpu.memory_space<vmem>>, %arg21: memref<2x64x64xf32, #tpu.memory_space<vmem>>, %arg22: memref<2x1x64xf32, #tpu.memory_space<vmem>>, %arg23: memref<2x64x128xf32, #tpu.memory_space<vmem>>, %arg24: memref<2x1x128xf32, #tpu.memory_space<vmem>>, %arg25: memref<2x64x64xf32, #tpu.memory_space<vmem>>, %arg26: memref<2x1x64xf32, #tpu.memory_space<vmem>>, %arg27: memref<2x1x64xf32, #tpu.memory_space<vmem>>, %arg28: memref<2x1x64xf32, #tpu.memory_space<vmem>>, %arg29: memref<2x64x128xf32, #tpu.memory_space<vmem>>, %arg30: memref<2x1x128xf32, #tpu.memory_space<vmem>>, %arg31: memref<2x128x64xf32, #tpu.memory_space<vmem>>, %arg32: memref<2x1x64xf32, #tpu.memory_space<vmem>>, %arg33: memref<2x1x64xf32, #tpu.memory_space<vmem>>, %arg34: memref<2x1x64xf32, #tpu.memory_space<vmem>>, %arg35: memref<1x64xf32, #tpu.memory_space<vmem>>, %arg36: memref<1x64xf32, #tpu.memory_space<vmem>>, %arg37: memref<1x64xf32, #tpu.memory_space<vmem>>, %arg38: memref<1x64xf32, #tpu.memory_space<vmem>>, %arg39: memref<64x128xf32, #tpu.memory_space<vmem>>, %arg40: memref<1x128xf32, #tpu.memory_space<vmem>>, %arg41: memref<16x128xf32, #tpu.memory_space<vmem>>, %arg42: memref<16x64xf32, #tpu.memory_space<vmem>>) attributes {dimension_semantics = [], scalar_prefetch = 0 : i64, scratch_operands = 1 : i64, tpu.core_type = #tpu.core_type<tc>} {
    %c0 = arith.constant 0 : index
    %c0_0 = arith.constant 0 : index
    %0 = vector.load %arg0[%c0, %c0_0] : memref<16x64xf32, #tpu.memory_space<vmem>>, vector<16x64xf32>
    %c0_1 = arith.constant 0 : index
    %c0_2 = arith.constant 0 : index
    %c0_3 = arith.constant 0 : index
    %1 = vector.load %arg3[%c0_1, %c0_2, %c0_3] : memref<2x64x192xf32, #tpu.memory_space<vmem>>, vector<1x64x192xf32>
    %2 = vector.shape_cast %1 : vector<1x64x192xf32> to vector<64x192xf32>
    %c0_4 = arith.constant 0 : index
    %c0_5 = arith.constant 0 : index
    %c0_6 = arith.constant 0 : index
    %3 = vector.load %arg4[%c0_4, %c0_5, %c0_6] : memref<2x1x192xf32, #tpu.memory_space<vmem>>, vector<1x1x192xf32>
    %4 = vector.shape_cast %3 : vector<1x1x192xf32> to vector<1x192xf32>
    %cst = arith.constant dense<0.000000e+00> : vector<16x192xf32>
    %5 = tpu.matmul %0, %2, %cst {dimension_numbers = #tpu.dot_dimension_numbers<[1], [0], [0], [1], [0, 0, 1, 1], [], []>} : vector<16x64xf32>, vector<64x192xf32>, vector<16x192xf32> -> vector<16x192xf32>
    %6 = vector.broadcast %4 : vector<1x192xf32> to vector<16x192xf32>
    %7 = arith.addf %5, %6 : vector<16x192xf32>
    %8 = vector.extract_strided_slice %7 {offsets = [0, 0], sizes = [16, 64], strides = [1, 1]} : vector<16x192xf32> to vector<16x64xf32>
    %9 = vector.extract_strided_slice %7 {offsets = [0, 64], sizes = [16, 64], strides = [1, 1]} : vector<16x192xf32> to vector<16x64xf32>
    %10 = vector.extract_strided_slice %7 {offsets = [0, 128], sizes = [16, 64], strides = [1, 1]} : vector<16x192xf32> to vector<16x64xf32>
    %11 = vector.extract_strided_slice %8 {offsets = [0, 0], sizes = [8, 16], strides = [1, 1]} : vector<16x64xf32> to vector<8x16xf32>
    %12 = vector.extract_strided_slice %9 {offsets = [0, 0], sizes = [8, 16], strides = [1, 1]} : vector<16x64xf32> to vector<8x16xf32>
    %13 = vector.extract_strided_slice %10 {offsets = [0, 0], sizes = [8, 16], strides = [1, 1]} : vector<16x64xf32> to vector<8x16xf32>
    %14 = tpu.transpose %12, [1, 0] : vector<8x16xf32> -> vector<16x8xf32>
    %cst_7 = arith.constant dense<0.000000e+00> : vector<8x8xf32>
    %15 = tpu.matmul %11, %14, %cst_7 {dimension_numbers = #tpu.dot_dimension_numbers<[1], [0], [0], [1], [0, 0, 1, 1], [], []>} : vector<8x16xf32>, vector<16x8xf32>, vector<8x8xf32> -> vector<8x8xf32>
    %cst_8 = arith.constant 2.500000e-01 : f32
    %16 = vector.broadcast %cst_8 : f32 to vector<8x8xf32>
    %17 = arith.mulf %15, %16 : vector<8x8xf32>
    %cst_9 = arith.constant dense<0xFF800000> : vector<8xf32>
    %18 = vector.multi_reduction <maximumf>, %17, %cst_9 [1] : vector<8x8xf32> to vector<8xf32>
    %19 = vector.shape_cast %18 : vector<8xf32> to vector<8x1xf32>
    %20 = vector.broadcast %19 : vector<8x1xf32> to vector<8x8xf32>
    %21 = arith.subf %17, %20 : vector<8x8xf32>
    %22 = math.exp %21 : vector<8x8xf32>
    %cst_10 = arith.constant dense<0.000000e+00> : vector<8xf32>
    %23 = vector.multi_reduction <add>, %22, %cst_10 [1] : vector<8x8xf32> to vector<8xf32>
    %24 = vector.shape_cast %23 : vector<8xf32> to vector<8x1xf32>
    %25 = tpu.reciprocal %24 {approx = true} : vector<8x1xf32> -> vector<8x1xf32>
    %26 = vector.broadcast %25 : vector<8x1xf32> to vector<8x8xf32>
    %27 = arith.mulf %22, %26 : vector<8x8xf32>
    %cst_11 = arith.constant dense<0.000000e+00> : vector<8x16xf32>
    %28 = tpu.matmul %27, %13, %cst_11 {dimension_numbers = #tpu.dot_dimension_numbers<[1], [0], [0], [1], [0, 0, 1, 1], [], []>} : vector<8x8xf32>, vector<8x16xf32>, vector<8x16xf32> -> vector<8x16xf32>
    %c0_12 = arith.constant 0 : index
    %c0_13 = arith.constant 0 : index
    %29 = vector.load %arg42[%c0_12, %c0_13] : memref<16x64xf32, #tpu.memory_space<vmem>>, vector<8x16xf32>
    tpu.vector_store %arg42[%c0_12, %c0_13], %28 {strides = array<i32>} : memref<16x64xf32, #tpu.memory_space<vmem>>, vector<8x16xf32>,
    %30 = vector.extract_strided_slice %8 {offsets = [0, 16], sizes = [8, 16], strides = [1, 1]} : vector<16x64xf32> to vector<8x16xf32>
    %31 = vector.extract_strided_slice %9 {offsets = [0, 16], sizes = [8, 16], strides = [1, 1]} : vector<16x64xf32> to vector<8x16xf32>
    %32 = vector.extract_strided_slice %10 {offsets = [0, 16], sizes = [8, 16], strides = [1, 1]} : vector<16x64xf32> to vector<8x16xf32>
    %33 = tpu.transpose %31, [1, 0] : vector<8x16xf32> -> vector<16x8xf32>
    %cst_14 = arith.constant dense<0.000000e+00> : vector<8x8xf32>
    %34 = tpu.matmul %30, %33, %cst_14 {dimension_numbers = #tpu.dot_dimension_numbers<[1], [0], [0], [1], [0, 0, 1, 1], [], []>} : vector<8x16xf32>, vector<16x8xf32>, vector<8x8xf32> -> vector<8x8xf32>
    %cst_15 = arith.constant 2.500000e-01 : f32
    %35 = vector.broadcast %cst_15 : f32 to vector<8x8xf32>
    %36 = arith.mulf %34, %35 : vector<8x8xf32>
    %cst_16 = arith.constant dense<0xFF800000> : vector<8xf32>
    %37 = vector.multi_reduction <maximumf>, %36, %cst_16 [1] : vector<8x8xf32> to vector<8xf32>
    %38 = vector.shape_cast %37 : vector<8xf32> to vector<8x1xf32>
    %39 = vector.broadcast %38 : vector<8x1xf32> to vector<8x8xf32>
    %40 = arith.subf %36, %39 : vector<8x8xf32>
    %41 = math.exp %40 : vector<8x8xf32>
    %cst_17 = arith.constant dense<0.000000e+00> : vector<8xf32>
    %42 = vector.multi_reduction <add>, %41, %cst_17 [1] : vector<8x8xf32> to vector<8xf32>
    %43 = vector.shape_cast %42 : vector<8xf32> to vector<8x1xf32>
    %44 = tpu.reciprocal %43 {approx = true} : vector<8x1xf32> -> vector<8x1xf32>
    %45 = vector.broadcast %44 : vector<8x1xf32> to vector<8x8xf32>
    %46 = arith.mulf %41, %45 : vector<8x8xf32>
    %cst_18 = arith.constant dense<0.000000e+00> : vector<8x16xf32>
    %47 = tpu.matmul %46, %32, %cst_18 {dimension_numbers = #tpu.dot_dimension_numbers<[1], [0], [0], [1], [0, 0, 1, 1], [], []>} : vector<8x8xf32>, vector<8x16xf32>, vector<8x16xf32> -> vector<8x16xf32>
    %c0_19 = arith.constant 0 : index
    %c16 = arith.constant 16 : index
    %48 = vector.load %arg42[%c0_19, %c16] : memref<16x64xf32, #tpu.memory_space<vmem>>, vector<8x16xf32>
    tpu.vector_store %arg42[%c0_19, %c16], %47 {strides = array<i32>} : memref<16x64xf32, #tpu.memory_space<vmem>>, vector<8x16xf32>,
    %49 = vector.extract_strided_slice %8 {offsets = [0, 32], sizes = [8, 16], strides = [1, 1]} : vector<16x64xf32> to vector<8x16xf32>
    %50 = vector.extract_strided_slice %9 {offsets = [0, 32], sizes = [8, 16], strides = [1, 1]} : vector<16x64xf32> to vector<8x16xf32>
    %51 = vector.extract_strided_slice %10 {offsets = [0, 32], sizes = [8, 16], strides = [1, 1]} : vector<16x64xf32> to vector<8x16xf32>
    %52 = tpu.transpose %50, [1, 0] : vector<8x16xf32> -> vector<16x8xf32>
    %cst_20 = arith.constant dense<0.000000e+00> : vector<8x8xf32>
    %53 = tpu.matmul %49, %52, %cst_20 {dimension_numbers = #tpu.dot_dimension_numbers<[1], [0], [0], [1], [0, 0, 1, 1], [], []>} : vector<8x16xf32>, vector<16x8xf32>, vector<8x8xf32> -> vector<8x8xf32>
    %cst_21 = arith.constant 2.500000e-01 : f32
    %54 = vector.broadcast %cst_21 : f32 to vector<8x8xf32>
    %55 = arith.mulf %53, %54 : vector<8x8xf32>
    %cst_22 = arith.constant dense<0xFF800000> : vector<8xf32>
    %56 = vector.multi_reduction <maximumf>, %55, %cst_22 [1] : vector<8x8xf32> to vector<8xf32>
    %57 = vector.shape_cast %56 : vector<8xf32> to vector<8x1xf32>
    %58 = vector.broadcast %57 : vector<8x1xf32> to vector<8x8xf32>
    %59 = arith.subf %55, %58 : vector<8x8xf32>
    %60 = math.exp %59 : vector<8x8xf32>
    %cst_23 = arith.constant dense<0.000000e+00> : vector<8xf32>
    %61 = vector.multi_reduction <add>, %60, %cst_23 [1] : vector<8x8xf32> to vector<8xf32>
    %62 = vector.shape_cast %61 : vector<8xf32> to vector<8x1xf32>
    %63 = tpu.reciprocal %62 {approx = true} : vector<8x1xf32> -> vector<8x1xf32>
    %64 = vector.broadcast %63 : vector<8x1xf32> to vector<8x8xf32>
    %65 = arith.mulf %60, %64 : vector<8x8xf32>
    %cst_24 = arith.constant dense<0.000000e+00> : vector<8x16xf32>
    %66 = tpu.matmul %65, %51, %cst_24 {dimension_numbers = #tpu.dot_dimension_numbers<[1], [0], [0], [1], [0, 0, 1, 1], [], []>} : vector<8x8xf32>, vector<8x16xf32>, vector<8x16xf32> -> vector<8x16xf32>
    %c0_25 = arith.constant 0 : index
    %c32 = arith.constant 32 : index
    %67 = vector.load %arg42[%c0_25, %c32] : memref<16x64xf32, #tpu.memory_space<vmem>>, vector<8x16xf32>
    tpu.vector_store %arg42[%c0_25, %c32], %66 {strides = array<i32>} : memref<16x64xf32, #tpu.memory_space<vmem>>, vector<8x16xf32>,
    %68 = vector.extract_strided_slice %8 {offsets = [0, 48], sizes = [8, 16], strides = [1, 1]} : vector<16x64xf32> to vector<8x16xf32>
    %69 = vector.extract_strided_slice %9 {offsets = [0, 48], sizes = [8, 16], strides = [1, 1]} : vector<16x64xf32> to vector<8x16xf32>
    %70 = vector.extract_strided_slice %10 {offsets = [0, 48], sizes = [8, 16], strides = [1, 1]} : vector<16x64xf32> to vector<8x16xf32>
    %71 = tpu.transpose %69, [1, 0] : vector<8x16xf32> -> vector<16x8xf32>
    %cst_26 = arith.constant dense<0.000000e+00> : vector<8x8xf32>
    %72 = tpu.matmul %68, %71, %cst_26 {dimension_numbers = #tpu.dot_dimension_numbers<[1], [0], [0], [1], [0, 0, 1, 1], [], []>} : vector<8x16xf32>, vector<16x8xf32>, vector<8x8xf32> -> vector<8x8xf32>
    %cst_27 = arith.constant 2.500000e-01 : f32
    %73 = vector.broadcast %cst_27 : f32 to vector<8x8xf32>
    %74 = arith.mulf %72, %73 : vector<8x8xf32>
    %cst_28 = arith.constant dense<0xFF800000> : vector<8xf32>
    %75 = vector.multi_reduction <maximumf>, %74, %cst_28 [1] : vector<8x8xf32> to vector<8xf32>
    %76 = vector.shape_cast %75 : vector<8xf32> to vector<8x1xf32>
    %77 = vector.broadcast %76 : vector<8x1xf32> to vector<8x8xf32>
    %78 = arith.subf %74, %77 : vector<8x8xf32>
    %79 = math.exp %78 : vector<8x8xf32>
    %cst_29 = arith.constant dense<0.000000e+00> : vector<8xf32>
    %80 = vector.multi_reduction <add>, %79, %cst_29 [1] : vector<8x8xf32> to vector<8xf32>
    %81 = vector.shape_cast %80 : vector<8xf32> to vector<8x1xf32>
    %82 = tpu.reciprocal %81 {approx = true} : vector<8x1xf32> -> vector<8x1xf32>
    %83 = vector.broadcast %82 : vector<8x1xf32> to vector<8x8xf32>
    %84 = arith.mulf %79, %83 : vector<8x8xf32>
    %cst_30 = arith.constant dense<0.000000e+00> : vector<8x16xf32>
    %85 = tpu.matmul %84, %70, %cst_30 {dimension_numbers = #tpu.dot_dimension_numbers<[1], [0], [0], [1], [0, 0, 1, 1], [], []>} : vector<8x8xf32>, vector<8x16xf32>, vector<8x16xf32> -> vector<8x16xf32>
    %c0_31 = arith.constant 0 : index
    %c48 = arith.constant 48 : index
    %86 = vector.load %arg42[%c0_31, %c48] : memref<16x64xf32, #tpu.memory_space<vmem>>, vector<8x16xf32>
    tpu.vector_store %arg42[%c0_31, %c48], %85 {strides = array<i32>} : memref<16x64xf32, #tpu.memory_space<vmem>>, vector<8x16xf32>,
    %87 = vector.extract_strided_slice %8 {offsets = [8, 0], sizes = [8, 16], strides = [1, 1]} : vector<16x64xf32> to vector<8x16xf32>
    %88 = vector.extract_strided_slice %9 {offsets = [8, 0], sizes = [8, 16], strides = [1, 1]} : vector<16x64xf32> to vector<8x16xf32>
    %89 = vector.extract_strided_slice %10 {offsets = [8, 0], sizes = [8, 16], strides = [1, 1]} : vector<16x64xf32> to vector<8x16xf32>
    %90 = tpu.transpose %88, [1, 0] : vector<8x16xf32> -> vector<16x8xf32>
    %cst_32 = arith.constant dense<0.000000e+00> : vector<8x8xf32>
    %91 = tpu.matmul %87, %90, %cst_32 {dimension_numbers = #tpu.dot_dimension_numbers<[1], [0], [0], [1], [0, 0, 1, 1], [], []>} : vector<8x16xf32>, vector<16x8xf32>, vector<8x8xf32> -> vector<8x8xf32>
    %cst_33 = arith.constant 2.500000e-01 : f32
    %92 = vector.broadcast %cst_33 : f32 to vector<8x8xf32>
    %93 = arith.mulf %91, %92 : vector<8x8xf32>
    %cst_34 = arith.constant dense<0xFF800000> : vector<8xf32>
    %94 = vector.multi_reduction <maximumf>, %93, %cst_34 [1] : vector<8x8xf32> to vector<8xf32>
    %95 = vector.shape_cast %94 : vector<8xf32> to vector<8x1xf32>
    %96 = vector.broadcast %95 : vector<8x1xf32> to vector<8x8xf32>
    %97 = arith.subf %93, %96 : vector<8x8xf32>
    %98 = math.exp %97 : vector<8x8xf32>
    %cst_35 = arith.constant dense<0.000000e+00> : vector<8xf32>
    %99 = vector.multi_reduction <add>, %98, %cst_35 [1] : vector<8x8xf32> to vector<8xf32>
    %100 = vector.shape_cast %99 : vector<8xf32> to vector<8x1xf32>
    %101 = tpu.reciprocal %100 {approx = true} : vector<8x1xf32> -> vector<8x1xf32>
    %102 = vector.broadcast %101 : vector<8x1xf32> to vector<8x8xf32>
    %103 = arith.mulf %98, %102 : vector<8x8xf32>
    %cst_36 = arith.constant dense<0.000000e+00> : vector<8x16xf32>
    %104 = tpu.matmul %103, %89, %cst_36 {dimension_numbers = #tpu.dot_dimension_numbers<[1], [0], [0], [1], [0, 0, 1, 1], [], []>} : vector<8x8xf32>, vector<8x16xf32>, vector<8x16xf32> -> vector<8x16xf32>
    %c8 = arith.constant 8 : index
    %c0_37 = arith.constant 0 : index
    %105 = vector.load %arg42[%c8, %c0_37] : memref<16x64xf32, #tpu.memory_space<vmem>>, vector<8x16xf32>
    tpu.vector_store %arg42[%c8, %c0_37], %104 {strides = array<i32>} : memref<16x64xf32, #tpu.memory_space<vmem>>, vector<8x16xf32>,
    %106 = vector.extract_strided_slice %8 {offsets = [8, 16], sizes = [8, 16], strides = [1, 1]} : vector<16x64xf32> to vector<8x16xf32>
    %107 = vector.extract_strided_slice %9 {offsets = [8, 16], sizes = [8, 16], strides = [1, 1]} : vector<16x64xf32> to vector<8x16xf32>
    %108 = vector.extract_strided_slice %10 {offsets = [8, 16], sizes = [8, 16], strides = [1, 1]} : vector<16x64xf32> to vector<8x16xf32>
    %109 = tpu.transpose %107, [1, 0] : vector<8x16xf32> -> vector<16x8xf32>
    %cst_38 = arith.constant dense<0.000000e+00> : vector<8x8xf32>
    %110 = tpu.matmul %106, %109, %cst_38 {dimension_numbers = #tpu.dot_dimension_numbers<[1], [0], [0], [1], [0, 0, 1, 1], [], []>} : vector<8x16xf32>, vector<16x8xf32>, vector<8x8xf32> -> vector<8x8xf32>
    %cst_39 = arith.constant 2.500000e-01 : f32
    %111 = vector.broadcast %cst_39 : f32 to vector<8x8xf32>
    %112 = arith.mulf %110, %111 : vector<8x8xf32>
    %cst_40 = arith.constant dense<0xFF800000> : vector<8xf32>
    %113 = vector.multi_reduction <maximumf>, %112, %cst_40 [1] : vector<8x8xf32> to vector<8xf32>
    %114 = vector.shape_cast %113 : vector<8xf32> to vector<8x1xf32>
    %115 = vector.broadcast %114 : vector<8x1xf32> to vector<8x8xf32>
    %116 = arith.subf %112, %115 : vector<8x8xf32>
    %117 = math.exp %116 : vector<8x8xf32>
    %cst_41 = arith.constant dense<0.000000e+00> : vector<8xf32>
    %118 = vector.multi_reduction <add>, %117, %cst_41 [1] : vector<8x8xf32> to vector<8xf32>
    %119 = vector.shape_cast %118 : vector<8xf32> to vector<8x1xf32>
    %120 = tpu.reciprocal %119 {approx = true} : vector<8x1xf32> -> vector<8x1xf32>
    %121 = vector.broadcast %120 : vector<8x1xf32> to vector<8x8xf32>
    %122 = arith.mulf %117, %121 : vector<8x8xf32>
    %cst_42 = arith.constant dense<0.000000e+00> : vector<8x16xf32>
    %123 = tpu.matmul %122, %108, %cst_42 {dimension_numbers = #tpu.dot_dimension_numbers<[1], [0], [0], [1], [0, 0, 1, 1], [], []>} : vector<8x8xf32>, vector<8x16xf32>, vector<8x16xf32> -> vector<8x16xf32>
    %c8_43 = arith.constant 8 : index
    %c16_44 = arith.constant 16 : index
    %124 = vector.load %arg42[%c8_43, %c16_44] : memref<16x64xf32, #tpu.memory_space<vmem>>, vector<8x16xf32>
    tpu.vector_store %arg42[%c8_43, %c16_44], %123 {strides = array<i32>} : memref<16x64xf32, #tpu.memory_space<vmem>>, vector<8x16xf32>,
    %125 = vector.extract_strided_slice %8 {offsets = [8, 32], sizes = [8, 16], strides = [1, 1]} : vector<16x64xf32> to vector<8x16xf32>
    %126 = vector.extract_strided_slice %9 {offsets = [8, 32], sizes = [8, 16], strides = [1, 1]} : vector<16x64xf32> to vector<8x16xf32>
    %127 = vector.extract_strided_slice %10 {offsets = [8, 32], sizes = [8, 16], strides = [1, 1]} : vector<16x64xf32> to vector<8x16xf32>
    %128 = tpu.transpose %126, [1, 0] : vector<8x16xf32> -> vector<16x8xf32>
    %cst_45 = arith.constant dense<0.000000e+00> : vector<8x8xf32>
    %129 = tpu.matmul %125, %128, %cst_45 {dimension_numbers = #tpu.dot_dimension_numbers<[1], [0], [0], [1], [0, 0, 1, 1], [], []>} : vector<8x16xf32>, vector<16x8xf32>, vector<8x8xf32> -> vector<8x8xf32>
    %cst_46 = arith.constant 2.500000e-01 : f32
    %130 = vector.broadcast %cst_46 : f32 to vector<8x8xf32>
    %131 = arith.mulf %129, %130 : vector<8x8xf32>
    %cst_47 = arith.constant dense<0xFF800000> : vector<8xf32>
    %132 = vector.multi_reduction <maximumf>, %131, %cst_47 [1] : vector<8x8xf32> to vector<8xf32>
    %133 = vector.shape_cast %132 : vector<8xf32> to vector<8x1xf32>
    %134 = vector.broadcast %133 : vector<8x1xf32> to vector<8x8xf32>
    %135 = arith.subf %131, %134 : vector<8x8xf32>
    %136 = math.exp %135 : vector<8x8xf32>
    %cst_48 = arith.constant dense<0.000000e+00> : vector<8xf32>
    %137 = vector.multi_reduction <add>, %136, %cst_48 [1] : vector<8x8xf32> to vector<8xf32>
    %138 = vector.shape_cast %137 : vector<8xf32> to vector<8x1xf32>
    %139 = tpu.reciprocal %138 {approx = true} : vector<8x1xf32> -> vector<8x1xf32>
    %140 = vector.broadcast %139 : vector<8x1xf32> to vector<8x8xf32>
    %141 = arith.mulf %136, %140 : vector<8x8xf32>
    %cst_49 = arith.constant dense<0.000000e+00> : vector<8x16xf32>
    %142 = tpu.matmul %141, %127, %cst_49 {dimension_numbers = #tpu.dot_dimension_numbers<[1], [0], [0], [1], [0, 0, 1, 1], [], []>} : vector<8x8xf32>, vector<8x16xf32>, vector<8x16xf32> -> vector<8x16xf32>
    %c8_50 = arith.constant 8 : index
    %c32_51 = arith.constant 32 : index
    %143 = vector.load %arg42[%c8_50, %c32_51] : memref<16x64xf32, #tpu.memory_space<vmem>>, vector<8x16xf32>
    tpu.vector_store %arg42[%c8_50, %c32_51], %142 {strides = array<i32>} : memref<16x64xf32, #tpu.memory_space<vmem>>, vector<8x16xf32>,
    %144 = vector.extract_strided_slice %8 {offsets = [8, 48], sizes = [8, 16], strides = [1, 1]} : vector<16x64xf32> to vector<8x16xf32>
    %145 = vector.extract_strided_slice %9 {offsets = [8, 48], sizes = [8, 16], strides = [1, 1]} : vector<16x64xf32> to vector<8x16xf32>
    %146 = vector.extract_strided_slice %10 {offsets = [8, 48], sizes = [8, 16], strides = [1, 1]} : vector<16x64xf32> to vector<8x16xf32>
    %147 = tpu.transpose %145, [1, 0] : vector<8x16xf32> -> vector<16x8xf32>
    %cst_52 = arith.constant dense<0.000000e+00> : vector<8x8xf32>
    %148 = tpu.matmul %144, %147, %cst_52 {dimension_numbers = #tpu.dot_dimension_numbers<[1], [0], [0], [1], [0, 0, 1, 1], [], []>} : vector<8x16xf32>, vector<16x8xf32>, vector<8x8xf32> -> vector<8x8xf32>
    %cst_53 = arith.constant 2.500000e-01 : f32
    %149 = vector.broadcast %cst_53 : f32 to vector<8x8xf32>
    %150 = arith.mulf %148, %149 : vector<8x8xf32>
    %cst_54 = arith.constant dense<0xFF800000> : vector<8xf32>
    %151 = vector.multi_reduction <maximumf>, %150, %cst_54 [1] : vector<8x8xf32> to vector<8xf32>
    %152 = vector.shape_cast %151 : vector<8xf32> to vector<8x1xf32>
    %153 = vector.broadcast %152 : vector<8x1xf32> to vector<8x8xf32>
    %154 = arith.subf %150, %153 : vector<8x8xf32>
    %155 = math.exp %154 : vector<8x8xf32>
    %cst_55 = arith.constant dense<0.000000e+00> : vector<8xf32>
    %156 = vector.multi_reduction <add>, %155, %cst_55 [1] : vector<8x8xf32> to vector<8xf32>
    %157 = vector.shape_cast %156 : vector<8xf32> to vector<8x1xf32>
    %158 = tpu.reciprocal %157 {approx = true} : vector<8x1xf32> -> vector<8x1xf32>
    %159 = vector.broadcast %158 : vector<8x1xf32> to vector<8x8xf32>
    %160 = arith.mulf %155, %159 : vector<8x8xf32>
    %cst_56 = arith.constant dense<0.000000e+00> : vector<8x16xf32>
    %161 = tpu.matmul %160, %146, %cst_56 {dimension_numbers = #tpu.dot_dimension_numbers<[1], [0], [0], [1], [0, 0, 1, 1], [], []>} : vector<8x8xf32>, vector<8x16xf32>, vector<8x16xf32> -> vector<8x16xf32>
    %c8_57 = arith.constant 8 : index
    %c48_58 = arith.constant 48 : index
    %162 = vector.load %arg42[%c8_57, %c48_58] : memref<16x64xf32, #tpu.memory_space<vmem>>, vector<8x16xf32>
    tpu.vector_store %arg42[%c8_57, %c48_58], %161 {strides = array<i32>} : memref<16x64xf32, #tpu.memory_space<vmem>>, vector<8x16xf32>,
    %c0_59 = arith.constant 0 : index
    %c0_60 = arith.constant 0 : index
    %163 = vector.load %arg42[%c0_59, %c0_60] : memref<16x64xf32, #tpu.memory_space<vmem>>, vector<16x64xf32>
    %c0_61 = arith.constant 0 : index
    %c0_62 = arith.constant 0 : index
    %c0_63 = arith.constant 0 : index
    %164 = vector.load %arg5[%c0_61, %c0_62, %c0_63] : memref<2x64x64xf32, #tpu.memory_space<vmem>>, vector<1x64x64xf32>
    %165 = vector.shape_cast %164 : vector<1x64x64xf32> to vector<64x64xf32>
    %c0_64 = arith.constant 0 : index
    %c0_65 = arith.constant 0 : index
    %c0_66 = arith.constant 0 : index
    %166 = vector.load %arg6[%c0_64, %c0_65, %c0_66] : memref<2x1x64xf32, #tpu.memory_space<vmem>>, vector<1x1x64xf32>
    %167 = vector.shape_cast %166 : vector<1x1x64xf32> to vector<1x64xf32>
    %cst_67 = arith.constant dense<0.000000e+00> : vector<16x64xf32>
    %168 = tpu.matmul %163, %165, %cst_67 {dimension_numbers = #tpu.dot_dimension_numbers<[1], [0], [0], [1], [0, 0, 1, 1], [], []>} : vector<16x64xf32>, vector<64x64xf32>, vector<16x64xf32> -> vector<16x64xf32>
    %169 = vector.broadcast %167 : vector<1x64xf32> to vector<16x64xf32>
    %170 = arith.addf %168, %169 : vector<16x64xf32>
    %171 = arith.addf %0, %170 : vector<16x64xf32>
    %c0_68 = arith.constant 0 : index
    %c0_69 = arith.constant 0 : index
    %c0_70 = arith.constant 0 : index
    %172 = vector.load %arg7[%c0_68, %c0_69, %c0_70] : memref<2x1x64xf32, #tpu.memory_space<vmem>>, vector<1x1x64xf32>
    %173 = vector.shape_cast %172 : vector<1x1x64xf32> to vector<1x64xf32>
    %c0_71 = arith.constant 0 : index
    %c0_72 = arith.constant 0 : index
    %c0_73 = arith.constant 0 : index
    %174 = vector.load %arg8[%c0_71, %c0_72, %c0_73] : memref<2x1x64xf32, #tpu.memory_space<vmem>>, vector<1x1x64xf32>
    %175 = vector.shape_cast %174 : vector<1x1x64xf32> to vector<1x64xf32>
    %cst_74 = arith.constant dense<0.000000e+00> : vector<16xf32>
    %176 = vector.multi_reduction <add>, %171, %cst_74 [1] : vector<16x64xf32> to vector<16xf32>
    %177 = vector.shape_cast %176 : vector<16xf32> to vector<16x1xf32>
    %cst_75 = arith.constant 6.400000e+01 : f32
    %178 = vector.broadcast %cst_75 : f32 to vector<16x1xf32>
    %179 = arith.divf %177, %178 : vector<16x1xf32>
    %180 = vector.broadcast %179 : vector<16x1xf32> to vector<16x64xf32>
    %181 = arith.subf %171, %180 : vector<16x64xf32>
    %182 = arith.mulf %181, %181 : vector<16x64xf32>
    %cst_76 = arith.constant dense<0.000000e+00> : vector<16xf32>
    %183 = vector.multi_reduction <add>, %182, %cst_76 [1] : vector<16x64xf32> to vector<16xf32>
    %184 = vector.shape_cast %183 : vector<16xf32> to vector<16x1xf32>
    %cst_77 = arith.constant 6.400000e+01 : f32
    %185 = vector.broadcast %cst_77 : f32 to vector<16x1xf32>
    %186 = arith.divf %184, %185 : vector<16x1xf32>
    %187 = vector.broadcast %179 : vector<16x1xf32> to vector<16x64xf32>
    %188 = arith.subf %171, %187 : vector<16x64xf32>
    %cst_78 = arith.constant 9.99999974E-6 : f32
    %189 = vector.broadcast %cst_78 : f32 to vector<16x1xf32>
    %190 = arith.addf %186, %189 : vector<16x1xf32>
    %191 = math.rsqrt %190 : vector<16x1xf32>
    %192 = vector.broadcast %191 : vector<16x1xf32> to vector<16x64xf32>
    %193 = arith.mulf %188, %192 : vector<16x64xf32>
    %194 = vector.broadcast %173 : vector<1x64xf32> to vector<16x64xf32>
    %195 = arith.mulf %193, %194 : vector<16x64xf32>
    %196 = vector.broadcast %175 : vector<1x64xf32> to vector<16x64xf32>
    %197 = arith.addf %195, %196 : vector<16x64xf32>
    %c0_79 = arith.constant 0 : index
    %c0_80 = arith.constant 0 : index
    %c0_81 = arith.constant 0 : index
    %198 = vector.load %arg9[%c0_79, %c0_80, %c0_81] : memref<2x64x128xf32, #tpu.memory_space<vmem>>, vector<1x64x128xf32>
    %199 = vector.shape_cast %198 : vector<1x64x128xf32> to vector<64x128xf32>
    %c0_82 = arith.constant 0 : index
    %c0_83 = arith.constant 0 : index
    %c0_84 = arith.constant 0 : index
    %200 = vector.load %arg10[%c0_82, %c0_83, %c0_84] : memref<2x1x128xf32, #tpu.memory_space<vmem>>, vector<1x1x128xf32>
    %201 = vector.shape_cast %200 : vector<1x1x128xf32> to vector<1x128xf32>
    %cst_85 = arith.constant dense<0.000000e+00> : vector<16x128xf32>
    %202 = tpu.matmul %197, %199, %cst_85 {dimension_numbers = #tpu.dot_dimension_numbers<[1], [0], [0], [1], [0, 0, 1, 1], [], []>} : vector<16x64xf32>, vector<64x128xf32>, vector<16x128xf32> -> vector<16x128xf32>
    %203 = vector.broadcast %201 : vector<1x128xf32> to vector<16x128xf32>
    %204 = arith.addf %202, %203 : vector<16x128xf32>
    %cst_86 = arith.constant 0.000000e+00 : f32
    %205 = vector.broadcast %cst_86 : f32 to vector<16x128xf32>
    %206 = arith.maximumf %204, %205 : vector<16x128xf32>
    %c0_87 = arith.constant 0 : index
    %c0_88 = arith.constant 0 : index
    %c0_89 = arith.constant 0 : index
    %207 = vector.load %arg11[%c0_87, %c0_88, %c0_89] : memref<2x128x64xf32, #tpu.memory_space<vmem>>, vector<1x128x64xf32>
    %208 = vector.shape_cast %207 : vector<1x128x64xf32> to vector<128x64xf32>
    %c0_90 = arith.constant 0 : index
    %c0_91 = arith.constant 0 : index
    %c0_92 = arith.constant 0 : index
    %209 = vector.load %arg12[%c0_90, %c0_91, %c0_92] : memref<2x1x64xf32, #tpu.memory_space<vmem>>, vector<1x1x64xf32>
    %210 = vector.shape_cast %209 : vector<1x1x64xf32> to vector<1x64xf32>
    %cst_93 = arith.constant dense<0.000000e+00> : vector<16x64xf32>
    %211 = tpu.matmul %206, %208, %cst_93 {dimension_numbers = #tpu.dot_dimension_numbers<[1], [0], [0], [1], [0, 0, 1, 1], [], []>} : vector<16x128xf32>, vector<128x64xf32>, vector<16x64xf32> -> vector<16x64xf32>
    %212 = vector.broadcast %210 : vector<1x64xf32> to vector<16x64xf32>
    %213 = arith.addf %211, %212 : vector<16x64xf32>
    %214 = arith.addf %197, %213 : vector<16x64xf32>
    %c0_94 = arith.constant 0 : index
    %c0_95 = arith.constant 0 : index
    %c0_96 = arith.constant 0 : index
    %215 = vector.load %arg13[%c0_94, %c0_95, %c0_96] : memref<2x1x64xf32, #tpu.memory_space<vmem>>, vector<1x1x64xf32>
    %216 = vector.shape_cast %215 : vector<1x1x64xf32> to vector<1x64xf32>
    %c0_97 = arith.constant 0 : index
    %c0_98 = arith.constant 0 : index
    %c0_99 = arith.constant 0 : index
    %217 = vector.load %arg14[%c0_97, %c0_98, %c0_99] : memref<2x1x64xf32, #tpu.memory_space<vmem>>, vector<1x1x64xf32>
    %218 = vector.shape_cast %217 : vector<1x1x64xf32> to vector<1x64xf32>
    %cst_100 = arith.constant dense<0.000000e+00> : vector<16xf32>
    %219 = vector.multi_reduction <add>, %214, %cst_100 [1] : vector<16x64xf32> to vector<16xf32>
    %220 = vector.shape_cast %219 : vector<16xf32> to vector<16x1xf32>
    %cst_101 = arith.constant 6.400000e+01 : f32
    %221 = vector.broadcast %cst_101 : f32 to vector<16x1xf32>
    %222 = arith.divf %220, %221 : vector<16x1xf32>
    %223 = vector.broadcast %222 : vector<16x1xf32> to vector<16x64xf32>
    %224 = arith.subf %214, %223 : vector<16x64xf32>
    %225 = arith.mulf %224, %224 : vector<16x64xf32>
    %cst_102 = arith.constant dense<0.000000e+00> : vector<16xf32>
    %226 = vector.multi_reduction <add>, %225, %cst_102 [1] : vector<16x64xf32> to vector<16xf32>
    %227 = vector.shape_cast %226 : vector<16xf32> to vector<16x1xf32>
    %cst_103 = arith.constant 6.400000e+01 : f32
    %228 = vector.broadcast %cst_103 : f32 to vector<16x1xf32>
    %229 = arith.divf %227, %228 : vector<16x1xf32>
    %230 = vector.broadcast %222 : vector<16x1xf32> to vector<16x64xf32>
    %231 = arith.subf %214, %230 : vector<16x64xf32>
    %cst_104 = arith.constant 9.99999974E-6 : f32
    %232 = vector.broadcast %cst_104 : f32 to vector<16x1xf32>
    %233 = arith.addf %229, %232 : vector<16x1xf32>
    %234 = math.rsqrt %233 : vector<16x1xf32>
    %235 = vector.broadcast %234 : vector<16x1xf32> to vector<16x64xf32>
    %236 = arith.mulf %231, %235 : vector<16x64xf32>
    %237 = vector.broadcast %216 : vector<1x64xf32> to vector<16x64xf32>
    %238 = arith.mulf %236, %237 : vector<16x64xf32>
    %239 = vector.broadcast %218 : vector<1x64xf32> to vector<16x64xf32>
    %240 = arith.addf %238, %239 : vector<16x64xf32>
    %c1 = arith.constant 1 : index
    %c0_105 = arith.constant 0 : index
    %c0_106 = arith.constant 0 : index
    %241 = vector.load %arg3[%c1, %c0_105, %c0_106] : memref<2x64x192xf32, #tpu.memory_space<vmem>>, vector<1x64x192xf32>
    %242 = vector.shape_cast %241 : vector<1x64x192xf32> to vector<64x192xf32>
    %c1_107 = arith.constant 1 : index
    %c0_108 = arith.constant 0 : index
    %c0_109 = arith.constant 0 : index
    %243 = vector.load %arg4[%c1_107, %c0_108, %c0_109] : memref<2x1x192xf32, #tpu.memory_space<vmem>>, vector<1x1x192xf32>
    %244 = vector.shape_cast %243 : vector<1x1x192xf32> to vector<1x192xf32>
    %cst_110 = arith.constant dense<0.000000e+00> : vector<16x192xf32>
    %245 = tpu.matmul %240, %242, %cst_110 {dimension_numbers = #tpu.dot_dimension_numbers<[1], [0], [0], [1], [0, 0, 1, 1], [], []>} : vector<16x64xf32>, vector<64x192xf32>, vector<16x192xf32> -> vector<16x192xf32>
    %246 = vector.broadcast %244 : vector<1x192xf32> to vector<16x192xf32>
    %247 = arith.addf %245, %246 : vector<16x192xf32>
    %248 = vector.extract_strided_slice %247 {offsets = [0, 0], sizes = [16, 64], strides = [1, 1]} : vector<16x192xf32> to vector<16x64xf32>
    %249 = vector.extract_strided_slice %247 {offsets = [0, 64], sizes = [16, 64], strides = [1, 1]} : vector<16x192xf32> to vector<16x64xf32>
    %250 = vector.extract_strided_slice %247 {offsets = [0, 128], sizes = [16, 64], strides = [1, 1]} : vector<16x192xf32> to vector<16x64xf32>
    %251 = vector.extract_strided_slice %248 {offsets = [0, 0], sizes = [8, 16], strides = [1, 1]} : vector<16x64xf32> to vector<8x16xf32>
    %252 = vector.extract_strided_slice %249 {offsets = [0, 0], sizes = [8, 16], strides = [1, 1]} : vector<16x64xf32> to vector<8x16xf32>
    %253 = vector.extract_strided_slice %250 {offsets = [0, 0], sizes = [8, 16], strides = [1, 1]} : vector<16x64xf32> to vector<8x16xf32>
    %254 = tpu.transpose %252, [1, 0] : vector<8x16xf32> -> vector<16x8xf32>
    %cst_111 = arith.constant dense<0.000000e+00> : vector<8x8xf32>
    %255 = tpu.matmul %251, %254, %cst_111 {dimension_numbers = #tpu.dot_dimension_numbers<[1], [0], [0], [1], [0, 0, 1, 1], [], []>} : vector<8x16xf32>, vector<16x8xf32>, vector<8x8xf32> -> vector<8x8xf32>
    %cst_112 = arith.constant 2.500000e-01 : f32
    %256 = vector.broadcast %cst_112 : f32 to vector<8x8xf32>
    %257 = arith.mulf %255, %256 : vector<8x8xf32>
    %cst_113 = arith.constant dense<0xFF800000> : vector<8xf32>
    %258 = vector.multi_reduction <maximumf>, %257, %cst_113 [1] : vector<8x8xf32> to vector<8xf32>
    %259 = vector.shape_cast %258 : vector<8xf32> to vector<8x1xf32>
    %260 = vector.broadcast %259 : vector<8x1xf32> to vector<8x8xf32>
    %261 = arith.subf %257, %260 : vector<8x8xf32>
    %262 = math.exp %261 : vector<8x8xf32>
    %cst_114 = arith.constant dense<0.000000e+00> : vector<8xf32>
    %263 = vector.multi_reduction <add>, %262, %cst_114 [1] : vector<8x8xf32> to vector<8xf32>
    %264 = vector.shape_cast %263 : vector<8xf32> to vector<8x1xf32>
    %265 = tpu.reciprocal %264 {approx = true} : vector<8x1xf32> -> vector<8x1xf32>
    %266 = vector.broadcast %265 : vector<8x1xf32> to vector<8x8xf32>
    %267 = arith.mulf %262, %266 : vector<8x8xf32>
    %cst_115 = arith.constant dense<0.000000e+00> : vector<8x16xf32>
    %268 = tpu.matmul %267, %253, %cst_115 {dimension_numbers = #tpu.dot_dimension_numbers<[1], [0], [0], [1], [0, 0, 1, 1], [], []>} : vector<8x8xf32>, vector<8x16xf32>, vector<8x16xf32> -> vector<8x16xf32>
    %c0_116 = arith.constant 0 : index
    %c0_117 = arith.constant 0 : index
    %269 = vector.load %arg42[%c0_116, %c0_117] : memref<16x64xf32, #tpu.memory_space<vmem>>, vector<8x16xf32>
    tpu.vector_store %arg42[%c0_116, %c0_117], %268 {strides = array<i32>} : memref<16x64xf32, #tpu.memory_space<vmem>>, vector<8x16xf32>,
    %270 = vector.extract_strided_slice %248 {offsets = [0, 16], sizes = [8, 16], strides = [1, 1]} : vector<16x64xf32> to vector<8x16xf32>
    %271 = vector.extract_strided_slice %249 {offsets = [0, 16], sizes = [8, 16], strides = [1, 1]} : vector<16x64xf32> to vector<8x16xf32>
    %272 = vector.extract_strided_slice %250 {offsets = [0, 16], sizes = [8, 16], strides = [1, 1]} : vector<16x64xf32> to vector<8x16xf32>
    %273 = tpu.transpose %271, [1, 0] : vector<8x16xf32> -> vector<16x8xf32>
    %cst_118 = arith.constant dense<0.000000e+00> : vector<8x8xf32>
    %274 = tpu.matmul %270, %273, %cst_118 {dimension_numbers = #tpu.dot_dimension_numbers<[1], [0], [0], [1], [0, 0, 1, 1], [], []>} : vector<8x16xf32>, vector<16x8xf32>, vector<8x8xf32> -> vector<8x8xf32>
    %cst_119 = arith.constant 2.500000e-01 : f32
    %275 = vector.broadcast %cst_119 : f32 to vector<8x8xf32>
    %276 = arith.mulf %274, %275 : vector<8x8xf32>
    %cst_120 = arith.constant dense<0xFF800000> : vector<8xf32>
    %277 = vector.multi_reduction <maximumf>, %276, %cst_120 [1] : vector<8x8xf32> to vector<8xf32>
    %278 = vector.shape_cast %277 : vector<8xf32> to vector<8x1xf32>
    %279 = vector.broadcast %278 : vector<8x1xf32> to vector<8x8xf32>
    %280 = arith.subf %276, %279 : vector<8x8xf32>
    %281 = math.exp %280 : vector<8x8xf32>
    %cst_121 = arith.constant dense<0.000000e+00> : vector<8xf32>
    %282 = vector.multi_reduction <add>, %281, %cst_121 [1] : vector<8x8xf32> to vector<8xf32>
    %283 = vector.shape_cast %282 : vector<8xf32> to vector<8x1xf32>
    %284 = tpu.reciprocal %283 {approx = true} : vector<8x1xf32> -> vector<8x1xf32>
    %285 = vector.broadcast %284 : vector<8x1xf32> to vector<8x8xf32>
    %286 = arith.mulf %281, %285 : vector<8x8xf32>
    %cst_122 = arith.constant dense<0.000000e+00> : vector<8x16xf32>
    %287 = tpu.matmul %286, %272, %cst_122 {dimension_numbers = #tpu.dot_dimension_numbers<[1], [0], [0], [1], [0, 0, 1, 1], [], []>} : vector<8x8xf32>, vector<8x16xf32>, vector<8x16xf32> -> vector<8x16xf32>
    %c0_123 = arith.constant 0 : index
    %c16_124 = arith.constant 16 : index
    %288 = vector.load %arg42[%c0_123, %c16_124] : memref<16x64xf32, #tpu.memory_space<vmem>>, vector<8x16xf32>
    tpu.vector_store %arg42[%c0_123, %c16_124], %287 {strides = array<i32>} : memref<16x64xf32, #tpu.memory_space<vmem>>, vector<8x16xf32>,
    %289 = vector.extract_strided_slice %248 {offsets = [0, 32], sizes = [8, 16], strides = [1, 1]} : vector<16x64xf32> to vector<8x16xf32>
    %290 = vector.extract_strided_slice %249 {offsets = [0, 32], sizes = [8, 16], strides = [1, 1]} : vector<16x64xf32> to vector<8x16xf32>
    %291 = vector.extract_strided_slice %250 {offsets = [0, 32], sizes = [8, 16], strides = [1, 1]} : vector<16x64xf32> to vector<8x16xf32>
    %292 = tpu.transpose %290, [1, 0] : vector<8x16xf32> -> vector<16x8xf32>
    %cst_125 = arith.constant dense<0.000000e+00> : vector<8x8xf32>
    %293 = tpu.matmul %289, %292, %cst_125 {dimension_numbers = #tpu.dot_dimension_numbers<[1], [0], [0], [1], [0, 0, 1, 1], [], []>} : vector<8x16xf32>, vector<16x8xf32>, vector<8x8xf32> -> vector<8x8xf32>
    %cst_126 = arith.constant 2.500000e-01 : f32
    %294 = vector.broadcast %cst_126 : f32 to vector<8x8xf32>
    %295 = arith.mulf %293, %294 : vector<8x8xf32>
    %cst_127 = arith.constant dense<0xFF800000> : vector<8xf32>
    %296 = vector.multi_reduction <maximumf>, %295, %cst_127 [1] : vector<8x8xf32> to vector<8xf32>
    %297 = vector.shape_cast %296 : vector<8xf32> to vector<8x1xf32>
    %298 = vector.broadcast %297 : vector<8x1xf32> to vector<8x8xf32>
    %299 = arith.subf %295, %298 : vector<8x8xf32>
    %300 = math.exp %299 : vector<8x8xf32>
    %cst_128 = arith.constant dense<0.000000e+00> : vector<8xf32>
    %301 = vector.multi_reduction <add>, %300, %cst_128 [1] : vector<8x8xf32> to vector<8xf32>
    %302 = vector.shape_cast %301 : vector<8xf32> to vector<8x1xf32>
    %303 = tpu.reciprocal %302 {approx = true} : vector<8x1xf32> -> vector<8x1xf32>
    %304 = vector.broadcast %303 : vector<8x1xf32> to vector<8x8xf32>
    %305 = arith.mulf %300, %304 : vector<8x8xf32>
    %cst_129 = arith.constant dense<0.000000e+00> : vector<8x16xf32>
    %306 = tpu.matmul %305, %291, %cst_129 {dimension_numbers = #tpu.dot_dimension_numbers<[1], [0], [0], [1], [0, 0, 1, 1], [], []>} : vector<8x8xf32>, vector<8x16xf32>, vector<8x16xf32> -> vector<8x16xf32>
    %c0_130 = arith.constant 0 : index
    %c32_131 = arith.constant 32 : index
    %307 = vector.load %arg42[%c0_130, %c32_131] : memref<16x64xf32, #tpu.memory_space<vmem>>, vector<8x16xf32>
    tpu.vector_store %arg42[%c0_130, %c32_131], %306 {strides = array<i32>} : memref<16x64xf32, #tpu.memory_space<vmem>>, vector<8x16xf32>,
    %308 = vector.extract_strided_slice %248 {offsets = [0, 48], sizes = [8, 16], strides = [1, 1]} : vector<16x64xf32> to vector<8x16xf32>
    %309 = vector.extract_strided_slice %249 {offsets = [0, 48], sizes = [8, 16], strides = [1, 1]} : vector<16x64xf32> to vector<8x16xf32>
    %310 = vector.extract_strided_slice %250 {offsets = [0, 48], sizes = [8, 16], strides = [1, 1]} : vector<16x64xf32> to vector<8x16xf32>
    %311 = tpu.transpose %309, [1, 0] : vector<8x16xf32> -> vector<16x8xf32>
    %cst_132 = arith.constant dense<0.000000e+00> : vector<8x8xf32>
    %312 = tpu.matmul %308, %311, %cst_132 {dimension_numbers = #tpu.dot_dimension_numbers<[1], [0], [0], [1], [0, 0, 1, 1], [], []>} : vector<8x16xf32>, vector<16x8xf32>, vector<8x8xf32> -> vector<8x8xf32>
    %cst_133 = arith.constant 2.500000e-01 : f32
    %313 = vector.broadcast %cst_133 : f32 to vector<8x8xf32>
    %314 = arith.mulf %312, %313 : vector<8x8xf32>
    %cst_134 = arith.constant dense<0xFF800000> : vector<8xf32>
    %315 = vector.multi_reduction <maximumf>, %314, %cst_134 [1] : vector<8x8xf32> to vector<8xf32>
    %316 = vector.shape_cast %315 : vector<8xf32> to vector<8x1xf32>
    %317 = vector.broadcast %316 : vector<8x1xf32> to vector<8x8xf32>
    %318 = arith.subf %314, %317 : vector<8x8xf32>
    %319 = math.exp %318 : vector<8x8xf32>
    %cst_135 = arith.constant dense<0.000000e+00> : vector<8xf32>
    %320 = vector.multi_reduction <add>, %319, %cst_135 [1] : vector<8x8xf32> to vector<8xf32>
    %321 = vector.shape_cast %320 : vector<8xf32> to vector<8x1xf32>
    %322 = tpu.reciprocal %321 {approx = true} : vector<8x1xf32> -> vector<8x1xf32>
    %323 = vector.broadcast %322 : vector<8x1xf32> to vector<8x8xf32>
    %324 = arith.mulf %319, %323 : vector<8x8xf32>
    %cst_136 = arith.constant dense<0.000000e+00> : vector<8x16xf32>
    %325 = tpu.matmul %324, %310, %cst_136 {dimension_numbers = #tpu.dot_dimension_numbers<[1], [0], [0], [1], [0, 0, 1, 1], [], []>} : vector<8x8xf32>, vector<8x16xf32>, vector<8x16xf32> -> vector<8x16xf32>
    %c0_137 = arith.constant 0 : index
    %c48_138 = arith.constant 48 : index
    %326 = vector.load %arg42[%c0_137, %c48_138] : memref<16x64xf32, #tpu.memory_space<vmem>>, vector<8x16xf32>
    tpu.vector_store %arg42[%c0_137, %c48_138], %325 {strides = array<i32>} : memref<16x64xf32, #tpu.memory_space<vmem>>, vector<8x16xf32>,
    %327 = vector.extract_strided_slice %248 {offsets = [8, 0], sizes = [8, 16], strides = [1, 1]} : vector<16x64xf32> to vector<8x16xf32>
    %328 = vector.extract_strided_slice %249 {offsets = [8, 0], sizes = [8, 16], strides = [1, 1]} : vector<16x64xf32> to vector<8x16xf32>
    %329 = vector.extract_strided_slice %250 {offsets = [8, 0], sizes = [8, 16], strides = [1, 1]} : vector<16x64xf32> to vector<8x16xf32>
    %330 = tpu.transpose %328, [1, 0] : vector<8x16xf32> -> vector<16x8xf32>
    %cst_139 = arith.constant dense<0.000000e+00> : vector<8x8xf32>
    %331 = tpu.matmul %327, %330, %cst_139 {dimension_numbers = #tpu.dot_dimension_numbers<[1], [0], [0], [1], [0, 0, 1, 1], [], []>} : vector<8x16xf32>, vector<16x8xf32>, vector<8x8xf32> -> vector<8x8xf32>
    %cst_140 = arith.constant 2.500000e-01 : f32
    %332 = vector.broadcast %cst_140 : f32 to vector<8x8xf32>
    %333 = arith.mulf %331, %332 : vector<8x8xf32>
    %cst_141 = arith.constant dense<0xFF800000> : vector<8xf32>
    %334 = vector.multi_reduction <maximumf>, %333, %cst_141 [1] : vector<8x8xf32> to vector<8xf32>
    %335 = vector.shape_cast %334 : vector<8xf32> to vector<8x1xf32>
    %336 = vector.broadcast %335 : vector<8x1xf32> to vector<8x8xf32>
    %337 = arith.subf %333, %336 : vector<8x8xf32>
    %338 = math.exp %337 : vector<8x8xf32>
    %cst_142 = arith.constant dense<0.000000e+00> : vector<8xf32>
    %339 = vector.multi_reduction <add>, %338, %cst_142 [1] : vector<8x8xf32> to vector<8xf32>
    %340 = vector.shape_cast %339 : vector<8xf32> to vector<8x1xf32>
    %341 = tpu.reciprocal %340 {approx = true} : vector<8x1xf32> -> vector<8x1xf32>
    %342 = vector.broadcast %341 : vector<8x1xf32> to vector<8x8xf32>
    %343 = arith.mulf %338, %342 : vector<8x8xf32>
    %cst_143 = arith.constant dense<0.000000e+00> : vector<8x16xf32>
    %344 = tpu.matmul %343, %329, %cst_143 {dimension_numbers = #tpu.dot_dimension_numbers<[1], [0], [0], [1], [0, 0, 1, 1], [], []>} : vector<8x8xf32>, vector<8x16xf32>, vector<8x16xf32> -> vector<8x16xf32>
    %c8_144 = arith.constant 8 : index
    %c0_145 = arith.constant 0 : index
    %345 = vector.load %arg42[%c8_144, %c0_145] : memref<16x64xf32, #tpu.memory_space<vmem>>, vector<8x16xf32>
    tpu.vector_store %arg42[%c8_144, %c0_145], %344 {strides = array<i32>} : memref<16x64xf32, #tpu.memory_space<vmem>>, vector<8x16xf32>,
    %346 = vector.extract_strided_slice %248 {offsets = [8, 16], sizes = [8, 16], strides = [1, 1]} : vector<16x64xf32> to vector<8x16xf32>
    %347 = vector.extract_strided_slice %249 {offsets = [8, 16], sizes = [8, 16], strides = [1, 1]} : vector<16x64xf32> to vector<8x16xf32>
    %348 = vector.extract_strided_slice %250 {offsets = [8, 16], sizes = [8, 16], strides = [1, 1]} : vector<16x64xf32> to vector<8x16xf32>
    %349 = tpu.transpose %347, [1, 0] : vector<8x16xf32> -> vector<16x8xf32>
    %cst_146 = arith.constant dense<0.000000e+00> : vector<8x8xf32>
    %350 = tpu.matmul %346, %349, %cst_146 {dimension_numbers = #tpu.dot_dimension_numbers<[1], [0], [0], [1], [0, 0, 1, 1], [], []>} : vector<8x16xf32>, vector<16x8xf32>, vector<8x8xf32> -> vector<8x8xf32>
    %cst_147 = arith.constant 2.500000e-01 : f32
    %351 = vector.broadcast %cst_147 : f32 to vector<8x8xf32>
    %352 = arith.mulf %350, %351 : vector<8x8xf32>
    %cst_148 = arith.constant dense<0xFF800000> : vector<8xf32>
    %353 = vector.multi_reduction <maximumf>, %352, %cst_148 [1] : vector<8x8xf32> to vector<8xf32>
    %354 = vector.shape_cast %353 : vector<8xf32> to vector<8x1xf32>
    %355 = vector.broadcast %354 : vector<8x1xf32> to vector<8x8xf32>
    %356 = arith.subf %352, %355 : vector<8x8xf32>
    %357 = math.exp %356 : vector<8x8xf32>
    %cst_149 = arith.constant dense<0.000000e+00> : vector<8xf32>
    %358 = vector.multi_reduction <add>, %357, %cst_149 [1] : vector<8x8xf32> to vector<8xf32>
    %359 = vector.shape_cast %358 : vector<8xf32> to vector<8x1xf32>
    %360 = tpu.reciprocal %359 {approx = true} : vector<8x1xf32> -> vector<8x1xf32>
    %361 = vector.broadcast %360 : vector<8x1xf32> to vector<8x8xf32>
    %362 = arith.mulf %357, %361 : vector<8x8xf32>
    %cst_150 = arith.constant dense<0.000000e+00> : vector<8x16xf32>
    %363 = tpu.matmul %362, %348, %cst_150 {dimension_numbers = #tpu.dot_dimension_numbers<[1], [0], [0], [1], [0, 0, 1, 1], [], []>} : vector<8x8xf32>, vector<8x16xf32>, vector<8x16xf32> -> vector<8x16xf32>
    %c8_151 = arith.constant 8 : index
    %c16_152 = arith.constant 16 : index
    %364 = vector.load %arg42[%c8_151, %c16_152] : memref<16x64xf32, #tpu.memory_space<vmem>>, vector<8x16xf32>
    tpu.vector_store %arg42[%c8_151, %c16_152], %363 {strides = array<i32>} : memref<16x64xf32, #tpu.memory_space<vmem>>, vector<8x16xf32>,
    %365 = vector.extract_strided_slice %248 {offsets = [8, 32], sizes = [8, 16], strides = [1, 1]} : vector<16x64xf32> to vector<8x16xf32>
    %366 = vector.extract_strided_slice %249 {offsets = [8, 32], sizes = [8, 16], strides = [1, 1]} : vector<16x64xf32> to vector<8x16xf32>
    %367 = vector.extract_strided_slice %250 {offsets = [8, 32], sizes = [8, 16], strides = [1, 1]} : vector<16x64xf32> to vector<8x16xf32>
    %368 = tpu.transpose %366, [1, 0] : vector<8x16xf32> -> vector<16x8xf32>
    %cst_153 = arith.constant dense<0.000000e+00> : vector<8x8xf32>
    %369 = tpu.matmul %365, %368, %cst_153 {dimension_numbers = #tpu.dot_dimension_numbers<[1], [0], [0], [1], [0, 0, 1, 1], [], []>} : vector<8x16xf32>, vector<16x8xf32>, vector<8x8xf32> -> vector<8x8xf32>
    %cst_154 = arith.constant 2.500000e-01 : f32
    %370 = vector.broadcast %cst_154 : f32 to vector<8x8xf32>
    %371 = arith.mulf %369, %370 : vector<8x8xf32>
    %cst_155 = arith.constant dense<0xFF800000> : vector<8xf32>
    %372 = vector.multi_reduction <maximumf>, %371, %cst_155 [1] : vector<8x8xf32> to vector<8xf32>
    %373 = vector.shape_cast %372 : vector<8xf32> to vector<8x1xf32>
    %374 = vector.broadcast %373 : vector<8x1xf32> to vector<8x8xf32>
    %375 = arith.subf %371, %374 : vector<8x8xf32>
    %376 = math.exp %375 : vector<8x8xf32>
    %cst_156 = arith.constant dense<0.000000e+00> : vector<8xf32>
    %377 = vector.multi_reduction <add>, %376, %cst_156 [1] : vector<8x8xf32> to vector<8xf32>
    %378 = vector.shape_cast %377 : vector<8xf32> to vector<8x1xf32>
    %379 = tpu.reciprocal %378 {approx = true} : vector<8x1xf32> -> vector<8x1xf32>
    %380 = vector.broadcast %379 : vector<8x1xf32> to vector<8x8xf32>
    %381 = arith.mulf %376, %380 : vector<8x8xf32>
    %cst_157 = arith.constant dense<0.000000e+00> : vector<8x16xf32>
    %382 = tpu.matmul %381, %367, %cst_157 {dimension_numbers = #tpu.dot_dimension_numbers<[1], [0], [0], [1], [0, 0, 1, 1], [], []>} : vector<8x8xf32>, vector<8x16xf32>, vector<8x16xf32> -> vector<8x16xf32>
    %c8_158 = arith.constant 8 : index
    %c32_159 = arith.constant 32 : index
    %383 = vector.load %arg42[%c8_158, %c32_159] : memref<16x64xf32, #tpu.memory_space<vmem>>, vector<8x16xf32>
    tpu.vector_store %arg42[%c8_158, %c32_159], %382 {strides = array<i32>} : memref<16x64xf32, #tpu.memory_space<vmem>>, vector<8x16xf32>,
    %384 = vector.extract_strided_slice %248 {offsets = [8, 48], sizes = [8, 16], strides = [1, 1]} : vector<16x64xf32> to vector<8x16xf32>
    %385 = vector.extract_strided_slice %249 {offsets = [8, 48], sizes = [8, 16], strides = [1, 1]} : vector<16x64xf32> to vector<8x16xf32>
    %386 = vector.extract_strided_slice %250 {offsets = [8, 48], sizes = [8, 16], strides = [1, 1]} : vector<16x64xf32> to vector<8x16xf32>
    %387 = tpu.transpose %385, [1, 0] : vector<8x16xf32> -> vector<16x8xf32>
    %cst_160 = arith.constant dense<0.000000e+00> : vector<8x8xf32>
    %388 = tpu.matmul %384, %387, %cst_160 {dimension_numbers = #tpu.dot_dimension_numbers<[1], [0], [0], [1], [0, 0, 1, 1], [], []>} : vector<8x16xf32>, vector<16x8xf32>, vector<8x8xf32> -> vector<8x8xf32>
    %cst_161 = arith.constant 2.500000e-01 : f32
    %389 = vector.broadcast %cst_161 : f32 to vector<8x8xf32>
    %390 = arith.mulf %388, %389 : vector<8x8xf32>
    %cst_162 = arith.constant dense<0xFF800000> : vector<8xf32>
    %391 = vector.multi_reduction <maximumf>, %390, %cst_162 [1] : vector<8x8xf32> to vector<8xf32>
    %392 = vector.shape_cast %391 : vector<8xf32> to vector<8x1xf32>
    %393 = vector.broadcast %392 : vector<8x1xf32> to vector<8x8xf32>
    %394 = arith.subf %390, %393 : vector<8x8xf32>
    %395 = math.exp %394 : vector<8x8xf32>
    %cst_163 = arith.constant dense<0.000000e+00> : vector<8xf32>
    %396 = vector.multi_reduction <add>, %395, %cst_163 [1] : vector<8x8xf32> to vector<8xf32>
    %397 = vector.shape_cast %396 : vector<8xf32> to vector<8x1xf32>
    %398 = tpu.reciprocal %397 {approx = true} : vector<8x1xf32> -> vector<8x1xf32>
    %399 = vector.broadcast %398 : vector<8x1xf32> to vector<8x8xf32>
    %400 = arith.mulf %395, %399 : vector<8x8xf32>
    %cst_164 = arith.constant dense<0.000000e+00> : vector<8x16xf32>
    %401 = tpu.matmul %400, %386, %cst_164 {dimension_numbers = #tpu.dot_dimension_numbers<[1], [0], [0], [1], [0, 0, 1, 1], [], []>} : vector<8x8xf32>, vector<8x16xf32>, vector<8x16xf32> -> vector<8x16xf32>
    %c8_165 = arith.constant 8 : index
    %c48_166 = arith.constant 48 : index
    %402 = vector.load %arg42[%c8_165, %c48_166] : memref<16x64xf32, #tpu.memory_space<vmem>>, vector<8x16xf32>
    tpu.vector_store %arg42[%c8_165, %c48_166], %401 {strides = array<i32>} : memref<16x64xf32, #tpu.memory_space<vmem>>, vector<8x16xf32>,
    %c0_167 = arith.constant 0 : index
    %c0_168 = arith.constant 0 : index
    %403 = vector.load %arg42[%c0_167, %c0_168] : memref<16x64xf32, #tpu.memory_space<vmem>>, vector<16x64xf32>
    %c1_169 = arith.constant 1 : index
    %c0_170 = arith.constant 0 : index
    %c0_171 = arith.constant 0 : index
    %404 = vector.load %arg5[%c1_169, %c0_170, %c0_171] : memref<2x64x64xf32, #tpu.memory_space<vmem>>, vector<1x64x64xf32>
    %405 = vector.shape_cast %404 : vector<1x64x64xf32> to vector<64x64xf32>
    %c1_172 = arith.constant 1 : index
    %c0_173 = arith.constant 0 : index
    %c0_174 = arith.constant 0 : index
    %406 = vector.load %arg6[%c1_172, %c0_173, %c0_174] : memref<2x1x64xf32, #tpu.memory_space<vmem>>, vector<1x1x64xf32>
    %407 = vector.shape_cast %406 : vector<1x1x64xf32> to vector<1x64xf32>
    %cst_175 = arith.constant dense<0.000000e+00> : vector<16x64xf32>
    %408 = tpu.matmul %403, %405, %cst_175 {dimension_numbers = #tpu.dot_dimension_numbers<[1], [0], [0], [1], [0, 0, 1, 1], [], []>} : vector<16x64xf32>, vector<64x64xf32>, vector<16x64xf32> -> vector<16x64xf32>
    %409 = vector.broadcast %407 : vector<1x64xf32> to vector<16x64xf32>
    %410 = arith.addf %408, %409 : vector<16x64xf32>
    %411 = arith.addf %240, %410 : vector<16x64xf32>
    %c1_176 = arith.constant 1 : index
    %c0_177 = arith.constant 0 : index
    %c0_178 = arith.constant 0 : index
    %412 = vector.load %arg7[%c1_176, %c0_177, %c0_178] : memref<2x1x64xf32, #tpu.memory_space<vmem>>, vector<1x1x64xf32>
    %413 = vector.shape_cast %412 : vector<1x1x64xf32> to vector<1x64xf32>
    %c1_179 = arith.constant 1 : index
    %c0_180 = arith.constant 0 : index
    %c0_181 = arith.constant 0 : index
    %414 = vector.load %arg8[%c1_179, %c0_180, %c0_181] : memref<2x1x64xf32, #tpu.memory_space<vmem>>, vector<1x1x64xf32>
    %415 = vector.shape_cast %414 : vector<1x1x64xf32> to vector<1x64xf32>
    %cst_182 = arith.constant dense<0.000000e+00> : vector<16xf32>
    %416 = vector.multi_reduction <add>, %411, %cst_182 [1] : vector<16x64xf32> to vector<16xf32>
    %417 = vector.shape_cast %416 : vector<16xf32> to vector<16x1xf32>
    %cst_183 = arith.constant 6.400000e+01 : f32
    %418 = vector.broadcast %cst_183 : f32 to vector<16x1xf32>
    %419 = arith.divf %417, %418 : vector<16x1xf32>
    %420 = vector.broadcast %419 : vector<16x1xf32> to vector<16x64xf32>
    %421 = arith.subf %411, %420 : vector<16x64xf32>
    %422 = arith.mulf %421, %421 : vector<16x64xf32>
    %cst_184 = arith.constant dense<0.000000e+00> : vector<16xf32>
    %423 = vector.multi_reduction <add>, %422, %cst_184 [1] : vector<16x64xf32> to vector<16xf32>
    %424 = vector.shape_cast %423 : vector<16xf32> to vector<16x1xf32>
    %cst_185 = arith.constant 6.400000e+01 : f32
    %425 = vector.broadcast %cst_185 : f32 to vector<16x1xf32>
    %426 = arith.divf %424, %425 : vector<16x1xf32>
    %427 = vector.broadcast %419 : vector<16x1xf32> to vector<16x64xf32>
    %428 = arith.subf %411, %427 : vector<16x64xf32>
    %cst_186 = arith.constant 9.99999974E-6 : f32
    %429 = vector.broadcast %cst_186 : f32 to vector<16x1xf32>
    %430 = arith.addf %426, %429 : vector<16x1xf32>
    %431 = math.rsqrt %430 : vector<16x1xf32>
    %432 = vector.broadcast %431 : vector<16x1xf32> to vector<16x64xf32>
    %433 = arith.mulf %428, %432 : vector<16x64xf32>
    %434 = vector.broadcast %413 : vector<1x64xf32> to vector<16x64xf32>
    %435 = arith.mulf %433, %434 : vector<16x64xf32>
    %436 = vector.broadcast %415 : vector<1x64xf32> to vector<16x64xf32>
    %437 = arith.addf %435, %436 : vector<16x64xf32>
    %c1_187 = arith.constant 1 : index
    %c0_188 = arith.constant 0 : index
    %c0_189 = arith.constant 0 : index
    %438 = vector.load %arg9[%c1_187, %c0_188, %c0_189] : memref<2x64x128xf32, #tpu.memory_space<vmem>>, vector<1x64x128xf32>
    %439 = vector.shape_cast %438 : vector<1x64x128xf32> to vector<64x128xf32>
    %c1_190 = arith.constant 1 : index
    %c0_191 = arith.constant 0 : index
    %c0_192 = arith.constant 0 : index
    %440 = vector.load %arg10[%c1_190, %c0_191, %c0_192] : memref<2x1x128xf32, #tpu.memory_space<vmem>>, vector<1x1x128xf32>
    %441 = vector.shape_cast %440 : vector<1x1x128xf32> to vector<1x128xf32>
    %cst_193 = arith.constant dense<0.000000e+00> : vector<16x128xf32>
    %442 = tpu.matmul %437, %439, %cst_193 {dimension_numbers = #tpu.dot_dimension_numbers<[1], [0], [0], [1], [0, 0, 1, 1], [], []>} : vector<16x64xf32>, vector<64x128xf32>, vector<16x128xf32> -> vector<16x128xf32>
    %443 = vector.broadcast %441 : vector<1x128xf32> to vector<16x128xf32>
    %444 = arith.addf %442, %443 : vector<16x128xf32>
    %cst_194 = arith.constant 0.000000e+00 : f32
    %445 = vector.broadcast %cst_194 : f32 to vector<16x128xf32>
    %446 = arith.maximumf %444, %445 : vector<16x128xf32>
    %c1_195 = arith.constant 1 : index
    %c0_196 = arith.constant 0 : index
    %c0_197 = arith.constant 0 : index
    %447 = vector.load %arg11[%c1_195, %c0_196, %c0_197] : memref<2x128x64xf32, #tpu.memory_space<vmem>>, vector<1x128x64xf32>
    %448 = vector.shape_cast %447 : vector<1x128x64xf32> to vector<128x64xf32>
    %c1_198 = arith.constant 1 : index
    %c0_199 = arith.constant 0 : index
    %c0_200 = arith.constant 0 : index
    %449 = vector.load %arg12[%c1_198, %c0_199, %c0_200] : memref<2x1x64xf32, #tpu.memory_space<vmem>>, vector<1x1x64xf32>
    %450 = vector.shape_cast %449 : vector<1x1x64xf32> to vector<1x64xf32>
    %cst_201 = arith.constant dense<0.000000e+00> : vector<16x64xf32>
    %451 = tpu.matmul %446, %448, %cst_201 {dimension_numbers = #tpu.dot_dimension_numbers<[1], [0], [0], [1], [0, 0, 1, 1], [], []>} : vector<16x128xf32>, vector<128x64xf32>, vector<16x64xf32> -> vector<16x64xf32>
    %452 = vector.broadcast %450 : vector<1x64xf32> to vector<16x64xf32>
    %453 = arith.addf %451, %452 : vector<16x64xf32>
    %454 = arith.addf %437, %453 : vector<16x64xf32>
    %c1_202 = arith.constant 1 : index
    %c0_203 = arith.constant 0 : index
    %c0_204 = arith.constant 0 : index
    %455 = vector.load %arg13[%c1_202, %c0_203, %c0_204] : memref<2x1x64xf32, #tpu.memory_space<vmem>>, vector<1x1x64xf32>
    %456 = vector.shape_cast %455 : vector<1x1x64xf32> to vector<1x64xf32>
    %c1_205 = arith.constant 1 : index
    %c0_206 = arith.constant 0 : index
    %c0_207 = arith.constant 0 : index
    %457 = vector.load %arg14[%c1_205, %c0_206, %c0_207] : memref<2x1x64xf32, #tpu.memory_space<vmem>>, vector<1x1x64xf32>
    %458 = vector.shape_cast %457 : vector<1x1x64xf32> to vector<1x64xf32>
    %cst_208 = arith.constant dense<0.000000e+00> : vector<16xf32>
    %459 = vector.multi_reduction <add>, %454, %cst_208 [1] : vector<16x64xf32> to vector<16xf32>
    %460 = vector.shape_cast %459 : vector<16xf32> to vector<16x1xf32>
    %cst_209 = arith.constant 6.400000e+01 : f32
    %461 = vector.broadcast %cst_209 : f32 to vector<16x1xf32>
    %462 = arith.divf %460, %461 : vector<16x1xf32>
    %463 = vector.broadcast %462 : vector<16x1xf32> to vector<16x64xf32>
    %464 = arith.subf %454, %463 : vector<16x64xf32>
    %465 = arith.mulf %464, %464 : vector<16x64xf32>
    %cst_210 = arith.constant dense<0.000000e+00> : vector<16xf32>
    %466 = vector.multi_reduction <add>, %465, %cst_210 [1] : vector<16x64xf32> to vector<16xf32>
    %467 = vector.shape_cast %466 : vector<16xf32> to vector<16x1xf32>
    %cst_211 = arith.constant 6.400000e+01 : f32
    %468 = vector.broadcast %cst_211 : f32 to vector<16x1xf32>
    %469 = arith.divf %467, %468 : vector<16x1xf32>
    %470 = vector.broadcast %462 : vector<16x1xf32> to vector<16x64xf32>
    %471 = arith.subf %454, %470 : vector<16x64xf32>
    %cst_212 = arith.constant 9.99999974E-6 : f32
    %472 = vector.broadcast %cst_212 : f32 to vector<16x1xf32>
    %473 = arith.addf %469, %472 : vector<16x1xf32>
    %474 = math.rsqrt %473 : vector<16x1xf32>
    %475 = vector.broadcast %474 : vector<16x1xf32> to vector<16x64xf32>
    %476 = arith.mulf %471, %475 : vector<16x64xf32>
    %477 = vector.broadcast %456 : vector<1x64xf32> to vector<16x64xf32>
    %478 = arith.mulf %476, %477 : vector<16x64xf32>
    %479 = vector.broadcast %458 : vector<1x64xf32> to vector<16x64xf32>
    %480 = arith.addf %478, %479 : vector<16x64xf32>
    %c0_213 = arith.constant 0 : index
    %c0_214 = arith.constant 0 : index
    %481 = vector.load %arg35[%c0_213, %c0_214] : memref<1x64xf32, #tpu.memory_space<vmem>>, vector<1x64xf32>
    %c0_215 = arith.constant 0 : index
    %c0_216 = arith.constant 0 : index
    %482 = vector.load %arg36[%c0_215, %c0_216] : memref<1x64xf32, #tpu.memory_space<vmem>>, vector<1x64xf32>
    %cst_217 = arith.constant dense<0.000000e+00> : vector<16xf32>
    %483 = vector.multi_reduction <add>, %480, %cst_217 [1] : vector<16x64xf32> to vector<16xf32>
    %484 = vector.shape_cast %483 : vector<16xf32> to vector<16x1xf32>
    %cst_218 = arith.constant 6.400000e+01 : f32
    %485 = vector.broadcast %cst_218 : f32 to vector<16x1xf32>
    %486 = arith.divf %484, %485 : vector<16x1xf32>
    %487 = vector.broadcast %486 : vector<16x1xf32> to vector<16x64xf32>
    %488 = arith.subf %480, %487 : vector<16x64xf32>
    %489 = arith.mulf %488, %488 : vector<16x64xf32>
    %cst_219 = arith.constant dense<0.000000e+00> : vector<16xf32>
    %490 = vector.multi_reduction <add>, %489, %cst_219 [1] : vector<16x64xf32> to vector<16xf32>
    %491 = vector.shape_cast %490 : vector<16xf32> to vector<16x1xf32>
    %cst_220 = arith.constant 6.400000e+01 : f32
    %492 = vector.broadcast %cst_220 : f32 to vector<16x1xf32>
    %493 = arith.divf %491, %492 : vector<16x1xf32>
    %494 = vector.broadcast %486 : vector<16x1xf32> to vector<16x64xf32>
    %495 = arith.subf %480, %494 : vector<16x64xf32>
    %cst_221 = arith.constant 9.99999974E-6 : f32
    %496 = vector.broadcast %cst_221 : f32 to vector<16x1xf32>
    %497 = arith.addf %493, %496 : vector<16x1xf32>
    %498 = math.rsqrt %497 : vector<16x1xf32>
    %499 = vector.broadcast %498 : vector<16x1xf32> to vector<16x64xf32>
    %500 = arith.mulf %495, %499 : vector<16x64xf32>
    %501 = vector.broadcast %481 : vector<1x64xf32> to vector<16x64xf32>
    %502 = arith.mulf %500, %501 : vector<16x64xf32>
    %503 = vector.broadcast %482 : vector<1x64xf32> to vector<16x64xf32>
    %504 = arith.addf %502, %503 : vector<16x64xf32>
    %c0_222 = arith.constant 0 : index
    %c0_223 = arith.constant 0 : index
    %505 = vector.load %arg2[%c0_222, %c0_223] : memref<8x8xf32, #tpu.memory_space<vmem>>, vector<8x8xf32>
    %c0_224 = arith.constant 0 : index
    %c0_225 = arith.constant 0 : index
    %506 = vector.load %arg1[%c0_224, %c0_225] : memref<16x64xf32, #tpu.memory_space<vmem>>, vector<16x64xf32>
    %c0_226 = arith.constant 0 : index
    %c0_227 = arith.constant 0 : index
    %c0_228 = arith.constant 0 : index
    %507 = vector.load %arg15[%c0_226, %c0_227, %c0_228] : memref<2x64x192xf32, #tpu.memory_space<vmem>>, vector<1x64x192xf32>
    %508 = vector.shape_cast %507 : vector<1x64x192xf32> to vector<64x192xf32>
    %c0_229 = arith.constant 0 : index
    %c0_230 = arith.constant 0 : index
    %c0_231 = arith.constant 0 : index
    %509 = vector.load %arg16[%c0_229, %c0_230, %c0_231] : memref<2x1x192xf32, #tpu.memory_space<vmem>>, vector<1x1x192xf32>
    %510 = vector.shape_cast %509 : vector<1x1x192xf32> to vector<1x192xf32>
    %cst_232 = arith.constant dense<0.000000e+00> : vector<16x192xf32>
    %511 = tpu.matmul %506, %508, %cst_232 {dimension_numbers = #tpu.dot_dimension_numbers<[1], [0], [0], [1], [0, 0, 1, 1], [], []>} : vector<16x64xf32>, vector<64x192xf32>, vector<16x192xf32> -> vector<16x192xf32>
    %512 = vector.broadcast %510 : vector<1x192xf32> to vector<16x192xf32>
    %513 = arith.addf %511, %512 : vector<16x192xf32>
    %514 = vector.extract_strided_slice %513 {offsets = [0, 0], sizes = [16, 64], strides = [1, 1]} : vector<16x192xf32> to vector<16x64xf32>
    %515 = vector.extract_strided_slice %513 {offsets = [0, 64], sizes = [16, 64], strides = [1, 1]} : vector<16x192xf32> to vector<16x64xf32>
    %516 = vector.extract_strided_slice %513 {offsets = [0, 128], sizes = [16, 64], strides = [1, 1]} : vector<16x192xf32> to vector<16x64xf32>
    %517 = vector.extract_strided_slice %514 {offsets = [0, 0], sizes = [8, 16], strides = [1, 1]} : vector<16x64xf32> to vector<8x16xf32>
    %518 = vector.extract_strided_slice %515 {offsets = [0, 0], sizes = [8, 16], strides = [1, 1]} : vector<16x64xf32> to vector<8x16xf32>
    %519 = vector.extract_strided_slice %516 {offsets = [0, 0], sizes = [8, 16], strides = [1, 1]} : vector<16x64xf32> to vector<8x16xf32>
    %520 = tpu.transpose %518, [1, 0] : vector<8x16xf32> -> vector<16x8xf32>
    %cst_233 = arith.constant dense<0.000000e+00> : vector<8x8xf32>
    %521 = tpu.matmul %517, %520, %cst_233 {dimension_numbers = #tpu.dot_dimension_numbers<[1], [0], [0], [1], [0, 0, 1, 1], [], []>} : vector<8x16xf32>, vector<16x8xf32>, vector<8x8xf32> -> vector<8x8xf32>
    %cst_234 = arith.constant 2.500000e-01 : f32
    %522 = vector.broadcast %cst_234 : f32 to vector<8x8xf32>
    %523 = arith.mulf %521, %522 : vector<8x8xf32>
    %524 = arith.addf %523, %505 : vector<8x8xf32>
    %cst_235 = arith.constant dense<0xFF800000> : vector<8xf32>
    %525 = vector.multi_reduction <maximumf>, %524, %cst_235 [1] : vector<8x8xf32> to vector<8xf32>
    %526 = vector.shape_cast %525 : vector<8xf32> to vector<8x1xf32>
    %527 = vector.broadcast %526 : vector<8x1xf32> to vector<8x8xf32>
    %528 = arith.subf %524, %527 : vector<8x8xf32>
    %529 = math.exp %528 : vector<8x8xf32>
    %cst_236 = arith.constant dense<0.000000e+00> : vector<8xf32>
    %530 = vector.multi_reduction <add>, %529, %cst_236 [1] : vector<8x8xf32> to vector<8xf32>
    %531 = vector.shape_cast %530 : vector<8xf32> to vector<8x1xf32>
    %532 = tpu.reciprocal %531 {approx = true} : vector<8x1xf32> -> vector<8x1xf32>
    %533 = vector.broadcast %532 : vector<8x1xf32> to vector<8x8xf32>
    %534 = arith.mulf %529, %533 : vector<8x8xf32>
    %cst_237 = arith.constant dense<0.000000e+00> : vector<8x16xf32>
    %535 = tpu.matmul %534, %519, %cst_237 {dimension_numbers = #tpu.dot_dimension_numbers<[1], [0], [0], [1], [0, 0, 1, 1], [], []>} : vector<8x8xf32>, vector<8x16xf32>, vector<8x16xf32> -> vector<8x16xf32>
    %c0_238 = arith.constant 0 : index
    %c0_239 = arith.constant 0 : index
    %536 = vector.load %arg42[%c0_238, %c0_239] : memref<16x64xf32, #tpu.memory_space<vmem>>, vector<8x16xf32>
    tpu.vector_store %arg42[%c0_238, %c0_239], %535 {strides = array<i32>} : memref<16x64xf32, #tpu.memory_space<vmem>>, vector<8x16xf32>,
    %537 = vector.extract_strided_slice %514 {offsets = [0, 16], sizes = [8, 16], strides = [1, 1]} : vector<16x64xf32> to vector<8x16xf32>
    %538 = vector.extract_strided_slice %515 {offsets = [0, 16], sizes = [8, 16], strides = [1, 1]} : vector<16x64xf32> to vector<8x16xf32>
    %539 = vector.extract_strided_slice %516 {offsets = [0, 16], sizes = [8, 16], strides = [1, 1]} : vector<16x64xf32> to vector<8x16xf32>
    %540 = tpu.transpose %538, [1, 0] : vector<8x16xf32> -> vector<16x8xf32>
    %cst_240 = arith.constant dense<0.000000e+00> : vector<8x8xf32>
    %541 = tpu.matmul %537, %540, %cst_240 {dimension_numbers = #tpu.dot_dimension_numbers<[1], [0], [0], [1], [0, 0, 1, 1], [], []>} : vector<8x16xf32>, vector<16x8xf32>, vector<8x8xf32> -> vector<8x8xf32>
    %cst_241 = arith.constant 2.500000e-01 : f32
    %542 = vector.broadcast %cst_241 : f32 to vector<8x8xf32>
    %543 = arith.mulf %541, %542 : vector<8x8xf32>
    %544 = arith.addf %543, %505 : vector<8x8xf32>
    %cst_242 = arith.constant dense<0xFF800000> : vector<8xf32>
    %545 = vector.multi_reduction <maximumf>, %544, %cst_242 [1] : vector<8x8xf32> to vector<8xf32>
    %546 = vector.shape_cast %545 : vector<8xf32> to vector<8x1xf32>
    %547 = vector.broadcast %546 : vector<8x1xf32> to vector<8x8xf32>
    %548 = arith.subf %544, %547 : vector<8x8xf32>
    %549 = math.exp %548 : vector<8x8xf32>
    %cst_243 = arith.constant dense<0.000000e+00> : vector<8xf32>
    %550 = vector.multi_reduction <add>, %549, %cst_243 [1] : vector<8x8xf32> to vector<8xf32>
    %551 = vector.shape_cast %550 : vector<8xf32> to vector<8x1xf32>
    %552 = tpu.reciprocal %551 {approx = true} : vector<8x1xf32> -> vector<8x1xf32>
    %553 = vector.broadcast %552 : vector<8x1xf32> to vector<8x8xf32>
    %554 = arith.mulf %549, %553 : vector<8x8xf32>
    %cst_244 = arith.constant dense<0.000000e+00> : vector<8x16xf32>
    %555 = tpu.matmul %554, %539, %cst_244 {dimension_numbers = #tpu.dot_dimension_numbers<[1], [0], [0], [1], [0, 0, 1, 1], [], []>} : vector<8x8xf32>, vector<8x16xf32>, vector<8x16xf32> -> vector<8x16xf32>
    %c0_245 = arith.constant 0 : index
    %c16_246 = arith.constant 16 : index
    %556 = vector.load %arg42[%c0_245, %c16_246] : memref<16x64xf32, #tpu.memory_space<vmem>>, vector<8x16xf32>
    tpu.vector_store %arg42[%c0_245, %c16_246], %555 {strides = array<i32>} : memref<16x64xf32, #tpu.memory_space<vmem>>, vector<8x16xf32>,
    %557 = vector.extract_strided_slice %514 {offsets = [0, 32], sizes = [8, 16], strides = [1, 1]} : vector<16x64xf32> to vector<8x16xf32>
    %558 = vector.extract_strided_slice %515 {offsets = [0, 32], sizes = [8, 16], strides = [1, 1]} : vector<16x64xf32> to vector<8x16xf32>
    %559 = vector.extract_strided_slice %516 {offsets = [0, 32], sizes = [8, 16], strides = [1, 1]} : vector<16x64xf32> to vector<8x16xf32>
    %560 = tpu.transpose %558, [1, 0] : vector<8x16xf32> -> vector<16x8xf32>
    %cst_247 = arith.constant dense<0.000000e+00> : vector<8x8xf32>
    %561 = tpu.matmul %557, %560, %cst_247 {dimension_numbers = #tpu.dot_dimension_numbers<[1], [0], [0], [1], [0, 0, 1, 1], [], []>} : vector<8x16xf32>, vector<16x8xf32>, vector<8x8xf32> -> vector<8x8xf32>
    %cst_248 = arith.constant 2.500000e-01 : f32
    %562 = vector.broadcast %cst_248 : f32 to vector<8x8xf32>
    %563 = arith.mulf %561, %562 : vector<8x8xf32>
    %564 = arith.addf %563, %505 : vector<8x8xf32>
    %cst_249 = arith.constant dense<0xFF800000> : vector<8xf32>
    %565 = vector.multi_reduction <maximumf>, %564, %cst_249 [1] : vector<8x8xf32> to vector<8xf32>
    %566 = vector.shape_cast %565 : vector<8xf32> to vector<8x1xf32>
    %567 = vector.broadcast %566 : vector<8x1xf32> to vector<8x8xf32>
    %568 = arith.subf %564, %567 : vector<8x8xf32>
    %569 = math.exp %568 : vector<8x8xf32>
    %cst_250 = arith.constant dense<0.000000e+00> : vector<8xf32>
    %570 = vector.multi_reduction <add>, %569, %cst_250 [1] : vector<8x8xf32> to vector<8xf32>
    %571 = vector.shape_cast %570 : vector<8xf32> to vector<8x1xf32>
    %572 = tpu.reciprocal %571 {approx = true} : vector<8x1xf32> -> vector<8x1xf32>
    %573 = vector.broadcast %572 : vector<8x1xf32> to vector<8x8xf32>
    %574 = arith.mulf %569, %573 : vector<8x8xf32>
    %cst_251 = arith.constant dense<0.000000e+00> : vector<8x16xf32>
    %575 = tpu.matmul %574, %559, %cst_251 {dimension_numbers = #tpu.dot_dimension_numbers<[1], [0], [0], [1], [0, 0, 1, 1], [], []>} : vector<8x8xf32>, vector<8x16xf32>, vector<8x16xf32> -> vector<8x16xf32>
    %c0_252 = arith.constant 0 : index
    %c32_253 = arith.constant 32 : index
    %576 = vector.load %arg42[%c0_252, %c32_253] : memref<16x64xf32, #tpu.memory_space<vmem>>, vector<8x16xf32>
    tpu.vector_store %arg42[%c0_252, %c32_253], %575 {strides = array<i32>} : memref<16x64xf32, #tpu.memory_space<vmem>>, vector<8x16xf32>,
    %577 = vector.extract_strided_slice %514 {offsets = [0, 48], sizes = [8, 16], strides = [1, 1]} : vector<16x64xf32> to vector<8x16xf32>
    %578 = vector.extract_strided_slice %515 {offsets = [0, 48], sizes = [8, 16], strides = [1, 1]} : vector<16x64xf32> to vector<8x16xf32>
    %579 = vector.extract_strided_slice %516 {offsets = [0, 48], sizes = [8, 16], strides = [1, 1]} : vector<16x64xf32> to vector<8x16xf32>
    %580 = tpu.transpose %578, [1, 0] : vector<8x16xf32> -> vector<16x8xf32>
    %cst_254 = arith.constant dense<0.000000e+00> : vector<8x8xf32>
    %581 = tpu.matmul %577, %580, %cst_254 {dimension_numbers = #tpu.dot_dimension_numbers<[1], [0], [0], [1], [0, 0, 1, 1], [], []>} : vector<8x16xf32>, vector<16x8xf32>, vector<8x8xf32> -> vector<8x8xf32>
    %cst_255 = arith.constant 2.500000e-01 : f32
    %582 = vector.broadcast %cst_255 : f32 to vector<8x8xf32>
    %583 = arith.mulf %581, %582 : vector<8x8xf32>
    %584 = arith.addf %583, %505 : vector<8x8xf32>
    %cst_256 = arith.constant dense<0xFF800000> : vector<8xf32>
    %585 = vector.multi_reduction <maximumf>, %584, %cst_256 [1] : vector<8x8xf32> to vector<8xf32>
    %586 = vector.shape_cast %585 : vector<8xf32> to vector<8x1xf32>
    %587 = vector.broadcast %586 : vector<8x1xf32> to vector<8x8xf32>
    %588 = arith.subf %584, %587 : vector<8x8xf32>
    %589 = math.exp %588 : vector<8x8xf32>
    %cst_257 = arith.constant dense<0.000000e+00> : vector<8xf32>
    %590 = vector.multi_reduction <add>, %589, %cst_257 [1] : vector<8x8xf32> to vector<8xf32>
    %591 = vector.shape_cast %590 : vector<8xf32> to vector<8x1xf32>
    %592 = tpu.reciprocal %591 {approx = true} : vector<8x1xf32> -> vector<8x1xf32>
    %593 = vector.broadcast %592 : vector<8x1xf32> to vector<8x8xf32>
    %594 = arith.mulf %589, %593 : vector<8x8xf32>
    %cst_258 = arith.constant dense<0.000000e+00> : vector<8x16xf32>
    %595 = tpu.matmul %594, %579, %cst_258 {dimension_numbers = #tpu.dot_dimension_numbers<[1], [0], [0], [1], [0, 0, 1, 1], [], []>} : vector<8x8xf32>, vector<8x16xf32>, vector<8x16xf32> -> vector<8x16xf32>
    %c0_259 = arith.constant 0 : index
    %c48_260 = arith.constant 48 : index
    %596 = vector.load %arg42[%c0_259, %c48_260] : memref<16x64xf32, #tpu.memory_space<vmem>>, vector<8x16xf32>
    tpu.vector_store %arg42[%c0_259, %c48_260], %595 {strides = array<i32>} : memref<16x64xf32, #tpu.memory_space<vmem>>, vector<8x16xf32>,
    %597 = vector.extract_strided_slice %514 {offsets = [8, 0], sizes = [8, 16], strides = [1, 1]} : vector<16x64xf32> to vector<8x16xf32>
    %598 = vector.extract_strided_slice %515 {offsets = [8, 0], sizes = [8, 16], strides = [1, 1]} : vector<16x64xf32> to vector<8x16xf32>
    %599 = vector.extract_strided_slice %516 {offsets = [8, 0], sizes = [8, 16], strides = [1, 1]} : vector<16x64xf32> to vector<8x16xf32>
    %600 = tpu.transpose %598, [1, 0] : vector<8x16xf32> -> vector<16x8xf32>
    %cst_261 = arith.constant dense<0.000000e+00> : vector<8x8xf32>
    %601 = tpu.matmul %597, %600, %cst_261 {dimension_numbers = #tpu.dot_dimension_numbers<[1], [0], [0], [1], [0, 0, 1, 1], [], []>} : vector<8x16xf32>, vector<16x8xf32>, vector<8x8xf32> -> vector<8x8xf32>
    %cst_262 = arith.constant 2.500000e-01 : f32
    %602 = vector.broadcast %cst_262 : f32 to vector<8x8xf32>
    %603 = arith.mulf %601, %602 : vector<8x8xf32>
    %604 = arith.addf %603, %505 : vector<8x8xf32>
    %cst_263 = arith.constant dense<0xFF800000> : vector<8xf32>
    %605 = vector.multi_reduction <maximumf>, %604, %cst_263 [1] : vector<8x8xf32> to vector<8xf32>
    %606 = vector.shape_cast %605 : vector<8xf32> to vector<8x1xf32>
    %607 = vector.broadcast %606 : vector<8x1xf32> to vector<8x8xf32>
    %608 = arith.subf %604, %607 : vector<8x8xf32>
    %609 = math.exp %608 : vector<8x8xf32>
    %cst_264 = arith.constant dense<0.000000e+00> : vector<8xf32>
    %610 = vector.multi_reduction <add>, %609, %cst_264 [1] : vector<8x8xf32> to vector<8xf32>
    %611 = vector.shape_cast %610 : vector<8xf32> to vector<8x1xf32>
    %612 = tpu.reciprocal %611 {approx = true} : vector<8x1xf32> -> vector<8x1xf32>
    %613 = vector.broadcast %612 : vector<8x1xf32> to vector<8x8xf32>
    %614 = arith.mulf %609, %613 : vector<8x8xf32>
    %cst_265 = arith.constant dense<0.000000e+00> : vector<8x16xf32>
    %615 = tpu.matmul %614, %599, %cst_265 {dimension_numbers = #tpu.dot_dimension_numbers<[1], [0], [0], [1], [0, 0, 1, 1], [], []>} : vector<8x8xf32>, vector<8x16xf32>, vector<8x16xf32> -> vector<8x16xf32>
    %c8_266 = arith.constant 8 : index
    %c0_267 = arith.constant 0 : index
    %616 = vector.load %arg42[%c8_266, %c0_267] : memref<16x64xf32, #tpu.memory_space<vmem>>, vector<8x16xf32>
    tpu.vector_store %arg42[%c8_266, %c0_267], %615 {strides = array<i32>} : memref<16x64xf32, #tpu.memory_space<vmem>>, vector<8x16xf32>,
    %617 = vector.extract_strided_slice %514 {offsets = [8, 16], sizes = [8, 16], strides = [1, 1]} : vector<16x64xf32> to vector<8x16xf32>
    %618 = vector.extract_strided_slice %515 {offsets = [8, 16], sizes = [8, 16], strides = [1, 1]} : vector<16x64xf32> to vector<8x16xf32>
    %619 = vector.extract_strided_slice %516 {offsets = [8, 16], sizes = [8, 16], strides = [1, 1]} : vector<16x64xf32> to vector<8x16xf32>
    %620 = tpu.transpose %618, [1, 0] : vector<8x16xf32> -> vector<16x8xf32>
    %cst_268 = arith.constant dense<0.000000e+00> : vector<8x8xf32>
    %621 = tpu.matmul %617, %620, %cst_268 {dimension_numbers = #tpu.dot_dimension_numbers<[1], [0], [0], [1], [0, 0, 1, 1], [], []>} : vector<8x16xf32>, vector<16x8xf32>, vector<8x8xf32> -> vector<8x8xf32>
    %cst_269 = arith.constant 2.500000e-01 : f32
    %622 = vector.broadcast %cst_269 : f32 to vector<8x8xf32>
    %623 = arith.mulf %621, %622 : vector<8x8xf32>
    %624 = arith.addf %623, %505 : vector<8x8xf32>
    %cst_270 = arith.constant dense<0xFF800000> : vector<8xf32>
    %625 = vector.multi_reduction <maximumf>, %624, %cst_270 [1] : vector<8x8xf32> to vector<8xf32>
    %626 = vector.shape_cast %625 : vector<8xf32> to vector<8x1xf32>
    %627 = vector.broadcast %626 : vector<8x1xf32> to vector<8x8xf32>
    %628 = arith.subf %624, %627 : vector<8x8xf32>
    %629 = math.exp %628 : vector<8x8xf32>
    %cst_271 = arith.constant dense<0.000000e+00> : vector<8xf32>
    %630 = vector.multi_reduction <add>, %629, %cst_271 [1] : vector<8x8xf32> to vector<8xf32>
    %631 = vector.shape_cast %630 : vector<8xf32> to vector<8x1xf32>
    %632 = tpu.reciprocal %631 {approx = true} : vector<8x1xf32> -> vector<8x1xf32>
    %633 = vector.broadcast %632 : vector<8x1xf32> to vector<8x8xf32>
    %634 = arith.mulf %629, %633 : vector<8x8xf32>
    %cst_272 = arith.constant dense<0.000000e+00> : vector<8x16xf32>
    %635 = tpu.matmul %634, %619, %cst_272 {dimension_numbers = #tpu.dot_dimension_numbers<[1], [0], [0], [1], [0, 0, 1, 1], [], []>} : vector<8x8xf32>, vector<8x16xf32>, vector<8x16xf32> -> vector<8x16xf32>
    %c8_273 = arith.constant 8 : index
    %c16_274 = arith.constant 16 : index
    %636 = vector.load %arg42[%c8_273, %c16_274] : memref<16x64xf32, #tpu.memory_space<vmem>>, vector<8x16xf32>
    tpu.vector_store %arg42[%c8_273, %c16_274], %635 {strides = array<i32>} : memref<16x64xf32, #tpu.memory_space<vmem>>, vector<8x16xf32>,
    %637 = vector.extract_strided_slice %514 {offsets = [8, 32], sizes = [8, 16], strides = [1, 1]} : vector<16x64xf32> to vector<8x16xf32>
    %638 = vector.extract_strided_slice %515 {offsets = [8, 32], sizes = [8, 16], strides = [1, 1]} : vector<16x64xf32> to vector<8x16xf32>
    %639 = vector.extract_strided_slice %516 {offsets = [8, 32], sizes = [8, 16], strides = [1, 1]} : vector<16x64xf32> to vector<8x16xf32>
    %640 = tpu.transpose %638, [1, 0] : vector<8x16xf32> -> vector<16x8xf32>
    %cst_275 = arith.constant dense<0.000000e+00> : vector<8x8xf32>
    %641 = tpu.matmul %637, %640, %cst_275 {dimension_numbers = #tpu.dot_dimension_numbers<[1], [0], [0], [1], [0, 0, 1, 1], [], []>} : vector<8x16xf32>, vector<16x8xf32>, vector<8x8xf32> -> vector<8x8xf32>
    %cst_276 = arith.constant 2.500000e-01 : f32
    %642 = vector.broadcast %cst_276 : f32 to vector<8x8xf32>
    %643 = arith.mulf %641, %642 : vector<8x8xf32>
    %644 = arith.addf %643, %505 : vector<8x8xf32>
    %cst_277 = arith.constant dense<0xFF800000> : vector<8xf32>
    %645 = vector.multi_reduction <maximumf>, %644, %cst_277 [1] : vector<8x8xf32> to vector<8xf32>
    %646 = vector.shape_cast %645 : vector<8xf32> to vector<8x1xf32>
    %647 = vector.broadcast %646 : vector<8x1xf32> to vector<8x8xf32>
    %648 = arith.subf %644, %647 : vector<8x8xf32>
    %649 = math.exp %648 : vector<8x8xf32>
    %cst_278 = arith.constant dense<0.000000e+00> : vector<8xf32>
    %650 = vector.multi_reduction <add>, %649, %cst_278 [1] : vector<8x8xf32> to vector<8xf32>
    %651 = vector.shape_cast %650 : vector<8xf32> to vector<8x1xf32>
    %652 = tpu.reciprocal %651 {approx = true} : vector<8x1xf32> -> vector<8x1xf32>
    %653 = vector.broadcast %652 : vector<8x1xf32> to vector<8x8xf32>
    %654 = arith.mulf %649, %653 : vector<8x8xf32>
    %cst_279 = arith.constant dense<0.000000e+00> : vector<8x16xf32>
    %655 = tpu.matmul %654, %639, %cst_279 {dimension_numbers = #tpu.dot_dimension_numbers<[1], [0], [0], [1], [0, 0, 1, 1], [], []>} : vector<8x8xf32>, vector<8x16xf32>, vector<8x16xf32> -> vector<8x16xf32>
    %c8_280 = arith.constant 8 : index
    %c32_281 = arith.constant 32 : index
    %656 = vector.load %arg42[%c8_280, %c32_281] : memref<16x64xf32, #tpu.memory_space<vmem>>, vector<8x16xf32>
    tpu.vector_store %arg42[%c8_280, %c32_281], %655 {strides = array<i32>} : memref<16x64xf32, #tpu.memory_space<vmem>>, vector<8x16xf32>,
    %657 = vector.extract_strided_slice %514 {offsets = [8, 48], sizes = [8, 16], strides = [1, 1]} : vector<16x64xf32> to vector<8x16xf32>
    %658 = vector.extract_strided_slice %515 {offsets = [8, 48], sizes = [8, 16], strides = [1, 1]} : vector<16x64xf32> to vector<8x16xf32>
    %659 = vector.extract_strided_slice %516 {offsets = [8, 48], sizes = [8, 16], strides = [1, 1]} : vector<16x64xf32> to vector<8x16xf32>
    %660 = tpu.transpose %658, [1, 0] : vector<8x16xf32> -> vector<16x8xf32>
    %cst_282 = arith.constant dense<0.000000e+00> : vector<8x8xf32>
    %661 = tpu.matmul %657, %660, %cst_282 {dimension_numbers = #tpu.dot_dimension_numbers<[1], [0], [0], [1], [0, 0, 1, 1], [], []>} : vector<8x16xf32>, vector<16x8xf32>, vector<8x8xf32> -> vector<8x8xf32>
    %cst_283 = arith.constant 2.500000e-01 : f32
    %662 = vector.broadcast %cst_283 : f32 to vector<8x8xf32>
    %663 = arith.mulf %661, %662 : vector<8x8xf32>
    %664 = arith.addf %663, %505 : vector<8x8xf32>
    %cst_284 = arith.constant dense<0xFF800000> : vector<8xf32>
    %665 = vector.multi_reduction <maximumf>, %664, %cst_284 [1] : vector<8x8xf32> to vector<8xf32>
    %666 = vector.shape_cast %665 : vector<8xf32> to vector<8x1xf32>
    %667 = vector.broadcast %666 : vector<8x1xf32> to vector<8x8xf32>
    %668 = arith.subf %664, %667 : vector<8x8xf32>
    %669 = math.exp %668 : vector<8x8xf32>
    %cst_285 = arith.constant dense<0.000000e+00> : vector<8xf32>
    %670 = vector.multi_reduction <add>, %669, %cst_285 [1] : vector<8x8xf32> to vector<8xf32>
    %671 = vector.shape_cast %670 : vector<8xf32> to vector<8x1xf32>
    %672 = tpu.reciprocal %671 {approx = true} : vector<8x1xf32> -> vector<8x1xf32>
    %673 = vector.broadcast %672 : vector<8x1xf32> to vector<8x8xf32>
    %674 = arith.mulf %669, %673 : vector<8x8xf32>
    %cst_286 = arith.constant dense<0.000000e+00> : vector<8x16xf32>
    %675 = tpu.matmul %674, %659, %cst_286 {dimension_numbers = #tpu.dot_dimension_numbers<[1], [0], [0], [1], [0, 0, 1, 1], [], []>} : vector<8x8xf32>, vector<8x16xf32>, vector<8x16xf32> -> vector<8x16xf32>
    %c8_287 = arith.constant 8 : index
    %c48_288 = arith.constant 48 : index
    %676 = vector.load %arg42[%c8_287, %c48_288] : memref<16x64xf32, #tpu.memory_space<vmem>>, vector<8x16xf32>
    tpu.vector_store %arg42[%c8_287, %c48_288], %675 {strides = array<i32>} : memref<16x64xf32, #tpu.memory_space<vmem>>, vector<8x16xf32>,
    %c0_289 = arith.constant 0 : index
    %c0_290 = arith.constant 0 : index
    %677 = vector.load %arg42[%c0_289, %c0_290] : memref<16x64xf32, #tpu.memory_space<vmem>>, vector<16x64xf32>
    %c0_291 = arith.constant 0 : index
    %c0_292 = arith.constant 0 : index
    %c0_293 = arith.constant 0 : index
    %678 = vector.load %arg17[%c0_291, %c0_292, %c0_293] : memref<2x64x64xf32, #tpu.memory_space<vmem>>, vector<1x64x64xf32>
    %679 = vector.shape_cast %678 : vector<1x64x64xf32> to vector<64x64xf32>
    %c0_294 = arith.constant 0 : index
    %c0_295 = arith.constant 0 : index
    %c0_296 = arith.constant 0 : index
    %680 = vector.load %arg18[%c0_294, %c0_295, %c0_296] : memref<2x1x64xf32, #tpu.memory_space<vmem>>, vector<1x1x64xf32>
    %681 = vector.shape_cast %680 : vector<1x1x64xf32> to vector<1x64xf32>
    %cst_297 = arith.constant dense<0.000000e+00> : vector<16x64xf32>
    %682 = tpu.matmul %677, %679, %cst_297 {dimension_numbers = #tpu.dot_dimension_numbers<[1], [0], [0], [1], [0, 0, 1, 1], [], []>} : vector<16x64xf32>, vector<64x64xf32>, vector<16x64xf32> -> vector<16x64xf32>
    %683 = vector.broadcast %681 : vector<1x64xf32> to vector<16x64xf32>
    %684 = arith.addf %682, %683 : vector<16x64xf32>
    %685 = arith.addf %506, %684 : vector<16x64xf32>
    %c0_298 = arith.constant 0 : index
    %c0_299 = arith.constant 0 : index
    %c0_300 = arith.constant 0 : index
    %686 = vector.load %arg19[%c0_298, %c0_299, %c0_300] : memref<2x1x64xf32, #tpu.memory_space<vmem>>, vector<1x1x64xf32>
    %687 = vector.shape_cast %686 : vector<1x1x64xf32> to vector<1x64xf32>
    %c0_301 = arith.constant 0 : index
    %c0_302 = arith.constant 0 : index
    %c0_303 = arith.constant 0 : index
    %688 = vector.load %arg20[%c0_301, %c0_302, %c0_303] : memref<2x1x64xf32, #tpu.memory_space<vmem>>, vector<1x1x64xf32>
    %689 = vector.shape_cast %688 : vector<1x1x64xf32> to vector<1x64xf32>
    %cst_304 = arith.constant dense<0.000000e+00> : vector<16xf32>
    %690 = vector.multi_reduction <add>, %685, %cst_304 [1] : vector<16x64xf32> to vector<16xf32>
    %691 = vector.shape_cast %690 : vector<16xf32> to vector<16x1xf32>
    %cst_305 = arith.constant 6.400000e+01 : f32
    %692 = vector.broadcast %cst_305 : f32 to vector<16x1xf32>
    %693 = arith.divf %691, %692 : vector<16x1xf32>
    %694 = vector.broadcast %693 : vector<16x1xf32> to vector<16x64xf32>
    %695 = arith.subf %685, %694 : vector<16x64xf32>
    %696 = arith.mulf %695, %695 : vector<16x64xf32>
    %cst_306 = arith.constant dense<0.000000e+00> : vector<16xf32>
    %697 = vector.multi_reduction <add>, %696, %cst_306 [1] : vector<16x64xf32> to vector<16xf32>
    %698 = vector.shape_cast %697 : vector<16xf32> to vector<16x1xf32>
    %cst_307 = arith.constant 6.400000e+01 : f32
    %699 = vector.broadcast %cst_307 : f32 to vector<16x1xf32>
    %700 = arith.divf %698, %699 : vector<16x1xf32>
    %701 = vector.broadcast %693 : vector<16x1xf32> to vector<16x64xf32>
    %702 = arith.subf %685, %701 : vector<16x64xf32>
    %cst_308 = arith.constant 9.99999974E-6 : f32
    %703 = vector.broadcast %cst_308 : f32 to vector<16x1xf32>
    %704 = arith.addf %700, %703 : vector<16x1xf32>
    %705 = math.rsqrt %704 : vector<16x1xf32>
    %706 = vector.broadcast %705 : vector<16x1xf32> to vector<16x64xf32>
    %707 = arith.mulf %702, %706 : vector<16x64xf32>
    %708 = vector.broadcast %687 : vector<1x64xf32> to vector<16x64xf32>
    %709 = arith.mulf %707, %708 : vector<16x64xf32>
    %710 = vector.broadcast %689 : vector<1x64xf32> to vector<16x64xf32>
    %711 = arith.addf %709, %710 : vector<16x64xf32>
    %c0_309 = arith.constant 0 : index
    %c0_310 = arith.constant 0 : index
    %c0_311 = arith.constant 0 : index
    %712 = vector.load %arg21[%c0_309, %c0_310, %c0_311] : memref<2x64x64xf32, #tpu.memory_space<vmem>>, vector<1x64x64xf32>
    %713 = vector.shape_cast %712 : vector<1x64x64xf32> to vector<64x64xf32>
    %c0_312 = arith.constant 0 : index
    %c0_313 = arith.constant 0 : index
    %c0_314 = arith.constant 0 : index
    %714 = vector.load %arg22[%c0_312, %c0_313, %c0_314] : memref<2x1x64xf32, #tpu.memory_space<vmem>>, vector<1x1x64xf32>
    %715 = vector.shape_cast %714 : vector<1x1x64xf32> to vector<1x64xf32>
    %cst_315 = arith.constant dense<0.000000e+00> : vector<16x64xf32>
    %716 = tpu.matmul %711, %713, %cst_315 {dimension_numbers = #tpu.dot_dimension_numbers<[1], [0], [0], [1], [0, 0, 1, 1], [], []>} : vector<16x64xf32>, vector<64x64xf32>, vector<16x64xf32> -> vector<16x64xf32>
    %717 = vector.broadcast %715 : vector<1x64xf32> to vector<16x64xf32>
    %718 = arith.addf %716, %717 : vector<16x64xf32>
    %c0_316 = arith.constant 0 : index
    %c0_317 = arith.constant 0 : index
    %c0_318 = arith.constant 0 : index
    %719 = vector.load %arg23[%c0_316, %c0_317, %c0_318] : memref<2x64x128xf32, #tpu.memory_space<vmem>>, vector<1x64x128xf32>
    %720 = vector.shape_cast %719 : vector<1x64x128xf32> to vector<64x128xf32>
    %c0_319 = arith.constant 0 : index
    %c0_320 = arith.constant 0 : index
    %c0_321 = arith.constant 0 : index
    %721 = vector.load %arg24[%c0_319, %c0_320, %c0_321] : memref<2x1x128xf32, #tpu.memory_space<vmem>>, vector<1x1x128xf32>
    %722 = vector.shape_cast %721 : vector<1x1x128xf32> to vector<1x128xf32>
    %cst_322 = arith.constant dense<0.000000e+00> : vector<16x128xf32>
    %723 = tpu.matmul %504, %720, %cst_322 {dimension_numbers = #tpu.dot_dimension_numbers<[1], [0], [0], [1], [0, 0, 1, 1], [], []>} : vector<16x64xf32>, vector<64x128xf32>, vector<16x128xf32> -> vector<16x128xf32>
    %724 = vector.broadcast %722 : vector<1x128xf32> to vector<16x128xf32>
    %725 = arith.addf %723, %724 : vector<16x128xf32>
    %726 = vector.extract_strided_slice %725 {offsets = [0, 0], sizes = [16, 64], strides = [1, 1]} : vector<16x128xf32> to vector<16x64xf32>
    %727 = vector.extract_strided_slice %725 {offsets = [0, 64], sizes = [16, 64], strides = [1, 1]} : vector<16x128xf32> to vector<16x64xf32>
    %728 = vector.extract_strided_slice %718 {offsets = [0, 0], sizes = [8, 16], strides = [1, 1]} : vector<16x64xf32> to vector<8x16xf32>
    %729 = vector.extract_strided_slice %726 {offsets = [0, 0], sizes = [8, 16], strides = [1, 1]} : vector<16x64xf32> to vector<8x16xf32>
    %730 = vector.extract_strided_slice %727 {offsets = [0, 0], sizes = [8, 16], strides = [1, 1]} : vector<16x64xf32> to vector<8x16xf32>
    %731 = tpu.transpose %729, [1, 0] : vector<8x16xf32> -> vector<16x8xf32>
    %cst_323 = arith.constant dense<0.000000e+00> : vector<8x8xf32>
    %732 = tpu.matmul %728, %731, %cst_323 {dimension_numbers = #tpu.dot_dimension_numbers<[1], [0], [0], [1], [0, 0, 1, 1], [], []>} : vector<8x16xf32>, vector<16x8xf32>, vector<8x8xf32> -> vector<8x8xf32>
    %cst_324 = arith.constant 2.500000e-01 : f32
    %733 = vector.broadcast %cst_324 : f32 to vector<8x8xf32>
    %734 = arith.mulf %732, %733 : vector<8x8xf32>
    %cst_325 = arith.constant dense<0xFF800000> : vector<8xf32>
    %735 = vector.multi_reduction <maximumf>, %734, %cst_325 [1] : vector<8x8xf32> to vector<8xf32>
    %736 = vector.shape_cast %735 : vector<8xf32> to vector<8x1xf32>
    %737 = vector.broadcast %736 : vector<8x1xf32> to vector<8x8xf32>
    %738 = arith.subf %734, %737 : vector<8x8xf32>
    %739 = math.exp %738 : vector<8x8xf32>
    %cst_326 = arith.constant dense<0.000000e+00> : vector<8xf32>
    %740 = vector.multi_reduction <add>, %739, %cst_326 [1] : vector<8x8xf32> to vector<8xf32>
    %741 = vector.shape_cast %740 : vector<8xf32> to vector<8x1xf32>
    %742 = tpu.reciprocal %741 {approx = true} : vector<8x1xf32> -> vector<8x1xf32>
    %743 = vector.broadcast %742 : vector<8x1xf32> to vector<8x8xf32>
    %744 = arith.mulf %739, %743 : vector<8x8xf32>
    %cst_327 = arith.constant dense<0.000000e+00> : vector<8x16xf32>
    %745 = tpu.matmul %744, %730, %cst_327 {dimension_numbers = #tpu.dot_dimension_numbers<[1], [0], [0], [1], [0, 0, 1, 1], [], []>} : vector<8x8xf32>, vector<8x16xf32>, vector<8x16xf32> -> vector<8x16xf32>
    %c0_328 = arith.constant 0 : index
    %c0_329 = arith.constant 0 : index
    %746 = vector.load %arg42[%c0_328, %c0_329] : memref<16x64xf32, #tpu.memory_space<vmem>>, vector<8x16xf32>
    tpu.vector_store %arg42[%c0_328, %c0_329], %745 {strides = array<i32>} : memref<16x64xf32, #tpu.memory_space<vmem>>, vector<8x16xf32>,
    %747 = vector.extract_strided_slice %718 {offsets = [0, 16], sizes = [8, 16], strides = [1, 1]} : vector<16x64xf32> to vector<8x16xf32>
    %748 = vector.extract_strided_slice %726 {offsets = [0, 16], sizes = [8, 16], strides = [1, 1]} : vector<16x64xf32> to vector<8x16xf32>
    %749 = vector.extract_strided_slice %727 {offsets = [0, 16], sizes = [8, 16], strides = [1, 1]} : vector<16x64xf32> to vector<8x16xf32>
    %750 = tpu.transpose %748, [1, 0] : vector<8x16xf32> -> vector<16x8xf32>
    %cst_330 = arith.constant dense<0.000000e+00> : vector<8x8xf32>
    %751 = tpu.matmul %747, %750, %cst_330 {dimension_numbers = #tpu.dot_dimension_numbers<[1], [0], [0], [1], [0, 0, 1, 1], [], []>} : vector<8x16xf32>, vector<16x8xf32>, vector<8x8xf32> -> vector<8x8xf32>
    %cst_331 = arith.constant 2.500000e-01 : f32
    %752 = vector.broadcast %cst_331 : f32 to vector<8x8xf32>
    %753 = arith.mulf %751, %752 : vector<8x8xf32>
    %cst_332 = arith.constant dense<0xFF800000> : vector<8xf32>
    %754 = vector.multi_reduction <maximumf>, %753, %cst_332 [1] : vector<8x8xf32> to vector<8xf32>
    %755 = vector.shape_cast %754 : vector<8xf32> to vector<8x1xf32>
    %756 = vector.broadcast %755 : vector<8x1xf32> to vector<8x8xf32>
    %757 = arith.subf %753, %756 : vector<8x8xf32>
    %758 = math.exp %757 : vector<8x8xf32>
    %cst_333 = arith.constant dense<0.000000e+00> : vector<8xf32>
    %759 = vector.multi_reduction <add>, %758, %cst_333 [1] : vector<8x8xf32> to vector<8xf32>
    %760 = vector.shape_cast %759 : vector<8xf32> to vector<8x1xf32>
    %761 = tpu.reciprocal %760 {approx = true} : vector<8x1xf32> -> vector<8x1xf32>
    %762 = vector.broadcast %761 : vector<8x1xf32> to vector<8x8xf32>
    %763 = arith.mulf %758, %762 : vector<8x8xf32>
    %cst_334 = arith.constant dense<0.000000e+00> : vector<8x16xf32>
    %764 = tpu.matmul %763, %749, %cst_334 {dimension_numbers = #tpu.dot_dimension_numbers<[1], [0], [0], [1], [0, 0, 1, 1], [], []>} : vector<8x8xf32>, vector<8x16xf32>, vector<8x16xf32> -> vector<8x16xf32>
    %c0_335 = arith.constant 0 : index
    %c16_336 = arith.constant 16 : index
    %765 = vector.load %arg42[%c0_335, %c16_336] : memref<16x64xf32, #tpu.memory_space<vmem>>, vector<8x16xf32>
    tpu.vector_store %arg42[%c0_335, %c16_336], %764 {strides = array<i32>} : memref<16x64xf32, #tpu.memory_space<vmem>>, vector<8x16xf32>,
    %766 = vector.extract_strided_slice %718 {offsets = [0, 32], sizes = [8, 16], strides = [1, 1]} : vector<16x64xf32> to vector<8x16xf32>
    %767 = vector.extract_strided_slice %726 {offsets = [0, 32], sizes = [8, 16], strides = [1, 1]} : vector<16x64xf32> to vector<8x16xf32>
    %768 = vector.extract_strided_slice %727 {offsets = [0, 32], sizes = [8, 16], strides = [1, 1]} : vector<16x64xf32> to vector<8x16xf32>
    %769 = tpu.transpose %767, [1, 0] : vector<8x16xf32> -> vector<16x8xf32>
    %cst_337 = arith.constant dense<0.000000e+00> : vector<8x8xf32>
    %770 = tpu.matmul %766, %769, %cst_337 {dimension_numbers = #tpu.dot_dimension_numbers<[1], [0], [0], [1], [0, 0, 1, 1], [], []>} : vector<8x16xf32>, vector<16x8xf32>, vector<8x8xf32> -> vector<8x8xf32>
    %cst_338 = arith.constant 2.500000e-01 : f32
    %771 = vector.broadcast %cst_338 : f32 to vector<8x8xf32>
    %772 = arith.mulf %770, %771 : vector<8x8xf32>
    %cst_339 = arith.constant dense<0xFF800000> : vector<8xf32>
    %773 = vector.multi_reduction <maximumf>, %772, %cst_339 [1] : vector<8x8xf32> to vector<8xf32>
    %774 = vector.shape_cast %773 : vector<8xf32> to vector<8x1xf32>
    %775 = vector.broadcast %774 : vector<8x1xf32> to vector<8x8xf32>
    %776 = arith.subf %772, %775 : vector<8x8xf32>
    %777 = math.exp %776 : vector<8x8xf32>
    %cst_340 = arith.constant dense<0.000000e+00> : vector<8xf32>
    %778 = vector.multi_reduction <add>, %777, %cst_340 [1] : vector<8x8xf32> to vector<8xf32>
    %779 = vector.shape_cast %778 : vector<8xf32> to vector<8x1xf32>
    %780 = tpu.reciprocal %779 {approx = true} : vector<8x1xf32> -> vector<8x1xf32>
    %781 = vector.broadcast %780 : vector<8x1xf32> to vector<8x8xf32>
    %782 = arith.mulf %777, %781 : vector<8x8xf32>
    %cst_341 = arith.constant dense<0.000000e+00> : vector<8x16xf32>
    %783 = tpu.matmul %782, %768, %cst_341 {dimension_numbers = #tpu.dot_dimension_numbers<[1], [0], [0], [1], [0, 0, 1, 1], [], []>} : vector<8x8xf32>, vector<8x16xf32>, vector<8x16xf32> -> vector<8x16xf32>
    %c0_342 = arith.constant 0 : index
    %c32_343 = arith.constant 32 : index
    %784 = vector.load %arg42[%c0_342, %c32_343] : memref<16x64xf32, #tpu.memory_space<vmem>>, vector<8x16xf32>
    tpu.vector_store %arg42[%c0_342, %c32_343], %783 {strides = array<i32>} : memref<16x64xf32, #tpu.memory_space<vmem>>, vector<8x16xf32>,
    %785 = vector.extract_strided_slice %718 {offsets = [0, 48], sizes = [8, 16], strides = [1, 1]} : vector<16x64xf32> to vector<8x16xf32>
    %786 = vector.extract_strided_slice %726 {offsets = [0, 48], sizes = [8, 16], strides = [1, 1]} : vector<16x64xf32> to vector<8x16xf32>
    %787 = vector.extract_strided_slice %727 {offsets = [0, 48], sizes = [8, 16], strides = [1, 1]} : vector<16x64xf32> to vector<8x16xf32>
    %788 = tpu.transpose %786, [1, 0] : vector<8x16xf32> -> vector<16x8xf32>
    %cst_344 = arith.constant dense<0.000000e+00> : vector<8x8xf32>
    %789 = tpu.matmul %785, %788, %cst_344 {dimension_numbers = #tpu.dot_dimension_numbers<[1], [0], [0], [1], [0, 0, 1, 1], [], []>} : vector<8x16xf32>, vector<16x8xf32>, vector<8x8xf32> -> vector<8x8xf32>
    %cst_345 = arith.constant 2.500000e-01 : f32
    %790 = vector.broadcast %cst_345 : f32 to vector<8x8xf32>
    %791 = arith.mulf %789, %790 : vector<8x8xf32>
    %cst_346 = arith.constant dense<0xFF800000> : vector<8xf32>
    %792 = vector.multi_reduction <maximumf>, %791, %cst_346 [1] : vector<8x8xf32> to vector<8xf32>
    %793 = vector.shape_cast %792 : vector<8xf32> to vector<8x1xf32>
    %794 = vector.broadcast %793 : vector<8x1xf32> to vector<8x8xf32>
    %795 = arith.subf %791, %794 : vector<8x8xf32>
    %796 = math.exp %795 : vector<8x8xf32>
    %cst_347 = arith.constant dense<0.000000e+00> : vector<8xf32>
    %797 = vector.multi_reduction <add>, %796, %cst_347 [1] : vector<8x8xf32> to vector<8xf32>
    %798 = vector.shape_cast %797 : vector<8xf32> to vector<8x1xf32>
    %799 = tpu.reciprocal %798 {approx = true} : vector<8x1xf32> -> vector<8x1xf32>
    %800 = vector.broadcast %799 : vector<8x1xf32> to vector<8x8xf32>
    %801 = arith.mulf %796, %800 : vector<8x8xf32>
    %cst_348 = arith.constant dense<0.000000e+00> : vector<8x16xf32>
    %802 = tpu.matmul %801, %787, %cst_348 {dimension_numbers = #tpu.dot_dimension_numbers<[1], [0], [0], [1], [0, 0, 1, 1], [], []>} : vector<8x8xf32>, vector<8x16xf32>, vector<8x16xf32> -> vector<8x16xf32>
    %c0_349 = arith.constant 0 : index
    %c48_350 = arith.constant 48 : index
    %803 = vector.load %arg42[%c0_349, %c48_350] : memref<16x64xf32, #tpu.memory_space<vmem>>, vector<8x16xf32>
    tpu.vector_store %arg42[%c0_349, %c48_350], %802 {strides = array<i32>} : memref<16x64xf32, #tpu.memory_space<vmem>>, vector<8x16xf32>,
    %804 = vector.extract_strided_slice %718 {offsets = [8, 0], sizes = [8, 16], strides = [1, 1]} : vector<16x64xf32> to vector<8x16xf32>
    %805 = vector.extract_strided_slice %726 {offsets = [8, 0], sizes = [8, 16], strides = [1, 1]} : vector<16x64xf32> to vector<8x16xf32>
    %806 = vector.extract_strided_slice %727 {offsets = [8, 0], sizes = [8, 16], strides = [1, 1]} : vector<16x64xf32> to vector<8x16xf32>
    %807 = tpu.transpose %805, [1, 0] : vector<8x16xf32> -> vector<16x8xf32>
    %cst_351 = arith.constant dense<0.000000e+00> : vector<8x8xf32>
    %808 = tpu.matmul %804, %807, %cst_351 {dimension_numbers = #tpu.dot_dimension_numbers<[1], [0], [0], [1], [0, 0, 1, 1], [], []>} : vector<8x16xf32>, vector<16x8xf32>, vector<8x8xf32> -> vector<8x8xf32>
    %cst_352 = arith.constant 2.500000e-01 : f32
    %809 = vector.broadcast %cst_352 : f32 to vector<8x8xf32>
    %810 = arith.mulf %808, %809 : vector<8x8xf32>
    %cst_353 = arith.constant dense<0xFF800000> : vector<8xf32>
    %811 = vector.multi_reduction <maximumf>, %810, %cst_353 [1] : vector<8x8xf32> to vector<8xf32>
    %812 = vector.shape_cast %811 : vector<8xf32> to vector<8x1xf32>
    %813 = vector.broadcast %812 : vector<8x1xf32> to vector<8x8xf32>
    %814 = arith.subf %810, %813 : vector<8x8xf32>
    %815 = math.exp %814 : vector<8x8xf32>
    %cst_354 = arith.constant dense<0.000000e+00> : vector<8xf32>
    %816 = vector.multi_reduction <add>, %815, %cst_354 [1] : vector<8x8xf32> to vector<8xf32>
    %817 = vector.shape_cast %816 : vector<8xf32> to vector<8x1xf32>
    %818 = tpu.reciprocal %817 {approx = true} : vector<8x1xf32> -> vector<8x1xf32>
    %819 = vector.broadcast %818 : vector<8x1xf32> to vector<8x8xf32>
    %820 = arith.mulf %815, %819 : vector<8x8xf32>
    %cst_355 = arith.constant dense<0.000000e+00> : vector<8x16xf32>
    %821 = tpu.matmul %820, %806, %cst_355 {dimension_numbers = #tpu.dot_dimension_numbers<[1], [0], [0], [1], [0, 0, 1, 1], [], []>} : vector<8x8xf32>, vector<8x16xf32>, vector<8x16xf32> -> vector<8x16xf32>
    %c8_356 = arith.constant 8 : index
    %c0_357 = arith.constant 0 : index
    %822 = vector.load %arg42[%c8_356, %c0_357] : memref<16x64xf32, #tpu.memory_space<vmem>>, vector<8x16xf32>
    tpu.vector_store %arg42[%c8_356, %c0_357], %821 {strides = array<i32>} : memref<16x64xf32, #tpu.memory_space<vmem>>, vector<8x16xf32>,
    %823 = vector.extract_strided_slice %718 {offsets = [8, 16], sizes = [8, 16], strides = [1, 1]} : vector<16x64xf32> to vector<8x16xf32>
    %824 = vector.extract_strided_slice %726 {offsets = [8, 16], sizes = [8, 16], strides = [1, 1]} : vector<16x64xf32> to vector<8x16xf32>
    %825 = vector.extract_strided_slice %727 {offsets = [8, 16], sizes = [8, 16], strides = [1, 1]} : vector<16x64xf32> to vector<8x16xf32>
    %826 = tpu.transpose %824, [1, 0] : vector<8x16xf32> -> vector<16x8xf32>
    %cst_358 = arith.constant dense<0.000000e+00> : vector<8x8xf32>
    %827 = tpu.matmul %823, %826, %cst_358 {dimension_numbers = #tpu.dot_dimension_numbers<[1], [0], [0], [1], [0, 0, 1, 1], [], []>} : vector<8x16xf32>, vector<16x8xf32>, vector<8x8xf32> -> vector<8x8xf32>
    %cst_359 = arith.constant 2.500000e-01 : f32
    %828 = vector.broadcast %cst_359 : f32 to vector<8x8xf32>
    %829 = arith.mulf %827, %828 : vector<8x8xf32>
    %cst_360 = arith.constant dense<0xFF800000> : vector<8xf32>
    %830 = vector.multi_reduction <maximumf>, %829, %cst_360 [1] : vector<8x8xf32> to vector<8xf32>
    %831 = vector.shape_cast %830 : vector<8xf32> to vector<8x1xf32>
    %832 = vector.broadcast %831 : vector<8x1xf32> to vector<8x8xf32>
    %833 = arith.subf %829, %832 : vector<8x8xf32>
    %834 = math.exp %833 : vector<8x8xf32>
    %cst_361 = arith.constant dense<0.000000e+00> : vector<8xf32>
    %835 = vector.multi_reduction <add>, %834, %cst_361 [1] : vector<8x8xf32> to vector<8xf32>
    %836 = vector.shape_cast %835 : vector<8xf32> to vector<8x1xf32>
    %837 = tpu.reciprocal %836 {approx = true} : vector<8x1xf32> -> vector<8x1xf32>
    %838 = vector.broadcast %837 : vector<8x1xf32> to vector<8x8xf32>
    %839 = arith.mulf %834, %838 : vector<8x8xf32>
    %cst_362 = arith.constant dense<0.000000e+00> : vector<8x16xf32>
    %840 = tpu.matmul %839, %825, %cst_362 {dimension_numbers = #tpu.dot_dimension_numbers<[1], [0], [0], [1], [0, 0, 1, 1], [], []>} : vector<8x8xf32>, vector<8x16xf32>, vector<8x16xf32> -> vector<8x16xf32>
    %c8_363 = arith.constant 8 : index
    %c16_364 = arith.constant 16 : index
    %841 = vector.load %arg42[%c8_363, %c16_364] : memref<16x64xf32, #tpu.memory_space<vmem>>, vector<8x16xf32>
    tpu.vector_store %arg42[%c8_363, %c16_364], %840 {strides = array<i32>} : memref<16x64xf32, #tpu.memory_space<vmem>>, vector<8x16xf32>,
    %842 = vector.extract_strided_slice %718 {offsets = [8, 32], sizes = [8, 16], strides = [1, 1]} : vector<16x64xf32> to vector<8x16xf32>
    %843 = vector.extract_strided_slice %726 {offsets = [8, 32], sizes = [8, 16], strides = [1, 1]} : vector<16x64xf32> to vector<8x16xf32>
    %844 = vector.extract_strided_slice %727 {offsets = [8, 32], sizes = [8, 16], strides = [1, 1]} : vector<16x64xf32> to vector<8x16xf32>
    %845 = tpu.transpose %843, [1, 0] : vector<8x16xf32> -> vector<16x8xf32>
    %cst_365 = arith.constant dense<0.000000e+00> : vector<8x8xf32>
    %846 = tpu.matmul %842, %845, %cst_365 {dimension_numbers = #tpu.dot_dimension_numbers<[1], [0], [0], [1], [0, 0, 1, 1], [], []>} : vector<8x16xf32>, vector<16x8xf32>, vector<8x8xf32> -> vector<8x8xf32>
    %cst_366 = arith.constant 2.500000e-01 : f32
    %847 = vector.broadcast %cst_366 : f32 to vector<8x8xf32>
    %848 = arith.mulf %846, %847 : vector<8x8xf32>
    %cst_367 = arith.constant dense<0xFF800000> : vector<8xf32>
    %849 = vector.multi_reduction <maximumf>, %848, %cst_367 [1] : vector<8x8xf32> to vector<8xf32>
    %850 = vector.shape_cast %849 : vector<8xf32> to vector<8x1xf32>
    %851 = vector.broadcast %850 : vector<8x1xf32> to vector<8x8xf32>
    %852 = arith.subf %848, %851 : vector<8x8xf32>
    %853 = math.exp %852 : vector<8x8xf32>
    %cst_368 = arith.constant dense<0.000000e+00> : vector<8xf32>
    %854 = vector.multi_reduction <add>, %853, %cst_368 [1] : vector<8x8xf32> to vector<8xf32>
    %855 = vector.shape_cast %854 : vector<8xf32> to vector<8x1xf32>
    %856 = tpu.reciprocal %855 {approx = true} : vector<8x1xf32> -> vector<8x1xf32>
    %857 = vector.broadcast %856 : vector<8x1xf32> to vector<8x8xf32>
    %858 = arith.mulf %853, %857 : vector<8x8xf32>
    %cst_369 = arith.constant dense<0.000000e+00> : vector<8x16xf32>
    %859 = tpu.matmul %858, %844, %cst_369 {dimension_numbers = #tpu.dot_dimension_numbers<[1], [0], [0], [1], [0, 0, 1, 1], [], []>} : vector<8x8xf32>, vector<8x16xf32>, vector<8x16xf32> -> vector<8x16xf32>
    %c8_370 = arith.constant 8 : index
    %c32_371 = arith.constant 32 : index
    %860 = vector.load %arg42[%c8_370, %c32_371] : memref<16x64xf32, #tpu.memory_space<vmem>>, vector<8x16xf32>
    tpu.vector_store %arg42[%c8_370, %c32_371], %859 {strides = array<i32>} : memref<16x64xf32, #tpu.memory_space<vmem>>, vector<8x16xf32>,
    %861 = vector.extract_strided_slice %718 {offsets = [8, 48], sizes = [8, 16], strides = [1, 1]} : vector<16x64xf32> to vector<8x16xf32>
    %862 = vector.extract_strided_slice %726 {offsets = [8, 48], sizes = [8, 16], strides = [1, 1]} : vector<16x64xf32> to vector<8x16xf32>
    %863 = vector.extract_strided_slice %727 {offsets = [8, 48], sizes = [8, 16], strides = [1, 1]} : vector<16x64xf32> to vector<8x16xf32>
    %864 = tpu.transpose %862, [1, 0] : vector<8x16xf32> -> vector<16x8xf32>
    %cst_372 = arith.constant dense<0.000000e+00> : vector<8x8xf32>
    %865 = tpu.matmul %861, %864, %cst_372 {dimension_numbers = #tpu.dot_dimension_numbers<[1], [0], [0], [1], [0, 0, 1, 1], [], []>} : vector<8x16xf32>, vector<16x8xf32>, vector<8x8xf32> -> vector<8x8xf32>
    %cst_373 = arith.constant 2.500000e-01 : f32
    %866 = vector.broadcast %cst_373 : f32 to vector<8x8xf32>
    %867 = arith.mulf %865, %866 : vector<8x8xf32>
    %cst_374 = arith.constant dense<0xFF800000> : vector<8xf32>
    %868 = vector.multi_reduction <maximumf>, %867, %cst_374 [1] : vector<8x8xf32> to vector<8xf32>
    %869 = vector.shape_cast %868 : vector<8xf32> to vector<8x1xf32>
    %870 = vector.broadcast %869 : vector<8x1xf32> to vector<8x8xf32>
    %871 = arith.subf %867, %870 : vector<8x8xf32>
    %872 = math.exp %871 : vector<8x8xf32>
    %cst_375 = arith.constant dense<0.000000e+00> : vector<8xf32>
    %873 = vector.multi_reduction <add>, %872, %cst_375 [1] : vector<8x8xf32> to vector<8xf32>
    %874 = vector.shape_cast %873 : vector<8xf32> to vector<8x1xf32>
    %875 = tpu.reciprocal %874 {approx = true} : vector<8x1xf32> -> vector<8x1xf32>
    %876 = vector.broadcast %875 : vector<8x1xf32> to vector<8x8xf32>
    %877 = arith.mulf %872, %876 : vector<8x8xf32>
    %cst_376 = arith.constant dense<0.000000e+00> : vector<8x16xf32>
    %878 = tpu.matmul %877, %863, %cst_376 {dimension_numbers = #tpu.dot_dimension_numbers<[1], [0], [0], [1], [0, 0, 1, 1], [], []>} : vector<8x8xf32>, vector<8x16xf32>, vector<8x16xf32> -> vector<8x16xf32>
    %c8_377 = arith.constant 8 : index
    %c48_378 = arith.constant 48 : index
    %879 = vector.load %arg42[%c8_377, %c48_378] : memref<16x64xf32, #tpu.memory_space<vmem>>, vector<8x16xf32>
    tpu.vector_store %arg42[%c8_377, %c48_378], %878 {strides = array<i32>} : memref<16x64xf32, #tpu.memory_space<vmem>>, vector<8x16xf32>,
    %c0_379 = arith.constant 0 : index
    %c0_380 = arith.constant 0 : index
    %880 = vector.load %arg42[%c0_379, %c0_380] : memref<16x64xf32, #tpu.memory_space<vmem>>, vector<16x64xf32>
    %c0_381 = arith.constant 0 : index
    %c0_382 = arith.constant 0 : index
    %c0_383 = arith.constant 0 : index
    %881 = vector.load %arg25[%c0_381, %c0_382, %c0_383] : memref<2x64x64xf32, #tpu.memory_space<vmem>>, vector<1x64x64xf32>
    %882 = vector.shape_cast %881 : vector<1x64x64xf32> to vector<64x64xf32>
    %c0_384 = arith.constant 0 : index
    %c0_385 = arith.constant 0 : index
    %c0_386 = arith.constant 0 : index
    %883 = vector.load %arg26[%c0_384, %c0_385, %c0_386] : memref<2x1x64xf32, #tpu.memory_space<vmem>>, vector<1x1x64xf32>
    %884 = vector.shape_cast %883 : vector<1x1x64xf32> to vector<1x64xf32>
    %cst_387 = arith.constant dense<0.000000e+00> : vector<16x64xf32>
    %885 = tpu.matmul %880, %882, %cst_387 {dimension_numbers = #tpu.dot_dimension_numbers<[1], [0], [0], [1], [0, 0, 1, 1], [], []>} : vector<16x64xf32>, vector<64x64xf32>, vector<16x64xf32> -> vector<16x64xf32>
    %886 = vector.broadcast %884 : vector<1x64xf32> to vector<16x64xf32>
    %887 = arith.addf %885, %886 : vector<16x64xf32>
    %888 = arith.addf %711, %887 : vector<16x64xf32>
    %c0_388 = arith.constant 0 : index
    %c0_389 = arith.constant 0 : index
    %c0_390 = arith.constant 0 : index
    %889 = vector.load %arg27[%c0_388, %c0_389, %c0_390] : memref<2x1x64xf32, #tpu.memory_space<vmem>>, vector<1x1x64xf32>
    %890 = vector.shape_cast %889 : vector<1x1x64xf32> to vector<1x64xf32>
    %c0_391 = arith.constant 0 : index
    %c0_392 = arith.constant 0 : index
    %c0_393 = arith.constant 0 : index
    %891 = vector.load %arg28[%c0_391, %c0_392, %c0_393] : memref<2x1x64xf32, #tpu.memory_space<vmem>>, vector<1x1x64xf32>
    %892 = vector.shape_cast %891 : vector<1x1x64xf32> to vector<1x64xf32>
    %cst_394 = arith.constant dense<0.000000e+00> : vector<16xf32>
    %893 = vector.multi_reduction <add>, %888, %cst_394 [1] : vector<16x64xf32> to vector<16xf32>
    %894 = vector.shape_cast %893 : vector<16xf32> to vector<16x1xf32>
    %cst_395 = arith.constant 6.400000e+01 : f32
    %895 = vector.broadcast %cst_395 : f32 to vector<16x1xf32>
    %896 = arith.divf %894, %895 : vector<16x1xf32>
    %897 = vector.broadcast %896 : vector<16x1xf32> to vector<16x64xf32>
    %898 = arith.subf %888, %897 : vector<16x64xf32>
    %899 = arith.mulf %898, %898 : vector<16x64xf32>
    %cst_396 = arith.constant dense<0.000000e+00> : vector<16xf32>
    %900 = vector.multi_reduction <add>, %899, %cst_396 [1] : vector<16x64xf32> to vector<16xf32>
    %901 = vector.shape_cast %900 : vector<16xf32> to vector<16x1xf32>
    %cst_397 = arith.constant 6.400000e+01 : f32
    %902 = vector.broadcast %cst_397 : f32 to vector<16x1xf32>
    %903 = arith.divf %901, %902 : vector<16x1xf32>
    %904 = vector.broadcast %896 : vector<16x1xf32> to vector<16x64xf32>
    %905 = arith.subf %888, %904 : vector<16x64xf32>
    %cst_398 = arith.constant 9.99999974E-6 : f32
    %906 = vector.broadcast %cst_398 : f32 to vector<16x1xf32>
    %907 = arith.addf %903, %906 : vector<16x1xf32>
    %908 = math.rsqrt %907 : vector<16x1xf32>
    %909 = vector.broadcast %908 : vector<16x1xf32> to vector<16x64xf32>
    %910 = arith.mulf %905, %909 : vector<16x64xf32>
    %911 = vector.broadcast %890 : vector<1x64xf32> to vector<16x64xf32>
    %912 = arith.mulf %910, %911 : vector<16x64xf32>
    %913 = vector.broadcast %892 : vector<1x64xf32> to vector<16x64xf32>
    %914 = arith.addf %912, %913 : vector<16x64xf32>
    %c0_399 = arith.constant 0 : index
    %c0_400 = arith.constant 0 : index
    %c0_401 = arith.constant 0 : index
    %915 = vector.load %arg29[%c0_399, %c0_400, %c0_401] : memref<2x64x128xf32, #tpu.memory_space<vmem>>, vector<1x64x128xf32>
    %916 = vector.shape_cast %915 : vector<1x64x128xf32> to vector<64x128xf32>
    %c0_402 = arith.constant 0 : index
    %c0_403 = arith.constant 0 : index
    %c0_404 = arith.constant 0 : index
    %917 = vector.load %arg30[%c0_402, %c0_403, %c0_404] : memref<2x1x128xf32, #tpu.memory_space<vmem>>, vector<1x1x128xf32>
    %918 = vector.shape_cast %917 : vector<1x1x128xf32> to vector<1x128xf32>
    %cst_405 = arith.constant dense<0.000000e+00> : vector<16x128xf32>
    %919 = tpu.matmul %914, %916, %cst_405 {dimension_numbers = #tpu.dot_dimension_numbers<[1], [0], [0], [1], [0, 0, 1, 1], [], []>} : vector<16x64xf32>, vector<64x128xf32>, vector<16x128xf32> -> vector<16x128xf32>
    %920 = vector.broadcast %918 : vector<1x128xf32> to vector<16x128xf32>
    %921 = arith.addf %919, %920 : vector<16x128xf32>
    %cst_406 = arith.constant 0.000000e+00 : f32
    %922 = vector.broadcast %cst_406 : f32 to vector<16x128xf32>
    %923 = arith.maximumf %921, %922 : vector<16x128xf32>
    %c0_407 = arith.constant 0 : index
    %c0_408 = arith.constant 0 : index
    %c0_409 = arith.constant 0 : index
    %924 = vector.load %arg31[%c0_407, %c0_408, %c0_409] : memref<2x128x64xf32, #tpu.memory_space<vmem>>, vector<1x128x64xf32>
    %925 = vector.shape_cast %924 : vector<1x128x64xf32> to vector<128x64xf32>
    %c0_410 = arith.constant 0 : index
    %c0_411 = arith.constant 0 : index
    %c0_412 = arith.constant 0 : index
    %926 = vector.load %arg32[%c0_410, %c0_411, %c0_412] : memref<2x1x64xf32, #tpu.memory_space<vmem>>, vector<1x1x64xf32>
    %927 = vector.shape_cast %926 : vector<1x1x64xf32> to vector<1x64xf32>
    %cst_413 = arith.constant dense<0.000000e+00> : vector<16x64xf32>
    %928 = tpu.matmul %923, %925, %cst_413 {dimension_numbers = #tpu.dot_dimension_numbers<[1], [0], [0], [1], [0, 0, 1, 1], [], []>} : vector<16x128xf32>, vector<128x64xf32>, vector<16x64xf32> -> vector<16x64xf32>
    %929 = vector.broadcast %927 : vector<1x64xf32> to vector<16x64xf32>
    %930 = arith.addf %928, %929 : vector<16x64xf32>
    %931 = arith.addf %914, %930 : vector<16x64xf32>
    %c0_414 = arith.constant 0 : index
    %c0_415 = arith.constant 0 : index
    %c0_416 = arith.constant 0 : index
    %932 = vector.load %arg33[%c0_414, %c0_415, %c0_416] : memref<2x1x64xf32, #tpu.memory_space<vmem>>, vector<1x1x64xf32>
    %933 = vector.shape_cast %932 : vector<1x1x64xf32> to vector<1x64xf32>
    %c0_417 = arith.constant 0 : index
    %c0_418 = arith.constant 0 : index
    %c0_419 = arith.constant 0 : index
    %934 = vector.load %arg34[%c0_417, %c0_418, %c0_419] : memref<2x1x64xf32, #tpu.memory_space<vmem>>, vector<1x1x64xf32>
    %935 = vector.shape_cast %934 : vector<1x1x64xf32> to vector<1x64xf32>
    %cst_420 = arith.constant dense<0.000000e+00> : vector<16xf32>
    %936 = vector.multi_reduction <add>, %931, %cst_420 [1] : vector<16x64xf32> to vector<16xf32>
    %937 = vector.shape_cast %936 : vector<16xf32> to vector<16x1xf32>
    %cst_421 = arith.constant 6.400000e+01 : f32
    %938 = vector.broadcast %cst_421 : f32 to vector<16x1xf32>
    %939 = arith.divf %937, %938 : vector<16x1xf32>
    %940 = vector.broadcast %939 : vector<16x1xf32> to vector<16x64xf32>
    %941 = arith.subf %931, %940 : vector<16x64xf32>
    %942 = arith.mulf %941, %941 : vector<16x64xf32>
    %cst_422 = arith.constant dense<0.000000e+00> : vector<16xf32>
    %943 = vector.multi_reduction <add>, %942, %cst_422 [1] : vector<16x64xf32> to vector<16xf32>
    %944 = vector.shape_cast %943 : vector<16xf32> to vector<16x1xf32>
    %cst_423 = arith.constant 6.400000e+01 : f32
    %945 = vector.broadcast %cst_423 : f32 to vector<16x1xf32>
    %946 = arith.divf %944, %945 : vector<16x1xf32>
    %947 = vector.broadcast %939 : vector<16x1xf32> to vector<16x64xf32>
    %948 = arith.subf %931, %947 : vector<16x64xf32>
    %cst_424 = arith.constant 9.99999974E-6 : f32
    %949 = vector.broadcast %cst_424 : f32 to vector<16x1xf32>
    %950 = arith.addf %946, %949 : vector<16x1xf32>
    %951 = math.rsqrt %950 : vector<16x1xf32>
    %952 = vector.broadcast %951 : vector<16x1xf32> to vector<16x64xf32>
    %953 = arith.mulf %948, %952 : vector<16x64xf32>
    %954 = vector.broadcast %933 : vector<1x64xf32> to vector<16x64xf32>
    %955 = arith.mulf %953, %954 : vector<16x64xf32>
    %956 = vector.broadcast %935 : vector<1x64xf32> to vector<16x64xf32>
    %957 = arith.addf %955, %956 : vector<16x64xf32>
    %c1_425 = arith.constant 1 : index
    %c0_426 = arith.constant 0 : index
    %c0_427 = arith.constant 0 : index
    %958 = vector.load %arg15[%c1_425, %c0_426, %c0_427] : memref<2x64x192xf32, #tpu.memory_space<vmem>>, vector<1x64x192xf32>
    %959 = vector.shape_cast %958 : vector<1x64x192xf32> to vector<64x192xf32>
    %c1_428 = arith.constant 1 : index
    %c0_429 = arith.constant 0 : index
    %c0_430 = arith.constant 0 : index
    %960 = vector.load %arg16[%c1_428, %c0_429, %c0_430] : memref<2x1x192xf32, #tpu.memory_space<vmem>>, vector<1x1x192xf32>
    %961 = vector.shape_cast %960 : vector<1x1x192xf32> to vector<1x192xf32>
    %cst_431 = arith.constant dense<0.000000e+00> : vector<16x192xf32>
    %962 = tpu.matmul %957, %959, %cst_431 {dimension_numbers = #tpu.dot_dimension_numbers<[1], [0], [0], [1], [0, 0, 1, 1], [], []>} : vector<16x64xf32>, vector<64x192xf32>, vector<16x192xf32> -> vector<16x192xf32>
    %963 = vector.broadcast %961 : vector<1x192xf32> to vector<16x192xf32>
    %964 = arith.addf %962, %963 : vector<16x192xf32>
    %965 = vector.extract_strided_slice %964 {offsets = [0, 0], sizes = [16, 64], strides = [1, 1]} : vector<16x192xf32> to vector<16x64xf32>
    %966 = vector.extract_strided_slice %964 {offsets = [0, 64], sizes = [16, 64], strides = [1, 1]} : vector<16x192xf32> to vector<16x64xf32>
    %967 = vector.extract_strided_slice %964 {offsets = [0, 128], sizes = [16, 64], strides = [1, 1]} : vector<16x192xf32> to vector<16x64xf32>
    %968 = vector.extract_strided_slice %965 {offsets = [0, 0], sizes = [8, 16], strides = [1, 1]} : vector<16x64xf32> to vector<8x16xf32>
    %969 = vector.extract_strided_slice %966 {offsets = [0, 0], sizes = [8, 16], strides = [1, 1]} : vector<16x64xf32> to vector<8x16xf32>
    %970 = vector.extract_strided_slice %967 {offsets = [0, 0], sizes = [8, 16], strides = [1, 1]} : vector<16x64xf32> to vector<8x16xf32>
    %971 = tpu.transpose %969, [1, 0] : vector<8x16xf32> -> vector<16x8xf32>
    %cst_432 = arith.constant dense<0.000000e+00> : vector<8x8xf32>
    %972 = tpu.matmul %968, %971, %cst_432 {dimension_numbers = #tpu.dot_dimension_numbers<[1], [0], [0], [1], [0, 0, 1, 1], [], []>} : vector<8x16xf32>, vector<16x8xf32>, vector<8x8xf32> -> vector<8x8xf32>
    %cst_433 = arith.constant 2.500000e-01 : f32
    %973 = vector.broadcast %cst_433 : f32 to vector<8x8xf32>
    %974 = arith.mulf %972, %973 : vector<8x8xf32>
    %975 = arith.addf %974, %505 : vector<8x8xf32>
    %cst_434 = arith.constant dense<0xFF800000> : vector<8xf32>
    %976 = vector.multi_reduction <maximumf>, %975, %cst_434 [1] : vector<8x8xf32> to vector<8xf32>
    %977 = vector.shape_cast %976 : vector<8xf32> to vector<8x1xf32>
    %978 = vector.broadcast %977 : vector<8x1xf32> to vector<8x8xf32>
    %979 = arith.subf %975, %978 : vector<8x8xf32>
    %980 = math.exp %979 : vector<8x8xf32>
    %cst_435 = arith.constant dense<0.000000e+00> : vector<8xf32>
    %981 = vector.multi_reduction <add>, %980, %cst_435 [1] : vector<8x8xf32> to vector<8xf32>
    %982 = vector.shape_cast %981 : vector<8xf32> to vector<8x1xf32>
    %983 = tpu.reciprocal %982 {approx = true} : vector<8x1xf32> -> vector<8x1xf32>
    %984 = vector.broadcast %983 : vector<8x1xf32> to vector<8x8xf32>
    %985 = arith.mulf %980, %984 : vector<8x8xf32>
    %cst_436 = arith.constant dense<0.000000e+00> : vector<8x16xf32>
    %986 = tpu.matmul %985, %970, %cst_436 {dimension_numbers = #tpu.dot_dimension_numbers<[1], [0], [0], [1], [0, 0, 1, 1], [], []>} : vector<8x8xf32>, vector<8x16xf32>, vector<8x16xf32> -> vector<8x16xf32>
    %c0_437 = arith.constant 0 : index
    %c0_438 = arith.constant 0 : index
    %987 = vector.load %arg42[%c0_437, %c0_438] : memref<16x64xf32, #tpu.memory_space<vmem>>, vector<8x16xf32>
    tpu.vector_store %arg42[%c0_437, %c0_438], %986 {strides = array<i32>} : memref<16x64xf32, #tpu.memory_space<vmem>>, vector<8x16xf32>,
    %988 = vector.extract_strided_slice %965 {offsets = [0, 16], sizes = [8, 16], strides = [1, 1]} : vector<16x64xf32> to vector<8x16xf32>
    %989 = vector.extract_strided_slice %966 {offsets = [0, 16], sizes = [8, 16], strides = [1, 1]} : vector<16x64xf32> to vector<8x16xf32>
    %990 = vector.extract_strided_slice %967 {offsets = [0, 16], sizes = [8, 16], strides = [1, 1]} : vector<16x64xf32> to vector<8x16xf32>
    %991 = tpu.transpose %989, [1, 0] : vector<8x16xf32> -> vector<16x8xf32>
    %cst_439 = arith.constant dense<0.000000e+00> : vector<8x8xf32>
    %992 = tpu.matmul %988, %991, %cst_439 {dimension_numbers = #tpu.dot_dimension_numbers<[1], [0], [0], [1], [0, 0, 1, 1], [], []>} : vector<8x16xf32>, vector<16x8xf32>, vector<8x8xf32> -> vector<8x8xf32>
    %cst_440 = arith.constant 2.500000e-01 : f32
    %993 = vector.broadcast %cst_440 : f32 to vector<8x8xf32>
    %994 = arith.mulf %992, %993 : vector<8x8xf32>
    %995 = arith.addf %994, %505 : vector<8x8xf32>
    %cst_441 = arith.constant dense<0xFF800000> : vector<8xf32>
    %996 = vector.multi_reduction <maximumf>, %995, %cst_441 [1] : vector<8x8xf32> to vector<8xf32>
    %997 = vector.shape_cast %996 : vector<8xf32> to vector<8x1xf32>
    %998 = vector.broadcast %997 : vector<8x1xf32> to vector<8x8xf32>
    %999 = arith.subf %995, %998 : vector<8x8xf32>
    %1000 = math.exp %999 : vector<8x8xf32>
    %cst_442 = arith.constant dense<0.000000e+00> : vector<8xf32>
    %1001 = vector.multi_reduction <add>, %1000, %cst_442 [1] : vector<8x8xf32> to vector<8xf32>
    %1002 = vector.shape_cast %1001 : vector<8xf32> to vector<8x1xf32>
    %1003 = tpu.reciprocal %1002 {approx = true} : vector<8x1xf32> -> vector<8x1xf32>
    %1004 = vector.broadcast %1003 : vector<8x1xf32> to vector<8x8xf32>
    %1005 = arith.mulf %1000, %1004 : vector<8x8xf32>
    %cst_443 = arith.constant dense<0.000000e+00> : vector<8x16xf32>
    %1006 = tpu.matmul %1005, %990, %cst_443 {dimension_numbers = #tpu.dot_dimension_numbers<[1], [0], [0], [1], [0, 0, 1, 1], [], []>} : vector<8x8xf32>, vector<8x16xf32>, vector<8x16xf32> -> vector<8x16xf32>
    %c0_444 = arith.constant 0 : index
    %c16_445 = arith.constant 16 : index
    %1007 = vector.load %arg42[%c0_444, %c16_445] : memref<16x64xf32, #tpu.memory_space<vmem>>, vector<8x16xf32>
    tpu.vector_store %arg42[%c0_444, %c16_445], %1006 {strides = array<i32>} : memref<16x64xf32, #tpu.memory_space<vmem>>, vector<8x16xf32>,
    %1008 = vector.extract_strided_slice %965 {offsets = [0, 32], sizes = [8, 16], strides = [1, 1]} : vector<16x64xf32> to vector<8x16xf32>
    %1009 = vector.extract_strided_slice %966 {offsets = [0, 32], sizes = [8, 16], strides = [1, 1]} : vector<16x64xf32> to vector<8x16xf32>
    %1010 = vector.extract_strided_slice %967 {offsets = [0, 32], sizes = [8, 16], strides = [1, 1]} : vector<16x64xf32> to vector<8x16xf32>
    %1011 = tpu.transpose %1009, [1, 0] : vector<8x16xf32> -> vector<16x8xf32>
    %cst_446 = arith.constant dense<0.000000e+00> : vector<8x8xf32>
    %1012 = tpu.matmul %1008, %1011, %cst_446 {dimension_numbers = #tpu.dot_dimension_numbers<[1], [0], [0], [1], [0, 0, 1, 1], [], []>} : vector<8x16xf32>, vector<16x8xf32>, vector<8x8xf32> -> vector<8x8xf32>
    %cst_447 = arith.constant 2.500000e-01 : f32
    %1013 = vector.broadcast %cst_447 : f32 to vector<8x8xf32>
    %1014 = arith.mulf %1012, %1013 : vector<8x8xf32>
    %1015 = arith.addf %1014, %505 : vector<8x8xf32>
    %cst_448 = arith.constant dense<0xFF800000> : vector<8xf32>
    %1016 = vector.multi_reduction <maximumf>, %1015, %cst_448 [1] : vector<8x8xf32> to vector<8xf32>
    %1017 = vector.shape_cast %1016 : vector<8xf32> to vector<8x1xf32>
    %1018 = vector.broadcast %1017 : vector<8x1xf32> to vector<8x8xf32>
    %1019 = arith.subf %1015, %1018 : vector<8x8xf32>
    %1020 = math.exp %1019 : vector<8x8xf32>
    %cst_449 = arith.constant dense<0.000000e+00> : vector<8xf32>
    %1021 = vector.multi_reduction <add>, %1020, %cst_449 [1] : vector<8x8xf32> to vector<8xf32>
    %1022 = vector.shape_cast %1021 : vector<8xf32> to vector<8x1xf32>
    %1023 = tpu.reciprocal %1022 {approx = true} : vector<8x1xf32> -> vector<8x1xf32>
    %1024 = vector.broadcast %1023 : vector<8x1xf32> to vector<8x8xf32>
    %1025 = arith.mulf %1020, %1024 : vector<8x8xf32>
    %cst_450 = arith.constant dense<0.000000e+00> : vector<8x16xf32>
    %1026 = tpu.matmul %1025, %1010, %cst_450 {dimension_numbers = #tpu.dot_dimension_numbers<[1], [0], [0], [1], [0, 0, 1, 1], [], []>} : vector<8x8xf32>, vector<8x16xf32>, vector<8x16xf32> -> vector<8x16xf32>
    %c0_451 = arith.constant 0 : index
    %c32_452 = arith.constant 32 : index
    %1027 = vector.load %arg42[%c0_451, %c32_452] : memref<16x64xf32, #tpu.memory_space<vmem>>, vector<8x16xf32>
    tpu.vector_store %arg42[%c0_451, %c32_452], %1026 {strides = array<i32>} : memref<16x64xf32, #tpu.memory_space<vmem>>, vector<8x16xf32>,
    %1028 = vector.extract_strided_slice %965 {offsets = [0, 48], sizes = [8, 16], strides = [1, 1]} : vector<16x64xf32> to vector<8x16xf32>
    %1029 = vector.extract_strided_slice %966 {offsets = [0, 48], sizes = [8, 16], strides = [1, 1]} : vector<16x64xf32> to vector<8x16xf32>
    %1030 = vector.extract_strided_slice %967 {offsets = [0, 48], sizes = [8, 16], strides = [1, 1]} : vector<16x64xf32> to vector<8x16xf32>
    %1031 = tpu.transpose %1029, [1, 0] : vector<8x16xf32> -> vector<16x8xf32>
    %cst_453 = arith.constant dense<0.000000e+00> : vector<8x8xf32>
    %1032 = tpu.matmul %1028, %1031, %cst_453 {dimension_numbers = #tpu.dot_dimension_numbers<[1], [0], [0], [1], [0, 0, 1, 1], [], []>} : vector<8x16xf32>, vector<16x8xf32>, vector<8x8xf32> -> vector<8x8xf32>
    %cst_454 = arith.constant 2.500000e-01 : f32
    %1033 = vector.broadcast %cst_454 : f32 to vector<8x8xf32>
    %1034 = arith.mulf %1032, %1033 : vector<8x8xf32>
    %1035 = arith.addf %1034, %505 : vector<8x8xf32>
    %cst_455 = arith.constant dense<0xFF800000> : vector<8xf32>
    %1036 = vector.multi_reduction <maximumf>, %1035, %cst_455 [1] : vector<8x8xf32> to vector<8xf32>
    %1037 = vector.shape_cast %1036 : vector<8xf32> to vector<8x1xf32>
    %1038 = vector.broadcast %1037 : vector<8x1xf32> to vector<8x8xf32>
    %1039 = arith.subf %1035, %1038 : vector<8x8xf32>
    %1040 = math.exp %1039 : vector<8x8xf32>
    %cst_456 = arith.constant dense<0.000000e+00> : vector<8xf32>
    %1041 = vector.multi_reduction <add>, %1040, %cst_456 [1] : vector<8x8xf32> to vector<8xf32>
    %1042 = vector.shape_cast %1041 : vector<8xf32> to vector<8x1xf32>
    %1043 = tpu.reciprocal %1042 {approx = true} : vector<8x1xf32> -> vector<8x1xf32>
    %1044 = vector.broadcast %1043 : vector<8x1xf32> to vector<8x8xf32>
    %1045 = arith.mulf %1040, %1044 : vector<8x8xf32>
    %cst_457 = arith.constant dense<0.000000e+00> : vector<8x16xf32>
    %1046 = tpu.matmul %1045, %1030, %cst_457 {dimension_numbers = #tpu.dot_dimension_numbers<[1], [0], [0], [1], [0, 0, 1, 1], [], []>} : vector<8x8xf32>, vector<8x16xf32>, vector<8x16xf32> -> vector<8x16xf32>
    %c0_458 = arith.constant 0 : index
    %c48_459 = arith.constant 48 : index
    %1047 = vector.load %arg42[%c0_458, %c48_459] : memref<16x64xf32, #tpu.memory_space<vmem>>, vector<8x16xf32>
    tpu.vector_store %arg42[%c0_458, %c48_459], %1046 {strides = array<i32>} : memref<16x64xf32, #tpu.memory_space<vmem>>, vector<8x16xf32>,
    %1048 = vector.extract_strided_slice %965 {offsets = [8, 0], sizes = [8, 16], strides = [1, 1]} : vector<16x64xf32> to vector<8x16xf32>
    %1049 = vector.extract_strided_slice %966 {offsets = [8, 0], sizes = [8, 16], strides = [1, 1]} : vector<16x64xf32> to vector<8x16xf32>
    %1050 = vector.extract_strided_slice %967 {offsets = [8, 0], sizes = [8, 16], strides = [1, 1]} : vector<16x64xf32> to vector<8x16xf32>
    %1051 = tpu.transpose %1049, [1, 0] : vector<8x16xf32> -> vector<16x8xf32>
    %cst_460 = arith.constant dense<0.000000e+00> : vector<8x8xf32>
    %1052 = tpu.matmul %1048, %1051, %cst_460 {dimension_numbers = #tpu.dot_dimension_numbers<[1], [0], [0], [1], [0, 0, 1, 1], [], []>} : vector<8x16xf32>, vector<16x8xf32>, vector<8x8xf32> -> vector<8x8xf32>
    %cst_461 = arith.constant 2.500000e-01 : f32
    %1053 = vector.broadcast %cst_461 : f32 to vector<8x8xf32>
    %1054 = arith.mulf %1052, %1053 : vector<8x8xf32>
    %1055 = arith.addf %1054, %505 : vector<8x8xf32>
    %cst_462 = arith.constant dense<0xFF800000> : vector<8xf32>
    %1056 = vector.multi_reduction <maximumf>, %1055, %cst_462 [1] : vector<8x8xf32> to vector<8xf32>
    %1057 = vector.shape_cast %1056 : vector<8xf32> to vector<8x1xf32>
    %1058 = vector.broadcast %1057 : vector<8x1xf32> to vector<8x8xf32>
    %1059 = arith.subf %1055, %1058 : vector<8x8xf32>
    %1060 = math.exp %1059 : vector<8x8xf32>
    %cst_463 = arith.constant dense<0.000000e+00> : vector<8xf32>
    %1061 = vector.multi_reduction <add>, %1060, %cst_463 [1] : vector<8x8xf32> to vector<8xf32>
    %1062 = vector.shape_cast %1061 : vector<8xf32> to vector<8x1xf32>
    %1063 = tpu.reciprocal %1062 {approx = true} : vector<8x1xf32> -> vector<8x1xf32>
    %1064 = vector.broadcast %1063 : vector<8x1xf32> to vector<8x8xf32>
    %1065 = arith.mulf %1060, %1064 : vector<8x8xf32>
    %cst_464 = arith.constant dense<0.000000e+00> : vector<8x16xf32>
    %1066 = tpu.matmul %1065, %1050, %cst_464 {dimension_numbers = #tpu.dot_dimension_numbers<[1], [0], [0], [1], [0, 0, 1, 1], [], []>} : vector<8x8xf32>, vector<8x16xf32>, vector<8x16xf32> -> vector<8x16xf32>
    %c8_465 = arith.constant 8 : index
    %c0_466 = arith.constant 0 : index
    %1067 = vector.load %arg42[%c8_465, %c0_466] : memref<16x64xf32, #tpu.memory_space<vmem>>, vector<8x16xf32>
    tpu.vector_store %arg42[%c8_465, %c0_466], %1066 {strides = array<i32>} : memref<16x64xf32, #tpu.memory_space<vmem>>, vector<8x16xf32>,
    %1068 = vector.extract_strided_slice %965 {offsets = [8, 16], sizes = [8, 16], strides = [1, 1]} : vector<16x64xf32> to vector<8x16xf32>
    %1069 = vector.extract_strided_slice %966 {offsets = [8, 16], sizes = [8, 16], strides = [1, 1]} : vector<16x64xf32> to vector<8x16xf32>
    %1070 = vector.extract_strided_slice %967 {offsets = [8, 16], sizes = [8, 16], strides = [1, 1]} : vector<16x64xf32> to vector<8x16xf32>
    %1071 = tpu.transpose %1069, [1, 0] : vector<8x16xf32> -> vector<16x8xf32>
    %cst_467 = arith.constant dense<0.000000e+00> : vector<8x8xf32>
    %1072 = tpu.matmul %1068, %1071, %cst_467 {dimension_numbers = #tpu.dot_dimension_numbers<[1], [0], [0], [1], [0, 0, 1, 1], [], []>} : vector<8x16xf32>, vector<16x8xf32>, vector<8x8xf32> -> vector<8x8xf32>
    %cst_468 = arith.constant 2.500000e-01 : f32
    %1073 = vector.broadcast %cst_468 : f32 to vector<8x8xf32>
    %1074 = arith.mulf %1072, %1073 : vector<8x8xf32>
    %1075 = arith.addf %1074, %505 : vector<8x8xf32>
    %cst_469 = arith.constant dense<0xFF800000> : vector<8xf32>
    %1076 = vector.multi_reduction <maximumf>, %1075, %cst_469 [1] : vector<8x8xf32> to vector<8xf32>
    %1077 = vector.shape_cast %1076 : vector<8xf32> to vector<8x1xf32>
    %1078 = vector.broadcast %1077 : vector<8x1xf32> to vector<8x8xf32>
    %1079 = arith.subf %1075, %1078 : vector<8x8xf32>
    %1080 = math.exp %1079 : vector<8x8xf32>
    %cst_470 = arith.constant dense<0.000000e+00> : vector<8xf32>
    %1081 = vector.multi_reduction <add>, %1080, %cst_470 [1] : vector<8x8xf32> to vector<8xf32>
    %1082 = vector.shape_cast %1081 : vector<8xf32> to vector<8x1xf32>
    %1083 = tpu.reciprocal %1082 {approx = true} : vector<8x1xf32> -> vector<8x1xf32>
    %1084 = vector.broadcast %1083 : vector<8x1xf32> to vector<8x8xf32>
    %1085 = arith.mulf %1080, %1084 : vector<8x8xf32>
    %cst_471 = arith.constant dense<0.000000e+00> : vector<8x16xf32>
    %1086 = tpu.matmul %1085, %1070, %cst_471 {dimension_numbers = #tpu.dot_dimension_numbers<[1], [0], [0], [1], [0, 0, 1, 1], [], []>} : vector<8x8xf32>, vector<8x16xf32>, vector<8x16xf32> -> vector<8x16xf32>
    %c8_472 = arith.constant 8 : index
    %c16_473 = arith.constant 16 : index
    %1087 = vector.load %arg42[%c8_472, %c16_473] : memref<16x64xf32, #tpu.memory_space<vmem>>, vector<8x16xf32>
    tpu.vector_store %arg42[%c8_472, %c16_473], %1086 {strides = array<i32>} : memref<16x64xf32, #tpu.memory_space<vmem>>, vector<8x16xf32>,
    %1088 = vector.extract_strided_slice %965 {offsets = [8, 32], sizes = [8, 16], strides = [1, 1]} : vector<16x64xf32> to vector<8x16xf32>
    %1089 = vector.extract_strided_slice %966 {offsets = [8, 32], sizes = [8, 16], strides = [1, 1]} : vector<16x64xf32> to vector<8x16xf32>
    %1090 = vector.extract_strided_slice %967 {offsets = [8, 32], sizes = [8, 16], strides = [1, 1]} : vector<16x64xf32> to vector<8x16xf32>
    %1091 = tpu.transpose %1089, [1, 0] : vector<8x16xf32> -> vector<16x8xf32>
    %cst_474 = arith.constant dense<0.000000e+00> : vector<8x8xf32>
    %1092 = tpu.matmul %1088, %1091, %cst_474 {dimension_numbers = #tpu.dot_dimension_numbers<[1], [0], [0], [1], [0, 0, 1, 1], [], []>} : vector<8x16xf32>, vector<16x8xf32>, vector<8x8xf32> -> vector<8x8xf32>
    %cst_475 = arith.constant 2.500000e-01 : f32
    %1093 = vector.broadcast %cst_475 : f32 to vector<8x8xf32>
    %1094 = arith.mulf %1092, %1093 : vector<8x8xf32>
    %1095 = arith.addf %1094, %505 : vector<8x8xf32>
    %cst_476 = arith.constant dense<0xFF800000> : vector<8xf32>
    %1096 = vector.multi_reduction <maximumf>, %1095, %cst_476 [1] : vector<8x8xf32> to vector<8xf32>
    %1097 = vector.shape_cast %1096 : vector<8xf32> to vector<8x1xf32>
    %1098 = vector.broadcast %1097 : vector<8x1xf32> to vector<8x8xf32>
    %1099 = arith.subf %1095, %1098 : vector<8x8xf32>
    %1100 = math.exp %1099 : vector<8x8xf32>
    %cst_477 = arith.constant dense<0.000000e+00> : vector<8xf32>
    %1101 = vector.multi_reduction <add>, %1100, %cst_477 [1] : vector<8x8xf32> to vector<8xf32>
    %1102 = vector.shape_cast %1101 : vector<8xf32> to vector<8x1xf32>
    %1103 = tpu.reciprocal %1102 {approx = true} : vector<8x1xf32> -> vector<8x1xf32>
    %1104 = vector.broadcast %1103 : vector<8x1xf32> to vector<8x8xf32>
    %1105 = arith.mulf %1100, %1104 : vector<8x8xf32>
    %cst_478 = arith.constant dense<0.000000e+00> : vector<8x16xf32>
    %1106 = tpu.matmul %1105, %1090, %cst_478 {dimension_numbers = #tpu.dot_dimension_numbers<[1], [0], [0], [1], [0, 0, 1, 1], [], []>} : vector<8x8xf32>, vector<8x16xf32>, vector<8x16xf32> -> vector<8x16xf32>
    %c8_479 = arith.constant 8 : index
    %c32_480 = arith.constant 32 : index
    %1107 = vector.load %arg42[%c8_479, %c32_480] : memref<16x64xf32, #tpu.memory_space<vmem>>, vector<8x16xf32>
    tpu.vector_store %arg42[%c8_479, %c32_480], %1106 {strides = array<i32>} : memref<16x64xf32, #tpu.memory_space<vmem>>, vector<8x16xf32>,
    %1108 = vector.extract_strided_slice %965 {offsets = [8, 48], sizes = [8, 16], strides = [1, 1]} : vector<16x64xf32> to vector<8x16xf32>
    %1109 = vector.extract_strided_slice %966 {offsets = [8, 48], sizes = [8, 16], strides = [1, 1]} : vector<16x64xf32> to vector<8x16xf32>
    %1110 = vector.extract_strided_slice %967 {offsets = [8, 48], sizes = [8, 16], strides = [1, 1]} : vector<16x64xf32> to vector<8x16xf32>
    %1111 = tpu.transpose %1109, [1, 0] : vector<8x16xf32> -> vector<16x8xf32>
    %cst_481 = arith.constant dense<0.000000e+00> : vector<8x8xf32>
    %1112 = tpu.matmul %1108, %1111, %cst_481 {dimension_numbers = #tpu.dot_dimension_numbers<[1], [0], [0], [1], [0, 0, 1, 1], [], []>} : vector<8x16xf32>, vector<16x8xf32>, vector<8x8xf32> -> vector<8x8xf32>
    %cst_482 = arith.constant 2.500000e-01 : f32
    %1113 = vector.broadcast %cst_482 : f32 to vector<8x8xf32>
    %1114 = arith.mulf %1112, %1113 : vector<8x8xf32>
    %1115 = arith.addf %1114, %505 : vector<8x8xf32>
    %cst_483 = arith.constant dense<0xFF800000> : vector<8xf32>
    %1116 = vector.multi_reduction <maximumf>, %1115, %cst_483 [1] : vector<8x8xf32> to vector<8xf32>
    %1117 = vector.shape_cast %1116 : vector<8xf32> to vector<8x1xf32>
    %1118 = vector.broadcast %1117 : vector<8x1xf32> to vector<8x8xf32>
    %1119 = arith.subf %1115, %1118 : vector<8x8xf32>
    %1120 = math.exp %1119 : vector<8x8xf32>
    %cst_484 = arith.constant dense<0.000000e+00> : vector<8xf32>
    %1121 = vector.multi_reduction <add>, %1120, %cst_484 [1] : vector<8x8xf32> to vector<8xf32>
    %1122 = vector.shape_cast %1121 : vector<8xf32> to vector<8x1xf32>
    %1123 = tpu.reciprocal %1122 {approx = true} : vector<8x1xf32> -> vector<8x1xf32>
    %1124 = vector.broadcast %1123 : vector<8x1xf32> to vector<8x8xf32>
    %1125 = arith.mulf %1120, %1124 : vector<8x8xf32>
    %cst_485 = arith.constant dense<0.000000e+00> : vector<8x16xf32>
    %1126 = tpu.matmul %1125, %1110, %cst_485 {dimension_numbers = #tpu.dot_dimension_numbers<[1], [0], [0], [1], [0, 0, 1, 1], [], []>} : vector<8x8xf32>, vector<8x16xf32>, vector<8x16xf32> -> vector<8x16xf32>
    %c8_486 = arith.constant 8 : index
    %c48_487 = arith.constant 48 : index
    %1127 = vector.load %arg42[%c8_486, %c48_487] : memref<16x64xf32, #tpu.memory_space<vmem>>, vector<8x16xf32>
    tpu.vector_store %arg42[%c8_486, %c48_487], %1126 {strides = array<i32>} : memref<16x64xf32, #tpu.memory_space<vmem>>, vector<8x16xf32>,
    %c0_488 = arith.constant 0 : index
    %c0_489 = arith.constant 0 : index
    %1128 = vector.load %arg42[%c0_488, %c0_489] : memref<16x64xf32, #tpu.memory_space<vmem>>, vector<16x64xf32>
    %c1_490 = arith.constant 1 : index
    %c0_491 = arith.constant 0 : index
    %c0_492 = arith.constant 0 : index
    %1129 = vector.load %arg17[%c1_490, %c0_491, %c0_492] : memref<2x64x64xf32, #tpu.memory_space<vmem>>, vector<1x64x64xf32>
    %1130 = vector.shape_cast %1129 : vector<1x64x64xf32> to vector<64x64xf32>
    %c1_493 = arith.constant 1 : index
    %c0_494 = arith.constant 0 : index
    %c0_495 = arith.constant 0 : index
    %1131 = vector.load %arg18[%c1_493, %c0_494, %c0_495] : memref<2x1x64xf32, #tpu.memory_space<vmem>>, vector<1x1x64xf32>
    %1132 = vector.shape_cast %1131 : vector<1x1x64xf32> to vector<1x64xf32>
    %cst_496 = arith.constant dense<0.000000e+00> : vector<16x64xf32>
    %1133 = tpu.matmul %1128, %1130, %cst_496 {dimension_numbers = #tpu.dot_dimension_numbers<[1], [0], [0], [1], [0, 0, 1, 1], [], []>} : vector<16x64xf32>, vector<64x64xf32>, vector<16x64xf32> -> vector<16x64xf32>
    %1134 = vector.broadcast %1132 : vector<1x64xf32> to vector<16x64xf32>
    %1135 = arith.addf %1133, %1134 : vector<16x64xf32>
    %1136 = arith.addf %957, %1135 : vector<16x64xf32>
    %c1_497 = arith.constant 1 : index
    %c0_498 = arith.constant 0 : index
    %c0_499 = arith.constant 0 : index
    %1137 = vector.load %arg19[%c1_497, %c0_498, %c0_499] : memref<2x1x64xf32, #tpu.memory_space<vmem>>, vector<1x1x64xf32>
    %1138 = vector.shape_cast %1137 : vector<1x1x64xf32> to vector<1x64xf32>
    %c1_500 = arith.constant 1 : index
    %c0_501 = arith.constant 0 : index
    %c0_502 = arith.constant 0 : index
    %1139 = vector.load %arg20[%c1_500, %c0_501, %c0_502] : memref<2x1x64xf32, #tpu.memory_space<vmem>>, vector<1x1x64xf32>
    %1140 = vector.shape_cast %1139 : vector<1x1x64xf32> to vector<1x64xf32>
    %cst_503 = arith.constant dense<0.000000e+00> : vector<16xf32>
    %1141 = vector.multi_reduction <add>, %1136, %cst_503 [1] : vector<16x64xf32> to vector<16xf32>
    %1142 = vector.shape_cast %1141 : vector<16xf32> to vector<16x1xf32>
    %cst_504 = arith.constant 6.400000e+01 : f32
    %1143 = vector.broadcast %cst_504 : f32 to vector<16x1xf32>
    %1144 = arith.divf %1142, %1143 : vector<16x1xf32>
    %1145 = vector.broadcast %1144 : vector<16x1xf32> to vector<16x64xf32>
    %1146 = arith.subf %1136, %1145 : vector<16x64xf32>
    %1147 = arith.mulf %1146, %1146 : vector<16x64xf32>
    %cst_505 = arith.constant dense<0.000000e+00> : vector<16xf32>
    %1148 = vector.multi_reduction <add>, %1147, %cst_505 [1] : vector<16x64xf32> to vector<16xf32>
    %1149 = vector.shape_cast %1148 : vector<16xf32> to vector<16x1xf32>
    %cst_506 = arith.constant 6.400000e+01 : f32
    %1150 = vector.broadcast %cst_506 : f32 to vector<16x1xf32>
    %1151 = arith.divf %1149, %1150 : vector<16x1xf32>
    %1152 = vector.broadcast %1144 : vector<16x1xf32> to vector<16x64xf32>
    %1153 = arith.subf %1136, %1152 : vector<16x64xf32>
    %cst_507 = arith.constant 9.99999974E-6 : f32
    %1154 = vector.broadcast %cst_507 : f32 to vector<16x1xf32>
    %1155 = arith.addf %1151, %1154 : vector<16x1xf32>
    %1156 = math.rsqrt %1155 : vector<16x1xf32>
    %1157 = vector.broadcast %1156 : vector<16x1xf32> to vector<16x64xf32>
    %1158 = arith.mulf %1153, %1157 : vector<16x64xf32>
    %1159 = vector.broadcast %1138 : vector<1x64xf32> to vector<16x64xf32>
    %1160 = arith.mulf %1158, %1159 : vector<16x64xf32>
    %1161 = vector.broadcast %1140 : vector<1x64xf32> to vector<16x64xf32>
    %1162 = arith.addf %1160, %1161 : vector<16x64xf32>
    %c1_508 = arith.constant 1 : index
    %c0_509 = arith.constant 0 : index
    %c0_510 = arith.constant 0 : index
    %1163 = vector.load %arg21[%c1_508, %c0_509, %c0_510] : memref<2x64x64xf32, #tpu.memory_space<vmem>>, vector<1x64x64xf32>
    %1164 = vector.shape_cast %1163 : vector<1x64x64xf32> to vector<64x64xf32>
    %c1_511 = arith.constant 1 : index
    %c0_512 = arith.constant 0 : index
    %c0_513 = arith.constant 0 : index
    %1165 = vector.load %arg22[%c1_511, %c0_512, %c0_513] : memref<2x1x64xf32, #tpu.memory_space<vmem>>, vector<1x1x64xf32>
    %1166 = vector.shape_cast %1165 : vector<1x1x64xf32> to vector<1x64xf32>
    %cst_514 = arith.constant dense<0.000000e+00> : vector<16x64xf32>
    %1167 = tpu.matmul %1162, %1164, %cst_514 {dimension_numbers = #tpu.dot_dimension_numbers<[1], [0], [0], [1], [0, 0, 1, 1], [], []>} : vector<16x64xf32>, vector<64x64xf32>, vector<16x64xf32> -> vector<16x64xf32>
    %1168 = vector.broadcast %1166 : vector<1x64xf32> to vector<16x64xf32>
    %1169 = arith.addf %1167, %1168 : vector<16x64xf32>
    %c1_515 = arith.constant 1 : index
    %c0_516 = arith.constant 0 : index
    %c0_517 = arith.constant 0 : index
    %1170 = vector.load %arg23[%c1_515, %c0_516, %c0_517] : memref<2x64x128xf32, #tpu.memory_space<vmem>>, vector<1x64x128xf32>
    %1171 = vector.shape_cast %1170 : vector<1x64x128xf32> to vector<64x128xf32>
    %c1_518 = arith.constant 1 : index
    %c0_519 = arith.constant 0 : index
    %c0_520 = arith.constant 0 : index
    %1172 = vector.load %arg24[%c1_518, %c0_519, %c0_520] : memref<2x1x128xf32, #tpu.memory_space<vmem>>, vector<1x1x128xf32>
    %1173 = vector.shape_cast %1172 : vector<1x1x128xf32> to vector<1x128xf32>
    %cst_521 = arith.constant dense<0.000000e+00> : vector<16x128xf32>
    %1174 = tpu.matmul %504, %1171, %cst_521 {dimension_numbers = #tpu.dot_dimension_numbers<[1], [0], [0], [1], [0, 0, 1, 1], [], []>} : vector<16x64xf32>, vector<64x128xf32>, vector<16x128xf32> -> vector<16x128xf32>
    %1175 = vector.broadcast %1173 : vector<1x128xf32> to vector<16x128xf32>
    %1176 = arith.addf %1174, %1175 : vector<16x128xf32>
    %1177 = vector.extract_strided_slice %1176 {offsets = [0, 0], sizes = [16, 64], strides = [1, 1]} : vector<16x128xf32> to vector<16x64xf32>
    %1178 = vector.extract_strided_slice %1176 {offsets = [0, 64], sizes = [16, 64], strides = [1, 1]} : vector<16x128xf32> to vector<16x64xf32>
    %1179 = vector.extract_strided_slice %1169 {offsets = [0, 0], sizes = [8, 16], strides = [1, 1]} : vector<16x64xf32> to vector<8x16xf32>
    %1180 = vector.extract_strided_slice %1177 {offsets = [0, 0], sizes = [8, 16], strides = [1, 1]} : vector<16x64xf32> to vector<8x16xf32>
    %1181 = vector.extract_strided_slice %1178 {offsets = [0, 0], sizes = [8, 16], strides = [1, 1]} : vector<16x64xf32> to vector<8x16xf32>
    %1182 = tpu.transpose %1180, [1, 0] : vector<8x16xf32> -> vector<16x8xf32>
    %cst_522 = arith.constant dense<0.000000e+00> : vector<8x8xf32>
    %1183 = tpu.matmul %1179, %1182, %cst_522 {dimension_numbers = #tpu.dot_dimension_numbers<[1], [0], [0], [1], [0, 0, 1, 1], [], []>} : vector<8x16xf32>, vector<16x8xf32>, vector<8x8xf32> -> vector<8x8xf32>
    %cst_523 = arith.constant 2.500000e-01 : f32
    %1184 = vector.broadcast %cst_523 : f32 to vector<8x8xf32>
    %1185 = arith.mulf %1183, %1184 : vector<8x8xf32>
    %cst_524 = arith.constant dense<0xFF800000> : vector<8xf32>
    %1186 = vector.multi_reduction <maximumf>, %1185, %cst_524 [1] : vector<8x8xf32> to vector<8xf32>
    %1187 = vector.shape_cast %1186 : vector<8xf32> to vector<8x1xf32>
    %1188 = vector.broadcast %1187 : vector<8x1xf32> to vector<8x8xf32>
    %1189 = arith.subf %1185, %1188 : vector<8x8xf32>
    %1190 = math.exp %1189 : vector<8x8xf32>
    %cst_525 = arith.constant dense<0.000000e+00> : vector<8xf32>
    %1191 = vector.multi_reduction <add>, %1190, %cst_525 [1] : vector<8x8xf32> to vector<8xf32>
    %1192 = vector.shape_cast %1191 : vector<8xf32> to vector<8x1xf32>
    %1193 = tpu.reciprocal %1192 {approx = true} : vector<8x1xf32> -> vector<8x1xf32>
    %1194 = vector.broadcast %1193 : vector<8x1xf32> to vector<8x8xf32>
    %1195 = arith.mulf %1190, %1194 : vector<8x8xf32>
    %cst_526 = arith.constant dense<0.000000e+00> : vector<8x16xf32>
    %1196 = tpu.matmul %1195, %1181, %cst_526 {dimension_numbers = #tpu.dot_dimension_numbers<[1], [0], [0], [1], [0, 0, 1, 1], [], []>} : vector<8x8xf32>, vector<8x16xf32>, vector<8x16xf32> -> vector<8x16xf32>
    %c0_527 = arith.constant 0 : index
    %c0_528 = arith.constant 0 : index
    %1197 = vector.load %arg42[%c0_527, %c0_528] : memref<16x64xf32, #tpu.memory_space<vmem>>, vector<8x16xf32>
    tpu.vector_store %arg42[%c0_527, %c0_528], %1196 {strides = array<i32>} : memref<16x64xf32, #tpu.memory_space<vmem>>, vector<8x16xf32>,
    %1198 = vector.extract_strided_slice %1169 {offsets = [0, 16], sizes = [8, 16], strides = [1, 1]} : vector<16x64xf32> to vector<8x16xf32>
    %1199 = vector.extract_strided_slice %1177 {offsets = [0, 16], sizes = [8, 16], strides = [1, 1]} : vector<16x64xf32> to vector<8x16xf32>
    %1200 = vector.extract_strided_slice %1178 {offsets = [0, 16], sizes = [8, 16], strides = [1, 1]} : vector<16x64xf32> to vector<8x16xf32>
    %1201 = tpu.transpose %1199, [1, 0] : vector<8x16xf32> -> vector<16x8xf32>
    %cst_529 = arith.constant dense<0.000000e+00> : vector<8x8xf32>
    %1202 = tpu.matmul %1198, %1201, %cst_529 {dimension_numbers = #tpu.dot_dimension_numbers<[1], [0], [0], [1], [0, 0, 1, 1], [], []>} : vector<8x16xf32>, vector<16x8xf32>, vector<8x8xf32> -> vector<8x8xf32>
    %cst_530 = arith.constant 2.500000e-01 : f32
    %1203 = vector.broadcast %cst_530 : f32 to vector<8x8xf32>
    %1204 = arith.mulf %1202, %1203 : vector<8x8xf32>
    %cst_531 = arith.constant dense<0xFF800000> : vector<8xf32>
    %1205 = vector.multi_reduction <maximumf>, %1204, %cst_531 [1] : vector<8x8xf32> to vector<8xf32>
    %1206 = vector.shape_cast %1205 : vector<8xf32> to vector<8x1xf32>
    %1207 = vector.broadcast %1206 : vector<8x1xf32> to vector<8x8xf32>
    %1208 = arith.subf %1204, %1207 : vector<8x8xf32>
    %1209 = math.exp %1208 : vector<8x8xf32>
    %cst_532 = arith.constant dense<0.000000e+00> : vector<8xf32>
    %1210 = vector.multi_reduction <add>, %1209, %cst_532 [1] : vector<8x8xf32> to vector<8xf32>
    %1211 = vector.shape_cast %1210 : vector<8xf32> to vector<8x1xf32>
    %1212 = tpu.reciprocal %1211 {approx = true} : vector<8x1xf32> -> vector<8x1xf32>
    %1213 = vector.broadcast %1212 : vector<8x1xf32> to vector<8x8xf32>
    %1214 = arith.mulf %1209, %1213 : vector<8x8xf32>
    %cst_533 = arith.constant dense<0.000000e+00> : vector<8x16xf32>
    %1215 = tpu.matmul %1214, %1200, %cst_533 {dimension_numbers = #tpu.dot_dimension_numbers<[1], [0], [0], [1], [0, 0, 1, 1], [], []>} : vector<8x8xf32>, vector<8x16xf32>, vector<8x16xf32> -> vector<8x16xf32>
    %c0_534 = arith.constant 0 : index
    %c16_535 = arith.constant 16 : index
    %1216 = vector.load %arg42[%c0_534, %c16_535] : memref<16x64xf32, #tpu.memory_space<vmem>>, vector<8x16xf32>
    tpu.vector_store %arg42[%c0_534, %c16_535], %1215 {strides = array<i32>} : memref<16x64xf32, #tpu.memory_space<vmem>>, vector<8x16xf32>,
    %1217 = vector.extract_strided_slice %1169 {offsets = [0, 32], sizes = [8, 16], strides = [1, 1]} : vector<16x64xf32> to vector<8x16xf32>
    %1218 = vector.extract_strided_slice %1177 {offsets = [0, 32], sizes = [8, 16], strides = [1, 1]} : vector<16x64xf32> to vector<8x16xf32>
    %1219 = vector.extract_strided_slice %1178 {offsets = [0, 32], sizes = [8, 16], strides = [1, 1]} : vector<16x64xf32> to vector<8x16xf32>
    %1220 = tpu.transpose %1218, [1, 0] : vector<8x16xf32> -> vector<16x8xf32>
    %cst_536 = arith.constant dense<0.000000e+00> : vector<8x8xf32>
    %1221 = tpu.matmul %1217, %1220, %cst_536 {dimension_numbers = #tpu.dot_dimension_numbers<[1], [0], [0], [1], [0, 0, 1, 1], [], []>} : vector<8x16xf32>, vector<16x8xf32>, vector<8x8xf32> -> vector<8x8xf32>
    %cst_537 = arith.constant 2.500000e-01 : f32
    %1222 = vector.broadcast %cst_537 : f32 to vector<8x8xf32>
    %1223 = arith.mulf %1221, %1222 : vector<8x8xf32>
    %cst_538 = arith.constant dense<0xFF800000> : vector<8xf32>
    %1224 = vector.multi_reduction <maximumf>, %1223, %cst_538 [1] : vector<8x8xf32> to vector<8xf32>
    %1225 = vector.shape_cast %1224 : vector<8xf32> to vector<8x1xf32>
    %1226 = vector.broadcast %1225 : vector<8x1xf32> to vector<8x8xf32>
    %1227 = arith.subf %1223, %1226 : vector<8x8xf32>
    %1228 = math.exp %1227 : vector<8x8xf32>
    %cst_539 = arith.constant dense<0.000000e+00> : vector<8xf32>
    %1229 = vector.multi_reduction <add>, %1228, %cst_539 [1] : vector<8x8xf32> to vector<8xf32>
    %1230 = vector.shape_cast %1229 : vector<8xf32> to vector<8x1xf32>
    %1231 = tpu.reciprocal %1230 {approx = true} : vector<8x1xf32> -> vector<8x1xf32>
    %1232 = vector.broadcast %1231 : vector<8x1xf32> to vector<8x8xf32>
    %1233 = arith.mulf %1228, %1232 : vector<8x8xf32>
    %cst_540 = arith.constant dense<0.000000e+00> : vector<8x16xf32>
    %1234 = tpu.matmul %1233, %1219, %cst_540 {dimension_numbers = #tpu.dot_dimension_numbers<[1], [0], [0], [1], [0, 0, 1, 1], [], []>} : vector<8x8xf32>, vector<8x16xf32>, vector<8x16xf32> -> vector<8x16xf32>
    %c0_541 = arith.constant 0 : index
    %c32_542 = arith.constant 32 : index
    %1235 = vector.load %arg42[%c0_541, %c32_542] : memref<16x64xf32, #tpu.memory_space<vmem>>, vector<8x16xf32>
    tpu.vector_store %arg42[%c0_541, %c32_542], %1234 {strides = array<i32>} : memref<16x64xf32, #tpu.memory_space<vmem>>, vector<8x16xf32>,
    %1236 = vector.extract_strided_slice %1169 {offsets = [0, 48], sizes = [8, 16], strides = [1, 1]} : vector<16x64xf32> to vector<8x16xf32>
    %1237 = vector.extract_strided_slice %1177 {offsets = [0, 48], sizes = [8, 16], strides = [1, 1]} : vector<16x64xf32> to vector<8x16xf32>
    %1238 = vector.extract_strided_slice %1178 {offsets = [0, 48], sizes = [8, 16], strides = [1, 1]} : vector<16x64xf32> to vector<8x16xf32>
    %1239 = tpu.transpose %1237, [1, 0] : vector<8x16xf32> -> vector<16x8xf32>
    %cst_543 = arith.constant dense<0.000000e+00> : vector<8x8xf32>
    %1240 = tpu.matmul %1236, %1239, %cst_543 {dimension_numbers = #tpu.dot_dimension_numbers<[1], [0], [0], [1], [0, 0, 1, 1], [], []>} : vector<8x16xf32>, vector<16x8xf32>, vector<8x8xf32> -> vector<8x8xf32>
    %cst_544 = arith.constant 2.500000e-01 : f32
    %1241 = vector.broadcast %cst_544 : f32 to vector<8x8xf32>
    %1242 = arith.mulf %1240, %1241 : vector<8x8xf32>
    %cst_545 = arith.constant dense<0xFF800000> : vector<8xf32>
    %1243 = vector.multi_reduction <maximumf>, %1242, %cst_545 [1] : vector<8x8xf32> to vector<8xf32>
    %1244 = vector.shape_cast %1243 : vector<8xf32> to vector<8x1xf32>
    %1245 = vector.broadcast %1244 : vector<8x1xf32> to vector<8x8xf32>
    %1246 = arith.subf %1242, %1245 : vector<8x8xf32>
    %1247 = math.exp %1246 : vector<8x8xf32>
    %cst_546 = arith.constant dense<0.000000e+00> : vector<8xf32>
    %1248 = vector.multi_reduction <add>, %1247, %cst_546 [1] : vector<8x8xf32> to vector<8xf32>
    %1249 = vector.shape_cast %1248 : vector<8xf32> to vector<8x1xf32>
    %1250 = tpu.reciprocal %1249 {approx = true} : vector<8x1xf32> -> vector<8x1xf32>
    %1251 = vector.broadcast %1250 : vector<8x1xf32> to vector<8x8xf32>
    %1252 = arith.mulf %1247, %1251 : vector<8x8xf32>
    %cst_547 = arith.constant dense<0.000000e+00> : vector<8x16xf32>
    %1253 = tpu.matmul %1252, %1238, %cst_547 {dimension_numbers = #tpu.dot_dimension_numbers<[1], [0], [0], [1], [0, 0, 1, 1], [], []>} : vector<8x8xf32>, vector<8x16xf32>, vector<8x16xf32> -> vector<8x16xf32>
    %c0_548 = arith.constant 0 : index
    %c48_549 = arith.constant 48 : index
    %1254 = vector.load %arg42[%c0_548, %c48_549] : memref<16x64xf32, #tpu.memory_space<vmem>>, vector<8x16xf32>
    tpu.vector_store %arg42[%c0_548, %c48_549], %1253 {strides = array<i32>} : memref<16x64xf32, #tpu.memory_space<vmem>>, vector<8x16xf32>,
    %1255 = vector.extract_strided_slice %1169 {offsets = [8, 0], sizes = [8, 16], strides = [1, 1]} : vector<16x64xf32> to vector<8x16xf32>
    %1256 = vector.extract_strided_slice %1177 {offsets = [8, 0], sizes = [8, 16], strides = [1, 1]} : vector<16x64xf32> to vector<8x16xf32>
    %1257 = vector.extract_strided_slice %1178 {offsets = [8, 0], sizes = [8, 16], strides = [1, 1]} : vector<16x64xf32> to vector<8x16xf32>
    %1258 = tpu.transpose %1256, [1, 0] : vector<8x16xf32> -> vector<16x8xf32>
    %cst_550 = arith.constant dense<0.000000e+00> : vector<8x8xf32>
    %1259 = tpu.matmul %1255, %1258, %cst_550 {dimension_numbers = #tpu.dot_dimension_numbers<[1], [0], [0], [1], [0, 0, 1, 1], [], []>} : vector<8x16xf32>, vector<16x8xf32>, vector<8x8xf32> -> vector<8x8xf32>
    %cst_551 = arith.constant 2.500000e-01 : f32
    %1260 = vector.broadcast %cst_551 : f32 to vector<8x8xf32>
    %1261 = arith.mulf %1259, %1260 : vector<8x8xf32>
    %cst_552 = arith.constant dense<0xFF800000> : vector<8xf32>
    %1262 = vector.multi_reduction <maximumf>, %1261, %cst_552 [1] : vector<8x8xf32> to vector<8xf32>
    %1263 = vector.shape_cast %1262 : vector<8xf32> to vector<8x1xf32>
    %1264 = vector.broadcast %1263 : vector<8x1xf32> to vector<8x8xf32>
    %1265 = arith.subf %1261, %1264 : vector<8x8xf32>
    %1266 = math.exp %1265 : vector<8x8xf32>
    %cst_553 = arith.constant dense<0.000000e+00> : vector<8xf32>
    %1267 = vector.multi_reduction <add>, %1266, %cst_553 [1] : vector<8x8xf32> to vector<8xf32>
    %1268 = vector.shape_cast %1267 : vector<8xf32> to vector<8x1xf32>
    %1269 = tpu.reciprocal %1268 {approx = true} : vector<8x1xf32> -> vector<8x1xf32>
    %1270 = vector.broadcast %1269 : vector<8x1xf32> to vector<8x8xf32>
    %1271 = arith.mulf %1266, %1270 : vector<8x8xf32>
    %cst_554 = arith.constant dense<0.000000e+00> : vector<8x16xf32>
    %1272 = tpu.matmul %1271, %1257, %cst_554 {dimension_numbers = #tpu.dot_dimension_numbers<[1], [0], [0], [1], [0, 0, 1, 1], [], []>} : vector<8x8xf32>, vector<8x16xf32>, vector<8x16xf32> -> vector<8x16xf32>
    %c8_555 = arith.constant 8 : index
    %c0_556 = arith.constant 0 : index
    %1273 = vector.load %arg42[%c8_555, %c0_556] : memref<16x64xf32, #tpu.memory_space<vmem>>, vector<8x16xf32>
    tpu.vector_store %arg42[%c8_555, %c0_556], %1272 {strides = array<i32>} : memref<16x64xf32, #tpu.memory_space<vmem>>, vector<8x16xf32>,
    %1274 = vector.extract_strided_slice %1169 {offsets = [8, 16], sizes = [8, 16], strides = [1, 1]} : vector<16x64xf32> to vector<8x16xf32>
    %1275 = vector.extract_strided_slice %1177 {offsets = [8, 16], sizes = [8, 16], strides = [1, 1]} : vector<16x64xf32> to vector<8x16xf32>
    %1276 = vector.extract_strided_slice %1178 {offsets = [8, 16], sizes = [8, 16], strides = [1, 1]} : vector<16x64xf32> to vector<8x16xf32>
    %1277 = tpu.transpose %1275, [1, 0] : vector<8x16xf32> -> vector<16x8xf32>
    %cst_557 = arith.constant dense<0.000000e+00> : vector<8x8xf32>
    %1278 = tpu.matmul %1274, %1277, %cst_557 {dimension_numbers = #tpu.dot_dimension_numbers<[1], [0], [0], [1], [0, 0, 1, 1], [], []>} : vector<8x16xf32>, vector<16x8xf32>, vector<8x8xf32> -> vector<8x8xf32>
    %cst_558 = arith.constant 2.500000e-01 : f32
    %1279 = vector.broadcast %cst_558 : f32 to vector<8x8xf32>
    %1280 = arith.mulf %1278, %1279 : vector<8x8xf32>
    %cst_559 = arith.constant dense<0xFF800000> : vector<8xf32>
    %1281 = vector.multi_reduction <maximumf>, %1280, %cst_559 [1] : vector<8x8xf32> to vector<8xf32>
    %1282 = vector.shape_cast %1281 : vector<8xf32> to vector<8x1xf32>
    %1283 = vector.broadcast %1282 : vector<8x1xf32> to vector<8x8xf32>
    %1284 = arith.subf %1280, %1283 : vector<8x8xf32>
    %1285 = math.exp %1284 : vector<8x8xf32>
    %cst_560 = arith.constant dense<0.000000e+00> : vector<8xf32>
    %1286 = vector.multi_reduction <add>, %1285, %cst_560 [1] : vector<8x8xf32> to vector<8xf32>
    %1287 = vector.shape_cast %1286 : vector<8xf32> to vector<8x1xf32>
    %1288 = tpu.reciprocal %1287 {approx = true} : vector<8x1xf32> -> vector<8x1xf32>
    %1289 = vector.broadcast %1288 : vector<8x1xf32> to vector<8x8xf32>
    %1290 = arith.mulf %1285, %1289 : vector<8x8xf32>
    %cst_561 = arith.constant dense<0.000000e+00> : vector<8x16xf32>
    %1291 = tpu.matmul %1290, %1276, %cst_561 {dimension_numbers = #tpu.dot_dimension_numbers<[1], [0], [0], [1], [0, 0, 1, 1], [], []>} : vector<8x8xf32>, vector<8x16xf32>, vector<8x16xf32> -> vector<8x16xf32>
    %c8_562 = arith.constant 8 : index
    %c16_563 = arith.constant 16 : index
    %1292 = vector.load %arg42[%c8_562, %c16_563] : memref<16x64xf32, #tpu.memory_space<vmem>>, vector<8x16xf32>
    tpu.vector_store %arg42[%c8_562, %c16_563], %1291 {strides = array<i32>} : memref<16x64xf32, #tpu.memory_space<vmem>>, vector<8x16xf32>,
    %1293 = vector.extract_strided_slice %1169 {offsets = [8, 32], sizes = [8, 16], strides = [1, 1]} : vector<16x64xf32> to vector<8x16xf32>
    %1294 = vector.extract_strided_slice %1177 {offsets = [8, 32], sizes = [8, 16], strides = [1, 1]} : vector<16x64xf32> to vector<8x16xf32>
    %1295 = vector.extract_strided_slice %1178 {offsets = [8, 32], sizes = [8, 16], strides = [1, 1]} : vector<16x64xf32> to vector<8x16xf32>
    %1296 = tpu.transpose %1294, [1, 0] : vector<8x16xf32> -> vector<16x8xf32>
    %cst_564 = arith.constant dense<0.000000e+00> : vector<8x8xf32>
    %1297 = tpu.matmul %1293, %1296, %cst_564 {dimension_numbers = #tpu.dot_dimension_numbers<[1], [0], [0], [1], [0, 0, 1, 1], [], []>} : vector<8x16xf32>, vector<16x8xf32>, vector<8x8xf32> -> vector<8x8xf32>
    %cst_565 = arith.constant 2.500000e-01 : f32
    %1298 = vector.broadcast %cst_565 : f32 to vector<8x8xf32>
    %1299 = arith.mulf %1297, %1298 : vector<8x8xf32>
    %cst_566 = arith.constant dense<0xFF800000> : vector<8xf32>
    %1300 = vector.multi_reduction <maximumf>, %1299, %cst_566 [1] : vector<8x8xf32> to vector<8xf32>
    %1301 = vector.shape_cast %1300 : vector<8xf32> to vector<8x1xf32>
    %1302 = vector.broadcast %1301 : vector<8x1xf32> to vector<8x8xf32>
    %1303 = arith.subf %1299, %1302 : vector<8x8xf32>
    %1304 = math.exp %1303 : vector<8x8xf32>
    %cst_567 = arith.constant dense<0.000000e+00> : vector<8xf32>
    %1305 = vector.multi_reduction <add>, %1304, %cst_567 [1] : vector<8x8xf32> to vector<8xf32>
    %1306 = vector.shape_cast %1305 : vector<8xf32> to vector<8x1xf32>
    %1307 = tpu.reciprocal %1306 {approx = true} : vector<8x1xf32> -> vector<8x1xf32>
    %1308 = vector.broadcast %1307 : vector<8x1xf32> to vector<8x8xf32>
    %1309 = arith.mulf %1304, %1308 : vector<8x8xf32>
    %cst_568 = arith.constant dense<0.000000e+00> : vector<8x16xf32>
    %1310 = tpu.matmul %1309, %1295, %cst_568 {dimension_numbers = #tpu.dot_dimension_numbers<[1], [0], [0], [1], [0, 0, 1, 1], [], []>} : vector<8x8xf32>, vector<8x16xf32>, vector<8x16xf32> -> vector<8x16xf32>
    %c8_569 = arith.constant 8 : index
    %c32_570 = arith.constant 32 : index
    %1311 = vector.load %arg42[%c8_569, %c32_570] : memref<16x64xf32, #tpu.memory_space<vmem>>, vector<8x16xf32>
    tpu.vector_store %arg42[%c8_569, %c32_570], %1310 {strides = array<i32>} : memref<16x64xf32, #tpu.memory_space<vmem>>, vector<8x16xf32>,
    %1312 = vector.extract_strided_slice %1169 {offsets = [8, 48], sizes = [8, 16], strides = [1, 1]} : vector<16x64xf32> to vector<8x16xf32>
    %1313 = vector.extract_strided_slice %1177 {offsets = [8, 48], sizes = [8, 16], strides = [1, 1]} : vector<16x64xf32> to vector<8x16xf32>
    %1314 = vector.extract_strided_slice %1178 {offsets = [8, 48], sizes = [8, 16], strides = [1, 1]} : vector<16x64xf32> to vector<8x16xf32>
    %1315 = tpu.transpose %1313, [1, 0] : vector<8x16xf32> -> vector<16x8xf32>
    %cst_571 = arith.constant dense<0.000000e+00> : vector<8x8xf32>
    %1316 = tpu.matmul %1312, %1315, %cst_571 {dimension_numbers = #tpu.dot_dimension_numbers<[1], [0], [0], [1], [0, 0, 1, 1], [], []>} : vector<8x16xf32>, vector<16x8xf32>, vector<8x8xf32> -> vector<8x8xf32>
    %cst_572 = arith.constant 2.500000e-01 : f32
    %1317 = vector.broadcast %cst_572 : f32 to vector<8x8xf32>
    %1318 = arith.mulf %1316, %1317 : vector<8x8xf32>
    %cst_573 = arith.constant dense<0xFF800000> : vector<8xf32>
    %1319 = vector.multi_reduction <maximumf>, %1318, %cst_573 [1] : vector<8x8xf32> to vector<8xf32>
    %1320 = vector.shape_cast %1319 : vector<8xf32> to vector<8x1xf32>
    %1321 = vector.broadcast %1320 : vector<8x1xf32> to vector<8x8xf32>
    %1322 = arith.subf %1318, %1321 : vector<8x8xf32>
    %1323 = math.exp %1322 : vector<8x8xf32>
    %cst_574 = arith.constant dense<0.000000e+00> : vector<8xf32>
    %1324 = vector.multi_reduction <add>, %1323, %cst_574 [1] : vector<8x8xf32> to vector<8xf32>
    %1325 = vector.shape_cast %1324 : vector<8xf32> to vector<8x1xf32>
    %1326 = tpu.reciprocal %1325 {approx = true} : vector<8x1xf32> -> vector<8x1xf32>
    %1327 = vector.broadcast %1326 : vector<8x1xf32> to vector<8x8xf32>
    %1328 = arith.mulf %1323, %1327 : vector<8x8xf32>
    %cst_575 = arith.constant dense<0.000000e+00> : vector<8x16xf32>
    %1329 = tpu.matmul %1328, %1314, %cst_575 {dimension_numbers = #tpu.dot_dimension_numbers<[1], [0], [0], [1], [0, 0, 1, 1], [], []>} : vector<8x8xf32>, vector<8x16xf32>, vector<8x16xf32> -> vector<8x16xf32>
    %c8_576 = arith.constant 8 : index
    %c48_577 = arith.constant 48 : index
    %1330 = vector.load %arg42[%c8_576, %c48_577] : memref<16x64xf32, #tpu.memory_space<vmem>>, vector<8x16xf32>
    tpu.vector_store %arg42[%c8_576, %c48_577], %1329 {strides = array<i32>} : memref<16x64xf32, #tpu.memory_space<vmem>>, vector<8x16xf32>,
    %c0_578 = arith.constant 0 : index
    %c0_579 = arith.constant 0 : index
    %1331 = vector.load %arg42[%c0_578, %c0_579] : memref<16x64xf32, #tpu.memory_space<vmem>>, vector<16x64xf32>
    %c1_580 = arith.constant 1 : index
    %c0_581 = arith.constant 0 : index
    %c0_582 = arith.constant 0 : index
    %1332 = vector.load %arg25[%c1_580, %c0_581, %c0_582] : memref<2x64x64xf32, #tpu.memory_space<vmem>>, vector<1x64x64xf32>
    %1333 = vector.shape_cast %1332 : vector<1x64x64xf32> to vector<64x64xf32>
    %c1_583 = arith.constant 1 : index
    %c0_584 = arith.constant 0 : index
    %c0_585 = arith.constant 0 : index
    %1334 = vector.load %arg26[%c1_583, %c0_584, %c0_585] : memref<2x1x64xf32, #tpu.memory_space<vmem>>, vector<1x1x64xf32>
    %1335 = vector.shape_cast %1334 : vector<1x1x64xf32> to vector<1x64xf32>
    %cst_586 = arith.constant dense<0.000000e+00> : vector<16x64xf32>
    %1336 = tpu.matmul %1331, %1333, %cst_586 {dimension_numbers = #tpu.dot_dimension_numbers<[1], [0], [0], [1], [0, 0, 1, 1], [], []>} : vector<16x64xf32>, vector<64x64xf32>, vector<16x64xf32> -> vector<16x64xf32>
    %1337 = vector.broadcast %1335 : vector<1x64xf32> to vector<16x64xf32>
    %1338 = arith.addf %1336, %1337 : vector<16x64xf32>
    %1339 = arith.addf %1162, %1338 : vector<16x64xf32>
    %c1_587 = arith.constant 1 : index
    %c0_588 = arith.constant 0 : index
    %c0_589 = arith.constant 0 : index
    %1340 = vector.load %arg27[%c1_587, %c0_588, %c0_589] : memref<2x1x64xf32, #tpu.memory_space<vmem>>, vector<1x1x64xf32>
    %1341 = vector.shape_cast %1340 : vector<1x1x64xf32> to vector<1x64xf32>
    %c1_590 = arith.constant 1 : index
    %c0_591 = arith.constant 0 : index
    %c0_592 = arith.constant 0 : index
    %1342 = vector.load %arg28[%c1_590, %c0_591, %c0_592] : memref<2x1x64xf32, #tpu.memory_space<vmem>>, vector<1x1x64xf32>
    %1343 = vector.shape_cast %1342 : vector<1x1x64xf32> to vector<1x64xf32>
    %cst_593 = arith.constant dense<0.000000e+00> : vector<16xf32>
    %1344 = vector.multi_reduction <add>, %1339, %cst_593 [1] : vector<16x64xf32> to vector<16xf32>
    %1345 = vector.shape_cast %1344 : vector<16xf32> to vector<16x1xf32>
    %cst_594 = arith.constant 6.400000e+01 : f32
    %1346 = vector.broadcast %cst_594 : f32 to vector<16x1xf32>
    %1347 = arith.divf %1345, %1346 : vector<16x1xf32>
    %1348 = vector.broadcast %1347 : vector<16x1xf32> to vector<16x64xf32>
    %1349 = arith.subf %1339, %1348 : vector<16x64xf32>
    %1350 = arith.mulf %1349, %1349 : vector<16x64xf32>
    %cst_595 = arith.constant dense<0.000000e+00> : vector<16xf32>
    %1351 = vector.multi_reduction <add>, %1350, %cst_595 [1] : vector<16x64xf32> to vector<16xf32>
    %1352 = vector.shape_cast %1351 : vector<16xf32> to vector<16x1xf32>
    %cst_596 = arith.constant 6.400000e+01 : f32
    %1353 = vector.broadcast %cst_596 : f32 to vector<16x1xf32>
    %1354 = arith.divf %1352, %1353 : vector<16x1xf32>
    %1355 = vector.broadcast %1347 : vector<16x1xf32> to vector<16x64xf32>
    %1356 = arith.subf %1339, %1355 : vector<16x64xf32>
    %cst_597 = arith.constant 9.99999974E-6 : f32
    %1357 = vector.broadcast %cst_597 : f32 to vector<16x1xf32>
    %1358 = arith.addf %1354, %1357 : vector<16x1xf32>
    %1359 = math.rsqrt %1358 : vector<16x1xf32>
    %1360 = vector.broadcast %1359 : vector<16x1xf32> to vector<16x64xf32>
    %1361 = arith.mulf %1356, %1360 : vector<16x64xf32>
    %1362 = vector.broadcast %1341 : vector<1x64xf32> to vector<16x64xf32>
    %1363 = arith.mulf %1361, %1362 : vector<16x64xf32>
    %1364 = vector.broadcast %1343 : vector<1x64xf32> to vector<16x64xf32>
    %1365 = arith.addf %1363, %1364 : vector<16x64xf32>
    %c1_598 = arith.constant 1 : index
    %c0_599 = arith.constant 0 : index
    %c0_600 = arith.constant 0 : index
    %1366 = vector.load %arg29[%c1_598, %c0_599, %c0_600] : memref<2x64x128xf32, #tpu.memory_space<vmem>>, vector<1x64x128xf32>
    %1367 = vector.shape_cast %1366 : vector<1x64x128xf32> to vector<64x128xf32>
    %c1_601 = arith.constant 1 : index
    %c0_602 = arith.constant 0 : index
    %c0_603 = arith.constant 0 : index
    %1368 = vector.load %arg30[%c1_601, %c0_602, %c0_603] : memref<2x1x128xf32, #tpu.memory_space<vmem>>, vector<1x1x128xf32>
    %1369 = vector.shape_cast %1368 : vector<1x1x128xf32> to vector<1x128xf32>
    %cst_604 = arith.constant dense<0.000000e+00> : vector<16x128xf32>
    %1370 = tpu.matmul %1365, %1367, %cst_604 {dimension_numbers = #tpu.dot_dimension_numbers<[1], [0], [0], [1], [0, 0, 1, 1], [], []>} : vector<16x64xf32>, vector<64x128xf32>, vector<16x128xf32> -> vector<16x128xf32>
    %1371 = vector.broadcast %1369 : vector<1x128xf32> to vector<16x128xf32>
    %1372 = arith.addf %1370, %1371 : vector<16x128xf32>
    %cst_605 = arith.constant 0.000000e+00 : f32
    %1373 = vector.broadcast %cst_605 : f32 to vector<16x128xf32>
    %1374 = arith.maximumf %1372, %1373 : vector<16x128xf32>
    %c1_606 = arith.constant 1 : index
    %c0_607 = arith.constant 0 : index
    %c0_608 = arith.constant 0 : index
    %1375 = vector.load %arg31[%c1_606, %c0_607, %c0_608] : memref<2x128x64xf32, #tpu.memory_space<vmem>>, vector<1x128x64xf32>
    %1376 = vector.shape_cast %1375 : vector<1x128x64xf32> to vector<128x64xf32>
    %c1_609 = arith.constant 1 : index
    %c0_610 = arith.constant 0 : index
    %c0_611 = arith.constant 0 : index
    %1377 = vector.load %arg32[%c1_609, %c0_610, %c0_611] : memref<2x1x64xf32, #tpu.memory_space<vmem>>, vector<1x1x64xf32>
    %1378 = vector.shape_cast %1377 : vector<1x1x64xf32> to vector<1x64xf32>
    %cst_612 = arith.constant dense<0.000000e+00> : vector<16x64xf32>
    %1379 = tpu.matmul %1374, %1376, %cst_612 {dimension_numbers = #tpu.dot_dimension_numbers<[1], [0], [0], [1], [0, 0, 1, 1], [], []>} : vector<16x128xf32>, vector<128x64xf32>, vector<16x64xf32> -> vector<16x64xf32>
    %1380 = vector.broadcast %1378 : vector<1x64xf32> to vector<16x64xf32>
    %1381 = arith.addf %1379, %1380 : vector<16x64xf32>
    %1382 = arith.addf %1365, %1381 : vector<16x64xf32>
    %c1_613 = arith.constant 1 : index
    %c0_614 = arith.constant 0 : index
    %c0_615 = arith.constant 0 : index
    %1383 = vector.load %arg33[%c1_613, %c0_614, %c0_615] : memref<2x1x64xf32, #tpu.memory_space<vmem>>, vector<1x1x64xf32>
    %1384 = vector.shape_cast %1383 : vector<1x1x64xf32> to vector<1x64xf32>
    %c1_616 = arith.constant 1 : index
    %c0_617 = arith.constant 0 : index
    %c0_618 = arith.constant 0 : index
    %1385 = vector.load %arg34[%c1_616, %c0_617, %c0_618] : memref<2x1x64xf32, #tpu.memory_space<vmem>>, vector<1x1x64xf32>
    %1386 = vector.shape_cast %1385 : vector<1x1x64xf32> to vector<1x64xf32>
    %cst_619 = arith.constant dense<0.000000e+00> : vector<16xf32>
    %1387 = vector.multi_reduction <add>, %1382, %cst_619 [1] : vector<16x64xf32> to vector<16xf32>
    %1388 = vector.shape_cast %1387 : vector<16xf32> to vector<16x1xf32>
    %cst_620 = arith.constant 6.400000e+01 : f32
    %1389 = vector.broadcast %cst_620 : f32 to vector<16x1xf32>
    %1390 = arith.divf %1388, %1389 : vector<16x1xf32>
    %1391 = vector.broadcast %1390 : vector<16x1xf32> to vector<16x64xf32>
    %1392 = arith.subf %1382, %1391 : vector<16x64xf32>
    %1393 = arith.mulf %1392, %1392 : vector<16x64xf32>
    %cst_621 = arith.constant dense<0.000000e+00> : vector<16xf32>
    %1394 = vector.multi_reduction <add>, %1393, %cst_621 [1] : vector<16x64xf32> to vector<16xf32>
    %1395 = vector.shape_cast %1394 : vector<16xf32> to vector<16x1xf32>
    %cst_622 = arith.constant 6.400000e+01 : f32
    %1396 = vector.broadcast %cst_622 : f32 to vector<16x1xf32>
    %1397 = arith.divf %1395, %1396 : vector<16x1xf32>
    %1398 = vector.broadcast %1390 : vector<16x1xf32> to vector<16x64xf32>
    %1399 = arith.subf %1382, %1398 : vector<16x64xf32>
    %cst_623 = arith.constant 9.99999974E-6 : f32
    %1400 = vector.broadcast %cst_623 : f32 to vector<16x1xf32>
    %1401 = arith.addf %1397, %1400 : vector<16x1xf32>
    %1402 = math.rsqrt %1401 : vector<16x1xf32>
    %1403 = vector.broadcast %1402 : vector<16x1xf32> to vector<16x64xf32>
    %1404 = arith.mulf %1399, %1403 : vector<16x64xf32>
    %1405 = vector.broadcast %1384 : vector<1x64xf32> to vector<16x64xf32>
    %1406 = arith.mulf %1404, %1405 : vector<16x64xf32>
    %1407 = vector.broadcast %1386 : vector<1x64xf32> to vector<16x64xf32>
    %1408 = arith.addf %1406, %1407 : vector<16x64xf32>
    %c0_624 = arith.constant 0 : index
    %c0_625 = arith.constant 0 : index
    %1409 = vector.load %arg37[%c0_624, %c0_625] : memref<1x64xf32, #tpu.memory_space<vmem>>, vector<1x64xf32>
    %c0_626 = arith.constant 0 : index
    %c0_627 = arith.constant 0 : index
    %1410 = vector.load %arg38[%c0_626, %c0_627] : memref<1x64xf32, #tpu.memory_space<vmem>>, vector<1x64xf32>
    %cst_628 = arith.constant dense<0.000000e+00> : vector<16xf32>
    %1411 = vector.multi_reduction <add>, %1408, %cst_628 [1] : vector<16x64xf32> to vector<16xf32>
    %1412 = vector.shape_cast %1411 : vector<16xf32> to vector<16x1xf32>
    %cst_629 = arith.constant 6.400000e+01 : f32
    %1413 = vector.broadcast %cst_629 : f32 to vector<16x1xf32>
    %1414 = arith.divf %1412, %1413 : vector<16x1xf32>
    %1415 = vector.broadcast %1414 : vector<16x1xf32> to vector<16x64xf32>
    %1416 = arith.subf %1408, %1415 : vector<16x64xf32>
    %1417 = arith.mulf %1416, %1416 : vector<16x64xf32>
    %cst_630 = arith.constant dense<0.000000e+00> : vector<16xf32>
    %1418 = vector.multi_reduction <add>, %1417, %cst_630 [1] : vector<16x64xf32> to vector<16xf32>
    %1419 = vector.shape_cast %1418 : vector<16xf32> to vector<16x1xf32>
    %cst_631 = arith.constant 6.400000e+01 : f32
    %1420 = vector.broadcast %cst_631 : f32 to vector<16x1xf32>
    %1421 = arith.divf %1419, %1420 : vector<16x1xf32>
    %1422 = vector.broadcast %1414 : vector<16x1xf32> to vector<16x64xf32>
    %1423 = arith.subf %1408, %1422 : vector<16x64xf32>
    %cst_632 = arith.constant 9.99999974E-6 : f32
    %1424 = vector.broadcast %cst_632 : f32 to vector<16x1xf32>
    %1425 = arith.addf %1421, %1424 : vector<16x1xf32>
    %1426 = math.rsqrt %1425 : vector<16x1xf32>
    %1427 = vector.broadcast %1426 : vector<16x1xf32> to vector<16x64xf32>
    %1428 = arith.mulf %1423, %1427 : vector<16x64xf32>
    %1429 = vector.broadcast %1409 : vector<1x64xf32> to vector<16x64xf32>
    %1430 = arith.mulf %1428, %1429 : vector<16x64xf32>
    %1431 = vector.broadcast %1410 : vector<1x64xf32> to vector<16x64xf32>
    %1432 = arith.addf %1430, %1431 : vector<16x64xf32>
    %c0_633 = arith.constant 0 : index
    %c0_634 = arith.constant 0 : index
    %1433 = vector.load %arg39[%c0_633, %c0_634] : memref<64x128xf32, #tpu.memory_space<vmem>>, vector<64x128xf32>
    %c0_635 = arith.constant 0 : index
    %c0_636 = arith.constant 0 : index
    %1434 = vector.load %arg40[%c0_635, %c0_636] : memref<1x128xf32, #tpu.memory_space<vmem>>, vector<1x128xf32>
    %cst_637 = arith.constant dense<0.000000e+00> : vector<16x128xf32>
    %1435 = tpu.matmul %1432, %1433, %cst_637 {dimension_numbers = #tpu.dot_dimension_numbers<[1], [0], [0], [1], [0, 0, 1, 1], [], []>} : vector<16x64xf32>, vector<64x128xf32>, vector<16x128xf32> -> vector<16x128xf32>
    %1436 = vector.broadcast %1434 : vector<1x128xf32> to vector<16x128xf32>
    %1437 = arith.addf %1435, %1436 : vector<16x128xf32>
    %c0_638 = arith.constant 0 : index
    %c0_639 = arith.constant 0 : index
    %1438 = vector.load %arg41[%c0_638, %c0_639] : memref<16x128xf32, #tpu.memory_space<vmem>>, vector<16x128xf32>
    tpu.vector_store %arg41[%c0_638, %c0_639], %1437 {strides = array<i32>} : memref<16x128xf32, #tpu.memory_space<vmem>>, vector<16x128xf32>,
    return
  }
}

</mosaic_0001>

<bundles_post_ra>
// kernel: transformer_pseudo2code_forward.1
= control target key start
LH: loop header
LB: loop body
LE: loop exit
PB: predicated region body
PF: predicated region fallthrough
CT: control target
= control target key end

     0   :  { %s13730_s6 = smov 1   ;;  %s13731_s10 = smov 2   ;;  %s15464_s0 = inlined_call_operand.smem [shape: u32[42], index: -1, kind: input, shape index: {}] }
   0x1   :  { %s13791_s5 = sld [smem:[%s15464_s0]]   ;;  %s13732_s14 = smov 3  }
   0x2   :  { %s13796_s9 = sld [smem:[%s15464_s0 + %s13730_s6]]   ;;  %s13733_s18 = smov 4  }
   0x3   :  { %s13801_s13 = sld [smem:[%s15464_s0 + %s13731_s10]]   ;;  %s13734_s22 = smov 5  }
   0x4   :  { %s13806_s17 = sld [smem:[%s15464_s0 + %s13732_s14]]   ;;  %s13735_s26 = smov 6  }
   0x5   :  { %s13811_s21 = sld [smem:[%s15464_s0 + %s13733_s18]]   ;;  %s13736_s30 = smov 7  }
   0x6   :  { %s13816_s25 = sld [smem:[%s15464_s0 + %s13734_s22]]   ;;  %s13737_s4 = smov 8  }
   0x7   :  { %s13821_s29 = sld [smem:[%s15464_s0 + %s13735_s26]]   ;;  %s13738_s10 = smov 9  }
   0x8   :  { %15486 = sst [smem:[#allocation9_spill]] %s13796_s9  ;;  %s13739_s15 = smov 10  }
   0x9   :  { %15487 = sst [smem:[#allocation10_spill]] %s13801_s13  ;;  %s13740_s20 = smov 11  }
   0xa   :  { %s13826_s3 = sld [smem:[%s15464_s0 + %s13736_s30]]   ;;  %s13741_s26 = smov 12  }
   0xb   :  { %s13831_s8 = sld [smem:[%s15464_s0 + %s13737_s4]]   ;;  %s13742_s1 = smov 13  }
   0xc   :  { %s13836_s14 = sld [smem:[%s15464_s0 + %s13738_s10]]   ;;  %s13743_s7 = smov 14  }
   0xd   :  { %s13841_s19 = sld [smem:[%s15464_s0 + %s13739_s15]]   ;;  %s13744_s15 = smov 15  }
   0xe   :  { %s13846_s24 = sld [smem:[%s15464_s0 + %s13740_s20]]   ;;  %s13745_s22 = smov 16  }
   0xf   :  { %s13851_s30 = sld [smem:[%s15464_s0 + %s13741_s26]]   ;;  %s13746_s28 = smov 17  }
  0x10   :  { %s13856_s6 = sld [smem:[%s15464_s0 + %s13742_s1]]  }
  0x11   :  { %s13861_s12 = sld [smem:[%s15464_s0 + %s13743_s7]]   ;;  %s13747_s7 = smov 18  }
  0x12   :  { %s13866_s20 = sld [smem:[%s15464_s0 + %s13744_s15]]   ;;  %s13748_s15 = smov 19  }
  0x13   :  { %s13871_s27 = sld [smem:[%s15464_s0 + %s13745_s22]]   ;;  %s13749_s22 = smov 20  }
  0x14   :  { %s13876_s4 = sld [smem:[%s15464_s0 + %s13746_s28]]   ;;  %s13750_s28 = smov 21  }
  0x15   :  { %s13881_s13 = sld [smem:[%s15464_s0 + %s13747_s7]]   ;;  %s13751_s7 = smov 22  }
  0x16   :  { %s13886_s9 = sld [smem:[%s15464_s0 + %s13748_s15]]   ;;  %s13752_s15 = smov 23  }
  0x17   :  { %15488 = sst [smem:[#allocation11_spill]] %s13861_s12 }
  0x18   :  { %15489 = sst [smem:[#allocation12_spill]] %s13866_s20 }
  0x19   :  { %15490 = sst [smem:[#allocation13_spill]] %s13871_s27 }
  0x1a   :  { %15491 = sst [smem:[#allocation14_spill]] %s13876_s4 }
  0x1b   :  { %15492 = sst [smem:[#allocation15_spill]] %s13881_s13 }
  0x1c   :  { %15493 = sst [smem:[#allocation16_spill]] %s13886_s9 }
  0x1d   :  { %s13891_s27 = sld [smem:[%s15464_s0 + %s13749_s22]]   ;;  %s13753_s22 = smov 24  }
  0x1e   :  { %s13896_s4 = sld [smem:[%s15464_s0 + %s13750_s28]]   ;;  %s13754_s28 = smov 25  }
  0x1f   :  { %s13901_s13 = sld [smem:[%s15464_s0 + %s13751_s7]]   ;;  %s13755_s7 = smov 26  }
  0x20   :  { %s13906_s9 = sld [smem:[%s15464_s0 + %s13752_s15]]   ;;  %s13756_s15 = smov 27  }
  0x23   :  { %15494 = sst [smem:[#allocation17_spill]] %s13891_s27 }
  0x24   :  { %15495 = sst [smem:[#allocation18_spill]] %s13896_s4 }
  0x25   :  { %15496 = sst [smem:[#allocation19_spill]] %s13901_s13 }
  0x26   :  { %15497 = sst [smem:[#allocation20_spill]] %s13906_s9 }
  0x27   :  { %s13911_s27 = sld [smem:[%s15464_s0 + %s13753_s22]]   ;;  %s13757_s22 = smov 28  }
  0x28   :  { %s13916_s4 = sld [smem:[%s15464_s0 + %s13754_s28]]   ;;  %s13758_s28 = smov 29  }
  0x29   :  { %s13921_s13 = sld [smem:[%s15464_s0 + %s13755_s7]]   ;;  %s13759_s7 = smov 30  }
  0x2a   :  { %s13926_s9 = sld [smem:[%s15464_s0 + %s13756_s15]]   ;;  %s13760_s15 = smov 31  }
  0x2d   :  { %15498 = sst [smem:[#allocation21_spill]] %s13911_s27 }
  0x2e   :  { %15499 = sst [smem:[#allocation22_spill]] %s13916_s4 }
  0x2f   :  { %15500 = sst [smem:[#allocation23_spill]] %s13921_s13 }
  0x30   :  { %15501 = sst [smem:[#allocation24_spill]] %s13926_s9 }
  0x31   :  { %s13931_s27 = sld [smem:[%s15464_s0 + %s13757_s22]]   ;;  %s13761_s22 = smov 32  }
  0x32   :  { %s13936_s4 = sld [smem:[%s15464_s0 + %s13758_s28]]   ;;  %s13762_s28 = smov 33  }
  0x33   :  { %s13941_s13 = sld [smem:[%s15464_s0 + %s13759_s7]]   ;;  %s13763_s7 = smov 34  }
  0x34   :  { %s13946_s9 = sld [smem:[%s15464_s0 + %s13760_s15]]   ;;  %s13764_s15 = smov 35  }
  0x35   :  { %s13961_s20 = sld [smem:[%s15464_s0 + %s13763_s7]]   ;;  %s13767_s7 = smov 38  }
  0x37   :  { %15502 = sst [smem:[#allocation25_spill]] %s13931_s27 }
  0x38   :  { %15503 = sst [smem:[#allocation26_spill]] %s13936_s4 }
  0x39   :  { %s13951_s27 = sld [smem:[%s15464_s0 + %s13761_s22]]   ;;  %s13765_s22 = smov 36  }
  0x3a   :  { %15504 = sst [smem:[#allocation27_spill]] %s13946_s9 }
  0x3b   :  { %s13956_s4 = sld [smem:[%s15464_s0 + %s13762_s28]]   ;;  %s13766_s28 = smov 37  }
  0x3c   :  { %15506 = sst [smem:[#allocation29_spill]] %s13961_s20 }
  0x3d   :  { %s13966_s9 = sld [smem:[%s15464_s0 + %s13764_s15]]   ;;  %s13768_s15 = smov 39  }
  0x3e   :  { %s13971_s12 = sld [smem:[%s15464_s0 + %s13765_s22]]   ;;  %s13769_s22 = smov 40  }
  0x3f   :  { %s13981_s20 = sld [smem:[%s15464_s0 + %s13767_s7]]  }
  0x41   :  { %15505 = sst [smem:[#allocation28_spill]] %s13956_s4 }
  0x42   :  { %s13976_s4 = sld [smem:[%s15464_s0 + %s13766_s28]]   ;;  %s13770_s28 = smov 41  }
  0x43   :  { %15507 = sst [smem:[#allocation30_spill]] %s13966_s9 }
  0x44   :  { %15508 = sst [smem:[#allocation31_spill]] %s13971_s12 }
  0x45   :  { %s13986_s9 = sld [smem:[%s15464_s0 + %s13768_s15]]  }
  0x46   :  { %s13991_s12 = sld [smem:[%s15464_s0 + %s13769_s22]]  }
  0x48   :  { %15509 = sst [smem:[#allocation32_spill]] %s13976_s4 }
  0x49   :  { %s13996_s4 = sld [smem:[%s15464_s0 + %s13770_s28]]  }
  0x4a   :  { %88 = vsyncpa [#allocation4], 0 }
  0x4b   :  { %89 = vsyncpa [#allocation6], 0  ;;  %s13771_s7 = smov [#allocation3]   ;;  %s13682_s11 = scalar_lea.hbm %s13941_s13, 32 }
  0x4c   :  { %s155_s10 = sshll.u32 %s13771_s7, 4  ;;  %p13683_p0 = scmp.ne.s32.totalorder %s13941_s13, %s13682_s11  ;;  %s156_s10 = int_to_ptr.vmem [resolvable:$true] %s155_s10 }
  0x4d   :  { %p13686_p1 = scmp.lt.u32.totalorder %s13682_s11, %s13941_s13 }
  0x4f   :  { %p13688_p2 = pnand %p13686_p1, %p13683_p0 }
  0x51   :  { %13691 = shalt.err (!%p13688_p2)
}
  0x52   :  { %s13692_s15 = scalar_lea.vmem %s156_s10, 32  ;;  %p13697_p4 = scmp.lt.s32.totalorder %s156_s10, %s156_s10 }
  0x53   :  { %p13693_p3 = scmp.ne.s32.totalorder %s156_s10, %s13692_s15  ;;  %p13698_p5 = scmp.lt.s32.totalorder %s13692_s15, %s13692_s15 }
  0x55   :  { %p13699_p6 = por %p13698_p5, %p13697_p4 }
  0x57   :  { %p13700_p7 = pnand %p13699_p6, %p13693_p3 }
  0x59   :  { %13703 = shalt.err (!%p13700_p7)
}
  0x5a   :  { %s13772_s0 = smov 16   ;;  %s13773_s16 = smov 1  }
  0x5b   :  { %161 = dma.hbm_to_vmem [thread:$0]  %s13941_s13, 32, %s156_s10, [#allocation4], %s13772_s0, %s13772_s0, %s13773_s16  }
  0x5c   :  { %s13774_s18 = smov [#allocation5]   ;;  %s13704_s23 = scalar_lea.hbm %s13951_s27, 32 }
  0x5d   :  { %s169_s22 = sshll.u32 %s13774_s18, 4  ;;  %p13705_p8 = scmp.ne.s32.totalorder %s13951_s27, %s13704_s23  ;;  %s170_s22 = int_to_ptr.vmem [resolvable:$true] %s169_s22 }
  0x5e   :  { %p13708_p9 = scmp.lt.u32.totalorder %s13704_s23, %s13951_s27 }
  0x60   :  { %p13710_p10 = pnand %p13708_p9, %p13705_p8 }
  0x62   :  { %13713 = shalt.err (!%p13710_p10)
}
  0x63   :  { %s13714_s26 = scalar_lea.vmem %s170_s22, 32  ;;  %p13719_p12 = scmp.lt.s32.totalorder %s170_s22, %s170_s22 }
  0x64   :  { %p13715_p11 = scmp.ne.s32.totalorder %s170_s22, %s13714_s26  ;;  %p13720_p13 = scmp.lt.s32.totalorder %s13714_s26, %s13714_s26 }
  0x66   :  { %p13721_p0 = por %p13720_p13, %p13719_p12 }
  0x68   :  { %p13722_p1 = pnand %p13721_p0, %p13715_p11 }
  0x6a   :  { %13725 = shalt.err (!%p13722_p1)
}
  0x6b   :  { %175 = dma.hbm_to_vmem [thread:$0]  %s13951_s27, 32, %s170_s22, [#allocation6], %s13772_s0, %s13772_s0, %s13773_s16  }
  0x6c   :  { %13726 = dma.done.wait [#allocation4], 32  }
  0x6d   :  { %13727 = vsyncadd [#allocation4], 4294967264 }
  0x6e   :  { %13728 = dma.done.wait [#allocation6], 32  }
  0x6f   :  { %13729 = vsyncadd [#allocation6], 4294967264  ;;  %v13775_v0 = vmov 0.0   ;;  %v201_v1 = vld [vmem:[%s13806_s17 + $0x8] sm:$0xff]  ;;  %v203_v2 = vld [vmem:[%s13806_s17 + $0x18] sm:$0xff]  ;;  %vm228_vm0 = vcmask 523264   ;;  %v218_v26 = vlaneseq }
  0x70   :  { %299 = vmatprep.mubr.f32.mxu0 %v13775_v0  ;;  %12051 = vmatprep.subr.mxu1 %v13775_v0  ;;  %v200_v3 = vld [vmem:[%s13806_s17] sm:$0xff]  ;;  %v12956_v4 = vpack.c.bf16 %v203_v2, %v201_v1  ;;  %v202_v5 = vld [vmem:[%s13806_s17 + $0x10] sm:$0xff]  ;;  %v205_v6 = vld [vmem:[%s13806_s17 + $0x28] sm:$0xff]  ;;  %vm13776_vm1 = vmmov 0   ;;  %s13777_s13 = smov 48   ;;  %s13778_s27 = smov 64  }
  0x71   :  { %v207_v7 = vld [vmem:[%s13806_s17 + $0x38] sm:$0xff]  ;;  %v12958_v8 = vpack.c.bf16 %v202_v5, %v200_v3  ;;  %v204_v10 = vld [vmem:[%s13806_s17 + $0x20] sm:$0xff]  ;;  %v206_v11 = vld [vmem:[%s13806_s17 + $0x30] sm:$0xff]  ;;  %v219_v27 = vshrl.u32 %v218_v26, 7  ;;  %12053 = vmatprep.mubr.msk.f32.mxu1 %vm13776_vm1, %v13775_v0  ;;  %vm315_vm2 = vcmask 130048   ;;  %vm391_vm3 = vcmask 64512  }
  0x72   :  { %v12960_v9 = vpack.c.bf16 %v207_v7, %v205_v6  ;;  %v209_v12 = vld [vmem:[%s13806_s17 + $0x48] sm:$0xff]  ;;  %12957 = vmatprep.subr.bf16.mxu0 %v12956_v4  ;;  %v211_v13 = vld [vmem:[%s13806_s17 + $0x58] sm:$0xff]  ;;  %v12962_v14 = vpack.c.bf16 %v206_v11, %v204_v10  ;;  %v208_v16 = vld [vmem:[%s13806_s17 + $0x40] sm:$0xff]  ;;  %s13779_s28 = smov 112   ;;  %s13780_s1 = smov 96   ;;  %vm648_vm4 = vcmask 261248  }
  0x73   :  { %12959 = vmatpush1.bf16.msra.mxu0 %v12958_v8  ;;  %v12964_v15 = vpack.c.bf16 %v211_v13, %v209_v12  ;;  %v210_v17 = vld [vmem:[%s13806_s17 + $0x50] sm:$0xff]  ;;  %v213_v18 = vld [vmem:[%s13806_s17 + $0x68] sm:$0xff]  ;;  %v215_v19 = vld [vmem:[%s13806_s17 + $0x78] sm:$0xff]  ;;  %v14037_v28 = vsub.s32 0, %v219_v27  ;;  %v14050_v34 = vsub.s32 1, %v219_v27  ;;  %s13781_s2 = smov 32  }
  0x74   :  { %12961 = vmatprep.subr.bf16.mxu0 %v12960_v9  ;;  %v12966_v20 = vpack.c.bf16 %v210_v17, %v208_v16  ;;  %v12968_v21 = vpack.c.bf16 %v215_v19, %v213_v18  ;;  %v212_v22 = vld [vmem:[%s13806_s17 + $0x60] sm:$0xff]  ;;  %v214_v23 = vld [vmem:[%s13806_s17 + $0x70] sm:$0xff]  ;;  %s13782_s7 = smov 80   ;;  %v14108_v18 = vld [vmem:[%s13791_s5 + $0x8] sm:$0xff]  ;;  %vm820_vm5 = vcmask 392448   ;;  %vm992_vm6 = vcmask 523648  }
  0x75   :  { %v12970_v24 = vpack.c.bf16 %v214_v23, %v212_v22  ;;  %v14029_v25 = vld [vmem:[%s13791_s5] sm:$0xff]  ;;  %s15510_s5 = sld [smem:[#allocation11_spill]]  ;;  %s15522_s10 = sld [smem:[#allocation17_spill]] }
  0x76   :  { %v216_v29 = vld [vmem:[%s13811_s21] sm:$0x3]  ;;  %s15523_s11 = sld [smem:[#allocation21_spill]]  ;;  %s15524_s15 = sld [smem:[#allocation19_spill]] }
  0x77   :  { %12963 = vmatpush1.bf16.msra.mxu0 %v12962_v14  ;;  %v14041_v30 = vrot.slane %v216_v29, %v14037_v28  ;;  %v14053_v35 = vrot.slane %v216_v29, %v14050_v34  ;;  %s15525_s16 = sld [smem:[#allocation22_spill]]  ;;  %s15526_s18 = sld [smem:[#allocation23_spill]] }
  0x78   :  { %12965 = vmatprep.subr.bf16.mxu0 %v12964_v15  ;;  %s15527_s22 = sld [smem:[#allocation26_spill]]  ;;  %s15528_s23 = sld [smem:[#allocation27_spill]] }
  0x79   :  { %s15529_s26 = sld [smem:[#allocation24_spill]] }
  0x7b   :  { %12967 = vmatpush1.bf16.msra.mxu0 %v12966_v20 }
  0x7c   :  { %12969 = vmatprep.subr.bf16.mxu0 %v12968_v21 }
  0x7f   :  { %12971 = vmatpush1.bf16.msra.mxu0 %v12970_v24 }
  0x80   :  { %12096 = vmatprep.subr.mxu0 %v13775_v0 }
  0x82   :  { %11273 = vmatmul.mubr.msk.f32.vlgmr.msra.gmra.mrb[0].mxu0 %vm228_vm0, %v14029_v25 }
  0x83   :  { %305 = vmatprep.mubr.f32.mxu0 %v13775_v0 }
  0x86   :  { %11274 = vmatmul.mubr.msk.f32.gmra.mrb[2].mxu0 %vm228_vm0, %v14108_v18 }
  0x87   :  { %12098 = vmatprep.mubr.msk.f32.mxu0 %vm13776_vm1, %v13775_v0 }
 0x155   :  { %v301_v31 = vpop.f32.mrb[0].mxu0 }
 0x156   :  { %v14044_v32 = vadd.f32 %v301_v31, %v14041_v30  ;;  %v303_v33 = vpop.f32.mrb[1].mxu0 }
 0x157   :  { %v14058_v37 = vadd.f32 %v303_v33, %v14053_v35 }
 0x158   :  { %479 = vrot.lane.b32.xlu1 %v14044_v32, %s13777_s13  ;;  %313 = vrot.lane.b32.xlu0 %v14044_v32, %s13778_s27 }
 0x159   :  { %v307_v33 = vpop.f32.mrb[2].mxu0 }
 0x1ca   :  { %v314_v36 = vpop.permute.xlu0 %313  ;;  %v480_v47 = vpop.permute.xlu1 %479 }
 0x1cb   :  { %12052 = vmatpush3.xpose.msk.msra.mxu1 %vm315_vm2, %v314_v36  ;;  %v308_v36 = vadd.f32 %v307_v33, %v14041_v30 }
 0x1cc   :  { %12056 = vmatprep.subr.mxu1 %v13775_v0 }
 0x1ce   :  { %12054 = vmatmul.mubr.msk.f32.vlgmr.msra.gmra.mrb[0].mxu1 %vm315_vm2, %v14044_v32 }
 0x1cf   :  { %12057 = vmatpush3.msra.mxu1 %v14058_v37  ;;  %12058 = vmatprep.mubr.msk.f32.mxu1 %vm13776_vm1, %v13775_v0 }
 0x1d0   :  { %12061 = vmatprep.subr.mxu1 %v13775_v0 }
 0x2a1   :  { %v386_v38 = vpop.f32.mrb[0].mxu1 }
 0x2a2   :  { %v390_v39 = vmul.f32 0.25, %v386_v38  ;;  %v12055_v40 = vpop.f32.mrb[1].mxu1  ;;  %v309_v38 = vpop.f32.mrb[3].mxu0 }
 0x2a4   :  { %v392_v41 = vsel %vm391_vm3, %v390_v39, -inf }
 0x2a5   :  { %393 = vmax.xlane.f32.xlu0 %v392_v41 }
 0x2bb   :  { %568 = vrot.lane.b32.xlu0 %v14058_v37, %s13779_s28 }
 0x332   :  { %v394_v42 = vpop.xlane.xlu0 %393 }
 0x333   :  { %v395_v43 = vsub.f32 %v390_v39, %v394_v42  ;;  %v14133_v39 = vadd.f32 %v309_v38, %v14053_v35 }
 0x335   :  { %v396_v44 = vmul.f32 1.442695, %v395_v43  ;;  %12097 = vmatpush3.msra.mxu0 %v14133_v39 }
 0x336   :  { %v569_v52 = vpop.permute.xlu0 %568  ;;  %12106 = vmatprep.subr.mxu0 %v13775_v0 }
 0x337   :  { %13441 = vpow2.f32 %v396_v44 }
 0x341   :  { %v13442_v45 = vpop.eup %13441 }
 0x342   :  { %v398_v46 = vsel %vm391_vm3, %v13442_v45, 0.0 }
 0x343   :  { %399 = vadd.xlane.f32.xlu1 %v398_v46 }
 0x354   :  { %477 = vrot.lane.b32.xlu1 %v14044_v32, %s13779_s28 }
 0x3d0   :  { %v400_v48 = vpop.xlane.xlu1 %399 }
 0x3d1   :  { %13443 = vrcp.f32 %v400_v48 }
 0x3d4   :  { %v478_v51 = vpop.permute.xlu1 %477 }
 0x3db   :  { %v13444_v49 = vpop.eup %13443 }
 0x3dc   :  { %v402_v50 = vmul.f32 %v13444_v49, %v13442_v45 }
 0x3de   :  { %12059 = vmatmul.mubr.msk.f32.vlgmr.msra.gmra.mrb[2].mxu1 %vm391_vm3, %v402_v50 }
 0x3df   :  { %12062 = vmatpush3.xpose.msk.msra.mxu1 %vm315_vm2, %v480_v47  ;;  %12063 = vmatprep.mubr.msk.f32.mxu1 %vm13776_vm1, %v13775_v0 }
 0x3e0   :  { %12066 = vmatprep.subr.mxu1 %v13775_v0 }
 0x3e2   :  { %12064 = vmatmul.mubr.msk.f32.vlgmr.msra.gmra.mrb[4].mxu1 %vm315_vm2, %v478_v51 }
 0x3e3   :  { %12067 = vmatpush3.msra.mxu1 %v569_v52  ;;  %12068 = vmatprep.mubr.msk.f32.mxu1 %vm13776_vm1, %v13775_v0 }
 0x3e4   :  { %12071 = vmatprep.subr.mxu1 %v13775_v0 }
 0x4b1   :  { %v472_v53 = vpop.f32.mrb[2].mxu1 }
 0x4b2   :  { %476 = vst.msk [vmem:[#allocation2] sm:$0xff] %vm315_vm2, %v472_v53  ;;  %v12060_v54 = vpop.f32.mrb[3].mxu1 }
 0x4b5   :  { %v551_v55 = vpop.f32.mrb[4].mxu1 }
 0x4b6   :  { %v555_v56 = vmul.f32 0.25, %v551_v55  ;;  %v12065_v57 = vpop.f32.mrb[5].mxu1 }
 0x4b8   :  { %v556_v58 = vsel %vm391_vm3, %v555_v56, -inf }
 0x4b9   :  { %557 = vmax.xlane.f32.xlu1 %v556_v58 }
 0x4ca   :  { %650 = vrot.lane.b32.xlu1 %v14044_v32, %s13780_s1 }
 0x546   :  { %v558_v59 = vpop.xlane.xlu1 %557 }
 0x547   :  { %v559_v60 = vsub.f32 %v555_v56, %v558_v59 }
 0x549   :  { %v560_v61 = vmul.f32 1.442695, %v559_v60 }
 0x54a   :  { %v651_v5 = vpop.permute.xlu1 %650 }
 0x54b   :  { %13445 = vpow2.f32 %v560_v61 }
 0x555   :  { %v13446_v62 = vpop.eup %13445 }
 0x556   :  { %v562_v63 = vsel %vm391_vm3, %v13446_v62, 0.0 }
 0x557   :  { %563 = vadd.xlane.f32.xlu0 %v562_v63 }
 0x56d   :  { %652 = vrot.lane.b32.xlu0 %v14044_v32, %s13781_s2 }
 0x5e4   :  { %v564_v1 = vpop.xlane.xlu0 %563 }
 0x5e5   :  { %13447 = vrcp.f32 %v564_v1 }
 0x5e8   :  { %v653_v4 = vpop.permute.xlu0 %652 }
 0x5ef   :  { %v13448_v2 = vpop.eup %13447 }
 0x5f0   :  { %v566_v3 = vmul.f32 %v13448_v2, %v13446_v62 }
 0x5f2   :  { %12069 = vmatmul.mubr.msk.f32.vlgmr.msra.gmra.mrb[6].mxu1 %vm391_vm3, %v566_v3 }
 0x5f3   :  { %12072 = vmatpush3.xpose.msk.msra.mxu1 %vm315_vm2, %v653_v4  ;;  %12073 = vmatprep.mubr.msk.f32.mxu1 %vm13776_vm1, %v13775_v0 }
 0x5f4   :  { %12076 = vmatprep.subr.mxu1 %v13775_v0 }
 0x5f6   :  { %12074 = vmatmul.mubr.msk.f32.vlgmr.msra.gmra.mrb[8].mxu1 %vm315_vm2, %v651_v5 }
 0x5f7   :  { %12078 = vmatprep.mubr.msk.f32.mxu1 %vm13776_vm1, %v13775_v0 }
 0x6c5   :  { %v14096_v6 = vpop.f32.mrb[6].mxu1 }
 0x6c6   :  { %v12070_v7 = vpop.f32.mrb[7].mxu1 }
 0x6c9   :  { %v724_v8 = vpop.f32.mrb[8].mxu1 }
 0x6ca   :  { %v728_v9 = vmul.f32 0.25, %v724_v8  ;;  %v12075_v10 = vpop.f32.mrb[9].mxu1 }
 0x6cc   :  { %v729_v11 = vsel %vm391_vm3, %v728_v9, -inf }
 0x6cd   :  { %730 = vmax.xlane.f32.xlu0 %v729_v11 }
 0x6e3   :  { %740 = vrot.lane.b32.xlu0 %v14058_v37, %s13780_s1 }
 0x6e7   :  { %822 = vrot.lane.b32.xlu0 %v14044_v32, %s13782_s7 }
 0x75a   :  { %v731_v12 = vpop.xlane.xlu0 %730 }
 0x75b   :  { %v732_v13 = vsub.f32 %v728_v9, %v731_v12 }
 0x75d   :  { %v733_v14 = vmul.f32 1.442695, %v732_v13 }
 0x75e   :  { %v741_v15 = vpop.permute.xlu0 %740 }
 0x75f   :  { %13449 = vpow2.f32 %v733_v14  ;;  %12077 = vmatpush3.msra.mxu1 %v741_v15 }
 0x760   :  { %12081 = vmatprep.subr.mxu1 %v13775_v0 }
 0x762   :  { %v823_v23 = vpop.permute.xlu0 %822 }
 0x769   :  { %v13450_v16 = vpop.eup %13449 }
 0x76a   :  { %v735_v17 = vsel %vm391_vm3, %v13450_v16, 0.0 }
 0x76b   :  { %736 = vadd.xlane.f32.xlu1 %v735_v17 }
 0x77c   :  { %824 = vrot.lane.b32.xlu1 %v14044_v32, %s13772_s0 }
 0x7f8   :  { %v737_v19 = vpop.xlane.xlu1 %736 }
 0x7f9   :  { %13451 = vrcp.f32 %v737_v19 }
 0x7fc   :  { %v825_v22 = vpop.permute.xlu1 %824 }
 0x803   :  { %v13452_v20 = vpop.eup %13451 }
 0x804   :  { %v739_v21 = vmul.f32 %v13452_v20, %v13450_v16 }
 0x806   :  { %12079 = vmatmul.mubr.msk.f32.vlgmr.msra.gmra.mrb[10].mxu1 %vm391_vm3, %v739_v21 }
 0x807   :  { %12082 = vmatpush3.xpose.msk.msra.mxu1 %vm315_vm2, %v825_v22  ;;  %12083 = vmatprep.mubr.msk.f32.mxu1 %vm13776_vm1, %v13775_v0 }
 0x808   :  { %12086 = vmatprep.subr.mxu1 %v13775_v0 }
 0x80a   :  { %12084 = vmatmul.mubr.msk.f32.vlgmr.msra.gmra.mrb[12].mxu1 %vm315_vm2, %v823_v23 }
 0x80b   :  { %12088 = vmatprep.mubr.msk.f32.mxu1 %vm13776_vm1, %v13775_v0 }
 0x8d9   :  { %v14122_v24 = vpop.f32.mrb[10].mxu1 }
 0x8da   :  { %v12080_v26 = vpop.f32.mrb[11].mxu1 }
 0x8dd   :  { %v896_v27 = vpop.f32.mrb[12].mxu1 }
 0x8de   :  { %v900_v29 = vmul.f32 0.25, %v896_v27  ;;  %v12085_v31 = vpop.f32.mrb[13].mxu1 }
 0x8e0   :  { %v901_v32 = vsel %vm391_vm3, %v900_v29, -inf }
 0x8e1   :  { %902 = vmax.xlane.f32.xlu0 %v901_v32 }
 0x8f7   :  { %912 = vrot.lane.b32.xlu0 %v14058_v37, %s13782_s7 }
 0x8fb   :  { %1159 = vrot.lane.b32.xlu0 %v308_v36, %s13777_s13 }
 0x8ff   :  { %1157 = vrot.lane.b32.xlu0 %v308_v36, %s13779_s28 }
 0x903   :  { %1331 = vrot.lane.b32.xlu0 %v308_v36, %s13781_s2 }
 0x907   :  { %1502 = vrot.lane.b32.xlu0 %v308_v36, %s13772_s0 }
 0x96e   :  { %v903_v37 = vpop.xlane.xlu0 %902 }
 0x96f   :  { %v904_v40 = vsub.f32 %v900_v29, %v903_v37 }
 0x971   :  { %v905_v41 = vmul.f32 1.442695, %v904_v40 }
 0x972   :  { %v913_v30 = vpop.permute.xlu0 %912 }
 0x973   :  { %13453 = vpow2.f32 %v905_v41  ;;  %12087 = vmatpush3.msra.mxu1 %v913_v30 }
 0x974   :  { %12091 = vmatprep.subr.mxu1 %v13775_v0 }
 0x976   :  { %v1160_v44 = vpop.permute.xlu0 %1159 }
 0x97a   :  { %v1158_v48 = vpop.permute.xlu0 %1157 }
 0x97d   :  { %v13454_v42 = vpop.eup %13453 }
 0x97e   :  { %v907_v43 = vsel %vm391_vm3, %v13454_v42, 0.0  ;;  %v1332_v49 = vpop.permute.xlu0 %1331 }
 0x97f   :  { %908 = vadd.xlane.f32.xlu1 %v907_v43 }
 0x982   :  { %v1503_v51 = vpop.permute.xlu0 %1502 }
 0x990   :  { %995 = vrot.lane.b32.xlu1 %v308_v36, %s13778_s27 }
 0x994   :  { %1329 = vrot.lane.b32.xlu1 %v308_v36, %s13780_s1 }
 0x998   :  { %1500 = vrot.lane.b32.xlu1 %v308_v36, %s13782_s7 }
 0xa0c   :  { %v909_v35 = vpop.xlane.xlu1 %908 }
 0xa0d   :  { %13455 = vrcp.f32 %v909_v35 }
 0xa10   :  { %v996_v47 = vpop.permute.xlu1 %995 }
 0xa14   :  { %v1330_v50 = vpop.permute.xlu1 %1329 }
 0xa17   :  { %v13456_v45 = vpop.eup %13455 }
 0xa18   :  { %v911_v46 = vmul.f32 %v13456_v45, %v13454_v42  ;;  %v1501_v52 = vpop.permute.xlu1 %1500 }
 0xa1a   :  { %12089 = vmatmul.mubr.msk.f32.vlgmr.msra.gmra.mrb[14].mxu1 %vm391_vm3, %v911_v46 }
 0xa1b   :  { %12092 = vmatpush3.xpose.msk.msra.mxu1 %vm315_vm2, %v996_v47  ;;  %12093 = vmatprep.mubr.msk.f32.mxu1 %vm13776_vm1, %v13775_v0 }
 0xa1c   :  { %12101 = vmatprep.subr.mxu1 %v13775_v0 }
 0xa1e   :  { %12094 = vmatmul.mubr.msk.f32.vlgmr.msra.gmra.mrb[16].mxu1 %vm315_vm2, %v308_v36 }
 0xa1f   :  { %12102 = vmatpush3.xpose.msk.msra.mxu1 %vm315_vm2, %v1160_v44  ;;  %12103 = vmatprep.mubr.msk.f32.mxu1 %vm13776_vm1, %v13775_v0 }
 0xa20   :  { %12111 = vmatprep.subr.mxu1 %v13775_v0 }
 0xa22   :  { %12104 = vmatmul.mubr.msk.f32.vlgmr.msra.gmra.mrb[18].mxu1 %vm315_vm2, %v1158_v48 }
 0xa23   :  { %12112 = vmatpush3.xpose.msk.msra.mxu1 %vm315_vm2, %v1332_v49  ;;  %12113 = vmatprep.mubr.msk.f32.mxu1 %vm13776_vm1, %v13775_v0 }
 0xa24   :  { %12121 = vmatprep.subr.mxu1 %v13775_v0 }
 0xa26   :  { %12114 = vmatmul.mubr.msk.f32.vlgmr.msra.gmra.mrb[20].mxu1 %vm315_vm2, %v1330_v50 }
 0xa27   :  { %12122 = vmatpush3.xpose.msk.msra.mxu1 %vm315_vm2, %v1503_v51  ;;  %12123 = vmatprep.mubr.msk.f32.mxu1 %vm13776_vm1, %v13775_v0  ;;  %v1673_v51 = vld [vmem:[%s13816_s25] sm:$0xff] }
 0xa2a   :  { %12124 = vmatmul.mubr.msk.f32.vlgmr.msra.gmra.mrb[22].mxu1 %vm315_vm2, %v1501_v52  ;;  %v1674_v52 = vld [vmem:[%s13816_s25 + $0x8] sm:$0xff] }
 0xaed   :  { %v984_v53 = vpop.f32.mrb[14].mxu1 }
 0xaee   :  { %v12090_v54 = vpop.f32.mrb[15].mxu1 }
 0xaef   :  { %v1675_v54 = vld [vmem:[%s13816_s25 + $0x10] sm:$0xff] }
 0xaf1   :  { %v1067_v55 = vpop.f32.mrb[16].mxu1 }
 0xaf2   :  { %v1071_v56 = vmul.f32 0.25, %v1067_v55  ;;  %v12095_v57 = vpop.f32.mrb[17].mxu1  ;;  %v1676_v55 = vld [vmem:[%s13816_s25 + $0x18] sm:$0xff] }
 0xaf3   :  { %v1677_v57 = vld [vmem:[%s13816_s25 + $0x20] sm:$0xff] }
 0xaf4   :  { %v1072_v58 = vsel %vm391_vm3, %v1071_v56, -inf }
 0xaf5   :  { %1073 = vmax.xlane.f32.xlu0 %v1072_v58  ;;  %v1231_v59 = vpop.f32.mrb[18].mxu1  ;;  %v1678_v58 = vld [vmem:[%s13816_s25 + $0x28] sm:$0xff] }
 0xaf6   :  { %v1235_v60 = vmul.f32 0.25, %v1231_v59  ;;  %v12105_v61 = vpop.f32.mrb[19].mxu1  ;;  %v12980_v59 = vpack.c.bf16 %v1678_v58, %v1677_v57  ;;  %v1922_v57 = vld [vmem:[%s13846_s24 + $0x40] sm:$0xff]  ;;  %v1923_v58 = vld [vmem:[%s13846_s24 + $0x48] sm:$0xff] }
 0xaf7   :  { %v1679_v61 = vld [vmem:[%s13816_s25 + $0x30] sm:$0xff] }
 0xaf8   :  { %v1236_v62 = vsel %vm391_vm3, %v1235_v60, -inf }
 0xaf9   :  { %1237 = vmax.xlane.f32.xlu1 %v1236_v62  ;;  %v1403_v63 = vpop.f32.mrb[20].mxu1  ;;  %v1680_v62 = vld [vmem:[%s13816_s25 + $0x38] sm:$0xff] }
 0xafa   :  { %v1407_v1 = vmul.f32 0.25, %v1403_v63  ;;  %v12115_v2 = vpop.f32.mrb[21].mxu1 }
 0xafc   :  { %v1408_v3 = vsel %vm391_vm3, %v1407_v1, -inf }
 0xafd   :  { %1409 = vmax.xlane.f32.xlu0 %v1408_v3  ;;  %v1574_v4 = vpop.f32.mrb[22].mxu1 }
 0xafe   :  { %v1578_v5 = vmul.f32 0.25, %v1574_v4  ;;  %v12125_v7 = vpop.f32.mrb[23].mxu1 }
 0xb00   :  { %v1579_v8 = vsel %vm391_vm3, %v1578_v5, -inf }
 0xb01   :  { %1580 = vmax.xlane.f32.xlu0 %v1579_v8 }
 0xb0a   :  { %1248 = vrot.lane.b32.xlu1 %v14133_v39, %s13779_s28 }
 0xb82   :  { %v1074_v9 = vpop.xlane.xlu0 %1073 }
 0xb83   :  { %v1075_v10 = vsub.f32 %v1071_v56, %v1074_v9  ;;  %v12976_v56 = vpack.c.bf16 %v1676_v55, %v1675_v54  ;;  %v1920_v54 = vld [vmem:[%s13846_s24 + $0x30] sm:$0xff]  ;;  %v1921_v55 = vld [vmem:[%s13846_s24 + $0x38] sm:$0xff] }
 0xb85   :  { %v1076_v11 = vmul.f32 1.442695, %v1075_v10 }
 0xb86   :  { %v1238_v12 = vpop.xlane.xlu1 %1237 }
 0xb87   :  { %13457 = vpow2.f32 %v1076_v11  ;;  %v1239_v13 = vsub.f32 %v1235_v60, %v1238_v12 }
 0xb89   :  { %v1240_v14 = vmul.f32 1.442695, %v1239_v13  ;;  %v11299_v13 = vld [vmem:[%s13821_s29] ss:$0 sm:$0xff] }
 0xb8a   :  { %v1410_v15 = vpop.xlane.xlu0 %1409  ;;  %v1249_v36 = vpop.permute.xlu1 %1248 }
 0xb8b   :  { %13459 = vpow2.f32 %v1240_v14  ;;  %v1411_v16 = vsub.f32 %v1407_v1, %v1410_v15  ;;  %v12984_v1 = vpack.c.bf16 %v1680_v62, %v1679_v61  ;;  %v1925_v61 = vld [vmem:[%s13846_s24 + $0x58] sm:$0xff] }
 0xb8d   :  { %v1412_v17 = vmul.f32 1.442695, %v1411_v16 }
 0xb8e   :  { %v1581_v19 = vpop.xlane.xlu0 %1580 }
 0xb8f   :  { %13461 = vpow2.f32 %v1412_v17  ;;  %v1582_v20 = vsub.f32 %v1578_v5, %v1581_v19 }
 0xb91   :  { %v13458_v21 = vpop.eup %13457  ;;  %v1583_v22 = vmul.f32 1.442695, %v1582_v20 }
 0xb92   :  { %v1078_v23 = vsel %vm391_vm3, %v13458_v21, 0.0 }
 0xb93   :  { %13463 = vpow2.f32 %v1583_v22  ;;  %1079 = vadd.xlane.f32.xlu1 %v1078_v23 }
 0xb95   :  { %v13460_v26 = vpop.eup %13459 }
 0xb96   :  { %v1242_v27 = vsel %vm391_vm3, %v13460_v26, 0.0 }
 0xb97   :  { %1243 = vadd.xlane.f32.xlu0 %v1242_v27 }
 0xb99   :  { %v13462_v29 = vpop.eup %13461 }
 0xb9a   :  { %v1414_v31 = vsel %vm391_vm3, %v13462_v29, 0.0 }
 0xb9b   :  { %1415 = vadd.xlane.f32.xlu1 %v1414_v31 }
 0xb9d   :  { %v13464_v32 = vpop.eup %13463 }
 0xb9e   :  { %v1585_v33 = vsel %vm391_vm3, %v13464_v32, 0.0 }
 0xb9f   :  { %1586 = vadd.xlane.f32.xlu0 %v1585_v33 }
 0xbac   :  { %1590 = vrot.lane.b32.xlu1 %v14133_v39, %s13782_s7 }
 0xbb0   :  { %645 = vrot.lane.b32.xlu1 %v14096_v6, %s13772_s0 }
 0xbb5   :  { %1419 = vrot.lane.b32.xlu0 %v14133_v39, %s13780_s1 }
 0xbb9   :  { %817 = vrot.lane.b32.xlu0 %v14122_v24, %s13781_s2 }
 0xbbd   :  { %989 = vrot.lane.b32.xlu0 %v984_v53, %s13777_s13  ;;  %v12972_v53 = vpack.c.bf16 %v1674_v52, %v1673_v51  ;;  %v1918_v51 = vld [vmem:[%s13846_s24 + $0x20] sm:$0xff]  ;;  %v1919_v52 = vld [vmem:[%s13846_s24 + $0x28] sm:$0xff] }
 0xbbf   :  { %12973 = vmatprep.subr.bf16.mxu1 %v12972_v53 }
 0xbc0   :  { %12975 = vmatpush3.bf16.msra.mxu1 %v12972_v53  ;;  %v13012_v53 = vpack.c.bf16 %v1919_v52, %v1918_v51  ;;  %v11313_v51 = vld [vmem:[%s13806_s17 + $0x98] sm:$0xff] }
 0xbc1   :  { %12977 = vmatprep.subr.bf16.mxu1 %v12976_v56 }
 0xbc4   :  { %12979 = vmatpush3.bf16.msra.mxu1 %v12976_v56  ;;  %v13016_v56 = vpack.c.bf16 %v1921_v55, %v1920_v54  ;;  %v11312_v54 = vld [vmem:[%s13806_s17 + $0x90] sm:$0xff] }
 0xbc5   :  { %12981 = vmatprep.subr.bf16.mxu1 %v12980_v59 }
 0xbc8   :  { %12983 = vmatpush3.bf16.msra.mxu1 %v12980_v59  ;;  %v13020_v59 = vpack.c.bf16 %v1923_v58, %v1922_v57  ;;  %v11317_v57 = vld [vmem:[%s13806_s17 + $0xb8] sm:$0xff] }
 0xbc9   :  { %12985 = vmatprep.subr.bf16.mxu1 %v12984_v1 }
 0xbcc   :  { %12987 = vmatpush3.bf16.msra.mxu1 %v12984_v1  ;;  %v1927_v1 = vld [vmem:[%s13846_s24 + $0x68] sm:$0xff] }
 0xc20   :  { %v1080_v38 = vpop.xlane.xlu1 %1079 }
 0xc21   :  { %13465 = vrcp.f32 %v1080_v38  ;;  %v1816_v38 = vld [vmem:[%s13836_s14] sm:$0xff] }
 0xc24   :  { %v1244_v37 = vpop.xlane.xlu0 %1243 }
 0xc25   :  { %13467 = vrcp.f32 %v1244_v37  ;;  %v1817_v37 = vld [vmem:[%s13836_s14 + $0x8] sm:$0xff] }
 0xc28   :  { %v1416_v40 = vpop.xlane.xlu1 %1415 }
 0xc29   :  { %13469 = vrcp.f32 %v1416_v40  ;;  %v1818_v40 = vld [vmem:[%s13836_s14 + $0x10] sm:$0xff] }
 0xc2b   :  { %v13466_v41 = vpop.eup %13465 }
 0xc2c   :  { %v1082_v30 = vmul.f32 %v13466_v41, %v13458_v21  ;;  %v1591_v42 = vpop.permute.xlu1 %1590  ;;  %v1587_v43 = vpop.xlane.xlu0 %1586  ;;  %v12988_v41 = vpack.c.bf16 %v1817_v37, %v1816_v38 }
 0xc2d   :  { %13471 = vrcp.f32 %v1587_v43  ;;  %v1820_v43 = vld [vmem:[%s13836_s14 + $0x20] sm:$0xff] }
 0xc2e   :  { %12099 = vmatmul.mubr.msk.f32.vlgmr.msra.gmra.mrb[4].mxu0 %vm391_vm3, %v1082_v30  ;;  %v1819_v30 = vld [vmem:[%s13836_s14 + $0x18] sm:$0xff] }
 0xc2f   :  { %v13468_v6 = vpop.eup %13467  ;;  %12107 = vmatpush3.msra.mxu0 %v1249_v36  ;;  %12108 = vmatprep.mubr.msk.f32.mxu0 %vm13776_vm1, %v13775_v0 }
 0xc30   :  { %v646_v24 = vpop.permute.xlu1 %645  ;;  %v1420_v39 = vpop.permute.xlu0 %1419  ;;  %12116 = vmatprep.subr.mxu0 %v13775_v0  ;;  %v1246_v35 = vmul.f32 %v13468_v6, %v13460_v26  ;;  %v1821_v6 = vld [vmem:[%s13836_s14 + $0x28] sm:$0xff] }
 0xc31   :  { %649 = vst.msk [vmem:[#allocation2] sm:$0xff] %vm648_vm4, %v646_v24  ;;  %v12996_v24 = vpack.c.bf16 %v1821_v6, %v1820_v43 }
 0xc32   :  { %12109 = vmatmul.mubr.msk.f32.vlgmr.msra.gmra.mrb[6].mxu0 %vm391_vm3, %v1246_v35  ;;  %v1823_v35 = vld [vmem:[%s13836_s14 + $0x38] sm:$0xff] }
 0xc33   :  { %v13470_v44 = vpop.eup %13469  ;;  %12117 = vmatpush3.msra.mxu0 %v1420_v39  ;;  %12118 = vmatprep.mubr.msk.f32.mxu0 %vm13776_vm1, %v13775_v0  ;;  %v1822_v39 = vld [vmem:[%s13836_s14 + $0x30] sm:$0xff] }
 0xc34   :  { %v818_v45 = vpop.permute.xlu0 %817  ;;  %12126 = vmatprep.subr.mxu0 %v13775_v0  ;;  %v1418_v46 = vmul.f32 %v13470_v44, %v13462_v29  ;;  %v13000_v44 = vpack.c.bf16 %v1823_v35, %v1822_v39 }
 0xc35   :  { %821 = vst.msk [vmem:[#allocation2] sm:$0xff] %vm820_vm5, %v818_v45  ;;  %v1914_v45 = vld [vmem:[%s13846_s24] sm:$0xff] }
 0xc36   :  { %12119 = vmatmul.mubr.msk.f32.vlgmr.msra.gmra.mrb[8].mxu0 %vm391_vm3, %v1418_v46  ;;  %v1915_v46 = vld [vmem:[%s13846_s24 + $0x8] sm:$0xff] }
 0xc37   :  { %v13472_v47 = vpop.eup %13471  ;;  %12127 = vmatpush3.msra.mxu0 %v1591_v42  ;;  %12128 = vmatprep.mubr.msk.f32.mxu0 %vm13776_vm1, %v13775_v0  ;;  %v12992_v42 = vpack.c.bf16 %v1819_v30, %v1818_v40 }
 0xc38   :  { %v990_v48 = vpop.permute.xlu0 %989  ;;  %v1589_v49 = vmul.f32 %v13472_v47, %v13464_v32  ;;  %12989 = vmatprep.subr.bf16.mxu0 %v12988_v41  ;;  %v1916_v47 = vld [vmem:[%s13846_s24 + $0x10] sm:$0xff] }
 0xc39   :  { %993 = vst.msk [vmem:[#allocation2] sm:$0xff] %vm992_vm6, %v990_v48  ;;  %v13004_v48 = vpack.c.bf16 %v1915_v46, %v1914_v45 }
 0xc3a   :  { %12129 = vmatmul.mubr.msk.f32.vlgmr.msra.gmra.mrb[10].mxu0 %vm391_vm3, %v1589_v49  ;;  %v1917_v49 = vld [vmem:[%s13846_s24 + $0x18] sm:$0xff] }
 0xc3b   :  { %12991 = vmatpush3.bf16.msra.mxu0 %v12988_v41  ;;  %13005 = vmatprep.subr.bf16.mxu1 %v13004_v48 }
 0xc3c   :  { %12993 = vmatprep.subr.bf16.mxu0 %v12992_v42 }
 0xc3f   :  { %12995 = vmatpush3.bf16.msra.mxu0 %v12992_v42 }
 0xc40   :  { %v1671_v50 = vld [vmem:[#allocation2] sm:$0xff]  ;;  %12997 = vmatprep.subr.bf16.mxu0 %v12996_v24 }
 0xc41   :  { %12147 = vmatprep.mubr.msk.f32.mxu1 %vm228_vm0, %v1671_v50  ;;  %v13008_v50 = vpack.c.bf16 %v1917_v49, %v1916_v47 }
 0xc43   :  { %12999 = vmatpush3.bf16.msra.mxu0 %v12996_v24 }
 0xc44   :  { %13001 = vmatprep.subr.bf16.mxu0 %v13000_v44 }
 0xc47   :  { %13003 = vmatpush3.bf16.msra.mxu0 %v13000_v44 }
 0xd01   :  { %v1152_v60 = vpop.f32.mrb[4].mxu0 }
 0xd02   :  { %1156 = vst.msk [vmem:[#allocation2 + $0x8] sm:$0xff] %vm315_vm2, %v1152_v60  ;;  %v12100_v63 = vpop.f32.mrb[5].mxu0  ;;  %v1924_v60 = vld [vmem:[%s13846_s24 + $0x50] sm:$0xff] }
 0xd03   :  { %v13024_v62 = vpack.c.bf16 %v1925_v61, %v1924_v60  ;;  %v1926_v63 = vld [vmem:[%s13846_s24 + $0x60] sm:$0xff]  ;;  %v11316_v60 = vld [vmem:[%s13806_s17 + $0xb0] sm:$0xff] }
 0xd05   :  { %v1320_v2 = vpop.f32.mrb[6].mxu0 }
 0xd06   :  { %1325 = vrot.lane.b32.xlu1 %v1320_v2, %s13772_s0  ;;  %v12110_v3 = vpop.f32.mrb[7].mxu0  ;;  %v13028_v2 = vpack.c.bf16 %v1927_v1, %v1926_v63  ;;  %v11321_v63 = vld [vmem:[%s13806_s17 + $0xd8] sm:$0xff] }
 0xd09   :  { %v1491_v4 = vpop.f32.mrb[8].mxu0 }
 0xd0a   :  { %1496 = vrot.lane.b32.xlu1 %v1491_v4, %s13781_s2  ;;  %v12120_v5 = vpop.f32.mrb[9].mxu0 }
 0xd0d   :  { %v1662_v7 = vpop.f32.mrb[10].mxu0 }
 0xd0e   :  { %1667 = vrot.lane.b32.xlu0 %v1662_v7, %s13777_s13  ;;  %v12130_v8 = vpop.f32.mrb[11].mxu0 }
 0xd78   :  { %v1326_v9 = vpop.permute.xlu1 %1325 }
 0xd79   :  { %1328 = vst.msk [vmem:[#allocation2 + $0x8] sm:$0xff] %vm648_vm4, %v1326_v9 }
 0xd7c   :  { %v1497_v10 = vpop.permute.xlu1 %1496 }
 0xd7d   :  { %1499 = vst.msk [vmem:[#allocation2 + $0x8] sm:$0xff] %vm820_vm5, %v1497_v10 }
 0xd80   :  { %v1668_v11 = vpop.permute.xlu0 %1667 }
 0xd81   :  { %1670 = vst.msk [vmem:[#allocation2 + $0x8] sm:$0xff] %vm992_vm6, %v1668_v11  ;;  %v11302_v11 = vld [vmem:[%s13826_s3] ss:$0 sm:$0xff] }
 0xd88   :  { %v1672_v12 = vld [vmem:[#allocation2 + $0x8] sm:$0xff] }
 0xd89   :  { %12148 = vmatmul.mubr.msk.f32.vlgmr.msra.gmra.mrb[24].mxu1 %vm228_vm0, %v1672_v12 }
 0xd8a   :  { %13007 = vmatpush3.bf16.msra.mxu1 %v13004_v48 }
 0xd8b   :  { %13009 = vmatprep.subr.bf16.mxu1 %v13008_v50 }
 0xd8e   :  { %13011 = vmatpush3.bf16.msra.mxu1 %v13008_v50  ;;  %v11311_v50 = vld [vmem:[%s13806_s17 + $0x88] sm:$0xff] }
 0xd8f   :  { %13013 = vmatprep.subr.bf16.mxu1 %v13012_v53  ;;  %v13036_v52 = vpack.c.bf16 %v11313_v51, %v11311_v50 }
 0xd91   :  { %13037 = vmatprep.subr.bf16.mxu0 %v13036_v52 }
 0xd92   :  { %13015 = vmatpush3.bf16.msra.mxu1 %v13012_v53  ;;  %v11310_v53 = vld [vmem:[%s13806_s17 + $0x80] sm:$0xff] }
 0xd93   :  { %13017 = vmatprep.subr.bf16.mxu1 %v13016_v56  ;;  %v13038_v55 = vpack.c.bf16 %v11312_v54, %v11310_v53 }
 0xd96   :  { %13019 = vmatpush3.bf16.msra.mxu1 %v13016_v56  ;;  %v11315_v56 = vld [vmem:[%s13806_s17 + $0xa8] sm:$0xff] }
 0xd97   :  { %13021 = vmatprep.subr.bf16.mxu1 %v13020_v59  ;;  %v13040_v58 = vpack.c.bf16 %v11317_v57, %v11315_v56 }
 0xd9a   :  { %13023 = vmatpush3.bf16.msra.mxu1 %v13020_v59  ;;  %v11314_v59 = vld [vmem:[%s13806_s17 + $0xa0] sm:$0xff] }
 0xd9b   :  { %13025 = vmatprep.subr.bf16.mxu1 %v13024_v62  ;;  %v13042_v61 = vpack.c.bf16 %v11316_v60, %v11314_v59 }
 0xd9e   :  { %13027 = vmatpush3.bf16.msra.mxu1 %v13024_v62  ;;  %v11319_v62 = vld [vmem:[%s13806_s17 + $0xc8] sm:$0xff] }
 0xd9f   :  { %13029 = vmatprep.subr.bf16.mxu1 %v13028_v2  ;;  %v13044_v1 = vpack.c.bf16 %v11321_v63, %v11319_v62 }
 0xda2   :  { %13031 = vmatpush3.bf16.msra.mxu1 %v13028_v2  ;;  %v11318_v2 = vld [vmem:[%s13806_s17 + $0xc0] sm:$0xff] }
 0xe5c   :  { %v12149_v14 = vpop.f32.mrb[24].mxu1 }
 0xe5d   :  { %v1766_v15 = vadd.f32 %v12149_v14, %v11299_v13  ;;  %v1760_v16 = vpop.f32.mrb[25].mxu1 }
 0xe5e   :  { %v1761_v17 = vadd.f32 %v11299_v13, %v1760_v16 }
 0xe5f   :  { %v1770_v19 = vadd.f32 %v1766_v15, %v14108_v18  ;;  %v11303_v15 = vld [vmem:[%s13831_s8] ss:$0 sm:$0xff] }
 0xe60   :  { %v1769_v20 = vadd.f32 %v1761_v17, %v14029_v25 }
 0xe61   :  { %v1776_v21 = vsel %vm228_vm0, %v1770_v19, 0.0 }
 0xe62   :  { %1777 = vadd.xlane.f32.xlu0 %v1776_v21  ;;  %v1773_v22 = vsel %vm228_vm0, %v1769_v20, 0.0  ;;  %v1928_v21 = vld [vmem:[%s13846_s24 + $0x70] sm:$0xff] }
 0xe63   :  { %1774 = vadd.xlane.f32.xlu1 %v1773_v22  ;;  %v1929_v22 = vld [vmem:[%s13846_s24 + $0x78] sm:$0xff] }
 0xeef   :  { %v1778_v23 = vpop.xlane.xlu0 %1777 }
 0xef0   :  { %v1781_v26 = vmul.f32 0.015625, %v1778_v23  ;;  %v1775_v27 = vpop.xlane.xlu1 %1774  ;;  %v13032_v23 = vpack.c.bf16 %v1929_v22, %v1928_v21  ;;  %v11309_v22 = vld [vmem:[%s15510_s5] ss:$0 sm:$0xff] }
 0xef1   :  { %v1780_v29 = vmul.f32 0.015625, %v1775_v27 }
 0xef2   :  { %v14218_v31 = vsub.f32 %v1770_v19, %v1781_v26  ;;  %13033 = vmatprep.subr.bf16.mxu1 %v13032_v23  ;;  %v11304_v26 = vld [vmem:[%s13841_s19] ss:$0 sm:$0xff] }
 0xef3   :  { %v14220_v18 = vsub.f32 %v1769_v20, %v1780_v29  ;;  %13035 = vmatpush3.bf16.msra.mxu1 %v13032_v23 }
 0xef4   :  { %v1785_v25 = vmul.f32 %v14218_v31, %v14218_v31  ;;  %12219 = vmatprep.subr.mxu1 %v13775_v0 }
 0xef5   :  { %v1784_v32 = vmul.f32 %v14220_v18, %v14220_v18 }
 0xef6   :  { %v1789_v33 = vsel %vm228_vm0, %v1785_v25, 0.0 }
 0xef7   :  { %1790 = vadd.xlane.f32.xlu1 %v1789_v33  ;;  %v1786_v36 = vsel %vm228_vm0, %v1784_v32, 0.0  ;;  %v11307_v33 = vld [vmem:[%s13851_s30] ss:$0 sm:$0xff] }
 0xef8   :  { %1787 = vadd.xlane.f32.xlu0 %v1786_v36 }
 0xf84   :  { %v1791_v3 = vpop.xlane.xlu1 %1790 }
 0xf85   :  { %v1793_v4 = vmul.f32 0.015625, %v1791_v3  ;;  %v1788_v5 = vpop.xlane.xlu0 %1787  ;;  %v11320_v3 = vld [vmem:[%s13806_s17 + $0xd0] sm:$0xff] }
 0xf86   :  { %v1792_v7 = vmul.f32 0.015625, %v1788_v5  ;;  %v11323_v5 = vld [vmem:[%s13806_s17 + $0xe8] sm:$0xff] }
 0xf87   :  { %v1795_v8 = vadd.f32 1e-05, %v1793_v4  ;;  %v13046_v4 = vpack.c.bf16 %v11320_v3, %v11318_v2 }
 0xf88   :  { %v1794_v9 = vadd.f32 1e-05, %v1792_v7  ;;  %v11325_v7 = vld [vmem:[%s13806_s17 + $0xf8] sm:$0xff] }
 0xf89   :  { %13473 = vrsqrt.f32 %v1795_v8  ;;  %v11322_v8 = vld [vmem:[%s13806_s17 + $0xe0] sm:$0xff] }
 0xf8a   :  { %13475 = vrsqrt.f32 %v1794_v9  ;;  %v13048_v9 = vpack.c.bf16 %v11325_v7, %v11323_v5 }
 0xf93   :  { %v13474_v10 = vpop.eup %13473 }
 0xf94   :  { %v13476_v12 = vpop.eup %13475  ;;  %v1799_v13 = vmul.f32 %v13474_v10, %v14218_v31  ;;  %v11324_v10 = vld [vmem:[%s13806_s17 + $0xf0] sm:$0xff]  ;;  %s15511_s17 = sld [smem:[#allocation12_spill]] }
 0xf95   :  { %v1798_v14 = vmul.f32 %v13476_v12, %v14220_v18 }
 0xf96   :  { %v1807_v16 = vmul.f32 %v11302_v11, %v1799_v13 }
 0xf97   :  { %v1806_v17 = vmul.f32 %v11302_v11, %v1798_v14  ;;  %v13050_v11 = vpack.c.bf16 %v11324_v10, %v11322_v8 }
 0xf98   :  { %v1815_v20 = vadd.f32 %v11303_v15, %v1807_v16 }
 0xf99   :  { %v1814_v19 = vadd.f32 %v11303_v15, %v1806_v17 }
 0xf9b   :  { %12166 = vmatprep.mubr.msk.f32.mxu0 %vm228_vm0, %v1814_v19 }
 0xf9c   :  { %12167 = vmatmul.mubr.msk.f32.vlgmr.msra.gmra.mrb[12].mxu0 %vm228_vm0, %v1815_v20 }
 0xf9d   :  { %2158 = vmatprep.mubr.f32.mxu0 %v13775_v0  ;;  %13039 = vmatpush1.bf16.msra.mxu0 %v13038_v55 }
 0xf9e   :  { %13041 = vmatprep.subr.bf16.mxu0 %v13040_v58 }
 0xfa1   :  { %13043 = vmatpush1.bf16.msra.mxu0 %v13042_v61 }
 0xfa2   :  { %13045 = vmatprep.subr.bf16.mxu0 %v13044_v1 }
 0xfa5   :  { %13047 = vmatpush1.bf16.msra.mxu0 %v13046_v4 }
 0xfa6   :  { %13049 = vmatprep.subr.bf16.mxu0 %v13048_v9 }
 0xfa9   :  { %13051 = vmatpush1.bf16.msra.mxu0 %v13050_v11 }
 0xfaa   :  { %12204 = vmatprep.subr.mxu0 %v13775_v0 }
0x106f   :  { %v12168_v27 = vpop.f32.mrb[12].mxu0 }
0x1070   :  { %v1909_v29 = vadd.f32 %v12168_v27, %v11304_v26  ;;  %v1903_v31 = vpop.f32.mrb[13].mxu0 }
0x1071   :  { %v1904_v18 = vadd.f32 %v11304_v26, %v1903_v31 }
0x1072   :  { %v1913_v32 = vmax.f32 %v1909_v29, 0.0 }
0x1073   :  { %v1912_v25 = vmax.f32 %v1904_v18, 0.0 }
0x1075   :  { %12201 = vmatprep.mubr.f32.mxu1 %v1912_v25  ;;  %v11326_v25 = vld [vmem:[%s13811_s21 + $0x2] sm:$0x3]  ;;  %s15512_s21 = sld [smem:[#allocation9_spill]] }
0x1076   :  { %12202 = vmatmul.mubr.f32.vlgmr.msra.gmra.mrb[26].mxu1 %v1913_v32  ;;  %v2081_v32 = vrot.slane %v11326_v25, %v14037_v28 }
0x1077   :  { %12221 = vmatprep.mubr.msk.f32.mxu1 %vm13776_vm1, %v13775_v0 }
0x1149   :  { %v12203_v36 = vpop.f32.mrb[26].mxu1 }
0x114a   :  { %v2003_v38 = vpop.f32.mrb[27].mxu1  ;;  %v2009_v37 = vadd.f32 %v12203_v36, %v11307_v33 }
0x114b   :  { %v2004_v40 = vadd.f32 %v11307_v33, %v2003_v38 }
0x114c   :  { %v2013_v42 = vadd.f32 %v2009_v37, %v1815_v20  ;;  %v11308_v20 = vld [vmem:[%s13856_s6] ss:$0 sm:$0xff]  ;;  %v2085_v37 = vrot.slane %v11326_v25, %v14050_v34 }
0x114d   :  { %v2012_v41 = vadd.f32 %v2004_v40, %v1814_v19 }
0x114e   :  { %v2019_v43 = vsel %vm228_vm0, %v2013_v42, 0.0 }
0x114f   :  { %v2016_v30 = vsel %vm228_vm0, %v2012_v41, 0.0 }
0x1150   :  { %2017 = vadd.xlane.f32.xlu0 %v2016_v30 }
0x1154   :  { %2020 = vadd.xlane.f32.xlu0 %v2019_v43 }
0x11dd   :  { %v2018_v6 = vpop.xlane.xlu0 %2017 }
0x11de   :  { %v2022_v24 = vmul.f32 0.015625, %v2018_v6 }
0x11e0   :  { %v2024_v39 = vsub.f32 %v2012_v41, %v2022_v24 }
0x11e1   :  { %v2021_v35 = vpop.xlane.xlu0 %2020 }
0x11e2   :  { %v2023_v44 = vmul.f32 0.015625, %v2021_v35  ;;  %v2026_v45 = vmul.f32 %v2024_v39, %v2024_v39 }
0x11e4   :  { %v2025_v46 = vsub.f32 %v2013_v42, %v2023_v44  ;;  %v2028_v47 = vsel %vm228_vm0, %v2026_v45, 0.0 }
0x11e5   :  { %2029 = vadd.xlane.f32.xlu1 %v2028_v47 }
0x11e6   :  { %v2027_v48 = vmul.f32 %v2025_v46, %v2025_v46 }
0x11e8   :  { %v2031_v49 = vsel %vm228_vm0, %v2027_v48, 0.0 }
0x11e9   :  { %2032 = vadd.xlane.f32.xlu1 %v2031_v49 }
0x1272   :  { %v2030_v12 = vpop.xlane.xlu1 %2029 }
0x1273   :  { %v2034_v13 = vmul.f32 0.015625, %v2030_v12 }
0x1275   :  { %v2036_v14 = vadd.f32 1e-05, %v2034_v13 }
0x1276   :  { %v2033_v15 = vpop.xlane.xlu1 %2032 }
0x1277   :  { %13477 = vrsqrt.f32 %v2036_v14  ;;  %v2035_v16 = vmul.f32 0.015625, %v2033_v15 }
0x1279   :  { %v2037_v17 = vadd.f32 1e-05, %v2035_v16 }
0x127b   :  { %13479 = vrsqrt.f32 %v2037_v17 }
0x1281   :  { %v13478_v19 = vpop.eup %13477 }
0x1282   :  { %v2040_v21 = vmul.f32 %v13478_v19, %v2024_v39 }
0x1284   :  { %v2048_v23 = vmul.f32 %v11308_v20, %v2040_v21 }
0x1285   :  { %v13480_v26 = vpop.eup %13479 }
0x1286   :  { %v14287_v27 = vadd.f32 %v11309_v22, %v2048_v23  ;;  %v2041_v29 = vmul.f32 %v13480_v26, %v2025_v46 }
0x1288   :  { %11327 = vmatmul.mubr.msk.f32.vlgmr.msra.gmra.mrb[14].mxu0 %vm228_vm0, %v14287_v27  ;;  %v2049_v31 = vmul.f32 %v11308_v20, %v2041_v29 }
0x1289   :  { %2164 = vmatprep.mubr.f32.mxu0 %v13775_v0 }
0x128a   :  { %v14292_v18 = vadd.f32 %v11309_v22, %v2049_v31 }
0x128c   :  { %11328 = vmatmul.mubr.msk.f32.gmra.mrb[16].mxu0 %vm228_vm0, %v14292_v18 }
0x128d   :  { %12206 = vmatprep.mubr.msk.f32.mxu0 %vm13776_vm1, %v13775_v0 }
0x135b   :  { %v2160_v33 = vpop.f32.mrb[14].mxu0 }
0x135c   :  { %v2161_v36 = vadd.f32 %v2160_v33, %v2081_v32  ;;  %v2162_v38 = vpop.f32.mrb[15].mxu0 }
0x135d   :  { %v14313_v6 = vadd.f32 %v2162_v38, %v2085_v37 }
0x135e   :  { %2172 = vrot.lane.b32.xlu0 %v2161_v36, %s13778_s27 }
0x135f   :  { %v2166_v40 = vpop.f32.mrb[16].mxu0 }
0x1360   :  { %v2168_v41 = vpop.f32.mrb[17].mxu0  ;;  %v2167_v42 = vadd.f32 %v2166_v40, %v2081_v32 }
0x1361   :  { %v14302_v30 = vadd.f32 %v2168_v41, %v2085_v37 }
0x1362   :  { %2334 = vrot.lane.b32.xlu0 %v2161_v36, %s13779_s28 }
0x1366   :  { %2508 = vrot.lane.b32.xlu0 %v2161_v36, %s13781_s2 }
0x136a   :  { %2679 = vrot.lane.b32.xlu0 %v2161_v36, %s13772_s0 }
0x136e   :  { %2849 = vrot.lane.b32.xlu0 %v2167_v42, %s13778_s27 }
0x1372   :  { %3011 = vrot.lane.b32.xlu0 %v2167_v42, %s13779_s28 }
0x1376   :  { %3183 = vrot.lane.b32.xlu0 %v2167_v42, %s13780_s1 }
0x137a   :  { %3354 = vrot.lane.b32.xlu0 %v2167_v42, %s13782_s7 }
0x13d0   :  { %v2173_v43 = vpop.permute.xlu0 %2172 }
0x13d1   :  { %12205 = vmatpush3.xpose.msk.msra.mxu0 %vm315_vm2, %v2173_v43 }
0x13d2   :  { %12209 = vmatprep.subr.mxu0 %v13775_v0 }
0x13d4   :  { %12207 = vmatmul.mubr.msk.f32.vlgmr.msra.gmra.mrb[18].mxu0 %vm315_vm2, %v2161_v36  ;;  %v2335_v52 = vpop.permute.xlu0 %2334 }
0x13d5   :  { %12210 = vmatpush3.msra.mxu0 %v14313_v6  ;;  %12211 = vmatprep.mubr.msk.f32.mxu0 %vm13776_vm1, %v13775_v0 }
0x13d6   :  { %12214 = vmatprep.subr.mxu0 %v13775_v0 }
0x13d8   :  { %v2509_v54 = vpop.permute.xlu0 %2508 }
0x13dc   :  { %v2680_v57 = vpop.permute.xlu0 %2679 }
0x13e0   :  { %v2850_v59 = vpop.permute.xlu0 %2849 }
0x13e4   :  { %v3012_v61 = vpop.permute.xlu0 %3011 }
0x13e8   :  { %v3184_v63 = vpop.permute.xlu0 %3183 }
0x13ec   :  { %v3355_v2 = vpop.permute.xlu0 %3354 }
0x14a7   :  { %v2244_v24 = vpop.f32.mrb[18].mxu0 }
0x14a8   :  { %v2248_v39 = vmul.f32 0.25, %v2244_v24  ;;  %v12208_v35 = vpop.f32.mrb[19].mxu0 }
0x14aa   :  { %v2249_v44 = vsel %vm391_vm3, %v2248_v39, -inf }
0x14ab   :  { %2250 = vmax.xlane.f32.xlu1 %v2249_v44 }
0x14bc   :  { %2336 = vrot.lane.b32.xlu1 %v2161_v36, %s13777_s13 }
0x1538   :  { %v2251_v45 = vpop.xlane.xlu1 %2250 }
0x1539   :  { %v2252_v46 = vsub.f32 %v2248_v39, %v2251_v45 }
0x153b   :  { %v2253_v47 = vmul.f32 1.442695, %v2252_v46 }
0x153c   :  { %v2337_v50 = vpop.permute.xlu1 %2336 }
0x153d   :  { %13481 = vpow2.f32 %v2253_v47 }
0x1547   :  { %v13482_v48 = vpop.eup %13481 }
0x1548   :  { %v2255_v49 = vsel %vm391_vm3, %v13482_v48, 0.0 }
0x1549   :  { %2256 = vadd.xlane.f32.xlu1 %v2255_v49 }
0x155a   :  { %2506 = vrot.lane.b32.xlu1 %v2161_v36, %s13780_s1 }
0x155e   :  { %2677 = vrot.lane.b32.xlu1 %v2161_v36, %s13782_s7 }
0x1562   :  { %3013 = vrot.lane.b32.xlu1 %v2167_v42, %s13777_s13 }
0x1566   :  { %3185 = vrot.lane.b32.xlu1 %v2167_v42, %s13781_s2 }
0x156a   :  { %3356 = vrot.lane.b32.xlu1 %v2167_v42, %s13772_s0 }
0x15d6   :  { %v2257_v51 = vpop.xlane.xlu1 %2256 }
0x15d7   :  { %13483 = vrcp.f32 %v2257_v51 }
0x15da   :  { %v2507_v56 = vpop.permute.xlu1 %2506 }
0x15de   :  { %v2678_v58 = vpop.permute.xlu1 %2677 }
0x15e1   :  { %v13484_v53 = vpop.eup %13483 }
0x15e2   :  { %v2259_v55 = vmul.f32 %v13484_v53, %v13482_v48  ;;  %v3014_v60 = vpop.permute.xlu1 %3013 }
0x15e4   :  { %12212 = vmatmul.mubr.msk.f32.vlgmr.msra.gmra.mrb[20].mxu0 %vm391_vm3, %v2259_v55 }
0x15e5   :  { %12215 = vmatpush3.xpose.msk.msra.mxu0 %vm315_vm2, %v2337_v50  ;;  %12216 = vmatprep.mubr.msk.f32.mxu0 %vm13776_vm1, %v13775_v0 }
0x15e6   :  { %12224 = vmatprep.subr.mxu0 %v13775_v0  ;;  %v3186_v62 = vpop.permute.xlu1 %3185 }
0x15e8   :  { %12217 = vmatmul.mubr.msk.f32.vlgmr.msra.gmra.mrb[22].mxu0 %vm315_vm2, %v2335_v52 }
0x15e9   :  { %12225 = vmatpush3.xpose.msk.msra.mxu0 %vm315_vm2, %v2509_v54  ;;  %12226 = vmatprep.mubr.msk.f32.mxu0 %vm13776_vm1, %v13775_v0 }
0x15ea   :  { %12234 = vmatprep.subr.mxu0 %v13775_v0  ;;  %v3357_v1 = vpop.permute.xlu1 %3356 }
0x15ec   :  { %12227 = vmatmul.mubr.msk.f32.vlgmr.msra.gmra.mrb[24].mxu0 %vm315_vm2, %v2507_v56 }
0x15ed   :  { %12235 = vmatpush3.xpose.msk.msra.mxu0 %vm315_vm2, %v2680_v57  ;;  %12236 = vmatprep.mubr.msk.f32.mxu0 %vm13776_vm1, %v13775_v0 }
0x15ee   :  { %12244 = vmatprep.subr.mxu0 %v13775_v0 }
0x15f0   :  { %12237 = vmatmul.mubr.msk.f32.vlgmr.msra.gmra.mrb[26].mxu0 %vm315_vm2, %v2678_v58 }
0x15f1   :  { %12245 = vmatpush3.xpose.msk.msra.mxu0 %vm315_vm2, %v2850_v59  ;;  %12246 = vmatprep.mubr.msk.f32.mxu0 %vm13776_vm1, %v13775_v0 }
0x15f2   :  { %12254 = vmatprep.subr.mxu0 %v13775_v0 }
0x15f4   :  { %12247 = vmatmul.mubr.msk.f32.vlgmr.msra.gmra.mrb[28].mxu0 %vm315_vm2, %v2167_v42 }
0x15f5   :  { %12255 = vmatpush3.xpose.msk.msra.mxu0 %vm315_vm2, %v3014_v60  ;;  %12256 = vmatprep.mubr.msk.f32.mxu0 %vm13776_vm1, %v13775_v0 }
0x15f6   :  { %12264 = vmatprep.subr.mxu0 %v13775_v0 }
0x15f8   :  { %12257 = vmatmul.mubr.msk.f32.vlgmr.msra.gmra.mrb[30].mxu0 %vm315_vm2, %v3012_v61 }
0x15f9   :  { %12265 = vmatpush3.xpose.msk.msra.mxu0 %vm315_vm2, %v3186_v62  ;;  %12266 = vmatprep.mubr.msk.f32.mxu0 %vm13776_vm1, %v13775_v0 }
0x15fa   :  { %12274 = vmatprep.subr.mxu0 %v13775_v0 }
0x15fc   :  { %12267 = vmatmul.mubr.msk.f32.vlgmr.msra.gmra.mrb[32].mxu0 %vm315_vm2, %v3184_v63 }
0x15fd   :  { %12275 = vmatpush3.xpose.msk.msra.mxu0 %vm315_vm2, %v3357_v1  ;;  %12276 = vmatprep.mubr.msk.f32.mxu0 %vm13776_vm1, %v13775_v0 }
0x1600   :  { %12277 = vmatmul.mubr.msk.f32.vlgmr.msra.gmra.mrb[34].mxu0 %vm315_vm2, %v3355_v2 }
0x16b7   :  { %v2329_v3 = vpop.f32.mrb[20].mxu0 }
0x16b8   :  { %2333 = vst.msk [vmem:[#allocation2] sm:$0xff] %vm315_vm2, %v2329_v3  ;;  %v12213_v4 = vpop.f32.mrb[21].mxu0 }
0x16bb   :  { %v2408_v5 = vpop.f32.mrb[22].mxu0 }
0x16bc   :  { %v2412_v7 = vmul.f32 0.25, %v2408_v5  ;;  %v12218_v8 = vpop.f32.mrb[23].mxu0 }
0x16be   :  { %v2413_v9 = vsel %vm391_vm3, %v2412_v7, -inf }
0x16bf   :  { %2414 = vmax.xlane.f32.xlu1 %v2413_v9  ;;  %v2580_v10 = vpop.f32.mrb[24].mxu0 }
0x16c0   :  { %v2584_v11 = vmul.f32 0.25, %v2580_v10  ;;  %v12228_v12 = vpop.f32.mrb[25].mxu0 }
0x16c2   :  { %v2585_v13 = vsel %vm391_vm3, %v2584_v11, -inf }
0x16c3   :  { %2586 = vmax.xlane.f32.xlu0 %v2585_v13  ;;  %v2751_v14 = vpop.f32.mrb[26].mxu0 }
0x16c4   :  { %v2755_v15 = vmul.f32 0.25, %v2751_v14  ;;  %v12238_v16 = vpop.f32.mrb[27].mxu0 }
0x16c6   :  { %v2756_v17 = vsel %vm391_vm3, %v2755_v15, -inf }
0x16c7   :  { %2757 = vmax.xlane.f32.xlu0 %v2756_v17  ;;  %v2921_v19 = vpop.f32.mrb[28].mxu0 }
0x16c8   :  { %v2925_v20 = vmul.f32 0.25, %v2921_v19  ;;  %v12248_v21 = vpop.f32.mrb[29].mxu0 }
0x16ca   :  { %v2926_v22 = vsel %vm391_vm3, %v2925_v20, -inf }
0x16cb   :  { %2927 = vmax.xlane.f32.xlu1 %v2926_v22  ;;  %v3085_v23 = vpop.f32.mrb[30].mxu0 }
0x16cc   :  { %v3089_v26 = vmul.f32 0.25, %v3085_v23  ;;  %v12258_v29 = vpop.f32.mrb[31].mxu0 }
0x16ce   :  { %v3090_v31 = vsel %vm391_vm3, %v3089_v26, -inf }
0x16cf   :  { %3091 = vmax.xlane.f32.xlu0 %v3090_v31  ;;  %v3257_v25 = vpop.f32.mrb[32].mxu0 }
0x16d0   :  { %v3261_v32 = vmul.f32 0.25, %v3257_v25  ;;  %v12268_v33 = vpop.f32.mrb[33].mxu0 }
0x16d2   :  { %v3262_v36 = vsel %vm391_vm3, %v3261_v32, -inf }
0x16d3   :  { %3263 = vmax.xlane.f32.xlu1 %v3262_v36  ;;  %v3428_v38 = vpop.f32.mrb[34].mxu0 }
0x16d4   :  { %v3432_v37 = vmul.f32 0.25, %v3428_v38  ;;  %v12278_v40 = vpop.f32.mrb[35].mxu0 }
0x16d6   :  { %v3433_v41 = vsel %vm391_vm3, %v3432_v37, -inf }
0x16d7   :  { %3434 = vmax.xlane.f32.xlu0 %v3433_v41 }
0x16e4   :  { %2596 = vrot.lane.b32.xlu1 %v14313_v6, %s13780_s1 }
0x16e8   :  { %2767 = vrot.lane.b32.xlu1 %v14313_v6, %s13782_s7 }
0x16ed   :  { %2425 = vrot.lane.b32.xlu0 %v14313_v6, %s13779_s28 }
0x174c   :  { %v2415_v42 = vpop.xlane.xlu1 %2414 }
0x174d   :  { %v2416_v43 = vsub.f32 %v2412_v7, %v2415_v42 }
0x174f   :  { %v2417_v24 = vmul.f32 1.442695, %v2416_v43 }
0x1750   :  { %v2587_v39 = vpop.xlane.xlu0 %2586 }
0x1751   :  { %13485 = vpow2.f32 %v2417_v24  ;;  %v2588_v35 = vsub.f32 %v2584_v11, %v2587_v39 }
0x1753   :  { %v2589_v44 = vmul.f32 1.442695, %v2588_v35 }
0x1754   :  { %v2758_v45 = vpop.xlane.xlu0 %2757 }
0x1755   :  { %13487 = vpow2.f32 %v2589_v44  ;;  %v2759_v46 = vsub.f32 %v2755_v15, %v2758_v45  ;;  %v11353_v45 = vld [vmem:[%s13816_s25 + $0x40] sm:$0xff] }
0x1757   :  { %v2760_v47 = vmul.f32 1.442695, %v2759_v46  ;;  %v11354_v46 = vld [vmem:[%s13816_s25 + $0x48] sm:$0xff] }
0x1758   :  { %v2928_v48 = vpop.xlane.xlu1 %2927 }
0x1759   :  { %13489 = vpow2.f32 %v2760_v47  ;;  %v2929_v49 = vsub.f32 %v2925_v20, %v2928_v48  ;;  %v13052_v48 = vpack.c.bf16 %v11354_v46, %v11353_v45  ;;  %v3969_v46 = vld [vmem:[%s15511_s17 + $0x8] sm:$0xff] }
0x175b   :  { %v13486_v50 = vpop.eup %13485  ;;  %v2930_v51 = vmul.f32 1.442695, %v2929_v49  ;;  %13053 = vmatprep.subr.bf16.mxu0 %v13052_v48 }
0x175c   :  { %v3092_v52 = vpop.xlane.xlu0 %3091  ;;  %v2419_v53 = vsel %vm391_vm3, %v13486_v50, 0.0  ;;  %13055 = vmatpush3.bf16.msra.mxu0 %v13052_v48 }
0x175d   :  { %13491 = vpow2.f32 %v2930_v51  ;;  %v3093_v6 = vsub.f32 %v3089_v26, %v3092_v52  ;;  %2420 = vadd.xlane.f32.xlu1 %v2419_v53 }
0x175f   :  { %v13488_v54 = vpop.eup %13487  ;;  %v3094_v55 = vmul.f32 1.442695, %v3093_v6 }
0x1760   :  { %v2591_v56 = vsel %vm391_vm3, %v13488_v54, 0.0  ;;  %v3264_v7 = vpop.xlane.xlu1 %3263 }
0x1761   :  { %13493 = vpow2.f32 %v3094_v55  ;;  %2592 = vadd.xlane.f32.xlu0 %v2591_v56  ;;  %v3265_v8 = vsub.f32 %v3261_v32, %v3264_v7  ;;  %v11356_v55 = vld [vmem:[%s13816_s25 + $0x58] sm:$0xff] }
0x1763   :  { %v13490_v57 = vpop.eup %13489  ;;  %v3266_v9 = vmul.f32 1.442695, %v3265_v8 }
0x1764   :  { %v3435_v58 = vpop.xlane.xlu0 %3434  ;;  %v2762_v59 = vsel %vm391_vm3, %v13490_v57, 0.0  ;;  %v2597_v12 = vpop.permute.xlu1 %2596 }
0x1765   :  { %v3436_v60 = vsub.f32 %v3432_v37, %v3435_v58  ;;  %2763 = vadd.xlane.f32.xlu1 %v2762_v59  ;;  %v11358_v58 = vld [vmem:[%s13816_s25 + $0x68] sm:$0xff] }
0x1767   :  { %v13492_v61 = vpop.eup %13491  ;;  %v3437_v62 = vmul.f32 1.442695, %v3436_v60  ;;  %v11359_v60 = vld [vmem:[%s13816_s25 + $0x70] sm:$0xff] }
0x1768   :  { %v2426_v63 = vpop.permute.xlu0 %2425  ;;  %v2932_v1 = vsel %vm391_vm3, %v13492_v61, 0.0  ;;  %v2768_v13 = vpop.permute.xlu1 %2767 }
0x1769   :  { %13495 = vpow2.f32 %v3437_v62  ;;  %2933 = vadd.xlane.f32.xlu0 %v2932_v1  ;;  %12220 = vmatpush3.msra.mxu1 %v2426_v63 }
0x176a   :  { %12229 = vmatprep.subr.mxu1 %v13775_v0  ;;  %13497 = vpow2.f32 %v3266_v9 }
0x176b   :  { %v13494_v2 = vpop.eup %13493 }
0x176c   :  { %v3096_v3 = vsel %vm391_vm3, %v13494_v2, 0.0 }
0x176d   :  { %3097 = vadd.xlane.f32.xlu1 %v3096_v3 }
0x1773   :  { %v14383_v4 = vpop.eup %13495 }
0x1774   :  { %v3439_v5 = vsel %vm391_vm3, %v14383_v4, 0.0  ;;  %v13498_v10 = vpop.eup %13497 }
0x1775   :  { %3440 = vadd.xlane.f32.xlu1 %v3439_v5  ;;  %v3268_v11 = vsel %vm391_vm3, %v13498_v10, 0.0 }
0x177f   :  { %3102 = vrot.lane.b32.xlu0 %v14302_v30, %s13779_s28 }
0x1786   :  { %3273 = vrot.lane.b32.xlu1 %v14302_v30, %s13780_s1 }
0x179e   :  { %3269 = vadd.xlane.f32.xlu0 %v3268_v11 }
0x17b4   :  { %3444 = vrot.lane.b32.xlu0 %v14302_v30, %s13782_s7 }
0x17ea   :  { %v2421_v14 = vpop.xlane.xlu1 %2420 }
0x17eb   :  { %13499 = vrcp.f32 %v2421_v14 }
0x17ee   :  { %v2593_v15 = vpop.xlane.xlu0 %2592 }
0x17ef   :  { %13501 = vrcp.f32 %v2593_v15 }
0x17f2   :  { %v2764_v16 = vpop.xlane.xlu1 %2763 }
0x17f3   :  { %13503 = vrcp.f32 %v2764_v16 }
0x17f5   :  { %v13500_v17 = vpop.eup %13499 }
0x17f6   :  { %v2934_v19 = vpop.xlane.xlu0 %2933  ;;  %v2423_v20 = vmul.f32 %v13500_v17, %v13486_v50 }
0x17f7   :  { %13505 = vrcp.f32 %v2934_v19 }
0x17f8   :  { %12222 = vmatmul.mubr.msk.f32.vlgmr.msra.gmra.mrb[28].mxu1 %vm391_vm3, %v2423_v20 }
0x17f9   :  { %v13502_v21 = vpop.eup %13501  ;;  %12230 = vmatpush3.msra.mxu1 %v2597_v12  ;;  %12231 = vmatprep.mubr.msk.f32.mxu1 %vm13776_vm1, %v13775_v0 }
0x17fa   :  { %v3098_v22 = vpop.xlane.xlu1 %3097  ;;  %12239 = vmatprep.subr.mxu1 %v13775_v0  ;;  %v2595_v23 = vmul.f32 %v13502_v21, %v13488_v54  ;;  %v3103_v33 = vpop.permute.xlu0 %3102  ;;  %v11355_v54 = vld [vmem:[%s13816_s25 + $0x50] sm:$0xff] }
0x17fb   :  { %13507 = vrcp.f32 %v3098_v22  ;;  %v13056_v56 = vpack.c.bf16 %v11356_v55, %v11355_v54  ;;  %v11385_v54 = vld [vmem:[%s13846_s24 + $0xa0] sm:$0xff]  ;;  %v11386_v55 = vld [vmem:[%s13846_s24 + $0xa8] sm:$0xff] }
0x17fc   :  { %12232 = vmatmul.mubr.msk.f32.vlgmr.msra.gmra.mrb[30].mxu1 %vm391_vm3, %v2595_v23 }
0x17fd   :  { %v13504_v26 = vpop.eup %13503  ;;  %12240 = vmatpush3.msra.mxu1 %v2768_v13  ;;  %12241 = vmatprep.mubr.msk.f32.mxu1 %vm13776_vm1, %v13775_v0  ;;  %v11362_v13 = vld [vmem:[%s13821_s29 + $0x1] ss:$0 sm:$0xff]  ;;  %s15514_s29 = sld [smem:[#allocation10_spill]] }
0x17fe   :  { %12249 = vmatprep.subr.mxu1 %v13775_v0  ;;  %v2766_v29 = vmul.f32 %v13504_v26, %v13490_v57  ;;  %13057 = vmatprep.subr.bf16.mxu0 %v13056_v56  ;;  %v11357_v57 = vld [vmem:[%s13816_s25 + $0x60] sm:$0xff] }
0x17ff   :  { %13059 = vmatpush3.bf16.msra.mxu0 %v13056_v56  ;;  %v13060_v59 = vpack.c.bf16 %v11358_v58, %v11357_v57  ;;  %v13092_v56 = vpack.c.bf16 %v11386_v55, %v11385_v54  ;;  %v11387_v57 = vld [vmem:[%s13846_s24 + $0xb0] sm:$0xff]  ;;  %v11388_v58 = vld [vmem:[%s13846_s24 + $0xb8] sm:$0xff] }
0x1800   :  { %12242 = vmatmul.mubr.msk.f32.vlgmr.msra.gmra.mrb[32].mxu1 %vm391_vm3, %v2766_v29 }
0x1801   :  { %v13506_v31 = vpop.eup %13505  ;;  %12250 = vmatpush3.msra.mxu1 %v14302_v30  ;;  %12251 = vmatprep.mubr.msk.f32.mxu1 %vm13776_vm1, %v13775_v0 }
0x1802   :  { %v3441_v25 = vpop.xlane.xlu1 %3440  ;;  %12259 = vmatprep.subr.mxu1 %v13775_v0  ;;  %v2936_v32 = vmul.f32 %v13506_v31, %v13492_v61  ;;  %v11360_v61 = vld [vmem:[%s13816_s25 + $0x78] sm:$0xff]  ;;  %13061 = vmatprep.subr.bf16.mxu0 %v13060_v59  ;;  %s15513_s25 = sld [smem:[#allocation13_spill]] }
0x1803   :  { %v13064_v62 = vpack.c.bf16 %v11360_v61, %v11359_v60  ;;  %13063 = vmatpush3.bf16.msra.mxu0 %v13060_v59  ;;  %v13096_v59 = vpack.c.bf16 %v11388_v58, %v11387_v57  ;;  %v11389_v60 = vld [vmem:[%s13846_s24 + $0xc0] sm:$0xff]  ;;  %v11390_v61 = vld [vmem:[%s13846_s24 + $0xc8] sm:$0xff] }
0x1804   :  { %12252 = vmatmul.mubr.msk.f32.vlgmr.msra.gmra.mrb[34].mxu1 %vm391_vm3, %v2936_v32 }
0x1805   :  { %v13508_v36 = vpop.eup %13507  ;;  %12260 = vmatpush3.msra.mxu1 %v3103_v33  ;;  %12261 = vmatprep.mubr.msk.f32.mxu1 %vm13776_vm1, %v13775_v0 }
0x1806   :  { %v3274_v38 = vpop.permute.xlu1 %3273  ;;  %12269 = vmatprep.subr.mxu1 %v13775_v0  ;;  %v3100_v37 = vmul.f32 %v13508_v36, %v13494_v2  ;;  %13065 = vmatprep.subr.bf16.mxu0 %v13064_v62 }
0x1807   :  { %13067 = vmatpush3.bf16.msra.mxu0 %v13064_v62  ;;  %v13100_v62 = vpack.c.bf16 %v11390_v61, %v11389_v60 }
0x1808   :  { %12262 = vmatmul.mubr.msk.f32.vlgmr.msra.gmra.mrb[36].mxu1 %vm391_vm3, %v3100_v37  ;;  %v11370_v37 = vld [vmem:[%s13836_s14 + $0x48] sm:$0xff]  ;;  %v3984_v57 = vld [vmem:[%s15513_s25] sm:$0x3] }
0x1809   :  { %12270 = vmatpush3.msra.mxu1 %v3274_v38  ;;  %12271 = vmatprep.mubr.msk.f32.mxu1 %vm13776_vm1, %v13775_v0  ;;  %v11369_v38 = vld [vmem:[%s13836_s14 + $0x40] sm:$0xff]  ;;  %v3989_v58 = vrot.slane %v3984_v57, %v14037_v28 }
0x180a   :  { %12279 = vmatprep.subr.mxu1 %v13775_v0 }
0x182b   :  { %v3270_v30 = vpop.xlane.xlu0 %3269 }
0x182c   :  { %13509 = vrcp.f32 %v3270_v30  ;;  %v13068_v30 = vpack.c.bf16 %v11370_v37, %v11369_v38  ;;  %v3979_v38 = vld [vmem:[%s15511_s17 + $0x58] sm:$0xff] }
0x182d   :  { %13511 = vrcp.f32 %v3441_v25 }
0x182f   :  { %v3445_v43 = vpop.permute.xlu0 %3444 }
0x1836   :  { %v13510_v40 = vpop.eup %13509 }
0x1837   :  { %v3272_v41 = vmul.f32 %v13510_v40, %v13498_v10  ;;  %v13512_v42 = vpop.eup %13511  ;;  %v11371_v40 = vld [vmem:[%s13836_s14 + $0x50] sm:$0xff] }
0x1838   :  { %v3443_v24 = vmul.f32 %v13512_v42, %v14383_v4 }
0x1839   :  { %12272 = vmatmul.mubr.msk.f32.vlgmr.msra.gmra.mrb[38].mxu1 %vm391_vm3, %v3272_v41  ;;  %v11372_v41 = vld [vmem:[%s13836_s14 + $0x58] sm:$0xff] }
0x183a   :  { %12280 = vmatpush3.msra.mxu1 %v3445_v43  ;;  %12281 = vmatprep.mubr.msk.f32.mxu1 %vm13776_vm1, %v13775_v0  ;;  %v13072_v42 = vpack.c.bf16 %v11372_v41, %v11371_v40  ;;  %v11373_v43 = vld [vmem:[%s13836_s14 + $0x60] sm:$0xff]  ;;  %v3978_v41 = vld [vmem:[%s15511_s17 + $0x50] sm:$0xff] }
0x183b   :  { %13069 = vmatprep.subr.bf16.mxu1 %v13068_v30  ;;  %v3976_v40 = vld [vmem:[%s15511_s17 + $0x40] sm:$0xff] }
0x183d   :  { %12282 = vmatmul.mubr.msk.f32.vlgmr.msra.gmra.mrb[40].mxu1 %vm391_vm3, %v3443_v24  ;;  %v11374_v24 = vld [vmem:[%s13836_s14 + $0x68] sm:$0xff] }
0x183e   :  { %13071 = vmatpush3.bf16.msra.mxu1 %v13068_v30 }
0x183f   :  { %13073 = vmatprep.subr.bf16.mxu1 %v13072_v42 }
0x1842   :  { %13075 = vmatpush3.bf16.msra.mxu1 %v13072_v42  ;;  %v3981_v42 = vld [vmem:[%s15511_s17 + $0x68] sm:$0xff] }
0x18cb   :  { %v2497_v39 = vpop.f32.mrb[28].mxu1 }
0x18cc   :  { %2502 = vrot.lane.b32.xlu1 %v2497_v39, %s13772_s0  ;;  %v12223_v35 = vpop.f32.mrb[29].mxu1  ;;  %v13076_v39 = vpack.c.bf16 %v11374_v24, %v11373_v43  ;;  %v3983_v43 = vld [vmem:[%s15511_s17 + $0x78] sm:$0xff]  ;;  %v13126_v24 = vpack.c.bf16 %v3978_v41, %v3976_v40 }
0x18cd   :  { %v11375_v35 = vld [vmem:[%s13836_s14 + $0x70] sm:$0xff] }
0x18ce   :  { %13077 = vmatprep.subr.bf16.mxu1 %v13076_v39 }
0x18cf   :  { %v2668_v44 = vpop.f32.mrb[30].mxu1  ;;  %13079 = vmatpush3.bf16.msra.mxu1 %v13076_v39  ;;  %v13128_v39 = vpack.c.bf16 %v3983_v43, %v3981_v42 }
0x18d0   :  { %2673 = vrot.lane.b32.xlu0 %v2668_v44, %s13781_s2  ;;  %v12233_v47 = vpop.f32.mrb[31].mxu1  ;;  %v11376_v44 = vld [vmem:[%s13836_s14 + $0x78] sm:$0xff]  ;;  %s15517_s14 = sld [smem:[#allocation20_spill]] }
0x18d1   :  { %v13080_v45 = vpack.c.bf16 %v11376_v44, %v11375_v35  ;;  %v3971_v47 = vld [vmem:[%s15511_s17 + $0x18] sm:$0xff]  ;;  %v3980_v35 = vld [vmem:[%s15511_s17 + $0x60] sm:$0xff]  ;;  %v3982_v44 = vld [vmem:[%s15511_s17 + $0x70] sm:$0xff] }
0x18d2   :  { %v13116_v48 = vpack.c.bf16 %v3971_v47, %v3969_v46  ;;  %v14510_v46 = vld [vmem:[%s15512_s21] sm:$0xff]  ;;  %v11395_v47 = vld [vmem:[%s13846_s24 + $0xf0] sm:$0xff] }
0x18d3   :  { %v2839_v49 = vpop.f32.mrb[32].mxu1  ;;  %13081 = vmatprep.subr.bf16.mxu1 %v13080_v45 }
0x18d4   :  { %2844 = vrot.lane.b32.xlu0 %v2839_v49, %s13777_s13  ;;  %v12243_v50 = vpop.f32.mrb[33].mxu1  ;;  %13083 = vmatpush3.bf16.msra.mxu1 %v13080_v45  ;;  %v11381_v49 = vld [vmem:[%s13846_s24 + $0x80] sm:$0xff]  ;;  %v13130_v45 = vpack.c.bf16 %v3982_v44, %v3980_v35 }
0x18d5   :  { %13117 = vmatprep.subr.bf16.mxu1 %v13116_v48  ;;  %v11382_v50 = vld [vmem:[%s13846_s24 + $0x88] sm:$0xff]  ;;  %v11396_v48 = vld [vmem:[%s13846_s24 + $0xf8] sm:$0xff] }
0x18d7   :  { %v3006_v51 = vpop.f32.mrb[34].mxu1 }
0x18d8   :  { %3010 = vst.msk [vmem:[#allocation2 + $0x8] sm:$0xff] %vm315_vm2, %v3006_v51  ;;  %v12253_v52 = vpop.f32.mrb[35].mxu1  ;;  %v11383_v51 = vld [vmem:[%s13846_s24 + $0x90] sm:$0xff] }
0x18d9   :  { %v13084_v52 = vpack.c.bf16 %v11382_v50, %v11381_v49  ;;  %v13112_v49 = vpack.c.bf16 %v11396_v48, %v11395_v47  ;;  %v14520_v50 = vld [vmem:[%s15512_s21 + $0x8] sm:$0xff]  ;;  %s15531_s21 = sld [smem:[#allocation28_spill]] }
0x18db   :  { %v3174_v53 = vpop.f32.mrb[36].mxu1  ;;  %13085 = vmatprep.subr.bf16.mxu0 %v13084_v52 }
0x18dc   :  { %3179 = vrot.lane.b32.xlu1 %v3174_v53, %s13772_s0  ;;  %v12263_v6 = vpop.f32.mrb[37].mxu1  ;;  %v11384_v53 = vld [vmem:[%s13846_s24 + $0x98] sm:$0xff] }
0x18dd   :  { %v13088_v6 = vpack.c.bf16 %v11384_v53, %v11383_v51  ;;  %v11378_v51 = vld [vmem:[%s13841_s19 + $0x1] ss:$0 sm:$0xff]  ;;  %s15518_s19 = sld [smem:[#allocation18_spill]] }
0x190c   :  { %v3345_v63 = vpop.f32.mrb[38].mxu1 }
0x190d   :  { %3350 = vrot.lane.b32.xlu1 %v3345_v63, %s13781_s2  ;;  %v12273_v1 = vpop.f32.mrb[39].mxu1  ;;  %v11391_v63 = vld [vmem:[%s13846_s24 + $0xd0] sm:$0xff] }
0x190e   :  { %v11392_v1 = vld [vmem:[%s13846_s24 + $0xd8] sm:$0xff] }
0x1910   :  { %v3516_v2 = vpop.f32.mrb[40].mxu1 }
0x1911   :  { %3521 = vrot.lane.b32.xlu0 %v3516_v2, %s13777_s13  ;;  %v12283_v3 = vpop.f32.mrb[41].mxu1  ;;  %v13104_v2 = vpack.c.bf16 %v11392_v1, %v11391_v63 }
0x1912   :  { %v11393_v3 = vld [vmem:[%s13846_s24 + $0xe0] sm:$0xff] }
0x193e   :  { %v2503_v4 = vpop.permute.xlu1 %2502 }
0x193f   :  { %2505 = vst.msk [vmem:[#allocation2] sm:$0xff] %vm648_vm4, %v2503_v4  ;;  %v11394_v4 = vld [vmem:[%s13846_s24 + $0xe8] sm:$0xff]  ;;  %s15519_s24 = sld [smem:[#allocation30_spill]] }
0x1942   :  { %v2674_v5 = vpop.permute.xlu0 %2673 }
0x1943   :  { %2676 = vst.msk [vmem:[#allocation2] sm:$0xff] %vm820_vm5, %v2674_v5  ;;  %v13108_v5 = vpack.c.bf16 %v11394_v4, %v11393_v3 }
0x1946   :  { %v2845_v7 = vpop.permute.xlu0 %2844 }
0x1947   :  { %2847 = vst.msk [vmem:[#allocation2] sm:$0xff] %vm992_vm6, %v2845_v7 }
0x194e   :  { %v3180_v8 = vpop.permute.xlu1 %3179  ;;  %v3525_v9 = vld [vmem:[#allocation2] sm:$0xff] }
0x194f   :  { %3182 = vst.msk [vmem:[#allocation2 + $0x8] sm:$0xff] %vm648_vm4, %v3180_v8  ;;  %12300 = vmatprep.mubr.msk.f32.mxu0 %vm228_vm0, %v3525_v9 }
0x197f   :  { %v3351_v10 = vpop.permute.xlu1 %3350 }
0x1980   :  { %3353 = vst.msk [vmem:[#allocation2 + $0x8] sm:$0xff] %vm820_vm5, %v3351_v10 }
0x1983   :  { %v3522_v11 = vpop.permute.xlu0 %3521 }
0x1984   :  { %3524 = vst.msk [vmem:[#allocation2 + $0x8] sm:$0xff] %vm992_vm6, %v3522_v11 }
0x198b   :  { %v3526_v12 = vld [vmem:[#allocation2 + $0x8] sm:$0xff] }
0x198c   :  { %12301 = vmatmul.mubr.msk.f32.vlgmr.msra.gmra.mrb[36].mxu0 %vm228_vm0, %v3526_v12 }
0x198d   :  { %13087 = vmatpush3.bf16.msra.mxu0 %v13084_v52 }
0x198e   :  { %13089 = vmatprep.subr.bf16.mxu0 %v13088_v6 }
0x1991   :  { %13091 = vmatpush3.bf16.msra.mxu0 %v13088_v6 }
0x1992   :  { %13093 = vmatprep.subr.bf16.mxu0 %v13092_v56 }
0x1995   :  { %13095 = vmatpush3.bf16.msra.mxu0 %v13092_v56 }
0x1996   :  { %13097 = vmatprep.subr.bf16.mxu0 %v13096_v59 }
0x1999   :  { %13099 = vmatpush3.bf16.msra.mxu0 %v13096_v59 }
0x199a   :  { %13101 = vmatprep.subr.bf16.mxu0 %v13100_v62 }
0x199d   :  { %13103 = vmatpush3.bf16.msra.mxu0 %v13100_v62 }
0x199e   :  { %13105 = vmatprep.subr.bf16.mxu0 %v13104_v2 }
0x19a1   :  { %13107 = vmatpush3.bf16.msra.mxu0 %v13104_v2  ;;  %v14548_v2 = vrot.slane %v3984_v57, %v14050_v34 }
0x19a2   :  { %13109 = vmatprep.subr.bf16.mxu0 %v13108_v5 }
0x19a5   :  { %13111 = vmatpush3.bf16.msra.mxu0 %v13108_v5 }
0x19a6   :  { %13113 = vmatprep.subr.bf16.mxu0 %v13112_v49 }
0x19a9   :  { %13115 = vmatpush3.bf16.msra.mxu0 %v13112_v49 }
0x19aa   :  { %12372 = vmatprep.subr.mxu0 %v13775_v0 }
0x1a5f   :  { %v12302_v14 = vpop.f32.mrb[36].mxu0 }
0x1a60   :  { %v3622_v15 = vadd.f32 %v12302_v14, %v11362_v13  ;;  %v3616_v16 = vpop.f32.mrb[37].mxu0  ;;  %v11367_v14 = vld [vmem:[%s13826_s3 + $0x1] ss:$0 sm:$0xff]  ;;  %s15515_s3 = sld [smem:[#allocation14_spill]] }
0x1a61   :  { %v3617_v17 = vadd.f32 %v11362_v13, %v3616_v16 }
0x1a62   :  { %v3626_v19 = vadd.f32 %v3622_v15, %v14292_v18 }
0x1a63   :  { %v3625_v20 = vadd.f32 %v3617_v17, %v14287_v27 }
0x1a64   :  { %v3634_v21 = vsel %vm228_vm0, %v3626_v19, 0.0 }
0x1a65   :  { %3635 = vadd.xlane.f32.xlu0 %v3634_v21  ;;  %v3631_v22 = vsel %vm228_vm0, %v3625_v20, 0.0  ;;  %v3968_v21 = vld [vmem:[%s15511_s17] sm:$0xff] }
0x1a66   :  { %3632 = vadd.xlane.f32.xlu1 %v3631_v22  ;;  %v3970_v22 = vld [vmem:[%s15511_s17 + $0x10] sm:$0xff] }
0x1af2   :  { %v3636_v23 = vpop.xlane.xlu0 %3635 }
0x1af3   :  { %v3638_v26 = vmul.f32 0.015625, %v3636_v23  ;;  %v3633_v29 = vpop.xlane.xlu1 %3632 }
0x1af4   :  { %v3637_v31 = vmul.f32 0.015625, %v3633_v29  ;;  %v3975_v29 = vld [vmem:[%s15511_s17 + $0x38] sm:$0xff] }
0x1af5   :  { %v14448_v25 = vsub.f32 %v3626_v19, %v3638_v26  ;;  %v11368_v19 = vld [vmem:[%s13831_s8 + $0x1] ss:$0 sm:$0xff]  ;;  %v3973_v26 = vld [vmem:[%s15511_s17 + $0x28] sm:$0xff]  ;;  %s15516_s8 = sld [smem:[#allocation15_spill]] }
0x1af6   :  { %v14450_v18 = vsub.f32 %v3625_v20, %v3637_v31 }
0x1af7   :  { %v3642_v27 = vmul.f32 %v14448_v25, %v14448_v25 }
0x1af8   :  { %v3641_v32 = vmul.f32 %v14450_v18, %v14450_v18 }
0x1af9   :  { %v3646_v33 = vsel %vm228_vm0, %v3642_v27, 0.0  ;;  %v13118_v27 = vpack.c.bf16 %v3970_v22, %v3968_v21 }
0x1afa   :  { %3647 = vadd.xlane.f32.xlu1 %v3646_v33  ;;  %v3643_v36 = vsel %vm228_vm0, %v3641_v32, 0.0  ;;  %v3972_v33 = vld [vmem:[%s15511_s17 + $0x20] sm:$0xff] }
0x1afb   :  { %3644 = vadd.xlane.f32.xlu0 %v3643_v36  ;;  %v3977_v36 = vld [vmem:[%s15511_s17 + $0x48] sm:$0xff] }
0x1afc   :  { %v13124_v30 = vpack.c.bf16 %v3979_v38, %v3977_v36 }
0x1b87   :  { %v3648_v7 = vpop.xlane.xlu1 %3647 }
0x1b88   :  { %v3650_v8 = vmul.f32 0.015625, %v3648_v7  ;;  %v3645_v9 = vpop.xlane.xlu0 %3644 }
0x1b89   :  { %v3649_v10 = vmul.f32 0.015625, %v3645_v9  ;;  %v14565_v9 = vld [vmem:[%s15514_s29] sm:$0xff] }
0x1b8a   :  { %v3652_v11 = vadd.f32 1e-05, %v3650_v8 }
0x1b8b   :  { %v3651_v12 = vadd.f32 1e-05, %v3649_v10 }
0x1b8c   :  { %13513 = vrsqrt.f32 %v3652_v11 }
0x1b8d   :  { %13515 = vrsqrt.f32 %v3651_v12 }
0x1b96   :  { %v13514_v13 = vpop.eup %13513 }
0x1b97   :  { %v13516_v15 = vpop.eup %13515  ;;  %v3656_v16 = vmul.f32 %v13514_v13, %v14448_v25  ;;  %v13120_v25 = vpack.c.bf16 %v3975_v29, %v3973_v26 }
0x1b98   :  { %v3655_v17 = vmul.f32 %v13516_v15, %v14450_v18  ;;  %v3974_v18 = vld [vmem:[%s15511_s17 + $0x30] sm:$0xff] }
0x1b99   :  { %v3664_v20 = vmul.f32 %v11367_v14, %v3656_v16  ;;  %v13122_v37 = vpack.c.bf16 %v3974_v18, %v3972_v33 }
0x1b9a   :  { %v3663_v23 = vmul.f32 %v11367_v14, %v3655_v17 }
0x1b9b   :  { %v14492_v32 = vadd.f32 %v11368_v19, %v3664_v20 }
0x1b9c   :  { %v14490_v31 = vadd.f32 %v11368_v19, %v3663_v23 }
0x1b9e   :  { %12319 = vmatprep.mubr.msk.f32.mxu1 %vm228_vm0, %v14490_v31 }
0x1b9f   :  { %12320 = vmatmul.mubr.msk.f32.vlgmr.msra.gmra.mrb[42].mxu1 %vm228_vm0, %v14492_v32 }
0x1ba0   :  { %13119 = vmatpush1.bf16.msra.mxu1 %v13118_v27  ;;  %4066 = vmatprep.mubr.f32.mxu1 %v13775_v0 }
0x1ba1   :  { %13121 = vmatprep.subr.bf16.mxu1 %v13120_v25 }
0x1ba4   :  { %13123 = vmatpush1.bf16.msra.mxu1 %v13122_v37 }
0x1ba5   :  { %13125 = vmatprep.subr.bf16.mxu1 %v13124_v30 }
0x1ba8   :  { %13127 = vmatpush1.bf16.msra.mxu1 %v13126_v24 }
0x1ba9   :  { %13129 = vmatprep.subr.bf16.mxu1 %v13128_v39 }
0x1bac   :  { %13131 = vmatpush1.bf16.msra.mxu1 %v13130_v45 }
0x1bad   :  { %12357 = vmatprep.subr.mxu1 %v13775_v0 }
0x1baf   :  { %11405 = vmatmul.mubr.msk.f32.vlgmr.msra.gmra.mrb[44].mxu1 %vm228_vm0, %v14510_v46 }
0x1bb0   :  { %4072 = vmatprep.mubr.f32.mxu1 %v13775_v0 }
0x1bb3   :  { %11406 = vmatmul.mubr.msk.f32.gmra.mrb[46].mxu1 %vm228_vm0, %v14520_v50 }
0x1bb4   :  { %12359 = vmatprep.mubr.msk.f32.mxu1 %vm13776_vm1, %v13775_v0 }
0x1c72   :  { %v12321_v52 = vpop.f32.mrb[42].mxu1 }
0x1c73   :  { %v3768_v53 = vadd.f32 %v12321_v52, %v11378_v51  ;;  %v3762_v6 = vpop.f32.mrb[43].mxu1 }
0x1c74   :  { %v3763_v54 = vadd.f32 %v11378_v51, %v3762_v6 }
0x1c75   :  { %v3772_v56 = vmax.f32 %v3768_v53, 0.0 }
0x1c76   :  { %v3771_v55 = vmax.f32 %v3763_v54, 0.0 }
0x1c78   :  { %12354 = vmatprep.mubr.f32.mxu0 %v3771_v55 }
0x1c79   :  { %12355 = vmatmul.mubr.f32.vlgmr.msra.gmra.mrb[38].mxu0 %v3772_v56 }
0x1c7a   :  { %12374 = vmatprep.mubr.msk.f32.mxu0 %vm13776_vm1, %v13775_v0 }
0x1c82   :  { %v4068_v59 = vpop.f32.mrb[44].mxu1 }
0x1c83   :  { %v4069_v60 = vadd.f32 %v4068_v59, %v3989_v58  ;;  %v4070_v61 = vpop.f32.mrb[45].mxu1 }
0x1c84   :  { %v14553_v4 = vadd.f32 %v4070_v61, %v14548_v2 }
0x1c85   :  { %4080 = vrot.lane.b32.xlu0 %v4069_v60, %s13778_s27 }
0x1c86   :  { %v4074_v62 = vpop.f32.mrb[46].mxu1 }
0x1c87   :  { %v14535_v63 = vadd.f32 %v4074_v62, %v3989_v58  ;;  %v14537_v1 = vpop.f32.mrb[47].mxu1 }
0x1c89   :  { %4243 = vrot.lane.b32.xlu0 %v4069_v60, %s13779_s28 }
0x1c8d   :  { %4418 = vrot.lane.b32.xlu0 %v4069_v60, %s13781_s2 }
0x1c91   :  { %4590 = vrot.lane.b32.xlu0 %v4069_v60, %s13772_s0 }
0x1c95   :  { %4761 = vrot.lane.b32.xlu0 %v14535_v63, %s13778_s27 }
0x1c99   :  { %4924 = vrot.lane.b32.xlu0 %v14535_v63, %s13779_s28 }
0x1c9d   :  { %5097 = vrot.lane.b32.xlu0 %v14535_v63, %s13780_s1 }
0x1ca1   :  { %5269 = vrot.lane.b32.xlu0 %v14535_v63, %s13782_s7 }
0x1cf7   :  { %v4081_v3 = vpop.permute.xlu0 %4080 }
0x1cf8   :  { %12358 = vmatpush3.xpose.msk.msra.mxu1 %vm315_vm2, %v4081_v3 }
0x1cf9   :  { %12362 = vmatprep.subr.mxu1 %v13775_v0 }
0x1cfb   :  { %12360 = vmatmul.mubr.msk.f32.vlgmr.msra.gmra.mrb[48].mxu1 %vm315_vm2, %v4069_v60  ;;  %v4244_v22 = vpop.permute.xlu0 %4243 }
0x1cfc   :  { %12363 = vmatpush3.msra.mxu1 %v14553_v4  ;;  %12364 = vmatprep.mubr.msk.f32.mxu1 %vm13776_vm1, %v13775_v0 }
0x1cfd   :  { %12367 = vmatprep.subr.mxu1 %v13775_v0 }
0x1cff   :  { %v4419_v29 = vpop.permute.xlu0 %4418 }
0x1d03   :  { %v4591_v25 = vpop.permute.xlu0 %4590 }
0x1d07   :  { %v4762_v18 = vpop.permute.xlu0 %4761 }
0x1d0b   :  { %v4925_v38 = vpop.permute.xlu0 %4924 }
0x1d0f   :  { %v5098_v30 = vpop.permute.xlu0 %5097 }
0x1d13   :  { %v5270_v41 = vpop.permute.xlu0 %5269 }
0x1d4c   :  { %v14560_v5 = vpop.f32.mrb[38].mxu0 }
0x1d4d   :  { %v14562_v7 = vpop.f32.mrb[39].mxu0 }
0x1dce   :  { %v4152_v8 = vpop.f32.mrb[48].mxu1 }
0x1dcf   :  { %v4156_v10 = vmul.f32 0.25, %v4152_v8  ;;  %v12361_v11 = vpop.f32.mrb[49].mxu1 }
0x1dd1   :  { %v4157_v12 = vadd.f32 %v4156_v10, %v14565_v9 }
0x1dd3   :  { %v4158_v13 = vsel %vm391_vm3, %v4157_v12, -inf }
0x1dd4   :  { %4159 = vmax.xlane.f32.xlu1 %v4158_v13 }
0x1de5   :  { %4245 = vrot.lane.b32.xlu1 %v4069_v60, %s13777_s13 }
0x1e61   :  { %v4160_v14 = vpop.xlane.xlu1 %4159 }
0x1e62   :  { %v4161_v15 = vsub.f32 %v4157_v12, %v4160_v14 }
0x1e64   :  { %v4162_v16 = vmul.f32 1.442695, %v4161_v15 }
0x1e65   :  { %v4246_v20 = vpop.permute.xlu1 %4245 }
0x1e66   :  { %13517 = vpow2.f32 %v4162_v16 }
0x1e70   :  { %v13518_v17 = vpop.eup %13517 }
0x1e71   :  { %v4164_v19 = vsel %vm391_vm3, %v13518_v17, 0.0 }
0x1e72   :  { %4165 = vadd.xlane.f32.xlu1 %v4164_v19 }
0x1e83   :  { %4416 = vrot.lane.b32.xlu1 %v4069_v60, %s13780_s1 }
0x1e87   :  { %4588 = vrot.lane.b32.xlu1 %v4069_v60, %s13782_s7 }
0x1e8b   :  { %4926 = vrot.lane.b32.xlu1 %v14535_v63, %s13777_s13 }
0x1e8f   :  { %5099 = vrot.lane.b32.xlu1 %v14535_v63, %s13781_s2 }
0x1e93   :  { %5271 = vrot.lane.b32.xlu1 %v14535_v63, %s13772_s0 }
0x1eff   :  { %v4166_v21 = vpop.xlane.xlu1 %4165 }
0x1f00   :  { %13519 = vrcp.f32 %v4166_v21 }
0x1f03   :  { %v4417_v27 = vpop.permute.xlu1 %4416 }
0x1f07   :  { %v4589_v33 = vpop.permute.xlu1 %4588 }
0x1f0a   :  { %v13520_v23 = vpop.eup %13519 }
0x1f0b   :  { %v4168_v26 = vmul.f32 %v13520_v23, %v13518_v17  ;;  %v4927_v36 = vpop.permute.xlu1 %4926 }
0x1f0d   :  { %12365 = vmatmul.mubr.msk.f32.vlgmr.msra.gmra.mrb[50].mxu1 %vm391_vm3, %v4168_v26 }
0x1f0e   :  { %12368 = vmatpush3.xpose.msk.msra.mxu1 %vm315_vm2, %v4246_v20  ;;  %12369 = vmatprep.mubr.msk.f32.mxu1 %vm13776_vm1, %v13775_v0 }
0x1f0f   :  { %12377 = vmatprep.subr.mxu1 %v13775_v0  ;;  %v5100_v37 = vpop.permute.xlu1 %5099 }
0x1f11   :  { %12370 = vmatmul.mubr.msk.f32.vlgmr.msra.gmra.mrb[52].mxu1 %vm315_vm2, %v4244_v22 }
0x1f12   :  { %12378 = vmatpush3.xpose.msk.msra.mxu1 %vm315_vm2, %v4419_v29  ;;  %12379 = vmatprep.mubr.msk.f32.mxu1 %vm13776_vm1, %v13775_v0 }
0x1f13   :  { %12387 = vmatprep.subr.mxu1 %v13775_v0  ;;  %v5272_v40 = vpop.permute.xlu1 %5271 }
0x1f15   :  { %12380 = vmatmul.mubr.msk.f32.vlgmr.msra.gmra.mrb[54].mxu1 %vm315_vm2, %v4417_v27 }
0x1f16   :  { %12388 = vmatpush3.xpose.msk.msra.mxu1 %vm315_vm2, %v4591_v25  ;;  %12389 = vmatprep.mubr.msk.f32.mxu1 %vm13776_vm1, %v13775_v0 }
0x1f17   :  { %12397 = vmatprep.subr.mxu1 %v13775_v0 }
0x1f19   :  { %12390 = vmatmul.mubr.msk.f32.vlgmr.msra.gmra.mrb[56].mxu1 %vm315_vm2, %v4589_v33 }
0x1f1a   :  { %12398 = vmatpush3.xpose.msk.msra.mxu1 %vm315_vm2, %v4762_v18  ;;  %12399 = vmatprep.mubr.msk.f32.mxu1 %vm13776_vm1, %v13775_v0 }
0x1f1b   :  { %12407 = vmatprep.subr.mxu1 %v13775_v0 }
0x1f1d   :  { %12400 = vmatmul.mubr.msk.f32.vlgmr.msra.gmra.mrb[58].mxu1 %vm315_vm2, %v14535_v63 }
0x1f1e   :  { %12408 = vmatpush3.xpose.msk.msra.mxu1 %vm315_vm2, %v4927_v36  ;;  %12409 = vmatprep.mubr.msk.f32.mxu1 %vm13776_vm1, %v13775_v0 }
0x1f1f   :  { %12417 = vmatprep.subr.mxu1 %v13775_v0 }
0x1f21   :  { %12410 = vmatmul.mubr.msk.f32.vlgmr.msra.gmra.mrb[60].mxu1 %vm315_vm2, %v4925_v38 }
0x1f22   :  { %12418 = vmatpush3.xpose.msk.msra.mxu1 %vm315_vm2, %v5100_v37  ;;  %12419 = vmatprep.mubr.msk.f32.mxu1 %vm13776_vm1, %v13775_v0 }
0x1f23   :  { %12427 = vmatprep.subr.mxu1 %v13775_v0 }
0x1f25   :  { %12420 = vmatmul.mubr.msk.f32.vlgmr.msra.gmra.mrb[62].mxu1 %vm315_vm2, %v5098_v30 }
0x1f26   :  { %12428 = vmatpush3.xpose.msk.msra.mxu1 %vm315_vm2, %v5272_v40  ;;  %12429 = vmatprep.mubr.msk.f32.mxu1 %vm13776_vm1, %v13775_v0 }
0x1f29   :  { %12430 = vmatmul.mubr.msk.f32.vlgmr.msra.gmra.mrb[64].mxu1 %vm315_vm2, %v5270_v41 }
0x1fe0   :  { %v4238_v42 = vpop.f32.mrb[50].mxu1 }
0x1fe1   :  { %4242 = vst.msk [vmem:[#allocation2] sm:$0xff] %vm315_vm2, %v4238_v42  ;;  %v12366_v43 = vpop.f32.mrb[51].mxu1 }
0x1fe4   :  { %v4317_v24 = vpop.f32.mrb[52].mxu1 }
0x1fe5   :  { %v4321_v39 = vmul.f32 0.25, %v4317_v24  ;;  %v12371_v35 = vpop.f32.mrb[53].mxu1 }
0x1fe7   :  { %v4322_v44 = vadd.f32 %v4321_v39, %v14565_v9 }
0x1fe8   :  { %v4490_v45 = vpop.f32.mrb[54].mxu1 }
0x1fe9   :  { %v4494_v47 = vmul.f32 0.25, %v4490_v45  ;;  %v12381_v48 = vpop.f32.mrb[55].mxu1  ;;  %v4323_v49 = vsel %vm391_vm3, %v4322_v44, -inf }
0x1fea   :  { %4324 = vmax.xlane.f32.xlu1 %v4323_v49 }
0x1feb   :  { %v4495_v51 = vadd.f32 %v4494_v47, %v14565_v9 }
0x1fec   :  { %v4662_v52 = vpop.f32.mrb[56].mxu1 }
0x1fed   :  { %v4666_v53 = vmul.f32 0.25, %v4662_v52  ;;  %v12391_v6 = vpop.f32.mrb[57].mxu1  ;;  %v4496_v54 = vsel %vm391_vm3, %v4495_v51, -inf }
0x1fee   :  { %4497 = vmax.xlane.f32.xlu0 %v4496_v54 }
0x1fef   :  { %v4667_v55 = vadd.f32 %v4666_v53, %v14565_v9 }
0x1ff0   :  { %v4833_v56 = vpop.f32.mrb[58].mxu1 }
0x1ff1   :  { %v4837_v57 = vmul.f32 0.25, %v4833_v56  ;;  %v12401_v58 = vpop.f32.mrb[59].mxu1  ;;  %v4668_v59 = vsel %vm391_vm3, %v4667_v55, -inf }
0x1ff2   :  { %4669 = vmax.xlane.f32.xlu0 %v4668_v59 }
0x1ff3   :  { %v4838_v60 = vadd.f32 %v4837_v57, %v14565_v9 }
0x1ff4   :  { %v4998_v61 = vpop.f32.mrb[60].mxu1 }
0x1ff5   :  { %v5002_v62 = vmul.f32 0.25, %v4998_v61  ;;  %v12411_v63 = vpop.f32.mrb[61].mxu1  ;;  %v4839_v3 = vsel %vm391_vm3, %v4838_v60, -inf }
0x1ff6   :  { %4840 = vmax.xlane.f32.xlu1 %v4839_v3 }
0x1ff7   :  { %v5003_v8 = vadd.f32 %v5002_v62, %v14565_v9 }
0x1ff8   :  { %v5171_v10 = vpop.f32.mrb[62].mxu1 }
0x1ff9   :  { %v5175_v11 = vmul.f32 0.25, %v5171_v10  ;;  %v12421_v12 = vpop.f32.mrb[63].mxu1  ;;  %v5004_v13 = vsel %vm391_vm3, %v5003_v8, -inf }
0x1ffa   :  { %5005 = vmax.xlane.f32.xlu0 %v5004_v13 }
0x1ffb   :  { %v5176_v14 = vadd.f32 %v5175_v11, %v14565_v9 }
0x1ffc   :  { %v5343_v15 = vpop.f32.mrb[64].mxu1 }
0x1ffd   :  { %v5347_v16 = vmul.f32 0.25, %v5343_v15  ;;  %v12431_v17 = vpop.f32.mrb[65].mxu1  ;;  %v5177_v19 = vsel %vm391_vm3, %v5176_v14, -inf }
0x1ffe   :  { %5178 = vmax.xlane.f32.xlu1 %v5177_v19 }
0x1fff   :  { %v5348_v20 = vadd.f32 %v5347_v16, %v14565_v9 }
0x2001   :  { %v5349_v21 = vsel %vm391_vm3, %v5348_v20, -inf }
0x2002   :  { %5350 = vmax.xlane.f32.xlu0 %v5349_v21 }
0x200f   :  { %4507 = vrot.lane.b32.xlu1 %v14553_v4, %s13780_s1 }
0x2013   :  { %4679 = vrot.lane.b32.xlu1 %v14553_v4, %s13782_s7 }
0x2018   :  { %4335 = vrot.lane.b32.xlu0 %v14553_v4, %s13779_s28 }
0x2077   :  { %v4325_v22 = vpop.xlane.xlu1 %4324 }
0x2078   :  { %v4326_v23 = vsub.f32 %v4322_v44, %v4325_v22 }
0x207a   :  { %v4327_v26 = vmul.f32 1.442695, %v4326_v23 }
0x207b   :  { %v4498_v29 = vpop.xlane.xlu0 %4497 }
0x207c   :  { %13521 = vpow2.f32 %v4327_v26  ;;  %v4499_v27 = vsub.f32 %v4495_v51, %v4498_v29 }
0x207e   :  { %v4500_v25 = vmul.f32 1.442695, %v4499_v27 }
0x207f   :  { %v4670_v9 = vpop.xlane.xlu0 %4669 }
0x2080   :  { %13523 = vpow2.f32 %v4500_v25  ;;  %v4671_v33 = vsub.f32 %v4667_v55, %v4670_v9  ;;  %v4077_v55 = vadd.f32 %v14537_v1, %v14548_v2 }
0x2082   :  { %v4672_v18 = vmul.f32 1.442695, %v4671_v33 }
0x2083   :  { %v4841_v36 = vpop.xlane.xlu1 %4840 }
0x2084   :  { %13525 = vpow2.f32 %v4672_v18  ;;  %v4842_v38 = vsub.f32 %v4838_v60, %v4841_v36 }
0x2086   :  { %v13522_v37 = vpop.eup %13521  ;;  %v4843_v30 = vmul.f32 1.442695, %v4842_v38 }
0x2087   :  { %v5006_v40 = vpop.xlane.xlu0 %5005  ;;  %v4329_v41 = vsel %vm391_vm3, %v13522_v37, 0.0 }
0x2088   :  { %13527 = vpow2.f32 %v4843_v30  ;;  %v5007_v4 = vsub.f32 %v5003_v8, %v5006_v40  ;;  %4330 = vadd.xlane.f32.xlu1 %v4329_v41  ;;  %v5444_v30 = vld [vmem:[%s15515_s3 + $0x8] sm:$0xff] }
0x208a   :  { %v13524_v42 = vpop.eup %13523  ;;  %v5008_v43 = vmul.f32 1.442695, %v5007_v4 }
0x208b   :  { %v4502_v24 = vsel %vm391_vm3, %v13524_v42, 0.0  ;;  %v5179_v56 = vpop.xlane.xlu1 %5178 }
0x208c   :  { %13529 = vpow2.f32 %v5008_v43  ;;  %4503 = vadd.xlane.f32.xlu0 %v4502_v24  ;;  %v5180_v57 = vsub.f32 %v5176_v14, %v5179_v56 }
0x208e   :  { %v13526_v39 = vpop.eup %13525  ;;  %v5181_v58 = vmul.f32 1.442695, %v5180_v57 }
0x208f   :  { %v5351_v35 = vpop.xlane.xlu0 %5350  ;;  %v4674_v44 = vsel %vm391_vm3, %v13526_v39, 0.0  ;;  %v4508_v61 = vpop.permute.xlu1 %4507 }
0x2090   :  { %v5352_v45 = vsub.f32 %v5348_v20, %v5351_v35  ;;  %4675 = vadd.xlane.f32.xlu1 %v4674_v44  ;;  %v5445_v44 = vld [vmem:[%s15515_s3 + $0x10] sm:$0xff] }
0x2092   :  { %v13528_v47 = vpop.eup %13527  ;;  %v5353_v48 = vmul.f32 1.442695, %v5352_v45  ;;  %v5446_v45 = vld [vmem:[%s15515_s3 + $0x18] sm:$0xff] }
0x2093   :  { %v4336_v49 = vpop.permute.xlu0 %4335  ;;  %v4845_v51 = vsel %vm391_vm3, %v13528_v47, 0.0  ;;  %v4680_v62 = vpop.permute.xlu1 %4679 }
0x2094   :  { %13531 = vpow2.f32 %v5353_v48  ;;  %4846 = vadd.xlane.f32.xlu0 %v4845_v51  ;;  %12373 = vmatpush3.msra.mxu0 %v4336_v49  ;;  %v5447_v48 = vld [vmem:[%s15515_s3 + $0x20] sm:$0xff]  ;;  %v5448_v49 = vld [vmem:[%s15515_s3 + $0x28] sm:$0xff] }
0x2095   :  { %12382 = vmatprep.subr.mxu0 %v13775_v0  ;;  %13533 = vpow2.f32 %v5181_v58  ;;  %v13140_v51 = vpack.c.bf16 %v5448_v49, %v5447_v48  ;;  %v11398_v58 = vld [vmem:[%s13851_s30 + $0x1] ss:$0 sm:$0xff]  ;;  %s15520_s30 = sld [smem:[#allocation31_spill]] }
0x2096   :  { %v13530_v52 = vpop.eup %13529 }
0x2097   :  { %v5010_v53 = vsel %vm391_vm3, %v13530_v52, 0.0 }
0x2098   :  { %5011 = vadd.xlane.f32.xlu1 %v5010_v53  ;;  %v5450_v53 = vld [vmem:[%s15515_s3 + $0x38] sm:$0xff] }
0x209e   :  { %v14642_v6 = vpop.eup %13531 }
0x209f   :  { %v5355_v54 = vsel %vm391_vm3, %v14642_v6, 0.0  ;;  %v13534_v59 = vpop.eup %13533 }
0x20a0   :  { %5356 = vadd.xlane.f32.xlu1 %v5355_v54  ;;  %v5183_v60 = vsel %vm391_vm3, %v13534_v59, 0.0 }
0x20aa   :  { %5016 = vrot.lane.b32.xlu0 %v4077_v55, %s13779_s28 }
0x20b1   :  { %5188 = vrot.lane.b32.xlu1 %v4077_v55, %s13780_s1 }
0x20c9   :  { %5184 = vadd.xlane.f32.xlu0 %v5183_v60  ;;  %v3865_v60 = vadd.f32 %v11398_v58, %v14562_v7 }
0x20df   :  { %5360 = vrot.lane.b32.xlu0 %v4077_v55, %s13782_s7 }
0x2115   :  { %v4331_v63 = vpop.xlane.xlu1 %4330 }
0x2116   :  { %13535 = vrcp.f32 %v4331_v63 }
0x2119   :  { %v4504_v3 = vpop.xlane.xlu0 %4503 }
0x211a   :  { %13537 = vrcp.f32 %v4504_v3 }
0x211d   :  { %v4676_v1 = vpop.xlane.xlu1 %4675 }
0x211e   :  { %13539 = vrcp.f32 %v4676_v1 }
0x2120   :  { %v13536_v2 = vpop.eup %13535 }
0x2121   :  { %v4847_v8 = vpop.xlane.xlu0 %4846  ;;  %v4333_v10 = vmul.f32 %v13536_v2, %v13522_v37  ;;  %v5443_v37 = vld [vmem:[%s15515_s3] sm:$0xff] }
0x2122   :  { %13541 = vrcp.f32 %v4847_v8  ;;  %v13132_v41 = vpack.c.bf16 %v5444_v30, %v5443_v37 }
0x2123   :  { %12375 = vmatmul.mubr.msk.f32.vlgmr.msra.gmra.mrb[40].mxu0 %vm391_vm3, %v4333_v10 }
0x2124   :  { %v13538_v11 = vpop.eup %13537  ;;  %12383 = vmatpush3.msra.mxu0 %v4508_v61  ;;  %12384 = vmatprep.mubr.msk.f32.mxu0 %vm13776_vm1, %v13775_v0 }
0x2125   :  { %v5012_v12 = vpop.xlane.xlu1 %5011  ;;  %12392 = vmatprep.subr.mxu0 %v13775_v0  ;;  %v4506_v13 = vmul.f32 %v13538_v11, %v13524_v42  ;;  %v5017_v20 = vpop.permute.xlu0 %5016  ;;  %13133 = vmatprep.subr.bf16.mxu1 %v13132_v41 }
0x2126   :  { %13543 = vrcp.f32 %v5012_v12  ;;  %13135 = vmatpush3.bf16.msra.mxu1 %v13132_v41 }
0x2127   :  { %12385 = vmatmul.mubr.msk.f32.vlgmr.msra.gmra.mrb[42].mxu0 %vm391_vm3, %v4506_v13 }
0x2128   :  { %v13540_v14 = vpop.eup %13539  ;;  %12393 = vmatpush3.msra.mxu0 %v4680_v62  ;;  %12394 = vmatprep.mubr.msk.f32.mxu0 %vm13776_vm1, %v13775_v0  ;;  %v3873_v62 = vadd.f32 %v3865_v60, %v14490_v31 }
0x2129   :  { %12402 = vmatprep.subr.mxu0 %v13775_v0  ;;  %v4678_v15 = vmul.f32 %v13540_v14, %v13526_v39 }
0x212a   :  { %v3879_v3 = vsel %vm228_vm0, %v3873_v62, 0.0 }
0x212b   :  { %12395 = vmatmul.mubr.msk.f32.vlgmr.msra.gmra.mrb[44].mxu0 %vm391_vm3, %v4678_v15 }
0x212c   :  { %v13542_v16 = vpop.eup %13541  ;;  %12403 = vmatpush3.msra.mxu0 %v4077_v55  ;;  %12404 = vmatprep.mubr.msk.f32.mxu0 %vm13776_vm1, %v13775_v0 }
0x212d   :  { %v5357_v17 = vpop.xlane.xlu1 %5356  ;;  %12412 = vmatprep.subr.mxu0 %v13775_v0  ;;  %v4849_v19 = vmul.f32 %v13542_v16, %v13528_v47  ;;  %v13136_v47 = vpack.c.bf16 %v5446_v45, %v5445_v44 }
0x212f   :  { %12405 = vmatmul.mubr.msk.f32.vlgmr.msra.gmra.mrb[46].mxu0 %vm391_vm3, %v4849_v19  ;;  %13137 = vmatprep.subr.bf16.mxu1 %v13136_v47 }
0x2130   :  { %v13544_v21 = vpop.eup %13543  ;;  %12413 = vmatpush3.msra.mxu0 %v5017_v20  ;;  %12414 = vmatprep.mubr.msk.f32.mxu0 %vm13776_vm1, %v13775_v0 }
0x2131   :  { %v5189_v22 = vpop.permute.xlu1 %5188  ;;  %12422 = vmatprep.subr.mxu0 %v13775_v0  ;;  %v5014_v23 = vmul.f32 %v13544_v21, %v13530_v52  ;;  %13139 = vmatpush3.bf16.msra.mxu1 %v13136_v47  ;;  %v5449_v52 = vld [vmem:[%s15515_s3 + $0x30] sm:$0xff] }
0x2132   :  { %13141 = vmatprep.subr.bf16.mxu1 %v13140_v51 }
0x2133   :  { %12415 = vmatmul.mubr.msk.f32.vlgmr.msra.gmra.mrb[48].mxu0 %vm391_vm3, %v5014_v23 }
0x2134   :  { %12423 = vmatpush3.msra.mxu0 %v5189_v22  ;;  %12424 = vmatprep.mubr.msk.f32.mxu0 %vm13776_vm1, %v13775_v0 }
0x2135   :  { %12432 = vmatprep.subr.mxu0 %v13775_v0  ;;  %13143 = vmatpush3.bf16.msra.mxu1 %v13140_v51 }
0x2156   :  { %v5185_v26 = vpop.xlane.xlu0 %5184 }
0x2157   :  { %13545 = vrcp.f32 %v5185_v26 }
0x2158   :  { %13547 = vrcp.f32 %v5357_v17 }
0x215a   :  { %v5361_v9 = vpop.permute.xlu0 %5360 }
0x2161   :  { %v13546_v29 = vpop.eup %13545 }
0x2162   :  { %v5187_v27 = vmul.f32 %v13546_v29, %v13534_v59  ;;  %v13548_v25 = vpop.eup %13547  ;;  %v3870_v59 = vadd.f32 %v14560_v5, %v11398_v58 }
0x2163   :  { %v5359_v33 = vmul.f32 %v13548_v25, %v14642_v6  ;;  %v13144_v6 = vpack.c.bf16 %v5450_v53, %v5449_v52 }
0x2164   :  { %12425 = vmatmul.mubr.msk.f32.vlgmr.msra.gmra.mrb[50].mxu0 %vm391_vm3, %v5187_v27  ;;  %v3874_v61 = vadd.f32 %v3870_v59, %v14492_v32 }
0x2165   :  { %12433 = vmatpush3.msra.mxu0 %v5361_v9  ;;  %12434 = vmatprep.mubr.msk.f32.mxu0 %vm13776_vm1, %v13775_v0 }
0x2166   :  { %13145 = vmatprep.subr.bf16.mxu1 %v13144_v6  ;;  %v3882_v63 = vsel %vm228_vm0, %v3874_v61, 0.0 }
0x2167   :  { %13147 = vmatpush3.bf16.msra.mxu1 %v13144_v6 }
0x2168   :  { %12435 = vmatmul.mubr.msk.f32.vlgmr.msra.gmra.mrb[52].mxu0 %vm391_vm3, %v5359_v33 }
0x21f6   :  { %v4407_v18 = vpop.f32.mrb[40].mxu0 }
0x21f7   :  { %4412 = vrot.lane.b32.xlu1 %v4407_v18, %s13772_s0  ;;  %v12376_v36 = vpop.f32.mrb[41].mxu0 }
0x21f8   :  { %v11431_v36 = vld [vmem:[%s15516_s8] ss:$0 sm:$0xff] }
0x21fa   :  { %v4579_v38 = vpop.f32.mrb[42].mxu0 }
0x21fb   :  { %4584 = vrot.lane.b32.xlu0 %v4579_v38, %s13781_s2  ;;  %v12386_v40 = vpop.f32.mrb[43].mxu0  ;;  %v11401_v38 = vld [vmem:[%s13856_s6 + $0x1] ss:$0 sm:$0xff]  ;;  %s15521_s6 = sld [smem:[#allocation16_spill]] }
0x21fc   :  { %v11402_v40 = vld [vmem:[%s15510_s5 + $0x1] ss:$0 sm:$0xff]  ;;  %s15530_s5 = sld [smem:[#allocation25_spill]] }
0x21fe   :  { %v4751_v4 = vpop.f32.mrb[44].mxu0 }
0x21ff   :  { %4756 = vrot.lane.b32.xlu0 %v4751_v4, %s13777_s13  ;;  %v12396_v42 = vpop.f32.mrb[45].mxu0 }
0x2202   :  { %v4919_v43 = vpop.f32.mrb[46].mxu0 }
0x2203   :  { %4923 = vst.msk [vmem:[#allocation2 + $0x8] sm:$0xff] %vm315_vm2, %v4919_v43  ;;  %v12406_v24 = vpop.f32.mrb[47].mxu0 }
0x2206   :  { %v5088_v39 = vpop.f32.mrb[48].mxu0 }
0x2207   :  { %5093 = vrot.lane.b32.xlu1 %v5088_v39, %s13772_s0  ;;  %v12416_v35 = vpop.f32.mrb[49].mxu0 }
0x2237   :  { %v5260_v54 = vpop.f32.mrb[50].mxu0 }
0x2238   :  { %5265 = vrot.lane.b32.xlu1 %v5260_v54, %s13781_s2  ;;  %v12426_v55 = vpop.f32.mrb[51].mxu0 }
0x223b   :  { %v5432_v56 = vpop.f32.mrb[52].mxu0 }
0x223c   :  { %5437 = vrot.lane.b32.xlu0 %v5432_v56, %s13777_s13  ;;  %v12436_v57 = vpop.f32.mrb[53].mxu0 }
0x225b   :  { %3883 = vadd.xlane.f32.xlu0 %v3882_v63 }
0x225c   :  { %3880 = vadd.xlane.f32.xlu1 %v3879_v3 }
0x2269   :  { %v4413_v1 = vpop.permute.xlu1 %4412 }
0x226a   :  { %4415 = vst.msk [vmem:[#allocation2] sm:$0xff] %vm648_vm4, %v4413_v1 }
0x226d   :  { %v4585_v2 = vpop.permute.xlu0 %4584 }
0x226e   :  { %4587 = vst.msk [vmem:[#allocation2] sm:$0xff] %vm820_vm5, %v4585_v2 }
0x2271   :  { %v4757_v8 = vpop.permute.xlu0 %4756 }
0x2272   :  { %4759 = vst.msk [vmem:[#allocation2] sm:$0xff] %vm992_vm6, %v4757_v8 }
0x2279   :  { %v5094_v5 = vpop.permute.xlu1 %5093  ;;  %v5441_v7 = vld [vmem:[#allocation2] sm:$0xff] }
0x227a   :  { %5096 = vst.msk [vmem:[#allocation2 + $0x8] sm:$0xff] %vm648_vm4, %v5094_v5  ;;  %12453 = vmatprep.mubr.msk.f32.mxu1 %vm228_vm0, %v5441_v7  ;;  %v5681_v7 = vld [vmem:[%s15517_s14] sm:$0xff] }
0x22aa   :  { %v5266_v31 = vpop.permute.xlu1 %5265 }
0x22ab   :  { %5268 = vst.msk [vmem:[#allocation2 + $0x8] sm:$0xff] %vm820_vm5, %v5266_v31  ;;  %v5682_v31 = vld [vmem:[%s15517_s14 + $0x8] sm:$0xff] }
0x22ae   :  { %v5438_v32 = vpop.permute.xlu0 %5437 }
0x22af   :  { %5440 = vst.msk [vmem:[#allocation2 + $0x8] sm:$0xff] %vm992_vm6, %v5438_v32  ;;  %v13164_v32 = vpack.c.bf16 %v5682_v31, %v5681_v7  ;;  %v11436_v7 = vld [vmem:[%s15524_s15] ss:$0 sm:$0xff] }
0x22b1   :  { %13165 = vmatprep.subr.bf16.mxu1 %v13164_v32 }
0x22b6   :  { %v5442_v10 = vld [vmem:[#allocation2 + $0x8] sm:$0xff] }
0x22b7   :  { %12454 = vmatmul.mubr.msk.f32.vlgmr.msra.gmra.mrb[66].mxu1 %vm228_vm0, %v5442_v10  ;;  %v5585_v10 = vld [vmem:[%s15518_s19] sm:$0xff] }
0x22b8   :  { %13167 = vmatpush3.bf16.msra.mxu1 %v13164_v32 }
0x22e8   :  { %v3884_v11 = vpop.xlane.xlu0 %3883 }
0x22e9   :  { %v3886_v12 = vmul.f32 0.015625, %v3884_v11  ;;  %v3881_v13 = vpop.xlane.xlu1 %3880  ;;  %v5586_v11 = vld [vmem:[%s15518_s19 + $0x8] sm:$0xff] }
0x22ea   :  { %v3885_v14 = vmul.f32 0.015625, %v3881_v13  ;;  %v13148_v13 = vpack.c.bf16 %v5586_v11, %v5585_v10 }
0x22eb   :  { %v3888_v15 = vsub.f32 %v3874_v61, %v3886_v12  ;;  %v5683_v12 = vld [vmem:[%s15517_s14 + $0x10] sm:$0xff] }
0x22ec   :  { %v3887_v16 = vsub.f32 %v3873_v62, %v3885_v14  ;;  %v5684_v14 = vld [vmem:[%s15517_s14 + $0x18] sm:$0xff]  ;;  %13149 = vmatprep.subr.bf16.mxu0 %v13148_v13 }
0x22ed   :  { %v3890_v17 = vmul.f32 %v3888_v15, %v3888_v15  ;;  %13151 = vmatpush3.bf16.msra.mxu0 %v13148_v13 }
0x22ee   :  { %v3889_v19 = vmul.f32 %v3887_v16, %v3887_v16 }
0x22ef   :  { %v3894_v20 = vsel %vm228_vm0, %v3890_v17, 0.0  ;;  %v13168_v17 = vpack.c.bf16 %v5684_v14, %v5683_v12 }
0x22f0   :  { %3895 = vadd.xlane.f32.xlu1 %v3894_v20  ;;  %v3891_v21 = vsel %vm228_vm0, %v3889_v19, 0.0  ;;  %v5685_v20 = vld [vmem:[%s15517_s14 + $0x20] sm:$0xff] }
0x22f1   :  { %3892 = vadd.xlane.f32.xlu0 %v3891_v21  ;;  %v5686_v21 = vld [vmem:[%s15517_s14 + $0x28] sm:$0xff]  ;;  %13169 = vmatprep.subr.bf16.mxu1 %v13168_v17 }
0x22f2   :  { %13171 = vmatpush3.bf16.msra.mxu1 %v13168_v17 }
0x237d   :  { %v3896_v22 = vpop.xlane.xlu1 %3895 }
0x237e   :  { %v3898_v23 = vmul.f32 0.015625, %v3896_v22  ;;  %v3893_v26 = vpop.xlane.xlu0 %3892  ;;  %v5589_v22 = vld [vmem:[%s15518_s19 + $0x20] sm:$0xff] }
0x237f   :  { %v3897_v29 = vmul.f32 0.015625, %v3893_v26  ;;  %v5590_v26 = vld [vmem:[%s15518_s19 + $0x28] sm:$0xff] }
0x2380   :  { %v3900_v27 = vadd.f32 1e-05, %v3898_v23  ;;  %v13172_v23 = vpack.c.bf16 %v5686_v21, %v5685_v20 }
0x2381   :  { %v3899_v25 = vadd.f32 1e-05, %v3897_v29  ;;  %v5687_v29 = vld [vmem:[%s15517_s14 + $0x30] sm:$0xff] }
0x2382   :  { %13549 = vrsqrt.f32 %v3900_v27  ;;  %v5688_v27 = vld [vmem:[%s15517_s14 + $0x38] sm:$0xff]  ;;  %13173 = vmatprep.subr.bf16.mxu1 %v13172_v23 }
0x2383   :  { %13551 = vrsqrt.f32 %v3899_v25  ;;  %v13156_v25 = vpack.c.bf16 %v5590_v26, %v5589_v22  ;;  %13175 = vmatpush3.bf16.msra.mxu1 %v13172_v23 }
0x238a   :  { %v12455_v9 = vpop.f32.mrb[66].mxu1 }
0x238b   :  { %v5530_v33 = vpop.f32.mrb[67].mxu1  ;;  %v5536_v4 = vadd.f32 %v12455_v9, %v11431_v36  ;;  %v13176_v9 = vpack.c.bf16 %v5688_v27, %v5687_v29 }
0x238c   :  { %v13550_v18 = vpop.eup %13549  ;;  %v5531_v43 = vadd.f32 %v11431_v36, %v5530_v33  ;;  %v5591_v33 = vld [vmem:[%s15518_s19 + $0x30] sm:$0xff] }
0x238d   :  { %v13552_v37 = vpop.eup %13551  ;;  %v3904_v30 = vmul.f32 %v13550_v18, %v3888_v15  ;;  %v5540_v44 = vadd.f32 %v5536_v4, %v14520_v50  ;;  %v5587_v15 = vld [vmem:[%s15518_s19 + $0x10] sm:$0xff]  ;;  %13177 = vmatprep.subr.bf16.mxu1 %v13176_v9  ;;  %v5592_v18 = vld [vmem:[%s15518_s19 + $0x38] sm:$0xff] }
0x238e   :  { %v3903_v41 = vmul.f32 %v13552_v37, %v3887_v16  ;;  %v5539_v47 = vadd.f32 %v5531_v43, %v14510_v46  ;;  %v5588_v16 = vld [vmem:[%s15518_s19 + $0x18] sm:$0xff]  ;;  %13179 = vmatpush3.bf16.msra.mxu1 %v13176_v9  ;;  %v13160_v36 = vpack.c.bf16 %v5592_v18, %v5591_v33 }
0x238f   :  { %v3912_v42 = vmul.f32 %v11401_v38, %v3904_v30  ;;  %v5546_v49 = vsel %vm228_vm0, %v5540_v44, 0.0  ;;  %v13152_v19 = vpack.c.bf16 %v5588_v16, %v5587_v15  ;;  %12514 = vmatprep.subr.mxu1 %v13775_v0 }
0x2390   :  { %v3911_v24 = vmul.f32 %v11401_v38, %v3903_v41  ;;  %v5543_v51 = vsel %vm228_vm0, %v5539_v47, 0.0 }
0x2391   :  { %v3920_v39 = vadd.f32 %v11402_v40, %v3912_v42  ;;  %13153 = vmatprep.subr.bf16.mxu0 %v13152_v19 }
0x2392   :  { %v3919_v35 = vadd.f32 %v11402_v40, %v3911_v24  ;;  %13155 = vmatpush3.bf16.msra.mxu0 %v13152_v19 }
0x2393   :  { %v3926_v45 = vsel %vm228_vm0, %v3920_v39, 0.0  ;;  %13157 = vmatprep.subr.bf16.mxu0 %v13156_v25 }
0x2394   :  { %3927 = vadd.xlane.f32.xlu1 %v3926_v45  ;;  %v3923_v48 = vsel %vm228_vm0, %v3919_v35, 0.0 }
0x2395   :  { %3924 = vadd.xlane.f32.xlu0 %v3923_v48 }
0x2396   :  { %13159 = vmatpush3.bf16.msra.mxu0 %v13156_v25 }
0x2397   :  { %13161 = vmatprep.subr.bf16.mxu0 %v13160_v36 }
0x2398   :  { %5547 = vadd.xlane.f32.xlu1 %v5546_v49 }
0x2399   :  { %5544 = vadd.xlane.f32.xlu0 %v5543_v51 }
0x239a   :  { %13163 = vmatpush3.bf16.msra.mxu0 %v13160_v36 }
0x239b   :  { %12494 = vmatprep.subr.mxu0 %v13775_v0 }
0x2421   :  { %v3928_v52 = vpop.xlane.xlu1 %3927 }
0x2422   :  { %v3930_v53 = vmul.f32 0.015625, %v3928_v52  ;;  %v3925_v6 = vpop.xlane.xlu0 %3924  ;;  %v11404_v52 = vld [vmem:[%s15520_s30] ss:$0 sm:$0xff] }
0x2423   :  { %v3929_v54 = vmul.f32 0.015625, %v3925_v6 }
0x2424   :  { %v14718_v55 = vsub.f32 %v3920_v39, %v3930_v53 }
0x2425   :  { %v14720_v50 = vsub.f32 %v3919_v35, %v3929_v54  ;;  %v5548_v56 = vpop.xlane.xlu1 %5547 }
0x2426   :  { %v5550_v46 = vmul.f32 0.015625, %v5548_v56  ;;  %v5545_v57 = vpop.xlane.xlu0 %5544  ;;  %v3934_v58 = vmul.f32 %v14718_v55, %v14718_v55  ;;  %v11434_v56 = vld [vmem:[%s15521_s6] ss:$0 sm:$0xff] }
0x2427   :  { %v5549_v59 = vmul.f32 0.015625, %v5545_v57  ;;  %v3933_v60 = vmul.f32 %v14720_v50, %v14720_v50 }
0x2428   :  { %v14726_v61 = vsub.f32 %v5540_v44, %v5550_v46  ;;  %v3938_v62 = vsel %vm228_vm0, %v3934_v58, 0.0 }
0x2429   :  { %v14729_v63 = vsub.f32 %v5539_v47, %v5549_v59  ;;  %3939 = vadd.xlane.f32.xlu1 %v3938_v62  ;;  %v3935_v3 = vsel %vm228_vm0, %v3933_v60, 0.0  ;;  %v11403_v47 = vld [vmem:[%s15519_s24] ss:$0 sm:$0xff]  ;;  %s15532_s24 = sld [smem:[#allocation29_spill]] }
0x242a   :  { %3936 = vadd.xlane.f32.xlu0 %v3935_v3  ;;  %v5554_v1 = vmul.f32 %v14726_v61, %v14726_v61  ;;  %v11435_v62 = vld [vmem:[%s15522_s10] ss:$0 sm:$0xff] }
0x242b   :  { %v5553_v2 = vmul.f32 %v14729_v63, %v14729_v63 }
0x242c   :  { %v5558_v8 = vsel %vm228_vm0, %v5554_v1, 0.0 }
0x242d   :  { %5559 = vadd.xlane.f32.xlu1 %v5558_v8  ;;  %v5555_v5 = vsel %vm228_vm0, %v5553_v2, 0.0 }
0x242e   :  { %5556 = vadd.xlane.f32.xlu0 %v5555_v5 }
0x24b6   :  { %v3940_v38 = vpop.xlane.xlu1 %3939 }
0x24b7   :  { %v3942_v37 = vmul.f32 0.015625, %v3940_v38  ;;  %v3937_v30 = vpop.xlane.xlu0 %3936 }
0x24b8   :  { %v3941_v40 = vmul.f32 0.015625, %v3937_v30 }
0x24b9   :  { %v3944_v41 = vadd.f32 1e-05, %v3942_v37 }
0x24ba   :  { %v3943_v4 = vadd.f32 1e-05, %v3941_v40  ;;  %v5560_v42 = vpop.xlane.xlu1 %5559 }
0x24bb   :  { %13553 = vrsqrt.f32 %v3944_v41  ;;  %v5562_v43 = vmul.f32 0.015625, %v5560_v42  ;;  %v5557_v24 = vpop.xlane.xlu0 %5556 }
0x24bc   :  { %13555 = vrsqrt.f32 %v3943_v4  ;;  %v5561_v39 = vmul.f32 0.015625, %v5557_v24 }
0x24bd   :  { %v5564_v35 = vadd.f32 1e-05, %v5562_v43 }
0x24be   :  { %v5563_v44 = vadd.f32 1e-05, %v5561_v39 }
0x24bf   :  { %13557 = vrsqrt.f32 %v5564_v35 }
0x24c0   :  { %13559 = vrsqrt.f32 %v5563_v44 }
0x24c5   :  { %v13554_v45 = vpop.eup %13553 }
0x24c6   :  { %v13556_v48 = vpop.eup %13555  ;;  %v3948_v49 = vmul.f32 %v13554_v45, %v14718_v55 }
0x24c7   :  { %v3947_v51 = vmul.f32 %v13556_v48, %v14720_v50 }
0x24c8   :  { %v3956_v53 = vmul.f32 %v11403_v47, %v3948_v49 }
0x24c9   :  { %v13558_v6 = vpop.eup %13557  ;;  %v3955_v54 = vmul.f32 %v11403_v47, %v3947_v51 }
0x24ca   :  { %v13560_v46 = vpop.eup %13559  ;;  %v5568_v57 = vmul.f32 %v13558_v6, %v14726_v61  ;;  %v14765_v60 = vadd.f32 %v11404_v52, %v3956_v53 }
0x24cb   :  { %v14762_v58 = vadd.f32 %v11404_v52, %v3955_v54  ;;  %v5567_v59 = vmul.f32 %v13560_v46, %v14729_v63  ;;  %v11439_v63 = vld [vmem:[%s15523_s11] ss:$0 sm:$0xff] }
0x24cc   :  { %v5576_v55 = vmul.f32 %v11434_v56, %v5568_v57 }
0x24cd   :  { %12491 = vmatprep.mubr.msk.f32.mxu1 %vm228_vm0, %v14762_v58  ;;  %v5575_v50 = vmul.f32 %v11434_v56, %v5567_v59 }
0x24ce   :  { %12492 = vmatmul.mubr.msk.f32.vlgmr.msra.gmra.mrb[68].mxu1 %vm228_vm0, %v14765_v60  ;;  %v14776_v61 = vadd.f32 %v11435_v62, %v5576_v55 }
0x24cf   :  { %v14772_v3 = vadd.f32 %v11435_v62, %v5575_v50  ;;  %12516 = vmatprep.mubr.msk.f32.mxu1 %vm13776_vm1, %v13775_v0 }
0x24d1   :  { %12472 = vmatprep.mubr.msk.f32.mxu0 %vm228_vm0, %v14772_v3 }
0x24d2   :  { %12473 = vmatmul.mubr.msk.f32.vlgmr.msra.gmra.mrb[54].mxu0 %vm228_vm0, %v14776_v61 }
0x24d3   :  { %12496 = vmatprep.mubr.msk.f32.mxu0 %vm13776_vm1, %v13775_v0 }
0x25a1   :  { %v12493_v1 = vpop.f32.mrb[68].mxu1 }
0x25a2   :  { %v14785_v2 = vadd.f32 %v12493_v1, %v11439_v63  ;;  %v5768_v8 = vpop.f32.mrb[69].mxu1 }
0x25a3   :  { %v14787_v5 = vadd.f32 %v11439_v63, %v5768_v8 }
0x25a5   :  { %5944 = vrot.lane.b32.xlu1 %v14787_v5, %s13779_s28  ;;  %v12474_v31 = vpop.f32.mrb[54].mxu0  ;;  %12495 = vmatpush3.xpose.msk.msra.mxu0 %vm315_vm2, %v14787_v5 }
0x25a6   :  { %v5678_v32 = vadd.f32 %v12474_v31, %v11436_v7  ;;  %v5672_v10 = vpop.f32.mrb[55].mxu0  ;;  %12499 = vmatprep.subr.mxu0 %v13775_v0 }
0x25a7   :  { %v5673_v11 = vadd.f32 %v11436_v7, %v5672_v10 }
0x25a9   :  { %5942 = vrot.lane.b32.xlu1 %v5673_v11, %s13779_s28  ;;  %12497 = vmatmul.mubr.msk.f32.vlgmr.msra.gmra.mrb[56].mxu0 %vm315_vm2, %v5673_v11 }
0x25aa   :  { %12501 = vmatprep.mubr.msk.f32.mxu0 %vm13776_vm1, %v13775_v0 }
0x2617   :  { %v5945_v26 = vpop.permute.xlu1 %5944 }
0x261b   :  { %v5943_v29 = vpop.permute.xlu1 %5942 }
0x267c   :  { %v5849_v12 = vpop.f32.mrb[56].mxu0 }
0x267d   :  { %v5853_v13 = vmul.f32 0.25, %v5849_v12  ;;  %v12498_v14 = vpop.f32.mrb[57].mxu0 }
0x267f   :  { %v5854_v15 = vsel %vm391_vm3, %v5853_v13, -inf }
0x2680   :  { %5855 = vmax.xlane.f32.xlu0 %v5854_v15 }
0x2696   :  { %5865 = vrot.lane.b32.xlu0 %v14787_v5, %s13778_s27 }
0x269a   :  { %6115 = vrot.lane.b32.xlu0 %v14787_v5, %s13780_s1 }
0x269e   :  { %6286 = vrot.lane.b32.xlu0 %v14787_v5, %s13782_s7 }
0x26a2   :  { %6622 = vrot.lane.b32.xlu0 %v14785_v2, %s13779_s28 }
0x26a6   :  { %6793 = vrot.lane.b32.xlu0 %v14785_v2, %s13780_s1 }
0x26aa   :  { %6964 = vrot.lane.b32.xlu0 %v14785_v2, %s13782_s7 }
0x270d   :  { %v5856_v16 = vpop.xlane.xlu0 %5855 }
0x270e   :  { %v5857_v17 = vsub.f32 %v5853_v13, %v5856_v16 }
0x2710   :  { %v5858_v19 = vmul.f32 1.442695, %v5857_v17 }
0x2711   :  { %v5866_v20 = vpop.permute.xlu0 %5865 }
0x2712   :  { %13561 = vpow2.f32 %v5858_v19  ;;  %12500 = vmatpush3.msra.mxu0 %v5866_v20 }
0x2713   :  { %12504 = vmatprep.subr.mxu0 %v13775_v0 }
0x2715   :  { %v6116_v21 = vpop.permute.xlu0 %6115 }
0x2716   :  { %12515 = vmatpush3.xpose.msk.msra.mxu1 %vm315_vm2, %v6116_v21 }
0x2717   :  { %12524 = vmatprep.subr.mxu1 %v13775_v0 }
0x2719   :  { %v6287_v25 = vpop.permute.xlu0 %6286 }
0x271c   :  { %v13562_v22 = vpop.eup %13561 }
0x271d   :  { %v5860_v23 = vsel %vm391_vm3, %v13562_v22, 0.0  ;;  %v6623_v18 = vpop.permute.xlu0 %6622 }
0x271e   :  { %5861 = vadd.xlane.f32.xlu1 %v5860_v23 }
0x2721   :  { %v6794_v30 = vpop.permute.xlu0 %6793 }
0x2725   :  { %v6965_v41 = vpop.permute.xlu0 %6964 }
0x272f   :  { %6113 = vrot.lane.b32.xlu1 %v5673_v11, %s13780_s1 }
0x2733   :  { %6284 = vrot.lane.b32.xlu1 %v5673_v11, %s13782_s7 }
0x2737   :  { %6620 = vrot.lane.b32.xlu1 %v5678_v32, %s13779_s28 }
0x273b   :  { %6791 = vrot.lane.b32.xlu1 %v5678_v32, %s13780_s1 }
0x273f   :  { %6962 = vrot.lane.b32.xlu1 %v5678_v32, %s13782_s7 }
0x27ab   :  { %v5862_v27 = vpop.xlane.xlu1 %5861 }
0x27ac   :  { %13563 = vrcp.f32 %v5862_v27 }
0x27af   :  { %v6114_v9 = vpop.permute.xlu1 %6113 }
0x27b0   :  { %12517 = vmatmul.mubr.msk.f32.vlgmr.msra.gmra.mrb[70].mxu1 %vm315_vm2, %v6114_v9 }
0x27b1   :  { %12525 = vmatpush3.xpose.msk.msra.mxu1 %vm315_vm2, %v6287_v25  ;;  %12526 = vmatprep.mubr.msk.f32.mxu1 %vm13776_vm1, %v13775_v0 }
0x27b2   :  { %12534 = vmatprep.subr.mxu1 %v13775_v0 }
0x27b3   :  { %v6285_v33 = vpop.permute.xlu1 %6284 }
0x27b4   :  { %12527 = vmatmul.mubr.msk.f32.vlgmr.msra.gmra.mrb[72].mxu1 %vm315_vm2, %v6285_v33 }
0x27b5   :  { %12535 = vmatpush3.xpose.msk.msra.mxu1 %vm315_vm2, %v14785_v2  ;;  %12536 = vmatprep.mubr.msk.f32.mxu1 %vm13776_vm1, %v13775_v0 }
0x27b6   :  { %v13564_v36 = vpop.eup %13563  ;;  %12544 = vmatprep.subr.mxu1 %v13775_v0 }
0x27b7   :  { %v6621_v38 = vpop.permute.xlu1 %6620  ;;  %v5864_v37 = vmul.f32 %v13564_v36, %v13562_v22 }
0x27b8   :  { %12537 = vmatmul.mubr.msk.f32.vlgmr.msra.gmra.mrb[74].mxu1 %vm315_vm2, %v5678_v32 }
0x27b9   :  { %12545 = vmatpush3.xpose.msk.msra.mxu1 %vm315_vm2, %v6623_v18  ;;  %12502 = vmatmul.mubr.msk.f32.vlgmr.msra.gmra.mrb[58].mxu0 %vm391_vm3, %v5864_v37 }
0x27ba   :  { %12505 = vmatpush3.xpose.msk.msra.mxu0 %vm315_vm2, %v5945_v26  ;;  %12546 = vmatprep.mubr.msk.f32.mxu1 %vm13776_vm1, %v13775_v0 }
0x27bb   :  { %12554 = vmatprep.subr.mxu1 %v13775_v0  ;;  %12506 = vmatprep.mubr.msk.f32.mxu0 %vm13776_vm1, %v13775_v0  ;;  %v6792_v40 = vpop.permute.xlu1 %6791 }
0x27bc   :  { %12547 = vmatmul.mubr.msk.f32.vlgmr.msra.gmra.mrb[76].mxu1 %vm315_vm2, %v6621_v38  ;;  %12509 = vmatprep.subr.mxu0 %v13775_v0 }
0x27bd   :  { %12555 = vmatpush3.xpose.msk.msra.mxu1 %vm315_vm2, %v6794_v30  ;;  %12507 = vmatmul.mubr.msk.f32.vlgmr.msra.gmra.mrb[60].mxu0 %vm315_vm2, %v5943_v29 }
0x27be   :  { %12556 = vmatprep.mubr.msk.f32.mxu1 %vm13776_vm1, %v13775_v0  ;;  %12564 = vmatprep.subr.mxu1 %v13775_v0 }
0x27bf   :  { %12511 = vmatprep.mubr.msk.f32.mxu0 %vm13776_vm1, %v13775_v0  ;;  %v6963_v4 = vpop.permute.xlu1 %6962 }
0x27c0   :  { %12557 = vmatmul.mubr.msk.f32.vlgmr.msra.gmra.mrb[78].mxu1 %vm315_vm2, %v6792_v40 }
0x27c1   :  { %12565 = vmatpush3.xpose.msk.msra.mxu1 %vm315_vm2, %v6965_v41  ;;  %12566 = vmatprep.mubr.msk.f32.mxu1 %vm13776_vm1, %v13775_v0 }
0x27c4   :  { %12567 = vmatmul.mubr.msk.f32.vlgmr.msra.gmra.mrb[80].mxu1 %vm315_vm2, %v6963_v4 }
0x2883   :  { %v6187_v42 = vpop.f32.mrb[70].mxu1 }
0x2884   :  { %v6191_v43 = vmul.f32 0.25, %v6187_v42  ;;  %v12518_v24 = vpop.f32.mrb[71].mxu1 }
0x2886   :  { %v6192_v39 = vsel %vm391_vm3, %v6191_v43, -inf }
0x2887   :  { %6193 = vmax.xlane.f32.xlu1 %v6192_v39  ;;  %v6358_v35 = vpop.f32.mrb[72].mxu1 }
0x2888   :  { %v12528_v44 = vpop.f32.mrb[73].mxu1  ;;  %v6362_v57 = vmul.f32 0.25, %v6358_v35 }
0x288a   :  { %v6363_v1 = vsel %vm391_vm3, %v6362_v57, -inf }
0x288b   :  { %v6527_v45 = vpop.f32.mrb[74].mxu1 }
0x288c   :  { %v5937_v47 = vpop.f32.mrb[58].mxu0  ;;  %v12538_v48 = vpop.f32.mrb[75].mxu1  ;;  %v6531_v50 = vmul.f32 0.25, %v6527_v45 }
0x288d   :  { %5941 = vst.msk [vmem:[#allocation2] sm:$0xff] %vm315_vm2, %v5937_v47  ;;  %v12503_v49 = vpop.f32.mrb[59].mxu0 }
0x288e   :  { %v6532_v10 = vsel %vm391_vm3, %v6531_v50, -inf }
0x288f   :  { %v6694_v51 = vpop.f32.mrb[76].mxu1 }
0x2890   :  { %v6698_v52 = vmul.f32 0.25, %v6694_v51  ;;  %v6016_v53 = vpop.f32.mrb[60].mxu0  ;;  %v12548_v6 = vpop.f32.mrb[77].mxu1 }
0x2891   :  { %v6020_v54 = vmul.f32 0.25, %v6016_v53  ;;  %v12508_v56 = vpop.f32.mrb[61].mxu0 }
0x2892   :  { %v6699_v46 = vsel %vm391_vm3, %v6698_v52, -inf }
0x2893   :  { %6700 = vmax.xlane.f32.xlu1 %v6699_v46  ;;  %v6865_v59 = vpop.f32.mrb[78].mxu1  ;;  %v6021_v62 = vsel %vm391_vm3, %v6020_v54, -inf }
0x2894   :  { %6022 = vmax.xlane.f32.xlu0 %v6021_v62  ;;  %v12558_v55 = vpop.f32.mrb[79].mxu1  ;;  %v6869_v32 = vmul.f32 0.25, %v6865_v59 }
0x2896   :  { %v6870_v11 = vsel %vm391_vm3, %v6869_v32, -inf }
0x2897   :  { %v7036_v63 = vpop.f32.mrb[80].mxu1 }
0x2898   :  { %v7040_v8 = vmul.f32 0.25, %v7036_v63  ;;  %6364 = vmax.xlane.f32.xlu0 %v6363_v1  ;;  %v12568_v7 = vpop.f32.mrb[81].mxu1 }
0x289a   :  { %v7041_v31 = vsel %vm391_vm3, %v7040_v8, -inf }
0x289b   :  { %7042 = vmax.xlane.f32.xlu1 %v7041_v31 }
0x289c   :  { %6533 = vmax.xlane.f32.xlu0 %v6532_v10 }
0x28a0   :  { %6871 = vmax.xlane.f32.xlu0 %v6870_v11 }
0x2914   :  { %v6194_v12 = vpop.xlane.xlu1 %6193 }
0x2915   :  { %v6195_v13 = vsub.f32 %v6191_v43, %v6194_v12 }
0x2917   :  { %v6196_v14 = vmul.f32 1.442695, %v6195_v13 }
0x2919   :  { %13565 = vpow2.f32 %v6196_v14 }
0x2920   :  { %v6701_v15 = vpop.xlane.xlu1 %6700 }
0x2921   :  { %v6023_v16 = vpop.xlane.xlu0 %6022  ;;  %v6702_v19 = vsub.f32 %v6698_v52, %v6701_v15 }
0x2922   :  { %v6024_v33 = vsub.f32 %v6020_v54, %v6023_v16 }
0x2923   :  { %v14863_v17 = vpop.eup %13565  ;;  %v6703_v23 = vmul.f32 1.442695, %v6702_v19 }
0x2924   :  { %v6198_v20 = vsel %vm391_vm3, %v14863_v17, 0.0  ;;  %v6025_v30 = vmul.f32 1.442695, %v6024_v33 }
0x2925   :  { %v6365_v21 = vpop.xlane.xlu0 %6364  ;;  %6199 = vadd.xlane.f32.xlu1 %v6198_v20 }
0x2926   :  { %v6366_v22 = vsub.f32 %v6362_v57, %v6365_v21  ;;  %v7135_v21 = vld [vmem:[%s15525_s16] sm:$0xff] }
0x2928   :  { %v6367_v26 = vmul.f32 1.442695, %v6366_v22  ;;  %v7043_v29 = vpop.xlane.xlu1 %7042  ;;  %v7136_v22 = vld [vmem:[%s15525_s16 + $0x8] sm:$0xff] }
0x2929   :  { %v7044_v27 = vsub.f32 %v7040_v8, %v7043_v29  ;;  %v6534_v25 = vpop.xlane.xlu0 %6533 }
0x292a   :  { %13567 = vpow2.f32 %v6367_v26  ;;  %v6535_v9 = vsub.f32 %v6531_v50, %v6534_v25  ;;  %v7138_v25 = vld [vmem:[%s15525_s16 + $0x18] sm:$0xff] }
0x292b   :  { %13569 = vpow2.f32 %v6703_v23  ;;  %v7045_v18 = vmul.f32 1.442695, %v7044_v27  ;;  %v13180_v23 = vpack.c.bf16 %v7136_v22, %v7135_v21  ;;  %v7137_v27 = vld [vmem:[%s15525_s16 + $0x10] sm:$0xff] }
0x292c   :  { %v6536_v36 = vmul.f32 1.442695, %v6535_v9  ;;  %v13184_v9 = vpack.c.bf16 %v7138_v25, %v7137_v27  ;;  %v7283_v22 = vld [vmem:[%s15527_s22 + $0x30] sm:$0xff]  ;;  %v7376_v27 = vld [vmem:[%s15528_s23 + $0x8] sm:$0xff] }
0x292d   :  { %v6872_v38 = vpop.xlane.xlu0 %6871  ;;  %13181 = vmatprep.subr.bf16.mxu1 %v13180_v23  ;;  %v7377_v25 = vld [vmem:[%s15528_s23 + $0x10] sm:$0xff] }
0x292e   :  { %13571 = vpow2.f32 %v6536_v36  ;;  %v6873_v37 = vsub.f32 %v6869_v32, %v6872_v38  ;;  %13183 = vmatpush3.bf16.msra.mxu1 %v13180_v23  ;;  %v7139_v36 = vld [vmem:[%s15525_s16 + $0x20] sm:$0xff]  ;;  %v7140_v38 = vld [vmem:[%s15525_s16 + $0x28] sm:$0xff]  ;;  %v7284_v23 = vld [vmem:[%s15527_s22 + $0x38] sm:$0xff] }
0x292f   :  { %13573 = vpow2.f32 %v7045_v18  ;;  %13185 = vmatprep.subr.bf16.mxu1 %v13184_v9 }
0x2930   :  { %v6874_v40 = vmul.f32 1.442695, %v6873_v37  ;;  %v13188_v37 = vpack.c.bf16 %v7140_v38, %v7139_v36  ;;  %v7379_v36 = vld [vmem:[%s15528_s23 + $0x20] sm:$0xff]  ;;  %v7380_v38 = vld [vmem:[%s15528_s23 + $0x28] sm:$0xff] }
0x2932   :  { %13575 = vpow2.f32 %v6874_v40  ;;  %13187 = vmatpush3.bf16.msra.mxu1 %v13184_v9  ;;  %v7141_v40 = vld [vmem:[%s15525_s16 + $0x30] sm:$0xff] }
0x2933   :  { %13577 = vpow2.f32 %v6025_v30  ;;  %13189 = vmatprep.subr.bf16.mxu1 %v13188_v37 }
0x2934   :  { %v13568_v41 = vpop.eup %13567 }
0x2935   :  { %v6369_v4 = vsel %vm391_vm3, %v13568_v41, 0.0  ;;  %v14868_v42 = vpop.eup %13569 }
0x2936   :  { %6370 = vadd.xlane.f32.xlu0 %v6369_v4  ;;  %v6705_v39 = vsel %vm391_vm3, %v14868_v42, 0.0  ;;  %13191 = vmatpush3.bf16.msra.mxu1 %v13188_v37  ;;  %v13220_v37 = vpack.c.bf16 %v7380_v38, %v7379_v36  ;;  %v11478_v38 = vld [vmem:[%s15511_s17 + $0x88] sm:$0xff] }
0x2938   :  { %v13572_v43 = vpop.eup %13571 }
0x2939   :  { %v6538_v24 = vsel %vm391_vm3, %v13572_v43, 0.0  ;;  %v14873_v35 = vpop.eup %13573 }
0x293a   :  { %6539 = vadd.xlane.f32.xlu1 %v6538_v24  ;;  %6706 = vadd.xlane.f32.xlu0 %v6705_v39  ;;  %v7047_v47 = vsel %vm391_vm3, %v14873_v35, 0.0 }
0x293c   :  { %v14875_v44 = vpop.eup %13575 }
0x293d   :  { %v6876_v45 = vsel %vm391_vm3, %v14875_v44, 0.0  ;;  %v13578_v48 = vpop.eup %13577 }
0x293e   :  { %6877 = vadd.xlane.f32.xlu1 %v6876_v45  ;;  %7048 = vadd.xlane.f32.xlu0 %v7047_v47  ;;  %v6027_v49 = vsel %vm391_vm3, %v13578_v48, 0.0 }
0x2942   :  { %6028 = vadd.xlane.f32.xlu0 %v6027_v49 }
0x294f   :  { %6032 = vrot.lane.b32.xlu1 %v14787_v5, %s13777_s13 }
0x2953   :  { %6374 = vrot.lane.b32.xlu1 %v14787_v5, %s13772_s0 }
0x2957   :  { %6543 = vrot.lane.b32.xlu1 %v14785_v2, %s13778_s27 }
0x2958   :  { %6203 = vrot.lane.b32.xlu0 %v14787_v5, %s13781_s2 }
0x295b   :  { %6881 = vrot.lane.b32.xlu1 %v14785_v2, %s13781_s2 }
0x295c   :  { %6710 = vrot.lane.b32.xlu0 %v14785_v2, %s13777_s13 }
0x2960   :  { %7052 = vrot.lane.b32.xlu0 %v14785_v2, %s13772_s0 }
0x29b2   :  { %v6200_v51 = vpop.xlane.xlu1 %6199 }
0x29c3   :  { %v6371_v52 = vpop.xlane.xlu0 %6370 }
0x29c7   :  { %v6707_v53 = vpop.xlane.xlu0 %6706  ;;  %v6540_v6 = vpop.xlane.xlu1 %6539 }
0x29cb   :  { %v7049_v54 = vpop.xlane.xlu0 %7048  ;;  %v6878_v56 = vpop.xlane.xlu1 %6877 }
0x29cf   :  { %v6029_v46 = vpop.xlane.xlu0 %6028  ;;  %v6033_v57 = vpop.permute.xlu1 %6032 }
0x29d0   :  { %13579 = vrcp.f32 %v6029_v46  ;;  %12510 = vmatpush3.msra.mxu0 %v6033_v57 }
0x29d1   :  { %12519 = vmatprep.subr.mxu0 %v13775_v0  ;;  %13581 = vrcp.f32 %v6200_v51 }
0x29d2   :  { %13583 = vrcp.f32 %v6371_v52 }
0x29d3   :  { %13585 = vrcp.f32 %v6540_v6  ;;  %v6204_v55 = vpop.permute.xlu0 %6203  ;;  %v6375_v2 = vpop.permute.xlu1 %6374 }
0x29d4   :  { %13587 = vrcp.f32 %v6707_v53 }
0x29d5   :  { %13589 = vrcp.f32 %v6878_v56  ;;  %v11466_v56 = vld [vmem:[%s15526_s18] ss:$0 sm:$0xff] }
0x29d6   :  { %13591 = vrcp.f32 %v7049_v54 }
0x29d7   :  { %v6544_v7 = vpop.permute.xlu1 %6543  ;;  %v6711_v10 = vpop.permute.xlu0 %6710 }
0x29da   :  { %v13580_v5 = vpop.eup %13579 }
0x29db   :  { %v6031_v59 = vmul.f32 %v13580_v5, %v13578_v48  ;;  %v13582_v62 = vpop.eup %13581  ;;  %v6882_v13 = vpop.permute.xlu1 %6881 }
0x29dc   :  { %v6202_v50 = vmul.f32 %v13582_v62, %v14863_v17  ;;  %v13584_v63 = vpop.eup %13583  ;;  %v7053_v16 = vpop.permute.xlu0 %7052 }
0x29dd   :  { %12512 = vmatmul.mubr.msk.f32.vlgmr.msra.gmra.mrb[62].mxu0 %vm391_vm3, %v6031_v59  ;;  %v6373_v1 = vmul.f32 %v13584_v63, %v13568_v41  ;;  %v13586_v8 = vpop.eup %13585  ;;  %v7142_v41 = vld [vmem:[%s15525_s16 + $0x38] sm:$0xff] }
0x29de   :  { %12520 = vmatpush3.msra.mxu0 %v6204_v55  ;;  %12521 = vmatprep.mubr.msk.f32.mxu0 %vm13776_vm1, %v13775_v0  ;;  %v6542_v31 = vmul.f32 %v13586_v8, %v13572_v43  ;;  %v13588_v32 = vpop.eup %13587 }
0x29df   :  { %12529 = vmatprep.subr.mxu0 %v13775_v0  ;;  %v6709_v11 = vmul.f32 %v13588_v32, %v14868_v42  ;;  %v13590_v12 = vpop.eup %13589  ;;  %v13192_v42 = vpack.c.bf16 %v7142_v41, %v7141_v40  ;;  %v7382_v40 = vld [vmem:[%s15528_s23 + $0x38] sm:$0xff] }
0x29e0   :  { %v6880_v14 = vmul.f32 %v13590_v12, %v14875_v44  ;;  %v13592_v15 = vpop.eup %13591  ;;  %v7277_v12 = vld [vmem:[%s15527_s22] sm:$0xff] }
0x29e1   :  { %12522 = vmatmul.mubr.msk.f32.vlgmr.msra.gmra.mrb[64].mxu0 %vm391_vm3, %v6202_v50  ;;  %v7051_v17 = vmul.f32 %v13592_v15, %v14873_v35  ;;  %13193 = vmatprep.subr.bf16.mxu1 %v13192_v42 }
0x29e2   :  { %12530 = vmatpush3.msra.mxu0 %v6375_v2  ;;  %12531 = vmatprep.mubr.msk.f32.mxu0 %vm13776_vm1, %v13775_v0 }
0x29e3   :  { %12539 = vmatprep.subr.mxu0 %v13775_v0  ;;  %13195 = vmatpush3.bf16.msra.mxu1 %v13192_v42  ;;  %v7384_v42 = vld [vmem:[%s15528_s23 + $0x48] sm:$0xff] }
0x29e5   :  { %12532 = vmatmul.mubr.msk.f32.vlgmr.msra.gmra.mrb[66].mxu0 %vm391_vm3, %v6373_v1 }
0x29e6   :  { %12540 = vmatpush3.msra.mxu0 %v6544_v7  ;;  %12541 = vmatprep.mubr.msk.f32.mxu0 %vm13776_vm1, %v13775_v0 }
0x29e7   :  { %12549 = vmatprep.subr.mxu0 %v13775_v0 }
0x29e9   :  { %12542 = vmatmul.mubr.msk.f32.vlgmr.msra.gmra.mrb[68].mxu0 %vm391_vm3, %v6542_v31 }
0x29ea   :  { %12550 = vmatpush3.msra.mxu0 %v6711_v10  ;;  %12551 = vmatprep.mubr.msk.f32.mxu0 %vm13776_vm1, %v13775_v0 }
0x29eb   :  { %12559 = vmatprep.subr.mxu0 %v13775_v0 }
0x29ed   :  { %12552 = vmatmul.mubr.msk.f32.vlgmr.msra.gmra.mrb[70].mxu0 %vm391_vm3, %v6709_v11 }
0x29ee   :  { %12560 = vmatpush3.msra.mxu0 %v6882_v13  ;;  %12561 = vmatprep.mubr.msk.f32.mxu0 %vm13776_vm1, %v13775_v0  ;;  %v7278_v13 = vld [vmem:[%s15527_s22 + $0x8] sm:$0xff] }
0x29ef   :  { %12569 = vmatprep.subr.mxu0 %v13775_v0  ;;  %v13196_v15 = vpack.c.bf16 %v7278_v13, %v7277_v12  ;;  %v11474_v12 = vld [vmem:[#allocation5] ss:$0 sm:$0xff] }
0x29f1   :  { %12562 = vmatmul.mubr.msk.f32.vlgmr.msra.gmra.mrb[72].mxu0 %vm391_vm3, %v6880_v14  ;;  %v7279_v14 = vld [vmem:[%s15527_s22 + $0x10] sm:$0xff] }
0x29f2   :  { %12570 = vmatpush3.msra.mxu0 %v7053_v16  ;;  %12571 = vmatprep.mubr.msk.f32.mxu0 %vm13776_vm1, %v13775_v0  ;;  %v7280_v16 = vld [vmem:[%s15527_s22 + $0x18] sm:$0xff] }
0x29f3   :  { %13197 = vmatprep.subr.bf16.mxu0 %v13196_v15 }
0x29f5   :  { %12572 = vmatmul.mubr.msk.f32.vlgmr.msra.gmra.mrb[74].mxu0 %vm391_vm3, %v7051_v17  ;;  %v13200_v17 = vpack.c.bf16 %v7280_v16, %v7279_v14 }
0x29f6   :  { %13199 = vmatpush3.bf16.msra.mxu0 %v13196_v15 }
0x29f7   :  { %13201 = vmatprep.subr.bf16.mxu0 %v13200_v17 }
0x29fa   :  { %13203 = vmatpush3.bf16.msra.mxu0 %v13200_v17 }
0x2ab0   :  { %v6104_v19 = vpop.f32.mrb[62].mxu0 }
0x2ab1   :  { %6109 = vrot.lane.b32.xlu1 %v6104_v19, %s13772_s0  ;;  %v12513_v20 = vpop.f32.mrb[63].mxu0  ;;  %v7281_v19 = vld [vmem:[%s15527_s22 + $0x20] sm:$0xff] }
0x2ab2   :  { %v7282_v20 = vld [vmem:[%s15527_s22 + $0x28] sm:$0xff] }
0x2ab3   :  { %v13204_v21 = vpack.c.bf16 %v7282_v20, %v7281_v19 }
0x2ab4   :  { %v6275_v26 = vpop.f32.mrb[64].mxu0 }
0x2ab5   :  { %6280 = vrot.lane.b32.xlu0 %v6275_v26, %s13781_s2  ;;  %v12523_v29 = vpop.f32.mrb[65].mxu0  ;;  %13205 = vmatprep.subr.bf16.mxu0 %v13204_v21  ;;  %v13208_v26 = vpack.c.bf16 %v7284_v23, %v7283_v22 }
0x2ab6   :  { %13207 = vmatpush3.bf16.msra.mxu0 %v13204_v21  ;;  %v7375_v29 = vld [vmem:[%s15528_s23] sm:$0xff] }
0x2ab7   :  { %13209 = vmatprep.subr.bf16.mxu0 %v13208_v26  ;;  %v13212_v9 = vpack.c.bf16 %v7376_v27, %v7375_v29 }
0x2ab8   :  { %v6446_v33 = vpop.f32.mrb[66].mxu0 }
0x2ab9   :  { %6451 = vrot.lane.b32.xlu0 %v6446_v33, %s13777_s13  ;;  %v12533_v18 = vpop.f32.mrb[67].mxu0  ;;  %v7378_v33 = vld [vmem:[%s15528_s23 + $0x18] sm:$0xff]  ;;  %13213 = vmatprep.subr.bf16.mxu1 %v13212_v9 }
0x2aba   :  { %13211 = vmatpush3.bf16.msra.mxu0 %v13208_v26  ;;  %v13216_v18 = vpack.c.bf16 %v7378_v33, %v7377_v25 }
0x2abc   :  { %v6615_v30 = vpop.f32.mrb[68].mxu0 }
0x2abd   :  { %6619 = vst.msk [vmem:[#allocation2 + $0x8] sm:$0xff] %vm315_vm2, %v6615_v30  ;;  %v12543_v4 = vpop.f32.mrb[69].mxu0  ;;  %v7381_v30 = vld [vmem:[%s15528_s23 + $0x30] sm:$0xff] }
0x2abe   :  { %v13224_v41 = vpack.c.bf16 %v7382_v40, %v7381_v30  ;;  %v7383_v4 = vld [vmem:[%s15528_s23 + $0x40] sm:$0xff] }
0x2abf   :  { %v11477_v40 = vld [vmem:[%s15511_s17 + $0x80] sm:$0xff] }
0x2ac0   :  { %v6782_v43 = vpop.f32.mrb[70].mxu0 }
0x2ac1   :  { %6787 = vrot.lane.b32.xlu1 %v6782_v43, %s13772_s0  ;;  %v12553_v24 = vpop.f32.mrb[71].mxu0  ;;  %v13228_v43 = vpack.c.bf16 %v7384_v42, %v7383_v4  ;;  %v11482_v42 = vld [vmem:[%s15511_s17 + $0xa8] sm:$0xff] }
0x2ac2   :  { %v7385_v24 = vld [vmem:[%s15528_s23 + $0x50] sm:$0xff] }
0x2ac4   :  { %v6953_v39 = vpop.f32.mrb[72].mxu0 }
0x2ac5   :  { %6958 = vrot.lane.b32.xlu1 %v6953_v39, %s13781_s2  ;;  %v12563_v35 = vpop.f32.mrb[73].mxu0  ;;  %v7386_v39 = vld [vmem:[%s15528_s23 + $0x58] sm:$0xff] }
0x2ac6   :  { %v13232_v35 = vpack.c.bf16 %v7386_v39, %v7385_v24  ;;  %v11481_v39 = vld [vmem:[%s15511_s17 + $0xa0] sm:$0xff] }
0x2ac8   :  { %v7124_v44 = vpop.f32.mrb[74].mxu0 }
0x2ac9   :  { %7129 = vrot.lane.b32.xlu0 %v7124_v44, %s13777_s13  ;;  %v12573_v45 = vpop.f32.mrb[75].mxu0  ;;  %v7387_v44 = vld [vmem:[%s15528_s23 + $0x60] sm:$0xff] }
0x2aca   :  { %v7388_v45 = vld [vmem:[%s15528_s23 + $0x68] sm:$0xff] }
0x2b23   :  { %v6110_v47 = vpop.permute.xlu1 %6109 }
0x2b24   :  { %6112 = vst.msk [vmem:[#allocation2] sm:$0xff] %vm648_vm4, %v6110_v47  ;;  %v13236_v47 = vpack.c.bf16 %v7388_v45, %v7387_v44  ;;  %v11486_v45 = vld [vmem:[%s15511_s17 + $0xc8] sm:$0xff] }
0x2b27   :  { %v6281_v48 = vpop.permute.xlu0 %6280 }
0x2b28   :  { %6283 = vst.msk [vmem:[#allocation2] sm:$0xff] %vm820_vm5, %v6281_v48 }
0x2b2b   :  { %v6452_v49 = vpop.permute.xlu0 %6451 }
0x2b2c   :  { %6454 = vst.msk [vmem:[#allocation2] sm:$0xff] %vm992_vm6, %v6452_v49 }
0x2b33   :  { %v6788_v51 = vpop.permute.xlu1 %6787  ;;  %v7133_v52 = vld [vmem:[#allocation2] sm:$0xff] }
0x2b34   :  { %6790 = vst.msk [vmem:[#allocation2 + $0x8] sm:$0xff] %vm648_vm4, %v6788_v51  ;;  %12590 = vmatprep.mubr.msk.f32.mxu1 %vm228_vm0, %v7133_v52 }
0x2b37   :  { %v6959_v53 = vpop.permute.xlu1 %6958 }
0x2b38   :  { %6961 = vst.msk [vmem:[#allocation2 + $0x8] sm:$0xff] %vm820_vm5, %v6959_v53 }
0x2b3b   :  { %v7130_v6 = vpop.permute.xlu0 %7129 }
0x2b3c   :  { %7132 = vst.msk [vmem:[#allocation2 + $0x8] sm:$0xff] %vm992_vm6, %v7130_v6 }
0x2b43   :  { %v7134_v54 = vld [vmem:[#allocation2 + $0x8] sm:$0xff] }
0x2b44   :  { %12591 = vmatmul.mubr.msk.f32.vlgmr.msra.gmra.mrb[82].mxu1 %vm228_vm0, %v7134_v54 }
0x2b45   :  { %13215 = vmatpush3.bf16.msra.mxu1 %v13212_v9 }
0x2b46   :  { %13217 = vmatprep.subr.bf16.mxu1 %v13216_v18 }
0x2b49   :  { %13219 = vmatpush3.bf16.msra.mxu1 %v13216_v18 }
0x2b4a   :  { %13221 = vmatprep.subr.bf16.mxu1 %v13220_v37 }
0x2b4d   :  { %13223 = vmatpush3.bf16.msra.mxu1 %v13220_v37  ;;  %v11480_v37 = vld [vmem:[%s15511_s17 + $0x98] sm:$0xff] }
0x2b4e   :  { %13225 = vmatprep.subr.bf16.mxu1 %v13224_v41  ;;  %v13244_v30 = vpack.c.bf16 %v11480_v37, %v11478_v38 }
0x2b50   :  { %13245 = vmatprep.subr.bf16.mxu0 %v13244_v30 }
0x2b51   :  { %13227 = vmatpush3.bf16.msra.mxu1 %v13224_v41  ;;  %v11479_v41 = vld [vmem:[%s15511_s17 + $0x90] sm:$0xff] }
0x2b52   :  { %13229 = vmatprep.subr.bf16.mxu1 %v13228_v43  ;;  %v13246_v4 = vpack.c.bf16 %v11479_v41, %v11477_v40 }
0x2b55   :  { %13231 = vmatpush3.bf16.msra.mxu1 %v13228_v43  ;;  %v11484_v43 = vld [vmem:[%s15511_s17 + $0xb8] sm:$0xff] }
0x2b56   :  { %13233 = vmatprep.subr.bf16.mxu1 %v13232_v35  ;;  %v13248_v24 = vpack.c.bf16 %v11484_v43, %v11482_v42 }
0x2b59   :  { %13235 = vmatpush3.bf16.msra.mxu1 %v13232_v35  ;;  %v11483_v35 = vld [vmem:[%s15511_s17 + $0xb0] sm:$0xff] }
0x2b5a   :  { %13237 = vmatprep.subr.bf16.mxu1 %v13236_v47  ;;  %v13250_v44 = vpack.c.bf16 %v11483_v35, %v11481_v39 }
0x2b5d   :  { %13239 = vmatpush3.bf16.msra.mxu1 %v13236_v47  ;;  %v11488_v47 = vld [vmem:[%s15511_s17 + $0xd8] sm:$0xff] }
0x2c17   :  { %v12592_v46 = vpop.f32.mrb[82].mxu1 }
0x2c18   :  { %v7228_v57 = vadd.f32 %v12592_v46, %v11466_v56  ;;  %v7222_v5 = vpop.f32.mrb[83].mxu1 }
0x2c19   :  { %v7223_v59 = vadd.f32 %v11466_v56, %v7222_v5  ;;  %v11469_v56 = vld [vmem:[%s15529_s26] ss:$0 sm:$0xff] }
0x2c1a   :  { %v7232_v62 = vadd.f32 %v7228_v57, %v14776_v61 }
0x2c1b   :  { %v7231_v55 = vadd.f32 %v7223_v59, %v14772_v3  ;;  %v11470_v59 = vld [vmem:[%s15530_s5] ss:$0 sm:$0xff] }
0x2c1c   :  { %v7238_v2 = vsel %vm228_vm0, %v7232_v62, 0.0 }
0x2c1d   :  { %7239 = vadd.xlane.f32.xlu0 %v7238_v2  ;;  %v7235_v50 = vsel %vm228_vm0, %v7231_v55, 0.0 }
0x2c1e   :  { %7236 = vadd.xlane.f32.xlu1 %v7235_v50 }
0x2caa   :  { %v7240_v63 = vpop.xlane.xlu0 %7239 }
0x2cab   :  { %v7242_v1 = vmul.f32 0.015625, %v7240_v63  ;;  %v7237_v8 = vpop.xlane.xlu1 %7236  ;;  %v7389_v63 = vld [vmem:[%s15528_s23 + $0x70] sm:$0xff] }
0x2cac   :  { %v7241_v7 = vmul.f32 0.015625, %v7237_v8 }
0x2cad   :  { %v14953_v31 = vsub.f32 %v7232_v62, %v7242_v1  ;;  %v7390_v1 = vld [vmem:[%s15528_s23 + $0x78] sm:$0xff] }
0x2cae   :  { %v14955_v61 = vsub.f32 %v7231_v55, %v7241_v7  ;;  %v13240_v8 = vpack.c.bf16 %v7390_v1, %v7389_v63  ;;  %v11471_v7 = vld [vmem:[#allocation3] ss:$0 sm:$0xff]  ;;  %v11475_v1 = vld [vmem:[%s15531_s21] ss:$0 sm:$0xff] }
0x2caf   :  { %v7246_v3 = vmul.f32 %v14953_v31, %v14953_v31 }
0x2cb0   :  { %v7245_v32 = vmul.f32 %v14955_v61, %v14955_v61  ;;  %13241 = vmatprep.subr.bf16.mxu1 %v13240_v8 }
0x2cb1   :  { %v7250_v10 = vsel %vm228_vm0, %v7246_v3, 0.0  ;;  %13243 = vmatpush3.bf16.msra.mxu1 %v13240_v8 }
0x2cb2   :  { %7251 = vadd.xlane.f32.xlu1 %v7250_v10  ;;  %v7247_v11 = vsel %vm228_vm0, %v7245_v32, 0.0  ;;  %12662 = vmatprep.subr.mxu1 %v13775_v0 }
0x2cb3   :  { %7248 = vadd.xlane.f32.xlu0 %v7247_v11 }
0x2d3f   :  { %v7252_v48 = vpop.xlane.xlu1 %7251 }
0x2d40   :  { %v7254_v49 = vmul.f32 0.015625, %v7252_v48  ;;  %v7249_v51 = vpop.xlane.xlu0 %7248  ;;  %v13252_v48 = vpack.c.bf16 %v11488_v47, %v11486_v45 }
0x2d41   :  { %v7253_v52 = vmul.f32 0.015625, %v7249_v51  ;;  %v11487_v51 = vld [vmem:[%s15511_s17 + $0xd0] sm:$0xff] }
0x2d42   :  { %v7256_v53 = vadd.f32 1e-05, %v7254_v49  ;;  %v11485_v49 = vld [vmem:[%s15511_s17 + $0xc0] sm:$0xff] }
0x2d43   :  { %v7255_v6 = vadd.f32 1e-05, %v7253_v52  ;;  %v13254_v52 = vpack.c.bf16 %v11487_v51, %v11485_v49 }
0x2d44   :  { %13593 = vrsqrt.f32 %v7256_v53  ;;  %v11490_v53 = vld [vmem:[%s15511_s17 + $0xe8] sm:$0xff] }
0x2d45   :  { %13595 = vrsqrt.f32 %v7255_v6  ;;  %v11492_v6 = vld [vmem:[%s15511_s17 + $0xf8] sm:$0xff] }
0x2d4e   :  { %v13594_v54 = vpop.eup %13593 }
0x2d4f   :  { %v13596_v46 = vpop.eup %13595  ;;  %v7260_v57 = vmul.f32 %v13594_v54, %v14953_v31  ;;  %v11489_v54 = vld [vmem:[%s15511_s17 + $0xe0] sm:$0xff] }
0x2d50   :  { %v7259_v5 = vmul.f32 %v13596_v46, %v14955_v61  ;;  %v11491_v46 = vld [vmem:[%s15511_s17 + $0xf0] sm:$0xff] }
0x2d51   :  { %v7268_v62 = vmul.f32 %v11469_v56, %v7260_v57  ;;  %v13258_v57 = vpack.c.bf16 %v11491_v46, %v11489_v54 }
0x2d52   :  { %v7267_v55 = vmul.f32 %v11469_v56, %v7259_v5  ;;  %v13256_v56 = vpack.c.bf16 %v11492_v6, %v11490_v53 }
0x2d53   :  { %v7276_v50 = vadd.f32 %v11470_v59, %v7268_v62 }
0x2d54   :  { %v7275_v2 = vadd.f32 %v11470_v59, %v7267_v55 }
0x2d56   :  { %12609 = vmatprep.mubr.msk.f32.mxu0 %vm228_vm0, %v7275_v2 }
0x2d57   :  { %12610 = vmatmul.mubr.msk.f32.vlgmr.msra.gmra.mrb[76].mxu0 %vm228_vm0, %v7276_v50 }
0x2d58   :  { %7619 = vmatprep.mubr.f32.mxu0 %v13775_v0  ;;  %13247 = vmatpush1.bf16.msra.mxu0 %v13246_v4 }
0x2d59   :  { %13249 = vmatprep.subr.bf16.mxu0 %v13248_v24 }
0x2d5c   :  { %13251 = vmatpush1.bf16.msra.mxu0 %v13250_v44 }
0x2d5d   :  { %13253 = vmatprep.subr.bf16.mxu0 %v13252_v48 }
0x2d60   :  { %13255 = vmatpush1.bf16.msra.mxu0 %v13254_v52 }
0x2d61   :  { %13257 = vmatprep.subr.bf16.mxu0 %v13256_v56 }
0x2d64   :  { %13259 = vmatpush1.bf16.msra.mxu0 %v13258_v57 }
0x2d65   :  { %12647 = vmatprep.subr.mxu0 %v13775_v0 }
0x2e2a   :  { %v12611_v31 = vpop.f32.mrb[76].mxu0 }
0x2e2b   :  { %v7370_v61 = vadd.f32 %v12611_v31, %v11471_v7  ;;  %v7364_v3 = vpop.f32.mrb[77].mxu0 }
0x2e2c   :  { %v7365_v32 = vadd.f32 %v11471_v7, %v7364_v3  ;;  %v11476_v7 = vld [vmem:[%s15532_s24] ss:$0 sm:$0xff] }
0x2e2d   :  { %v7374_v11 = vmax.f32 %v7370_v61, 0.0 }
0x2e2e   :  { %v7373_v10 = vmax.f32 %v7365_v32, 0.0 }
0x2e30   :  { %12644 = vmatprep.mubr.f32.mxu1 %v7373_v10 }
0x2e31   :  { %12645 = vmatmul.mubr.f32.vlgmr.msra.gmra.mrb[84].mxu1 %v7374_v11 }
0x2e32   :  { %12664 = vmatprep.mubr.msk.f32.mxu1 %vm13776_vm1, %v13775_v0 }
0x2f04   :  { %v12646_v13 = vpop.f32.mrb[84].mxu1 }
0x2f05   :  { %v7464_v14 = vpop.f32.mrb[85].mxu1  ;;  %v7470_v15 = vadd.f32 %v12646_v13, %v11474_v12 }
0x2f06   :  { %v7465_v16 = vadd.f32 %v11474_v12, %v7464_v14  ;;  %v11493_v12 = vld [vmem:[%s15513_s25 + $0x2] sm:$0x3] }
0x2f07   :  { %v7474_v19 = vadd.f32 %v7470_v15, %v7276_v50  ;;  %v7542_v13 = vrot.slane %v11493_v12, %v14037_v28 }
0x2f08   :  { %v7473_v17 = vadd.f32 %v7465_v16, %v7275_v2 }
0x2f09   :  { %v7480_v21 = vsel %vm228_vm0, %v7474_v19, 0.0 }
0x2f0a   :  { %v7477_v20 = vsel %vm228_vm0, %v7473_v17, 0.0 }
0x2f0b   :  { %7478 = vadd.xlane.f32.xlu0 %v7477_v20 }
0x2f0f   :  { %7481 = vadd.xlane.f32.xlu0 %v7480_v21 }
0x2f98   :  { %v7479_v22 = vpop.xlane.xlu0 %7478 }
0x2f99   :  { %v7483_v23 = vmul.f32 0.015625, %v7479_v22 }
0x2f9b   :  { %v7485_v26 = vsub.f32 %v7473_v17, %v7483_v23  ;;  %v7546_v17 = vrot.slane %v11493_v12, %v14050_v34 }
0x2f9c   :  { %v7482_v29 = vpop.xlane.xlu0 %7481 }
0x2f9d   :  { %v7484_v27 = vmul.f32 0.015625, %v7482_v29  ;;  %v7487_v25 = vmul.f32 %v7485_v26, %v7485_v26 }
0x2f9f   :  { %v7486_v9 = vsub.f32 %v7474_v19, %v7484_v27  ;;  %v7489_v33 = vsel %vm228_vm0, %v7487_v25, 0.0  ;;  %v15054_v27 = vld [vmem:[%s15514_s29] sm:$0xff] }
0x2fa0   :  { %7490 = vadd.xlane.f32.xlu1 %v7489_v33 }
0x2fa1   :  { %v7488_v18 = vmul.f32 %v7486_v9, %v7486_v9 }
0x2fa3   :  { %v7492_v36 = vsel %vm228_vm0, %v7488_v18, 0.0 }
0x2fa4   :  { %7493 = vadd.xlane.f32.xlu1 %v7492_v36 }
0x302d   :  { %v7491_v5 = vpop.xlane.xlu1 %7490 }
0x302e   :  { %v7495_v59 = vmul.f32 0.015625, %v7491_v5 }
0x3030   :  { %v7497_v62 = vadd.f32 1e-05, %v7495_v59 }
0x3031   :  { %v7494_v55 = vpop.xlane.xlu1 %7493 }
0x3032   :  { %13597 = vrsqrt.f32 %v7497_v62  ;;  %v7496_v2 = vmul.f32 0.015625, %v7494_v55 }
0x3034   :  { %v7498_v50 = vadd.f32 1e-05, %v7496_v2 }
0x3036   :  { %13599 = vrsqrt.f32 %v7498_v50 }
0x303c   :  { %v13598_v63 = vpop.eup %13597 }
0x303d   :  { %v7501_v8 = vmul.f32 %v13598_v63, %v7485_v26 }
0x303f   :  { %v7509_v31 = vmul.f32 %v11475_v1, %v7501_v8 }
0x3040   :  { %v13600_v61 = vpop.eup %13599 }
0x3041   :  { %v15020_v3 = vadd.f32 %v11476_v7, %v7509_v31  ;;  %v7502_v32 = vmul.f32 %v13600_v61, %v7486_v9 }
0x3043   :  { %11494 = vmatmul.mubr.msk.f32.vlgmr.msra.gmra.mrb[78].mxu0 %vm228_vm0, %v15020_v3  ;;  %v7510_v10 = vmul.f32 %v11475_v1, %v7502_v32 }
0x3044   :  { %7625 = vmatprep.mubr.f32.mxu0 %v13775_v0 }
0x3045   :  { %v15025_v11 = vadd.f32 %v11476_v7, %v7510_v10 }
0x3047   :  { %11495 = vmatmul.mubr.msk.f32.gmra.mrb[80].mxu0 %vm228_vm0, %v15025_v11 }
0x3048   :  { %12649 = vmatprep.mubr.msk.f32.mxu0 %vm13776_vm1, %v13775_v0 }
0x3116   :  { %v7621_v14 = vpop.f32.mrb[78].mxu0 }
0x3117   :  { %v7622_v15 = vadd.f32 %v7621_v14, %v7542_v13  ;;  %v7623_v16 = vpop.f32.mrb[79].mxu0 }
0x3118   :  { %v15046_v34 = vadd.f32 %v7623_v16, %v7546_v17 }
0x3119   :  { %7633 = vrot.lane.b32.xlu0 %v7622_v15, %s13778_s27 }
0x311a   :  { %v7627_v19 = vpop.f32.mrb[80].mxu0 }
0x311b   :  { %v7629_v20 = vpop.f32.mrb[81].mxu0  ;;  %v7628_v22 = vadd.f32 %v7627_v19, %v7542_v13 }
0x311c   :  { %v15035_v21 = vadd.f32 %v7629_v20, %v7546_v17 }
0x311d   :  { %7796 = vrot.lane.b32.xlu0 %v7622_v15, %s13779_s28 }
0x3121   :  { %7971 = vrot.lane.b32.xlu0 %v7622_v15, %s13781_s2 }
0x3125   :  { %8143 = vrot.lane.b32.xlu0 %v7622_v15, %s13772_s0 }
0x3129   :  { %8314 = vrot.lane.b32.xlu0 %v7628_v22, %s13778_s27 }
0x312d   :  { %8477 = vrot.lane.b32.xlu0 %v7628_v22, %s13779_s28 }
0x3131   :  { %8650 = vrot.lane.b32.xlu0 %v7628_v22, %s13780_s1 }
0x3135   :  { %8822 = vrot.lane.b32.xlu0 %v7628_v22, %s13782_s7 }
0x318b   :  { %v7634_v28 = vpop.permute.xlu0 %7633 }
0x318c   :  { %12648 = vmatpush3.xpose.msk.msra.mxu0 %vm315_vm2, %v7634_v28 }
0x318d   :  { %12652 = vmatprep.subr.mxu0 %v13775_v0 }
0x318f   :  { %12650 = vmatmul.mubr.msk.f32.vlgmr.msra.gmra.mrb[82].mxu0 %vm315_vm2, %v7622_v15  ;;  %v7797_v41 = vpop.permute.xlu0 %7796 }
0x3190   :  { %12653 = vmatpush3.msra.mxu0 %v15046_v34  ;;  %12654 = vmatprep.mubr.msk.f32.mxu0 %vm13776_vm1, %v13775_v0 }
0x3191   :  { %12657 = vmatprep.subr.mxu0 %v13775_v0 }
0x3193   :  { %v7972_v42 = vpop.permute.xlu0 %7971 }
0x3197   :  { %v8144_v39 = vpop.permute.xlu0 %8143 }
0x319b   :  { %v8315_v44 = vpop.permute.xlu0 %8314 }
0x319f   :  { %v8478_v47 = vpop.permute.xlu0 %8477 }
0x31a3   :  { %v8651_v49 = vpop.permute.xlu0 %8650 }
0x31a7   :  { %v8823_v52 = vpop.permute.xlu0 %8822 }
0x3262   :  { %v7705_v23 = vpop.f32.mrb[82].mxu0 }
0x3263   :  { %v7709_v26 = vmul.f32 0.25, %v7705_v23  ;;  %v12651_v29 = vpop.f32.mrb[83].mxu0 }
0x3265   :  { %v7710_v25 = vadd.f32 %v15054_v27, %v7709_v26 }
0x3267   :  { %v7711_v9 = vsel %vm391_vm3, %v7710_v25, -inf }
0x3268   :  { %7712 = vmax.xlane.f32.xlu1 %v7711_v9 }
0x3279   :  { %7798 = vrot.lane.b32.xlu1 %v7622_v15, %s13777_s13 }
0x32f5   :  { %v7713_v33 = vpop.xlane.xlu1 %7712 }
0x32f6   :  { %v7714_v18 = vsub.f32 %v7710_v25, %v7713_v33 }
0x32f8   :  { %v7715_v36 = vmul.f32 1.442695, %v7714_v18 }
0x32f9   :  { %v7799_v30 = vpop.permute.xlu1 %7798 }
0x32fa   :  { %13601 = vpow2.f32 %v7715_v36 }
0x3304   :  { %v13602_v38 = vpop.eup %13601 }
0x3305   :  { %v7717_v37 = vsel %vm391_vm3, %v13602_v38, 0.0 }
0x3306   :  { %7718 = vadd.xlane.f32.xlu1 %v7717_v37 }
0x3317   :  { %7969 = vrot.lane.b32.xlu1 %v7622_v15, %s13780_s1 }
0x331b   :  { %8141 = vrot.lane.b32.xlu1 %v7622_v15, %s13782_s7 }
0x331f   :  { %8479 = vrot.lane.b32.xlu1 %v7628_v22, %s13777_s13 }
0x3323   :  { %8652 = vrot.lane.b32.xlu1 %v7628_v22, %s13781_s2 }
0x3327   :  { %8824 = vrot.lane.b32.xlu1 %v7628_v22, %s13772_s0 }
0x3393   :  { %v7719_v40 = vpop.xlane.xlu1 %7718 }
0x3394   :  { %13603 = vrcp.f32 %v7719_v40 }
0x3397   :  { %v7970_v24 = vpop.permute.xlu1 %7969 }
0x339b   :  { %v8142_v35 = vpop.permute.xlu1 %8141 }
0x339e   :  { %v13604_v4 = vpop.eup %13603 }
0x339f   :  { %v7721_v43 = vmul.f32 %v13604_v4, %v13602_v38  ;;  %v8480_v45 = vpop.permute.xlu1 %8479 }
0x33a1   :  { %12655 = vmatmul.mubr.msk.f32.vlgmr.msra.gmra.mrb[84].mxu0 %vm391_vm3, %v7721_v43 }
0x33a2   :  { %12658 = vmatpush3.xpose.msk.msra.mxu0 %vm315_vm2, %v7799_v30  ;;  %12659 = vmatprep.mubr.msk.f32.mxu0 %vm13776_vm1, %v13775_v0 }
0x33a3   :  { %12667 = vmatprep.subr.mxu0 %v13775_v0  ;;  %v8653_v48 = vpop.permute.xlu1 %8652 }
0x33a5   :  { %12660 = vmatmul.mubr.msk.f32.vlgmr.msra.gmra.mrb[86].mxu0 %vm315_vm2, %v7797_v41 }
0x33a6   :  { %12668 = vmatpush3.xpose.msk.msra.mxu0 %vm315_vm2, %v7972_v42  ;;  %12669 = vmatprep.mubr.msk.f32.mxu0 %vm13776_vm1, %v13775_v0 }
0x33a7   :  { %12677 = vmatprep.subr.mxu0 %v13775_v0  ;;  %v8825_v51 = vpop.permute.xlu1 %8824 }
0x33a9   :  { %12670 = vmatmul.mubr.msk.f32.vlgmr.msra.gmra.mrb[88].mxu0 %vm315_vm2, %v7970_v24 }
0x33aa   :  { %12678 = vmatpush3.xpose.msk.msra.mxu0 %vm315_vm2, %v8144_v39  ;;  %12679 = vmatprep.mubr.msk.f32.mxu0 %vm13776_vm1, %v13775_v0 }
0x33ab   :  { %12687 = vmatprep.subr.mxu0 %v13775_v0 }
0x33ad   :  { %12680 = vmatmul.mubr.msk.f32.vlgmr.msra.gmra.mrb[90].mxu0 %vm315_vm2, %v8142_v35 }
0x33ae   :  { %12688 = vmatpush3.xpose.msk.msra.mxu0 %vm315_vm2, %v8315_v44  ;;  %12689 = vmatprep.mubr.msk.f32.mxu0 %vm13776_vm1, %v13775_v0 }
0x33af   :  { %12697 = vmatprep.subr.mxu0 %v13775_v0 }
0x33b1   :  { %12690 = vmatmul.mubr.msk.f32.vlgmr.msra.gmra.mrb[92].mxu0 %vm315_vm2, %v7628_v22 }
0x33b2   :  { %12698 = vmatpush3.xpose.msk.msra.mxu0 %vm315_vm2, %v8480_v45  ;;  %12699 = vmatprep.mubr.msk.f32.mxu0 %vm13776_vm1, %v13775_v0 }
0x33b3   :  { %12707 = vmatprep.subr.mxu0 %v13775_v0 }
0x33b5   :  { %12700 = vmatmul.mubr.msk.f32.vlgmr.msra.gmra.mrb[94].mxu0 %vm315_vm2, %v8478_v47 }
0x33b6   :  { %12708 = vmatpush3.xpose.msk.msra.mxu0 %vm315_vm2, %v8653_v48  ;;  %12709 = vmatprep.mubr.msk.f32.mxu0 %vm13776_vm1, %v13775_v0 }
0x33b7   :  { %12717 = vmatprep.subr.mxu0 %v13775_v0 }
0x33b9   :  { %12710 = vmatmul.mubr.msk.f32.vlgmr.msra.gmra.mrb[96].mxu0 %vm315_vm2, %v8651_v49 }
0x33ba   :  { %12718 = vmatpush3.xpose.msk.msra.mxu0 %vm315_vm2, %v8825_v51  ;;  %12719 = vmatprep.mubr.msk.f32.mxu0 %vm13776_vm1, %v13775_v0 }
0x33bd   :  { %12720 = vmatmul.mubr.msk.f32.vlgmr.msra.gmra.mrb[98].mxu0 %vm315_vm2, %v8823_v52 }
0x3474   :  { %v7791_v53 = vpop.f32.mrb[84].mxu0 }
0x3475   :  { %7795 = vst.msk [vmem:[#allocation2] sm:$0xff] %vm315_vm2, %v7791_v53  ;;  %v12656_v6 = vpop.f32.mrb[85].mxu0 }
0x3478   :  { %v7870_v54 = vpop.f32.mrb[86].mxu0 }
0x3479   :  { %v7874_v56 = vmul.f32 0.25, %v7870_v54  ;;  %v12661_v46 = vpop.f32.mrb[87].mxu0 }
0x347b   :  { %v7875_v57 = vadd.f32 %v15054_v27, %v7874_v56 }
0x347c   :  { %v8043_v5 = vpop.f32.mrb[88].mxu0 }
0x347d   :  { %v8047_v59 = vmul.f32 0.25, %v8043_v5  ;;  %v12671_v62 = vpop.f32.mrb[89].mxu0  ;;  %v7876_v55 = vsel %vm391_vm3, %v7875_v57, -inf }
0x347e   :  { %7877 = vmax.xlane.f32.xlu1 %v7876_v55 }
0x347f   :  { %v8048_v2 = vadd.f32 %v15054_v27, %v8047_v59 }
0x3480   :  { %v8215_v50 = vpop.f32.mrb[90].mxu0 }
0x3481   :  { %v8219_v63 = vmul.f32 0.25, %v8215_v50  ;;  %v12681_v1 = vpop.f32.mrb[91].mxu0  ;;  %v8049_v8 = vsel %vm391_vm3, %v8048_v2, -inf }
0x3482   :  { %8050 = vmax.xlane.f32.xlu0 %v8049_v8 }
0x3483   :  { %v8220_v7 = vadd.f32 %v15054_v27, %v8219_v63 }
0x3484   :  { %v8386_v31 = vpop.f32.mrb[92].mxu0 }
0x3485   :  { %v8390_v61 = vmul.f32 0.25, %v8386_v31  ;;  %v12691_v32 = vpop.f32.mrb[93].mxu0  ;;  %v8221_v10 = vsel %vm391_vm3, %v8220_v7, -inf }
0x3486   :  { %8222 = vmax.xlane.f32.xlu0 %v8221_v10 }
0x3487   :  { %v8391_v12 = vadd.f32 %v15054_v27, %v8390_v61 }
0x3488   :  { %v8551_v13 = vpop.f32.mrb[94].mxu0 }
0x3489   :  { %v8555_v14 = vmul.f32 0.25, %v8551_v13  ;;  %v12701_v15 = vpop.f32.mrb[95].mxu0  ;;  %v8392_v16 = vsel %vm391_vm3, %v8391_v12, -inf }
0x348a   :  { %8393 = vmax.xlane.f32.xlu1 %v8392_v16 }
0x348b   :  { %v8556_v17 = vadd.f32 %v15054_v27, %v8555_v14 }
0x348c   :  { %v8724_v19 = vpop.f32.mrb[96].mxu0 }
0x348d   :  { %v8728_v20 = vmul.f32 0.25, %v8724_v19  ;;  %v12711_v22 = vpop.f32.mrb[97].mxu0  ;;  %v8557_v28 = vsel %vm391_vm3, %v8556_v17, -inf }
0x348e   :  { %8558 = vmax.xlane.f32.xlu0 %v8557_v28 }
0x348f   :  { %v8729_v23 = vadd.f32 %v15054_v27, %v8728_v20 }
0x3490   :  { %v8896_v26 = vpop.f32.mrb[98].mxu0 }
0x3491   :  { %v8900_v29 = vmul.f32 0.25, %v8896_v26  ;;  %v12721_v25 = vpop.f32.mrb[99].mxu0  ;;  %v8730_v9 = vsel %vm391_vm3, %v8729_v23, -inf }
0x3492   :  { %8731 = vmax.xlane.f32.xlu1 %v8730_v9 }
0x3493   :  { %v8901_v33 = vadd.f32 %v15054_v27, %v8900_v29 }
0x3495   :  { %v8902_v18 = vsel %vm391_vm3, %v8901_v33, -inf }
0x3496   :  { %8903 = vmax.xlane.f32.xlu0 %v8902_v18 }
0x34a3   :  { %8060 = vrot.lane.b32.xlu1 %v15046_v34, %s13780_s1 }
0x34a7   :  { %8232 = vrot.lane.b32.xlu1 %v15046_v34, %s13782_s7 }
0x34ac   :  { %7888 = vrot.lane.b32.xlu0 %v15046_v34, %s13779_s28 }
0x350b   :  { %v7878_v36 = vpop.xlane.xlu1 %7877 }
0x350c   :  { %v7879_v38 = vsub.f32 %v7875_v57, %v7878_v36 }
0x350e   :  { %v7880_v37 = vmul.f32 1.442695, %v7879_v38 }
0x350f   :  { %v8051_v30 = vpop.xlane.xlu0 %8050 }
0x3510   :  { %13605 = vpow2.f32 %v7880_v37  ;;  %v8052_v40 = vsub.f32 %v8048_v2, %v8051_v30 }
0x3512   :  { %v8053_v41 = vmul.f32 1.442695, %v8052_v40 }
0x3513   :  { %v8223_v27 = vpop.xlane.xlu0 %8222 }
0x3514   :  { %13607 = vpow2.f32 %v8053_v41  ;;  %v8224_v4 = vsub.f32 %v8220_v7, %v8223_v27  ;;  %v11520_v27 = vld [vmem:[%s15515_s3 + $0x40] sm:$0xff] }
0x3516   :  { %v8225_v42 = vmul.f32 1.442695, %v8224_v4  ;;  %v11521_v4 = vld [vmem:[%s15515_s3 + $0x48] sm:$0xff] }
0x3517   :  { %v8394_v43 = vpop.xlane.xlu1 %8393 }
0x3518   :  { %13609 = vpow2.f32 %v8225_v42  ;;  %v8395_v24 = vsub.f32 %v8391_v12, %v8394_v43  ;;  %v11522_v42 = vld [vmem:[%s15515_s3 + $0x50] sm:$0xff] }
0x351a   :  { %v13606_v39 = vpop.eup %13605  ;;  %v8396_v35 = vmul.f32 1.442695, %v8395_v24  ;;  %v13260_v24 = vpack.c.bf16 %v11521_v4, %v11520_v27 }
0x351b   :  { %v8559_v44 = vpop.xlane.xlu0 %8558  ;;  %v7882_v45 = vsel %vm391_vm3, %v13606_v39, 0.0 }
0x351c   :  { %13611 = vpow2.f32 %v8396_v35  ;;  %v8560_v34 = vsub.f32 %v8556_v17, %v8559_v44  ;;  %7883 = vadd.xlane.f32.xlu1 %v7882_v45  ;;  %13261 = vmatprep.subr.bf16.mxu0 %v13260_v24 }
0x351d   :  { %13263 = vmatpush3.bf16.msra.mxu0 %v13260_v24  ;;  %v11537_v24 = vld [vmem:[%s15518_s19 + $0x48] sm:$0xff] }
0x351e   :  { %v13608_v47 = vpop.eup %13607  ;;  %v8561_v48 = vmul.f32 1.442695, %v8560_v34 }
0x351f   :  { %v8055_v49 = vsel %vm391_vm3, %v13608_v47, 0.0  ;;  %v8732_v2 = vpop.xlane.xlu1 %8731 }
0x3520   :  { %13613 = vpow2.f32 %v8561_v48  ;;  %8056 = vadd.xlane.f32.xlu0 %v8055_v49  ;;  %v8733_v50 = vsub.f32 %v8729_v23, %v8732_v2 }
0x3522   :  { %v13610_v51 = vpop.eup %13609  ;;  %v8734_v63 = vmul.f32 1.442695, %v8733_v50 }
0x3523   :  { %v8904_v52 = vpop.xlane.xlu0 %8903  ;;  %v8227_v53 = vsel %vm391_vm3, %v13610_v51, 0.0  ;;  %v8061_v7 = vpop.permute.xlu1 %8060 }
0x3524   :  { %v8905_v6 = vsub.f32 %v8901_v33, %v8904_v52  ;;  %8228 = vadd.xlane.f32.xlu1 %v8227_v53  ;;  %v11525_v52 = vld [vmem:[%s15515_s3 + $0x68] sm:$0xff] }
0x3526   :  { %v13612_v54 = vpop.eup %13611  ;;  %v8906_v56 = vmul.f32 1.442695, %v8905_v6  ;;  %v11526_v6 = vld [vmem:[%s15515_s3 + $0x70] sm:$0xff] }
0x3527   :  { %v7889_v46 = vpop.permute.xlu0 %7888  ;;  %v8398_v57 = vsel %vm391_vm3, %v13612_v54, 0.0  ;;  %v8233_v31 = vpop.permute.xlu1 %8232 }
0x3528   :  { %13615 = vpow2.f32 %v8906_v56  ;;  %8399 = vadd.xlane.f32.xlu0 %v8398_v57  ;;  %12663 = vmatpush3.msra.mxu1 %v7889_v46  ;;  %v11548_v56 = vld [vmem:[%s15517_s14 + $0x40] sm:$0xff]  ;;  %v11549_v57 = vld [vmem:[%s15517_s14 + $0x48] sm:$0xff] }
0x3529   :  { %12672 = vmatprep.subr.mxu1 %v13775_v0  ;;  %13617 = vpow2.f32 %v8734_v63 }
0x352a   :  { %v13614_v5 = vpop.eup %13613 }
0x352b   :  { %v8563_v59 = vsel %vm391_vm3, %v13614_v5, 0.0 }
0x352c   :  { %8564 = vadd.xlane.f32.xlu1 %v8563_v59 }
0x3532   :  { %v15127_v62 = vpop.eup %13615 }
0x3533   :  { %v8908_v55 = vsel %vm391_vm3, %v15127_v62, 0.0  ;;  %v13618_v1 = vpop.eup %13617 }
0x3534   :  { %8909 = vadd.xlane.f32.xlu1 %v8908_v55  ;;  %v8736_v8 = vsel %vm391_vm3, %v13618_v1, 0.0 }
0x353e   :  { %8569 = vrot.lane.b32.xlu0 %v15035_v21, %s13779_s28 }
0x3545   :  { %8741 = vrot.lane.b32.xlu1 %v15035_v21, %s13780_s1 }
0x355d   :  { %8737 = vadd.xlane.f32.xlu0 %v8736_v8 }
0x3573   :  { %8913 = vrot.lane.b32.xlu0 %v15035_v21, %s13782_s7 }
0x35a9   :  { %v7884_v61 = vpop.xlane.xlu1 %7883 }
0x35aa   :  { %13619 = vrcp.f32 %v7884_v61 }
0x35ad   :  { %v8057_v32 = vpop.xlane.xlu0 %8056 }
0x35ae   :  { %13621 = vrcp.f32 %v8057_v32  ;;  %v11550_v32 = vld [vmem:[%s15517_s14 + $0x50] sm:$0xff] }
0x35b1   :  { %v8229_v10 = vpop.xlane.xlu1 %8228 }
0x35b2   :  { %13623 = vrcp.f32 %v8229_v10  ;;  %v11551_v10 = vld [vmem:[%s15517_s14 + $0x58] sm:$0xff] }
0x35b4   :  { %v13620_v12 = vpop.eup %13619 }
0x35b5   :  { %v7886_v13 = vmul.f32 %v13620_v12, %v13606_v39  ;;  %v8400_v14 = vpop.xlane.xlu0 %8399  ;;  %v11523_v39 = vld [vmem:[%s15515_s3 + $0x58] sm:$0xff]  ;;  %v13296_v12 = vpack.c.bf16 %v11551_v10, %v11550_v32 }
0x35b6   :  { %13625 = vrcp.f32 %v8400_v14  ;;  %v13264_v35 = vpack.c.bf16 %v11523_v39, %v11522_v42  ;;  %v11552_v14 = vld [vmem:[%s15517_s14 + $0x60] sm:$0xff] }
0x35b7   :  { %12665 = vmatmul.mubr.msk.f32.vlgmr.msra.gmra.mrb[86].mxu1 %vm391_vm3, %v7886_v13 }
0x35b8   :  { %v13622_v15 = vpop.eup %13621  ;;  %12673 = vmatpush3.msra.mxu1 %v8061_v7  ;;  %12674 = vmatprep.mubr.msk.f32.mxu1 %vm13776_vm1, %v13775_v0 }
0x35b9   :  { %v8059_v16 = vmul.f32 %v13622_v15, %v13608_v47  ;;  %v8565_v17 = vpop.xlane.xlu1 %8564  ;;  %12682 = vmatprep.subr.mxu1 %v13775_v0  ;;  %v8570_v26 = vpop.permute.xlu0 %8569  ;;  %13265 = vmatprep.subr.bf16.mxu0 %v13264_v35  ;;  %v11553_v15 = vld [vmem:[%s15517_s14 + $0x68] sm:$0xff] }
0x35ba   :  { %13627 = vrcp.f32 %v8565_v17  ;;  %13267 = vmatpush3.bf16.msra.mxu0 %v13264_v35  ;;  %v11554_v17 = vld [vmem:[%s15517_s14 + $0x70] sm:$0xff] }
0x35bb   :  { %12675 = vmatmul.mubr.msk.f32.vlgmr.msra.gmra.mrb[88].mxu1 %vm391_vm3, %v8059_v16  ;;  %v13300_v16 = vpack.c.bf16 %v11553_v15, %v11552_v14 }
0x35bc   :  { %v13624_v19 = vpop.eup %13623  ;;  %12683 = vmatpush3.msra.mxu1 %v8233_v31  ;;  %12684 = vmatprep.mubr.msk.f32.mxu1 %vm13776_vm1, %v13775_v0 }
0x35bd   :  { %v8231_v20 = vmul.f32 %v13624_v19, %v13610_v51  ;;  %12692 = vmatprep.subr.mxu1 %v13775_v0  ;;  %v11524_v51 = vld [vmem:[%s15515_s3 + $0x60] sm:$0xff]  ;;  %v11555_v19 = vld [vmem:[%s15517_s14 + $0x78] sm:$0xff] }
0x35be   :  { %v13268_v53 = vpack.c.bf16 %v11525_v52, %v11524_v51  ;;  %v11542_v51 = vld [vmem:[%s15518_s19 + $0x70] sm:$0xff]  ;;  %v11543_v52 = vld [vmem:[%s15518_s19 + $0x78] sm:$0xff] }
0x35bf   :  { %12685 = vmatmul.mubr.msk.f32.vlgmr.msra.gmra.mrb[90].mxu1 %vm391_vm3, %v8231_v20  ;;  %v13304_v20 = vpack.c.bf16 %v11555_v19, %v11554_v17 }
0x35c0   :  { %v13626_v22 = vpop.eup %13625  ;;  %12693 = vmatpush3.msra.mxu1 %v15035_v21  ;;  %12694 = vmatprep.mubr.msk.f32.mxu1 %vm13776_vm1, %v13775_v0 }
0x35c1   :  { %v8402_v28 = vmul.f32 %v13626_v22, %v13612_v54  ;;  %v8910_v23 = vpop.xlane.xlu1 %8909  ;;  %12702 = vmatprep.subr.mxu1 %v13775_v0  ;;  %13269 = vmatprep.subr.bf16.mxu0 %v13268_v53  ;;  %v11527_v54 = vld [vmem:[%s15515_s3 + $0x78] sm:$0xff] }
0x35c2   :  { %13271 = vmatpush3.bf16.msra.mxu0 %v13268_v53  ;;  %v13272_v46 = vpack.c.bf16 %v11527_v54, %v11526_v6  ;;  %v13288_v53 = vpack.c.bf16 %v11543_v52, %v11542_v51 }
0x35c3   :  { %12695 = vmatmul.mubr.msk.f32.vlgmr.msra.gmra.mrb[92].mxu1 %vm391_vm3, %v8402_v28 }
0x35c4   :  { %v13628_v29 = vpop.eup %13627  ;;  %12703 = vmatpush3.msra.mxu1 %v8570_v26  ;;  %12704 = vmatprep.mubr.msk.f32.mxu1 %vm13776_vm1, %v13775_v0 }
0x35c5   :  { %v8567_v25 = vmul.f32 %v13628_v29, %v13614_v5  ;;  %v8742_v9 = vpop.permute.xlu1 %8741  ;;  %12712 = vmatprep.subr.mxu1 %v13775_v0  ;;  %v13292_v5 = vpack.c.bf16 %v11549_v57, %v11548_v56  ;;  %13273 = vmatprep.subr.bf16.mxu0 %v13272_v46 }
0x35c6   :  { %13275 = vmatpush3.bf16.msra.mxu0 %v13272_v46 }
0x35c7   :  { %12705 = vmatmul.mubr.msk.f32.vlgmr.msra.gmra.mrb[94].mxu1 %vm391_vm3, %v8567_v25  ;;  %13293 = vmatprep.subr.bf16.mxu0 %v13292_v5 }
0x35c8   :  { %12713 = vmatpush3.msra.mxu1 %v8742_v9  ;;  %12714 = vmatprep.mubr.msk.f32.mxu1 %vm13776_vm1, %v13775_v0 }
0x35c9   :  { %12722 = vmatprep.subr.mxu1 %v13775_v0 }
0x35ea   :  { %v8738_v21 = vpop.xlane.xlu0 %8737 }
0x35eb   :  { %13629 = vrcp.f32 %v8738_v21 }
0x35ec   :  { %13631 = vrcp.f32 %v8910_v23 }
0x35ee   :  { %v8914_v38 = vpop.permute.xlu0 %8913 }
0x35f5   :  { %v13630_v33 = vpop.eup %13629 }
0x35f6   :  { %v8740_v18 = vmul.f32 %v13630_v33, %v13618_v1  ;;  %v13632_v36 = vpop.eup %13631  ;;  %v11557_v33 = vld [vmem:[%s15523_s11 + $0x1] ss:$0 sm:$0xff] }
0x35f7   :  { %v8912_v37 = vmul.f32 %v13632_v36, %v15127_v62 }
0x35f8   :  { %12715 = vmatmul.mubr.msk.f32.vlgmr.msra.gmra.mrb[96].mxu1 %vm391_vm3, %v8740_v18 }
0x35f9   :  { %12723 = vmatpush3.msra.mxu1 %v8914_v38  ;;  %12724 = vmatprep.mubr.msk.f32.mxu1 %vm13776_vm1, %v13775_v0 }
0x35fc   :  { %12725 = vmatmul.mubr.msk.f32.vlgmr.msra.gmra.mrb[98].mxu1 %vm391_vm3, %v8912_v37 }
0x368a   :  { %v7960_v30 = vpop.f32.mrb[86].mxu1 }
0x368b   :  { %7965 = vrot.lane.b32.xlu1 %v7960_v30, %s13772_s0  ;;  %v12666_v40 = vpop.f32.mrb[87].mxu1 }
0x368e   :  { %v8132_v41 = vpop.f32.mrb[88].mxu1 }
0x368f   :  { %8137 = vrot.lane.b32.xlu0 %v8132_v41, %s13781_s2  ;;  %v12676_v43 = vpop.f32.mrb[89].mxu1 }
0x3690   :  { %v11536_v43 = vld [vmem:[%s15518_s19 + $0x40] sm:$0xff] }
0x3691   :  { %v13276_v39 = vpack.c.bf16 %v11537_v24, %v11536_v43 }
0x3692   :  { %v8304_v44 = vpop.f32.mrb[90].mxu1 }
0x3693   :  { %8309 = vrot.lane.b32.xlu0 %v8304_v44, %s13777_s13  ;;  %v12686_v45 = vpop.f32.mrb[91].mxu1  ;;  %13277 = vmatprep.subr.bf16.mxu1 %v13276_v39  ;;  %v11538_v44 = vld [vmem:[%s15518_s19 + $0x50] sm:$0xff] }
0x3694   :  { %13279 = vmatpush3.bf16.msra.mxu1 %v13276_v39  ;;  %v11539_v45 = vld [vmem:[%s15518_s19 + $0x58] sm:$0xff] }
0x3696   :  { %v8472_v34 = vpop.f32.mrb[92].mxu1 }
0x3697   :  { %8476 = vst.msk [vmem:[#allocation2 + $0x8] sm:$0xff] %vm315_vm2, %v8472_v34  ;;  %v12696_v47 = vpop.f32.mrb[93].mxu1  ;;  %v13280_v34 = vpack.c.bf16 %v11539_v45, %v11538_v44 }
0x3698   :  { %v11540_v47 = vld [vmem:[%s15518_s19 + $0x60] sm:$0xff] }
0x3699   :  { %13281 = vmatprep.subr.bf16.mxu1 %v13280_v34 }
0x369a   :  { %v8641_v48 = vpop.f32.mrb[94].mxu1  ;;  %13283 = vmatpush3.bf16.msra.mxu1 %v13280_v34 }
0x369b   :  { %8646 = vrot.lane.b32.xlu1 %v8641_v48, %s13772_s0  ;;  %v12706_v49 = vpop.f32.mrb[95].mxu1  ;;  %v11541_v48 = vld [vmem:[%s15518_s19 + $0x68] sm:$0xff] }
0x369c   :  { %v13284_v49 = vpack.c.bf16 %v11541_v48, %v11540_v47 }
0x369e   :  { %13285 = vmatprep.subr.bf16.mxu1 %v13284_v49 }
0x369f   :  { %13287 = vmatpush3.bf16.msra.mxu1 %v13284_v49 }
0x36a0   :  { %13289 = vmatprep.subr.bf16.mxu1 %v13288_v53 }
0x36a3   :  { %13291 = vmatpush3.bf16.msra.mxu1 %v13288_v53 }
0x36a4   :  { %12784 = vmatprep.subr.mxu1 %v13775_v0 }
0x36cb   :  { %v8813_v59 = vpop.f32.mrb[96].mxu1 }
0x36cc   :  { %8818 = vrot.lane.b32.xlu1 %v8813_v59, %s13781_s2  ;;  %v12716_v62 = vpop.f32.mrb[97].mxu1 }
0x36cd   :  { %v11534_v62 = vld [vmem:[%s15521_s6 + $0x1] ss:$0 sm:$0xff] }
0x36cf   :  { %v8985_v55 = vpop.f32.mrb[98].mxu1 }
0x36d0   :  { %8990 = vrot.lane.b32.xlu0 %v8985_v55, %s13777_s13  ;;  %v12726_v2 = vpop.f32.mrb[99].mxu1 }
0x36fd   :  { %v7966_v50 = vpop.permute.xlu1 %7965 }
0x36fe   :  { %7968 = vst.msk [vmem:[#allocation2] sm:$0xff] %vm648_vm4, %v7966_v50 }
0x3701   :  { %v8138_v63 = vpop.permute.xlu0 %8137 }
0x3702   :  { %8140 = vst.msk [vmem:[#allocation2] sm:$0xff] %vm820_vm5, %v8138_v63  ;;  %v11535_v63 = vld [vmem:[%s15522_s10 + $0x1] ss:$0 sm:$0xff] }
0x3705   :  { %v8310_v1 = vpop.permute.xlu0 %8309 }
0x3706   :  { %8312 = vst.msk [vmem:[#allocation2] sm:$0xff] %vm992_vm6, %v8310_v1 }
0x370d   :  { %v8647_v8 = vpop.permute.xlu1 %8646  ;;  %v8994_v7 = vld [vmem:[#allocation2] sm:$0xff] }
0x370e   :  { %8649 = vst.msk [vmem:[#allocation2 + $0x8] sm:$0xff] %vm648_vm4, %v8647_v8  ;;  %12743 = vmatprep.mubr.msk.f32.mxu0 %vm228_vm0, %v8994_v7 }
0x373e   :  { %v8819_v31 = vpop.permute.xlu1 %8818 }
0x373f   :  { %8821 = vst.msk [vmem:[#allocation2 + $0x8] sm:$0xff] %vm820_vm5, %v8819_v31 }
0x3742   :  { %v8991_v61 = vpop.permute.xlu0 %8990 }
0x3743   :  { %8993 = vst.msk [vmem:[#allocation2 + $0x8] sm:$0xff] %vm992_vm6, %v8991_v61  ;;  %v11545_v61 = vld [vmem:[%s15524_s15 + $0x1] ss:$0 sm:$0xff] }
0x374a   :  { %v8995_v13 = vld [vmem:[#allocation2 + $0x8] sm:$0xff] }
0x374b   :  { %12744 = vmatmul.mubr.msk.f32.vlgmr.msra.gmra.mrb[100].mxu0 %vm228_vm0, %v8995_v13 }
0x374c   :  { %13295 = vmatpush3.bf16.msra.mxu0 %v13292_v5  ;;  %12781 = vmatprep.mubr.msk.f32.mxu0 %vm228_vm0, %v14762_v58  ;;  %v11529_v58 = vld [vmem:[%s15516_s8 + $0x1] ss:$0 sm:$0xff] }
0x374d   :  { %13297 = vmatprep.subr.bf16.mxu0 %v13296_v12 }
0x3750   :  { %13299 = vmatpush3.bf16.msra.mxu0 %v13296_v12 }
0x3751   :  { %13301 = vmatprep.subr.bf16.mxu0 %v13300_v16 }
0x3754   :  { %13303 = vmatpush3.bf16.msra.mxu0 %v13300_v16 }
0x3755   :  { %13305 = vmatprep.subr.bf16.mxu0 %v13304_v20 }
0x3758   :  { %13307 = vmatpush3.bf16.msra.mxu0 %v13304_v20 }
0x3759   :  { %12804 = vmatprep.subr.mxu0 %v13775_v0 }
0x375b   :  { %12782 = vmatmul.mubr.msk.f32.vlgmr.msra.gmra.mrb[102].mxu0 %vm228_vm0, %v14765_v60 }
0x375c   :  { %12806 = vmatprep.mubr.msk.f32.mxu0 %vm13776_vm1, %v13775_v0 }
0x381e   :  { %v12745_v22 = vpop.f32.mrb[100].mxu0 }
0x381f   :  { %v9091_v28 = vadd.f32 %v12745_v22, %v11529_v58  ;;  %v9085_v23 = vpop.f32.mrb[101].mxu0 }
0x3820   :  { %v9086_v26 = vadd.f32 %v11529_v58, %v9085_v23 }
0x3821   :  { %v9095_v29 = vadd.f32 %v9091_v28, %v15025_v11 }
0x3822   :  { %v9094_v25 = vadd.f32 %v9086_v26, %v15020_v3 }
0x3823   :  { %v9103_v9 = vsel %vm228_vm0, %v9095_v29, 0.0 }
0x3824   :  { %9104 = vadd.xlane.f32.xlu0 %v9103_v9  ;;  %v9100_v21 = vsel %vm228_vm0, %v9094_v25, 0.0 }
0x3825   :  { %9101 = vadd.xlane.f32.xlu1 %v9100_v21 }
0x382e   :  { %v12783_v60 = vpop.f32.mrb[102].mxu0 }
0x382f   :  { %v15208_v18 = vadd.f32 %v12783_v60, %v11557_v33  ;;  %v9323_v36 = vpop.f32.mrb[103].mxu0 }
0x3830   :  { %v15214_v35 = vadd.f32 %v11557_v33, %v9323_v36 }
0x38b1   :  { %v9105_v38 = vpop.xlane.xlu0 %9104 }
0x38b2   :  { %v9107_v37 = vmul.f32 0.015625, %v9105_v38  ;;  %v9102_v30 = vpop.xlane.xlu1 %9101 }
0x38b3   :  { %v9106_v40 = vmul.f32 0.015625, %v9102_v30 }
0x38b4   :  { %v9109_v11 = vsub.f32 %v9095_v29, %v9107_v37 }
0x38b5   :  { %v9108_v3 = vsub.f32 %v9094_v25, %v9106_v40 }
0x38b6   :  { %v9111_v41 = vmul.f32 %v9109_v11, %v9109_v11 }
0x38b7   :  { %v9110_v27 = vmul.f32 %v9108_v3, %v9108_v3 }
0x38b8   :  { %v9115_v4 = vsel %vm228_vm0, %v9111_v41, 0.0 }
0x38b9   :  { %9116 = vadd.xlane.f32.xlu1 %v9115_v4  ;;  %v9112_v42 = vsel %vm228_vm0, %v9110_v27, 0.0 }
0x38ba   :  { %9113 = vadd.xlane.f32.xlu0 %v9112_v42 }
0x38ca   :  { %9499 = vrot.lane.b32.xlu1 %v15214_v35, %s13779_s28 }
0x3946   :  { %v9117_v6 = vpop.xlane.xlu1 %9116 }
0x3947   :  { %v9119_v54 = vmul.f32 0.015625, %v9117_v6  ;;  %v9114_v56 = vpop.xlane.xlu0 %9113 }
0x3948   :  { %v9118_v46 = vmul.f32 0.015625, %v9114_v56 }
0x3949   :  { %v9121_v57 = vadd.f32 1e-05, %v9119_v54 }
0x394a   :  { %v9120_v5 = vadd.f32 1e-05, %v9118_v46  ;;  %v9500_v29 = vpop.permute.xlu1 %9499 }
0x394b   :  { %13633 = vrsqrt.f32 %v9121_v57 }
0x394c   :  { %13635 = vrsqrt.f32 %v9120_v5 }
0x3955   :  { %v13634_v59 = vpop.eup %13633 }
0x3956   :  { %v13636_v55 = vpop.eup %13635  ;;  %v9125_v2 = vmul.f32 %v13634_v59, %v9109_v11 }
0x3957   :  { %v9124_v50 = vmul.f32 %v13636_v55, %v9108_v3 }
0x3958   :  { %v9133_v1 = vmul.f32 %v11534_v62, %v9125_v2 }
0x3959   :  { %v9132_v8 = vmul.f32 %v11534_v62, %v9124_v50 }
0x395a   :  { %v15229_v31 = vadd.f32 %v11535_v63, %v9133_v1 }
0x395b   :  { %v15227_v7 = vadd.f32 %v11535_v63, %v9132_v8 }
0x395d   :  { %12762 = vmatprep.mubr.msk.f32.mxu1 %vm228_vm0, %v15227_v7 }
0x395e   :  { %12763 = vmatmul.mubr.msk.f32.vlgmr.msra.gmra.mrb[100].mxu1 %vm228_vm0, %v15229_v31 }
0x395f   :  { %12785 = vmatpush3.xpose.msk.msra.mxu1 %vm315_vm2, %v15214_v35  ;;  %12786 = vmatprep.mubr.msk.f32.mxu1 %vm13776_vm1, %v13775_v0 }
0x3960   :  { %12789 = vmatprep.subr.mxu1 %v13775_v0 }
0x3a31   :  { %v12764_v32 = vpop.f32.mrb[100].mxu1 }
0x3a32   :  { %v9237_v10 = vadd.f32 %v12764_v32, %v11545_v61  ;;  %v9231_v12 = vpop.f32.mrb[101].mxu1 }
0x3a33   :  { %v9232_v13 = vadd.f32 %v11545_v61, %v9231_v12 }
0x3a35   :  { %9497 = vrot.lane.b32.xlu1 %v9232_v13, %s13779_s28  ;;  %12787 = vmatmul.mubr.msk.f32.vlgmr.msra.gmra.mrb[102].mxu1 %vm315_vm2, %v9232_v13 }
0x3a36   :  { %12791 = vmatprep.mubr.msk.f32.mxu1 %vm13776_vm1, %v13775_v0 }
0x3aa7   :  { %v9498_v25 = vpop.permute.xlu1 %9497 }
0x3b08   :  { %v9404_v14 = vpop.f32.mrb[102].mxu1 }
0x3b09   :  { %v9408_v15 = vmul.f32 0.25, %v9404_v14  ;;  %v12788_v16 = vpop.f32.mrb[103].mxu1 }
0x3b0b   :  { %v9409_v17 = vsel %vm391_vm3, %v9408_v15, -inf }
0x3b0c   :  { %9410 = vmax.xlane.f32.xlu0 %v9409_v17 }
0x3b22   :  { %9420 = vrot.lane.b32.xlu0 %v15214_v35, %s13778_s27 }
0x3b26   :  { %9670 = vrot.lane.b32.xlu0 %v15214_v35, %s13780_s1 }
0x3b2a   :  { %9841 = vrot.lane.b32.xlu0 %v15214_v35, %s13782_s7 }
0x3b2e   :  { %10177 = vrot.lane.b32.xlu0 %v15208_v18, %s13779_s28 }
0x3b32   :  { %10348 = vrot.lane.b32.xlu0 %v15208_v18, %s13780_s1 }
0x3b36   :  { %10519 = vrot.lane.b32.xlu0 %v15208_v18, %s13782_s7 }
0x3b99   :  { %v9411_v19 = vpop.xlane.xlu0 %9410 }
0x3b9a   :  { %v9412_v20 = vsub.f32 %v9408_v15, %v9411_v19 }
0x3b9c   :  { %v9413_v58 = vmul.f32 1.442695, %v9412_v20 }
0x3b9d   :  { %v9421_v22 = vpop.permute.xlu0 %9420 }
0x3b9e   :  { %13637 = vpow2.f32 %v9413_v58  ;;  %12790 = vmatpush3.msra.mxu1 %v9421_v22 }
0x3b9f   :  { %12794 = vmatprep.subr.mxu1 %v13775_v0 }
0x3ba1   :  { %v9671_v28 = vpop.permute.xlu0 %9670 }
0x3ba2   :  { %12805 = vmatpush3.xpose.msk.msra.mxu0 %vm315_vm2, %v9671_v28 }
0x3ba3   :  { %12814 = vmatprep.subr.mxu0 %v13775_v0 }
0x3ba5   :  { %v9842_v21 = vpop.permute.xlu0 %9841 }
0x3ba8   :  { %v13638_v23 = vpop.eup %13637 }
0x3ba9   :  { %v9415_v26 = vsel %vm391_vm3, %v13638_v23, 0.0  ;;  %v10178_v36 = vpop.permute.xlu0 %10177 }
0x3baa   :  { %9416 = vadd.xlane.f32.xlu1 %v9415_v26 }
0x3bad   :  { %v10349_v40 = vpop.permute.xlu0 %10348 }
0x3bb1   :  { %v10520_v3 = vpop.permute.xlu0 %10519 }
0x3bbb   :  { %9668 = vrot.lane.b32.xlu1 %v9232_v13, %s13780_s1 }
0x3bbf   :  { %9839 = vrot.lane.b32.xlu1 %v9232_v13, %s13782_s7 }
0x3bc3   :  { %10175 = vrot.lane.b32.xlu1 %v9237_v10, %s13779_s28 }
0x3bc7   :  { %10346 = vrot.lane.b32.xlu1 %v9237_v10, %s13780_s1 }
0x3bcb   :  { %10517 = vrot.lane.b32.xlu1 %v9237_v10, %s13782_s7 }
0x3c37   :  { %v9417_v9 = vpop.xlane.xlu1 %9416 }
0x3c38   :  { %13639 = vrcp.f32 %v9417_v9 }
0x3c3b   :  { %v9669_v33 = vpop.permute.xlu1 %9668 }
0x3c3c   :  { %12807 = vmatmul.mubr.msk.f32.vlgmr.msra.gmra.mrb[104].mxu0 %vm315_vm2, %v9669_v33 }
0x3c3d   :  { %12815 = vmatpush3.xpose.msk.msra.mxu0 %vm315_vm2, %v9842_v21  ;;  %12816 = vmatprep.mubr.msk.f32.mxu0 %vm13776_vm1, %v13775_v0 }
0x3c3e   :  { %12824 = vmatprep.subr.mxu0 %v13775_v0 }
0x3c3f   :  { %v9840_v60 = vpop.permute.xlu1 %9839 }
0x3c40   :  { %12817 = vmatmul.mubr.msk.f32.vlgmr.msra.gmra.mrb[106].mxu0 %vm315_vm2, %v9840_v60 }
0x3c41   :  { %12825 = vmatpush3.xpose.msk.msra.mxu0 %vm315_vm2, %v15208_v18  ;;  %12826 = vmatprep.mubr.msk.f32.mxu0 %vm13776_vm1, %v13775_v0 }
0x3c42   :  { %v13640_v38 = vpop.eup %13639  ;;  %12834 = vmatprep.subr.mxu0 %v13775_v0 }
0x3c43   :  { %v9419_v37 = vmul.f32 %v13640_v38, %v13638_v23  ;;  %v10176_v30 = vpop.permute.xlu1 %10175 }
0x3c44   :  { %12827 = vmatmul.mubr.msk.f32.vlgmr.msra.gmra.mrb[108].mxu0 %vm315_vm2, %v9237_v10 }
0x3c45   :  { %12835 = vmatpush3.xpose.msk.msra.mxu0 %vm315_vm2, %v10178_v36  ;;  %12792 = vmatmul.mubr.msk.f32.vlgmr.msra.gmra.mrb[104].mxu1 %vm391_vm3, %v9419_v37 }
0x3c46   :  { %12795 = vmatpush3.xpose.msk.msra.mxu1 %vm315_vm2, %v9500_v29  ;;  %12836 = vmatprep.mubr.msk.f32.mxu0 %vm13776_vm1, %v13775_v0 }
0x3c47   :  { %12844 = vmatprep.subr.mxu0 %v13775_v0  ;;  %12796 = vmatprep.mubr.msk.f32.mxu1 %vm13776_vm1, %v13775_v0  ;;  %v10347_v11 = vpop.permute.xlu1 %10346 }
0x3c48   :  { %12837 = vmatmul.mubr.msk.f32.vlgmr.msra.gmra.mrb[110].mxu0 %vm315_vm2, %v10176_v30  ;;  %12799 = vmatprep.subr.mxu1 %v13775_v0 }
0x3c49   :  { %12845 = vmatpush3.xpose.msk.msra.mxu0 %vm315_vm2, %v10349_v40  ;;  %12797 = vmatmul.mubr.msk.f32.vlgmr.msra.gmra.mrb[106].mxu1 %vm315_vm2, %v9498_v25 }
0x3c4a   :  { %12846 = vmatprep.mubr.msk.f32.mxu0 %vm13776_vm1, %v13775_v0  ;;  %12854 = vmatprep.subr.mxu0 %v13775_v0 }
0x3c4b   :  { %12801 = vmatprep.mubr.msk.f32.mxu1 %vm13776_vm1, %v13775_v0  ;;  %v10518_v41 = vpop.permute.xlu1 %10517 }
0x3c4c   :  { %12847 = vmatmul.mubr.msk.f32.vlgmr.msra.gmra.mrb[112].mxu0 %vm315_vm2, %v10347_v11 }
0x3c4d   :  { %12855 = vmatpush3.xpose.msk.msra.mxu0 %vm315_vm2, %v10520_v3  ;;  %12856 = vmatprep.mubr.msk.f32.mxu0 %vm13776_vm1, %v13775_v0 }
0x3c50   :  { %12857 = vmatmul.mubr.msk.f32.vlgmr.msra.gmra.mrb[114].mxu0 %vm315_vm2, %v10518_v41 }
0x3d0f   :  { %v9742_v27 = vpop.f32.mrb[104].mxu0 }
0x3d10   :  { %v9746_v4 = vmul.f32 0.25, %v9742_v27  ;;  %v12808_v42 = vpop.f32.mrb[105].mxu0 }
0x3d12   :  { %v9747_v43 = vsel %vm391_vm3, %v9746_v4, -inf }
0x3d13   :  { %9748 = vmax.xlane.f32.xlu1 %v9747_v43  ;;  %v9913_v24 = vpop.f32.mrb[106].mxu0 }
0x3d14   :  { %v12818_v39 = vpop.f32.mrb[107].mxu0  ;;  %v9917_v56 = vmul.f32 0.25, %v9913_v24 }
0x3d16   :  { %v9918_v55 = vsel %vm391_vm3, %v9917_v56, -inf }
0x3d17   :  { %v10082_v44 = vpop.f32.mrb[108].mxu0 }
0x3d18   :  { %v9492_v45 = vpop.f32.mrb[104].mxu1  ;;  %v12828_v34 = vpop.f32.mrb[109].mxu0  ;;  %v10086_v59 = vmul.f32 0.25, %v10082_v44 }
0x3d19   :  { %9496 = vst.msk [vmem:[#allocation2] sm:$0xff] %vm315_vm2, %v9492_v45  ;;  %v12793_v47 = vpop.f32.mrb[105].mxu1 }
0x3d1a   :  { %v10087_v8 = vsel %vm391_vm3, %v10086_v59, -inf }
0x3d1b   :  { %v10249_v48 = vpop.f32.mrb[110].mxu0 }
0x3d1c   :  { %v10253_v49 = vmul.f32 0.25, %v10249_v48  ;;  %v9571_v51 = vpop.f32.mrb[106].mxu1  ;;  %v12838_v52 = vpop.f32.mrb[111].mxu0 }
0x3d1d   :  { %v9575_v53 = vmul.f32 0.25, %v9571_v51  ;;  %v12798_v6 = vpop.f32.mrb[107].mxu1 }
0x3d1e   :  { %v10254_v54 = vsel %vm391_vm3, %v10253_v49, -inf }
0x3d1f   :  { %10255 = vmax.xlane.f32.xlu1 %v10254_v54  ;;  %v10420_v46 = vpop.f32.mrb[112].mxu0  ;;  %v9576_v57 = vsel %vm391_vm3, %v9575_v53, -inf }
0x3d20   :  { %9577 = vmax.xlane.f32.xlu0 %v9576_v57  ;;  %v12848_v5 = vpop.f32.mrb[113].mxu0  ;;  %v10424_v1 = vmul.f32 0.25, %v10420_v46 }
0x3d22   :  { %v10425_v61 = vsel %vm391_vm3, %v10424_v1, -inf }
0x3d23   :  { %v10591_v62 = vpop.f32.mrb[114].mxu0 }
0x3d24   :  { %v10595_v2 = vmul.f32 0.25, %v10591_v62  ;;  %9919 = vmax.xlane.f32.xlu0 %v9918_v55  ;;  %v12858_v50 = vpop.f32.mrb[115].mxu0 }
0x3d26   :  { %v10596_v63 = vsel %vm391_vm3, %v10595_v2, -inf }
0x3d27   :  { %10597 = vmax.xlane.f32.xlu1 %v10596_v63 }
0x3d28   :  { %10088 = vmax.xlane.f32.xlu0 %v10087_v8 }
0x3d2c   :  { %10426 = vmax.xlane.f32.xlu0 %v10425_v61 }
0x3da0   :  { %v9749_v32 = vpop.xlane.xlu1 %9748 }
0x3da1   :  { %v9750_v10 = vsub.f32 %v9746_v4, %v9749_v32 }
0x3da3   :  { %v9751_v12 = vmul.f32 1.442695, %v9750_v10 }
0x3da5   :  { %13641 = vpow2.f32 %v9751_v12 }
0x3dac   :  { %v10256_v13 = vpop.xlane.xlu1 %10255 }
0x3dad   :  { %v9578_v14 = vpop.xlane.xlu0 %9577  ;;  %v10257_v16 = vsub.f32 %v10253_v49, %v10256_v13 }
0x3dae   :  { %v9579_v25 = vsub.f32 %v9575_v53, %v9578_v14  ;;  %v11584_v14 = vld [vmem:[%s15525_s16 + $0x40] sm:$0xff] }
0x3daf   :  { %v15309_v15 = vpop.eup %13641  ;;  %v10258_v58 = vmul.f32 1.442695, %v10257_v16 }
0x3db0   :  { %v9753_v17 = vsel %vm391_vm3, %v15309_v15, 0.0  ;;  %v9580_v36 = vmul.f32 1.442695, %v9579_v25 }
0x3db1   :  { %v9920_v19 = vpop.xlane.xlu0 %9919  ;;  %9754 = vadd.xlane.f32.xlu1 %v9753_v17 }
0x3db2   :  { %v9921_v20 = vsub.f32 %v9917_v56, %v9920_v19 }
0x3db4   :  { %v9922_v22 = vmul.f32 1.442695, %v9921_v20  ;;  %v10598_v28 = vpop.xlane.xlu1 %10597  ;;  %v11587_v20 = vld [vmem:[%s15525_s16 + $0x58] sm:$0xff] }
0x3db5   :  { %v10599_v23 = vsub.f32 %v10595_v2, %v10598_v28  ;;  %v10089_v26 = vpop.xlane.xlu0 %10088 }
0x3db6   :  { %13643 = vpow2.f32 %v9922_v22  ;;  %v10090_v29 = vsub.f32 %v10086_v59, %v10089_v26  ;;  %v11589_v26 = vld [vmem:[%s15525_s16 + $0x68] sm:$0xff] }
0x3db7   :  { %13645 = vpow2.f32 %v10258_v58  ;;  %v10600_v9 = vmul.f32 1.442695, %v10599_v23  ;;  %v11588_v23 = vld [vmem:[%s15525_s16 + $0x60] sm:$0xff] }
0x3db8   :  { %v10091_v21 = vmul.f32 1.442695, %v10090_v29  ;;  %v13316_v29 = vpack.c.bf16 %v11589_v26, %v11588_v23  ;;  %v11619_v26 = vld [vmem:[%s15528_s23 + $0xc0] sm:$0xff] }
0x3db9   :  { %v10427_v33 = vpop.xlane.xlu0 %10426 }
0x3dba   :  { %13647 = vpow2.f32 %v10091_v21  ;;  %v10428_v60 = vsub.f32 %v10424_v1, %v10427_v33  ;;  %v11591_v21 = vld [vmem:[%s15525_s16 + $0x78] sm:$0xff] }
0x3dbb   :  { %13649 = vpow2.f32 %v10600_v9  ;;  %v11590_v9 = vld [vmem:[%s15525_s16 + $0x70] sm:$0xff] }
0x3dbc   :  { %v10429_v38 = vmul.f32 1.442695, %v10428_v60  ;;  %v13320_v60 = vpack.c.bf16 %v11591_v21, %v11590_v9  ;;  %v11621_v9 = vld [vmem:[%s15528_s23 + $0xd0] sm:$0xff]  ;;  %v11622_v21 = vld [vmem:[%s15528_s23 + $0xd8] sm:$0xff] }
0x3dbe   :  { %13651 = vpow2.f32 %v10429_v38 }
0x3dbf   :  { %13653 = vpow2.f32 %v9580_v36 }
0x3dc0   :  { %v13644_v37 = vpop.eup %13643 }
0x3dc1   :  { %v9924_v30 = vsel %vm391_vm3, %v13644_v37, 0.0  ;;  %v15314_v40 = vpop.eup %13645 }
0x3dc2   :  { %9925 = vadd.xlane.f32.xlu0 %v9924_v30  ;;  %v10260_v41 = vsel %vm391_vm3, %v15314_v40, 0.0 }
0x3dc4   :  { %v13648_v11 = vpop.eup %13647 }
0x3dc5   :  { %v10093_v3 = vsel %vm391_vm3, %v13648_v11, 0.0  ;;  %v15319_v27 = vpop.eup %13649 }
0x3dc6   :  { %10094 = vadd.xlane.f32.xlu1 %v10093_v3  ;;  %10261 = vadd.xlane.f32.xlu0 %v10260_v41  ;;  %v10602_v43 = vsel %vm391_vm3, %v15319_v27, 0.0 }
0x3dc8   :  { %v15321_v4 = vpop.eup %13651 }
0x3dc9   :  { %v10431_v42 = vsel %vm391_vm3, %v15321_v4, 0.0  ;;  %v13654_v24 = vpop.eup %13653 }
0x3dca   :  { %10432 = vadd.xlane.f32.xlu1 %v10431_v42  ;;  %10603 = vadd.xlane.f32.xlu0 %v10602_v43  ;;  %v9582_v39 = vsel %vm391_vm3, %v13654_v24, 0.0 }
0x3dce   :  { %9583 = vadd.xlane.f32.xlu0 %v9582_v39 }
0x3ddb   :  { %9587 = vrot.lane.b32.xlu1 %v15214_v35, %s13777_s13 }
0x3ddf   :  { %9929 = vrot.lane.b32.xlu1 %v15214_v35, %s13772_s0 }
0x3de3   :  { %10098 = vrot.lane.b32.xlu1 %v15208_v18, %s13778_s27 }
0x3de4   :  { %9758 = vrot.lane.b32.xlu0 %v15214_v35, %s13781_s2 }
0x3de7   :  { %10436 = vrot.lane.b32.xlu1 %v15208_v18, %s13781_s2 }
0x3de8   :  { %10265 = vrot.lane.b32.xlu0 %v15208_v18, %s13777_s13 }
0x3dec   :  { %10607 = vrot.lane.b32.xlu0 %v15208_v18, %s13772_s0 }
0x3e3e   :  { %v9755_v44 = vpop.xlane.xlu1 %9754 }
0x3e4f   :  { %v9926_v45 = vpop.xlane.xlu0 %9925 }
0x3e53   :  { %v10262_v34 = vpop.xlane.xlu0 %10261  ;;  %v10095_v47 = vpop.xlane.xlu1 %10094 }
0x3e57   :  { %v10604_v48 = vpop.xlane.xlu0 %10603  ;;  %v10433_v49 = vpop.xlane.xlu1 %10432 }
0x3e5b   :  { %v9584_v51 = vpop.xlane.xlu0 %9583  ;;  %v9588_v52 = vpop.permute.xlu1 %9587 }
0x3e5c   :  { %13655 = vrcp.f32 %v9584_v51  ;;  %12800 = vmatpush3.msra.mxu1 %v9588_v52 }
0x3e5d   :  { %12809 = vmatprep.subr.mxu1 %v13775_v0  ;;  %13657 = vrcp.f32 %v9755_v44  ;;  %v11593_v44 = vld [vmem:[%s15526_s18 + $0x1] ss:$0 sm:$0xff] }
0x3e5e   :  { %13659 = vrcp.f32 %v9926_v45 }
0x3e5f   :  { %13661 = vrcp.f32 %v10095_v47  ;;  %v9759_v54 = vpop.permute.xlu0 %9758  ;;  %v9930_v56 = vpop.permute.xlu1 %9929 }
0x3e60   :  { %13663 = vrcp.f32 %v10262_v34 }
0x3e61   :  { %13665 = vrcp.f32 %v10433_v49 }
0x3e62   :  { %13667 = vrcp.f32 %v10604_v48 }
0x3e63   :  { %v10099_v59 = vpop.permute.xlu1 %10098  ;;  %v10266_v2 = vpop.permute.xlu0 %10265 }
0x3e66   :  { %v13656_v35 = vpop.eup %13655 }
0x3e67   :  { %v9586_v53 = vmul.f32 %v13656_v35, %v13654_v24  ;;  %v13658_v6 = vpop.eup %13657  ;;  %v10437_v1 = vpop.permute.xlu1 %10436 }
0x3e68   :  { %v9757_v18 = vmul.f32 %v13658_v6, %v15309_v15  ;;  %v13660_v46 = vpop.eup %13659  ;;  %v10608_v32 = vpop.permute.xlu0 %10607  ;;  %v11585_v15 = vld [vmem:[%s15525_s16 + $0x48] sm:$0xff] }
0x3e69   :  { %12802 = vmatmul.mubr.msk.f32.vlgmr.msra.gmra.mrb[108].mxu1 %vm391_vm3, %v9586_v53  ;;  %v9928_v57 = vmul.f32 %v13660_v46, %v13644_v37  ;;  %v13662_v5 = vpop.eup %13661  ;;  %v13308_v16 = vpack.c.bf16 %v11585_v15, %v11584_v14  ;;  %v11612_v14 = vld [vmem:[%s15528_s23 + $0x88] sm:$0xff]  ;;  %v11613_v15 = vld [vmem:[%s15528_s23 + $0x90] sm:$0xff] }
0x3e6a   :  { %12810 = vmatpush3.msra.mxu1 %v9759_v54  ;;  %12811 = vmatprep.mubr.msk.f32.mxu1 %vm13776_vm1, %v13775_v0  ;;  %v10097_v62 = vmul.f32 %v13662_v5, %v13648_v11  ;;  %v13664_v55 = vpop.eup %13663 }
0x3e6b   :  { %12819 = vmatprep.subr.mxu1 %v13775_v0  ;;  %v10264_v50 = vmul.f32 %v13664_v55, %v15314_v40  ;;  %v13666_v63 = vpop.eup %13665  ;;  %13309 = vmatprep.subr.bf16.mxu0 %v13308_v16 }
0x3e6c   :  { %v10435_v8 = vmul.f32 %v13666_v63, %v15321_v4  ;;  %v13668_v61 = vpop.eup %13667  ;;  %13311 = vmatpush3.bf16.msra.mxu0 %v13308_v16 }
0x3e6d   :  { %12812 = vmatmul.mubr.msk.f32.vlgmr.msra.gmra.mrb[110].mxu1 %vm391_vm3, %v9757_v18  ;;  %v10606_v10 = vmul.f32 %v13668_v61, %v15319_v27 }
0x3e6e   :  { %12820 = vmatpush3.msra.mxu1 %v9930_v56  ;;  %12821 = vmatprep.mubr.msk.f32.mxu1 %vm13776_vm1, %v13775_v0 }
0x3e6f   :  { %12829 = vmatprep.subr.mxu1 %v13775_v0 }
0x3e71   :  { %12822 = vmatmul.mubr.msk.f32.vlgmr.msra.gmra.mrb[112].mxu1 %vm391_vm3, %v9928_v57 }
0x3e72   :  { %12830 = vmatpush3.msra.mxu1 %v10099_v59  ;;  %12831 = vmatprep.mubr.msk.f32.mxu1 %vm13776_vm1, %v13775_v0  ;;  %v11600_v59 = vld [vmem:[%s15527_s22 + $0x40] sm:$0xff] }
0x3e73   :  { %12839 = vmatprep.subr.mxu1 %v13775_v0 }
0x3e75   :  { %12832 = vmatmul.mubr.msk.f32.vlgmr.msra.gmra.mrb[114].mxu1 %vm391_vm3, %v10097_v62  ;;  %v11601_v62 = vld [vmem:[%s15527_s22 + $0x48] sm:$0xff] }
0x3e76   :  { %12840 = vmatpush3.msra.mxu1 %v10266_v2  ;;  %12841 = vmatprep.mubr.msk.f32.mxu1 %vm13776_vm1, %v13775_v0  ;;  %v13324_v55 = vpack.c.bf16 %v11601_v62, %v11600_v59  ;;  %v11602_v2 = vld [vmem:[%s15527_s22 + $0x50] sm:$0xff] }
0x3e77   :  { %12849 = vmatprep.subr.mxu1 %v13775_v0 }
0x3e79   :  { %12842 = vmatmul.mubr.msk.f32.vlgmr.msra.gmra.mrb[116].mxu1 %vm391_vm3, %v10264_v50  ;;  %v11603_v50 = vld [vmem:[%s15527_s22 + $0x58] sm:$0xff] }
0x3e7a   :  { %12850 = vmatpush3.msra.mxu1 %v10437_v1  ;;  %12851 = vmatprep.mubr.msk.f32.mxu1 %vm13776_vm1, %v13775_v0  ;;  %v13328_v63 = vpack.c.bf16 %v11603_v50, %v11602_v2  ;;  %v11604_v1 = vld [vmem:[%s15527_s22 + $0x60] sm:$0xff] }
0x3e7b   :  { %12859 = vmatprep.subr.mxu1 %v13775_v0 }
0x3e7d   :  { %12852 = vmatmul.mubr.msk.f32.vlgmr.msra.gmra.mrb[118].mxu1 %vm391_vm3, %v10435_v8  ;;  %v11605_v8 = vld [vmem:[%s15527_s22 + $0x68] sm:$0xff] }
0x3e7e   :  { %12860 = vmatpush3.msra.mxu1 %v10608_v32  ;;  %12861 = vmatprep.mubr.msk.f32.mxu1 %vm13776_vm1, %v13775_v0  ;;  %v11586_v0 = vld [vmem:[%s15525_s16 + $0x50] sm:$0xff]  ;;  %v13332_v61 = vpack.c.bf16 %v11605_v8, %v11604_v1 }
0x3e7f   :  { %v13312_v58 = vpack.c.bf16 %v11587_v20, %v11586_v0  ;;  %13325 = vmatprep.subr.bf16.mxu1 %v13324_v55  ;;  %v11606_v32 = vld [vmem:[%s15527_s22 + $0x70] sm:$0xff]  ;;  %v11615_v0 = vld [vmem:[%s15528_s23 + $0xa0] sm:$0xff]  ;;  %v11616_v20 = vld [vmem:[%s15528_s23 + $0xa8] sm:$0xff] }
0x3e81   :  { %12862 = vmatmul.mubr.msk.f32.vlgmr.msra.gmra.mrb[120].mxu1 %vm391_vm3, %v10606_v10  ;;  %13313 = vmatprep.subr.bf16.mxu0 %v13312_v58  ;;  %v11607_v10 = vld [vmem:[%s15527_s22 + $0x78] sm:$0xff] }
0x3e82   :  { %13315 = vmatpush3.bf16.msra.mxu0 %v13312_v58  ;;  %13327 = vmatpush3.bf16.msra.mxu1 %v13324_v55  ;;  %v13348_v58 = vpack.c.bf16 %v11616_v20, %v11615_v0 }
0x3e83   :  { %13317 = vmatprep.subr.bf16.mxu0 %v13316_v29  ;;  %13329 = vmatprep.subr.bf16.mxu1 %v13328_v63 }
0x3e86   :  { %13319 = vmatpush3.bf16.msra.mxu0 %v13316_v29  ;;  %13331 = vmatpush3.bf16.msra.mxu1 %v13328_v63  ;;  %v11620_v29 = vld [vmem:[%s15528_s23 + $0xc8] sm:$0xff] }
0x3e87   :  { %13321 = vmatprep.subr.bf16.mxu0 %v13320_v60  ;;  %13333 = vmatprep.subr.bf16.mxu1 %v13332_v61 }
0x3e8a   :  { %13323 = vmatpush3.bf16.msra.mxu0 %v13320_v60  ;;  %13335 = vmatpush3.bf16.msra.mxu1 %v13332_v61  ;;  %v11623_v60 = vld [vmem:[%s15528_s23 + $0xe0] sm:$0xff] }
0x3f3c   :  { %v9659_v12 = vpop.f32.mrb[108].mxu1 }
0x3f3d   :  { %9664 = vrot.lane.b32.xlu1 %v9659_v12, %s13772_s0  ;;  %v12803_v13 = vpop.f32.mrb[109].mxu1  ;;  %v13336_v12 = vpack.c.bf16 %v11607_v10, %v11606_v32 }
0x3f3e   :  { %v11611_v13 = vld [vmem:[%s15528_s23 + $0x80] sm:$0xff] }
0x3f3f   :  { %13337 = vmatprep.subr.bf16.mxu1 %v13336_v12  ;;  %v13340_v16 = vpack.c.bf16 %v11612_v14, %v11611_v13 }
0x3f40   :  { %v9830_v17 = vpop.f32.mrb[110].mxu1  ;;  %13339 = vmatpush3.bf16.msra.mxu1 %v13336_v12 }
0x3f41   :  { %9835 = vrot.lane.b32.xlu0 %v9830_v17, %s13781_s2  ;;  %v12813_v19 = vpop.f32.mrb[111].mxu1  ;;  %v11614_v17 = vld [vmem:[%s15528_s23 + $0x98] sm:$0xff]  ;;  %13341 = vmatprep.subr.bf16.mxu0 %v13340_v16 }
0x3f42   :  { %v13344_v19 = vpack.c.bf16 %v11614_v17, %v11613_v15 }
0x3f44   :  { %v10001_v22 = vpop.f32.mrb[112].mxu1 }
0x3f45   :  { %10006 = vrot.lane.b32.xlu0 %v10001_v22, %s13777_s13  ;;  %v12823_v28 = vpop.f32.mrb[113].mxu1  ;;  %v11617_v22 = vld [vmem:[%s15528_s23 + $0xb0] sm:$0xff] }
0x3f46   :  { %v11618_v28 = vld [vmem:[%s15528_s23 + $0xb8] sm:$0xff] }
0x3f47   :  { %v13352_v23 = vpack.c.bf16 %v11618_v28, %v11617_v22  ;;  %v11630_v22 = vld [vmem:[%s15531_s21 + $0x1] ss:$0 sm:$0xff] }
0x3f48   :  { %v10170_v25 = vpop.f32.mrb[114].mxu1 }
0x3f49   :  { %10174 = vst.msk [vmem:[#allocation2 + $0x8] sm:$0xff] %vm315_vm2, %v10170_v25  ;;  %v12833_v33 = vpop.f32.mrb[115].mxu1  ;;  %v13356_v25 = vpack.c.bf16 %v11620_v29, %v11619_v26  ;;  %v11631_v26 = vld [vmem:[%s15532_s24 + $0x1] ss:$0 sm:$0xff] }
0x3f4a   :  { %v13360_v33 = vpack.c.bf16 %v11622_v21, %v11621_v9 }
0x3f4c   :  { %v10337_v36 = vpop.f32.mrb[116].mxu1 }
0x3f4d   :  { %10342 = vrot.lane.b32.xlu1 %v10337_v36, %s13772_s0  ;;  %v12843_v38 = vpop.f32.mrb[117].mxu1  ;;  %v11624_v36 = vld [vmem:[%s15528_s23 + $0xe8] sm:$0xff]  ;;  %s15533_s0 = sld [smem:[#allocation32_spill]] }
0x3f4e   :  { %v13364_v38 = vpack.c.bf16 %v11624_v36, %v11623_v60 }
0x3f50   :  { %v10508_v37 = vpop.f32.mrb[118].mxu1 }
0x3f51   :  { %10513 = vrot.lane.b32.xlu1 %v10508_v37, %s13781_s2  ;;  %v12853_v30 = vpop.f32.mrb[119].mxu1 }
0x3f54   :  { %v10679_v40 = vpop.f32.mrb[120].mxu1 }
0x3f55   :  { %10684 = vrot.lane.b32.xlu0 %v10679_v40, %s13777_s13  ;;  %v12863_v11 = vpop.f32.mrb[121].mxu1 }
0x3faf   :  { %v9665_v3 = vpop.permute.xlu1 %9664 }
0x3fb0   :  { %9667 = vst.msk [vmem:[#allocation2] sm:$0xff] %vm648_vm4, %v9665_v3 }
0x3fb3   :  { %v9836_v41 = vpop.permute.xlu0 %9835 }
0x3fb4   :  { %9838 = vst.msk [vmem:[#allocation2] sm:$0xff] %vm820_vm5, %v9836_v41 }
0x3fb7   :  { %v10007_v27 = vpop.permute.xlu0 %10006 }
0x3fb8   :  { %10009 = vst.msk [vmem:[#allocation2] sm:$0xff] %vm992_vm6, %v10007_v27 }
0x3fbf   :  { %v10343_v4 = vpop.permute.xlu1 %10342  ;;  %v10688_v42 = vld [vmem:[#allocation2] sm:$0xff] }
0x3fc0   :  { %10345 = vst.msk [vmem:[#allocation2 + $0x8] sm:$0xff] %vm648_vm4, %v10343_v4  ;;  %12880 = vmatprep.mubr.msk.f32.mxu0 %vm228_vm0, %v10688_v42  ;;  %v11598_v4 = vld [vmem:[%s15529_s26 + $0x1] ss:$0 sm:$0xff] }
0x3fc3   :  { %v10514_v43 = vpop.permute.xlu1 %10513 }
0x3fc4   :  { %10516 = vst.msk [vmem:[#allocation2 + $0x8] sm:$0xff] %vm820_vm5, %v10514_v43 }
0x3fc7   :  { %v10685_v24 = vpop.permute.xlu0 %10684 }
0x3fc8   :  { %10687 = vst.msk [vmem:[#allocation2 + $0x8] sm:$0xff] %vm992_vm6, %v10685_v24 }
0x3fcf   :  { %v10689_v39 = vld [vmem:[#allocation2 + $0x8] sm:$0xff] }
0x3fd0   :  { %12881 = vmatmul.mubr.msk.f32.vlgmr.msra.gmra.mrb[116].mxu0 %vm228_vm0, %v10689_v39  ;;  %v11599_v39 = vld [vmem:[%s15530_s5 + $0x1] ss:$0 sm:$0xff] }
0x3fd1   :  { %13343 = vmatpush3.bf16.msra.mxu0 %v13340_v16 }
0x3fd2   :  { %13345 = vmatprep.subr.bf16.mxu0 %v13344_v19 }
0x3fd5   :  { %13347 = vmatpush3.bf16.msra.mxu0 %v13344_v19 }
0x3fd6   :  { %13349 = vmatprep.subr.bf16.mxu0 %v13348_v58 }
0x3fd9   :  { %13351 = vmatpush3.bf16.msra.mxu0 %v13348_v58 }
0x3fda   :  { %13353 = vmatprep.subr.bf16.mxu0 %v13352_v23 }
0x3fdd   :  { %13355 = vmatpush3.bf16.msra.mxu0 %v13352_v23 }
0x3fde   :  { %13357 = vmatprep.subr.bf16.mxu0 %v13356_v25 }
0x3fe1   :  { %13359 = vmatpush3.bf16.msra.mxu0 %v13356_v25 }
0x3fe2   :  { %13361 = vmatprep.subr.bf16.mxu0 %v13360_v33 }
0x3fe5   :  { %13363 = vmatpush3.bf16.msra.mxu0 %v13360_v33 }
0x3fe6   :  { %13365 = vmatprep.subr.bf16.mxu0 %v13364_v38 }
0x3fe9   :  { %13367 = vmatpush3.bf16.msra.mxu0 %v13364_v38 }
0x40a3   :  { %v12882_v45 = vpop.f32.mrb[116].mxu0 }
0x40a4   :  { %v10785_v34 = vadd.f32 %v12882_v45, %v11593_v44  ;;  %v10779_v47 = vpop.f32.mrb[117].mxu0 }
0x40a5   :  { %v10780_v48 = vadd.f32 %v11593_v44, %v10779_v47 }
0x40a6   :  { %v10789_v49 = vadd.f32 %v10785_v34, %v15229_v31 }
0x40a7   :  { %v10788_v51 = vadd.f32 %v10780_v48, %v15227_v7  ;;  %v11625_v48 = vld [vmem:[%s15528_s23 + $0xf0] sm:$0xff] }
0x40a8   :  { %v10797_v52 = vsel %vm228_vm0, %v10789_v49, 0.0 }
0x40a9   :  { %10798 = vadd.xlane.f32.xlu0 %v10797_v52  ;;  %v10794_v35 = vsel %vm228_vm0, %v10788_v51, 0.0  ;;  %v11608_v52 = vld [vmem:[#allocation3 + $0x1] ss:$0 sm:$0xff] }
0x40aa   :  { %10795 = vadd.xlane.f32.xlu1 %v10794_v35 }
0x4136   :  { %v10799_v53 = vpop.xlane.xlu0 %10798 }
0x4137   :  { %v10801_v6 = vmul.f32 0.015625, %v10799_v53  ;;  %v10796_v54 = vpop.xlane.xlu1 %10795 }
0x4138   :  { %v10800_v18 = vmul.f32 0.015625, %v10796_v54 }
0x4139   :  { %v15399_v56 = vsub.f32 %v10789_v49, %v10801_v6  ;;  %v11626_v49 = vld [vmem:[%s15528_s23 + $0xf8] sm:$0xff] }
0x413a   :  { %v15401_v46 = vsub.f32 %v10788_v51, %v10800_v18  ;;  %v13368_v51 = vpack.c.bf16 %v11626_v49, %v11625_v48  ;;  %v11133_v48 = vld [vmem:[%s13986_s9 + $0x28] sm:$0xff] }
0x413b   :  { %v10805_v7 = vmul.f32 %v15399_v56, %v15399_v56 }
0x413c   :  { %v10804_v31 = vmul.f32 %v15401_v46, %v15401_v46  ;;  %13369 = vmatprep.subr.bf16.mxu0 %v13368_v51 }
0x413d   :  { %v10809_v57 = vsel %vm228_vm0, %v10805_v7, 0.0  ;;  %13371 = vmatpush3.bf16.msra.mxu0 %v13368_v51  ;;  %v11134_v51 = vld [vmem:[%s13986_s9 + $0x30] sm:$0xff] }
0x413e   :  { %10810 = vadd.xlane.f32.xlu1 %v10809_v57  ;;  %v10806_v5 = vsel %vm228_vm0, %v10804_v31, 0.0 }
0x413f   :  { %10807 = vadd.xlane.f32.xlu0 %v10806_v5 }
0x41cb   :  { %v10811_v37 = vpop.xlane.xlu1 %10810 }
0x41cc   :  { %v10813_v30 = vmul.f32 0.015625, %v10811_v37  ;;  %v10808_v40 = vpop.xlane.xlu0 %10807 }
0x41cd   :  { %v10812_v11 = vmul.f32 0.015625, %v10808_v40 }
0x41ce   :  { %v10815_v3 = vadd.f32 1e-05, %v10813_v30 }
0x41cf   :  { %v10814_v41 = vadd.f32 1e-05, %v10812_v11 }
0x41d0   :  { %13669 = vrsqrt.f32 %v10815_v3 }
0x41d1   :  { %13671 = vrsqrt.f32 %v10814_v41 }
0x41da   :  { %v13670_v27 = vpop.eup %13669 }
0x41db   :  { %v13672_v42 = vpop.eup %13671  ;;  %v10819_v43 = vmul.f32 %v13670_v27, %v15399_v56 }
0x41dc   :  { %v10818_v24 = vmul.f32 %v13672_v42, %v15401_v46  ;;  %v11627_v46 = vld [vmem:[#allocation5 + $0x1] ss:$0 sm:$0xff] }
0x41dd   :  { %v10827_v44 = vmul.f32 %v11598_v4, %v10819_v43  ;;  %v11128_v43 = vld [vmem:[%s13986_s9] sm:$0xff] }
0x41de   :  { %v10826_v45 = vmul.f32 %v11598_v4, %v10818_v24  ;;  %v11129_v24 = vld [vmem:[%s13986_s9 + $0x8] sm:$0xff] }
0x41df   :  { %v10835_v47 = vadd.f32 %v11599_v39, %v10827_v44  ;;  %v11130_v44 = vld [vmem:[%s13986_s9 + $0x10] sm:$0xff] }
0x41e0   :  { %v10834_v34 = vadd.f32 %v11599_v39, %v10826_v45  ;;  %v13372_v39 = vpack.c.bf16 %v11129_v24, %v11128_v43  ;;  %v11131_v45 = vld [vmem:[%s13986_s9 + $0x18] sm:$0xff] }
0x41e2   :  { %12899 = vmatprep.mubr.msk.f32.mxu1 %vm228_vm0, %v10834_v34  ;;  %13373 = vmatprep.subr.bf16.mxu1 %v13372_v39 }
0x41e3   :  { %12900 = vmatmul.mubr.msk.f32.vlgmr.msra.gmra.mrb[122].mxu1 %vm228_vm0, %v10835_v47 }
0x41e4   :  { %13375 = vmatpush3.bf16.msra.mxu1 %v13372_v39 }
0x42b6   :  { %v12901_v35 = vpop.f32.mrb[122].mxu1 }
0x42b7   :  { %v10931_v53 = vadd.f32 %v12901_v35, %v11608_v52  ;;  %v10925_v6 = vpop.f32.mrb[123].mxu1 }
0x42b8   :  { %v10926_v54 = vadd.f32 %v11608_v52, %v10925_v6  ;;  %v11135_v52 = vld [vmem:[%s13986_s9 + $0x38] sm:$0xff] }
0x42b9   :  { %v10935_v56 = vmax.f32 %v10931_v53, 0.0  ;;  %v13384_v35 = vpack.c.bf16 %v11135_v52, %v11134_v51 }
0x42ba   :  { %v10934_v18 = vmax.f32 %v10926_v54, 0.0 }
0x42bc   :  { %12934 = vmatprep.mubr.f32.mxu0 %v10934_v18 }
0x42bd   :  { %12935 = vmatmul.mubr.f32.vlgmr.msra.gmra.mrb[118].mxu0 %v10935_v56 }
0x4390   :  { %v12936_v7 = vpop.f32.mrb[118].mxu0 }
0x4391   :  { %v11033_v31 = vadd.f32 %v12936_v7, %v11627_v46  ;;  %v11027_v57 = vpop.f32.mrb[119].mxu0 }
0x4392   :  { %v11028_v5 = vadd.f32 %v11627_v46, %v11027_v57 }
0x4393   :  { %v11037_v59 = vadd.f32 %v11033_v31, %v10835_v47  ;;  %v11132_v47 = vld [vmem:[%s13986_s9 + $0x20] sm:$0xff] }
0x4394   :  { %v11036_v62 = vadd.f32 %v11028_v5, %v10834_v34  ;;  %v13376_v34 = vpack.c.bf16 %v11131_v45, %v11130_v44  ;;  %v13380_v49 = vpack.c.bf16 %v11133_v48, %v11132_v47  ;;  %v11632_v31 = vld [vmem:[%s15533_s0] ss:$0 sm:$0xff] }
0x4395   :  { %v11045_v55 = vsel %vm228_vm0, %v11037_v59, 0.0 }
0x4396   :  { %11046 = vadd.xlane.f32.xlu1 %v11045_v55  ;;  %v11042_v2 = vsel %vm228_vm0, %v11036_v62, 0.0  ;;  %13377 = vmatprep.subr.bf16.mxu1 %v13376_v34 }
0x4397   :  { %11043 = vadd.xlane.f32.xlu0 %v11042_v2  ;;  %13379 = vmatpush3.bf16.msra.mxu1 %v13376_v34 }
0x4398   :  { %13381 = vmatprep.subr.bf16.mxu1 %v13380_v49 }
0x439b   :  { %13383 = vmatpush3.bf16.msra.mxu1 %v13380_v49 }
0x439c   :  { %13385 = vmatprep.subr.bf16.mxu1 %v13384_v35 }
0x439f   :  { %13387 = vmatpush3.bf16.msra.mxu1 %v13384_v35 }
0x4423   :  { %v11047_v50 = vpop.xlane.xlu1 %11046 }
0x4424   :  { %v11049_v63 = vmul.f32 0.015625, %v11047_v50  ;;  %v11044_v1 = vpop.xlane.xlu0 %11043 }
0x4425   :  { %v11048_v8 = vmul.f32 0.015625, %v11044_v1  ;;  %v11634_v1 = vld [vmem:[%s13991_s12] ss:$0 sm:$0xff] }
0x4426   :  { %v11051_v61 = vsub.f32 %v11037_v59, %v11049_v63 }
0x4427   :  { %v11050_v32 = vsub.f32 %v11036_v62, %v11048_v8  ;;  %v11633_v62 = vld [vmem:[%s13981_s20] ss:$0 sm:$0xff] }
0x4428   :  { %v11053_v10 = vmul.f32 %v11051_v61, %v11051_v61 }
0x4429   :  { %v11052_v12 = vmul.f32 %v11050_v32, %v11050_v32 }
0x442a   :  { %v11057_v13 = vsel %vm228_vm0, %v11053_v10, 0.0 }
0x442b   :  { %11058 = vadd.xlane.f32.xlu1 %v11057_v13  ;;  %v11054_v14 = vsel %vm228_vm0, %v11052_v12, 0.0 }
0x442c   :  { %11055 = vadd.xlane.f32.xlu0 %v11054_v14 }
0x44b8   :  { %v11059_v15 = vpop.xlane.xlu1 %11058 }
0x44b9   :  { %v11061_v16 = vmul.f32 0.015625, %v11059_v15  ;;  %v11056_v17 = vpop.xlane.xlu0 %11055 }
0x44ba   :  { %v11060_v19 = vmul.f32 0.015625, %v11056_v17 }
0x44bb   :  { %v11063_v0 = vadd.f32 1e-05, %v11061_v16 }
0x44bc   :  { %v11062_v20 = vadd.f32 1e-05, %v11060_v19 }
0x44bd   :  { %13673 = vrsqrt.f32 %v11063_v0 }
0x44be   :  { %13675 = vrsqrt.f32 %v11062_v20 }
0x44c7   :  { %v13674_v58 = vpop.eup %13673 }
0x44c8   :  { %v13676_v28 = vpop.eup %13675  ;;  %v11067_v23 = vmul.f32 %v13674_v58, %v11051_v61 }
0x44c9   :  { %v11066_v29 = vmul.f32 %v13676_v28, %v11050_v32 }
0x44ca   :  { %v11075_v25 = vmul.f32 %v11630_v22, %v11067_v23 }
0x44cb   :  { %v11074_v9 = vmul.f32 %v11630_v22, %v11066_v29 }
0x44cc   :  { %v11083_v21 = vadd.f32 %v11631_v26, %v11075_v25 }
0x44cd   :  { %v11082_v33 = vadd.f32 %v11631_v26, %v11074_v9 }
0x44ce   :  { %v11089_v60 = vsel %vm228_vm0, %v11083_v21, 0.0 }
0x44cf   :  { %11090 = vadd.xlane.f32.xlu1 %v11089_v60  ;;  %v11086_v36 = vsel %vm228_vm0, %v11082_v33, 0.0 }
0x44d0   :  { %11087 = vadd.xlane.f32.xlu0 %v11086_v36 }
0x455c   :  { %v11091_v38 = vpop.xlane.xlu1 %11090 }
0x455d   :  { %v11093_v37 = vmul.f32 0.015625, %v11091_v38  ;;  %v11088_v30 = vpop.xlane.xlu0 %11087 }
0x455e   :  { %v11092_v40 = vmul.f32 0.015625, %v11088_v30 }
0x455f   :  { %v11095_v11 = vsub.f32 %v11083_v21, %v11093_v37 }
0x4560   :  { %v11094_v3 = vsub.f32 %v11082_v33, %v11092_v40 }
0x4561   :  { %v11097_v41 = vmul.f32 %v11095_v11, %v11095_v11 }
0x4562   :  { %v11096_v27 = vmul.f32 %v11094_v3, %v11094_v3 }
0x4563   :  { %v11101_v4 = vsel %vm228_vm0, %v11097_v41, 0.0 }
0x4564   :  { %11102 = vadd.xlane.f32.xlu1 %v11101_v4  ;;  %v11098_v42 = vsel %vm228_vm0, %v11096_v27, 0.0 }
0x4565   :  { %11099 = vadd.xlane.f32.xlu0 %v11098_v42 }
0x45f1   :  { %v11103_v53 = vpop.xlane.xlu1 %11102 }
0x45f2   :  { %v11105_v6 = vmul.f32 0.015625, %v11103_v53  ;;  %v11100_v54 = vpop.xlane.xlu0 %11099 }
0x45f3   :  { %v11104_v18 = vmul.f32 0.015625, %v11100_v54 }
0x45f4   :  { %v11107_v56 = vadd.f32 1e-05, %v11105_v6 }
0x45f5   :  { %v11106_v46 = vadd.f32 1e-05, %v11104_v18 }
0x45f6   :  { %13677 = vrsqrt.f32 %v11107_v56 }
0x45f7   :  { %13679 = vrsqrt.f32 %v11106_v46 }
0x4600   :  { %v13678_v7 = vpop.eup %13677 }
0x4601   :  { %v13680_v57 = vpop.eup %13679  ;;  %v11111_v5 = vmul.f32 %v13678_v7, %v11095_v11 }
0x4602   :  { %v11110_v59 = vmul.f32 %v13680_v57, %v11094_v3 }
0x4603   :  { %v11119_v55 = vmul.f32 %v11632_v31, %v11111_v5 }
0x4604   :  { %v11118_v2 = vmul.f32 %v11632_v31, %v11110_v59 }
0x4605   :  { %v11127_v63 = vadd.f32 %v11633_v62, %v11119_v55 }
0x4606   :  { %v11126_v50 = vadd.f32 %v11633_v62, %v11118_v2 }
0x4608   :  { %12953 = vmatprep.mubr.msk.f32.mxu1 %vm228_vm0, %v11126_v50 }
0x4609   :  { %12954 = vmatmul.mubr.msk.f32.vlgmr.msra.gmra.mrb[124].mxu1 %vm228_vm0, %v11127_v63 }
0x46dc   :  { %v12955_v8 = vpop.f32.mrb[124].mxu1 }
0x46dd   :  { %v11221_v61 = vadd.f32 %v12955_v8, %v11634_v1  ;;  %v11215_v32 = vpop.f32.mrb[125].mxu1 }
0x46de   :  { %v11216_v10 = vadd.f32 %v11634_v1, %v11215_v32 }
0x46df   :  { %11225 = vst [vmem:[%s13996_s4 + $0x8] sm:$0xff] %v11221_v61 }
0x46e0   :  { %11224 = vst [vmem:[%s13996_s4] sm:$0xff] %v11216_v10 }
0x46e1   :  { %11230 = vsyncpa [#allocation4], 1 }
0x46e2   :  { %11231 = vsyncpa [#allocation6], 1 }

</bundles_post_ra>
